<compile_context>
chip_gen: v5e
topology: v5e:2x2
jax: 0.10.0
libtpu: 0.0.40
codegen_flags: <defaults>
</compile_context>

<pallas_src>
import functools

import jax
import jax.numpy as jnp
from jax.experimental import pallas as pl
from jax.experimental.pallas import tpu as pltpu

C_IN = 384
C_MID = 512
F1 = 256
F2 = 64
F_OUT = 3
EPS = 1e-5

TN_MAX = 256  # point-dim tile (lane axis); x block = TB*384*TN*4 B (6 MiB @ 16x256)


def _round_up(x, m):
    return (x + m - 1) // m * m


# ---------------------------------------------------------------------------
# Fused kernel: conv(1x1, BN-scale folded) -> running max -> BN shift+LeakyReLU
#               -> FC head (all in the last-tile epilogue)
# ---------------------------------------------------------------------------
def fused_mlp_kernel(x_ref, wc_ref, t0_ref, w1_ref, t1_ref, w2_ref, t2_ref,
                     w3_ref, b3_ref, o_ref, acc_ref, *, n_valid, tn, needs_mask):
    # x_ref  : (TB, C_IN, TN) f32/bf16 -- NCL slab straight from HBM
    # wc_ref : (C_IN, C_MID) bf16      -- conv weight with BN scale folded in
    # t0_ref : (1, C_MID) f32          -- folded BN shift (applied post-max)
    # w1_ref : (C_MID, F1) bf16, t1_ref: (1, F1) f32
    # w2_ref : (F1, F2)    bf16, t2_ref: (1, F2) f32
    # w3_ref : (F2, F_OUT) f32,  b3_ref: (1, F_OUT) f32
    # o_ref  : (TB, F_OUT) f32
    # acc_ref: (TB, C_MID) f32 VMEM scratch (running max of RAW conv output)
    k = pl.program_id(1)
    nk = pl.num_programs(1)
    tb = x_ref.shape[0]

    @pl.when(k == 0)
    def _init():
        acc_ref[...] = jnp.full(acc_ref.shape, -jnp.inf, acc_ref.dtype)

    # --- stage 1: pointwise conv, consumed in NCL layout -------------------
    # Contract the channel axis (lhs dim 0) directly: no XLU transposes, no
    # concatenate copy.  bf16 inputs, f32 accumulation.
    hbs = []
    for b in range(tb):
        xb = x_ref[b].astype(jnp.bfloat16)               # (C_IN, TN)
        hbs.append(jax.lax.dot_general(
            xb, wc_ref[...],
            dimension_numbers=(((0,), (0,)), ((), ())),
            preferred_element_type=jnp.float32))          # (TN, C_MID)

    def _tile_max(mask_pad):
        rows = []
        if mask_pad:
            n_idx = jax.lax.broadcasted_iota(jnp.int32, (tn, 1), 0) + k * tn
            valid = n_idx < n_valid
        for hb in hbs:
            if mask_pad:
                # Mask the RAW conv output (padded columns are exactly 0 there
                # and could otherwise win the max).
                hb = jnp.where(valid, hb, -jnp.inf)
            rows.append(jnp.max(hb, axis=0, keepdims=True))
        return jnp.concatenate(rows, axis=0)              # (TB, C_MID), tiny

    if needs_mask:
        # Only the final point tile contains padded columns; all other tiles
        # skip the compare/select entirely.
        @pl.when(k == nk - 1)
        def _masked():
            acc_ref[...] = jnp.maximum(acc_ref[...], _tile_max(True))

        @pl.when(k < nk - 1)
        def _unmasked():
            acc_ref[...] = jnp.maximum(acc_ref[...], _tile_max(False))
    else:
        acc_ref[...] = jnp.maximum(acc_ref[...], _tile_max(False))

    # --- stage 2: epilogue on the last point tile only ----------------------
    # BN shift + LeakyReLU hoisted here: shift is per-channel (constant over
    # points) and LeakyReLU is monotone increasing, so both commute with max.
    @pl.when(k == nk - 1)
    def _head():
        pooled = acc_ref[...] + t0_ref[...]                       # (TB, 512)
        pooled = jnp.where(pooled >= 0.0, pooled, 0.2 * pooled)   # LeakyReLU(0.2)
        a = jnp.dot(pooled.astype(jnp.bfloat16), w1_ref[...],
                    preferred_element_type=jnp.float32)
        a = jnp.maximum(a + t1_ref[...], 0.0)                     # ReLU(BN(fc1_1))
        c = jnp.dot(a.astype(jnp.bfloat16), w2_ref[...],
                    preferred_element_type=jnp.float32)
        c = jnp.maximum(c + t2_ref[...], 0.0)                     # ReLU(BN(fc1_2))
        d = jnp.dot(c, w3_ref[...], preferred_element_type=jnp.float32)
        o_ref[...] = jnp.tanh(d + b3_ref[...])                    # (TB, 3)


def _fold_bn_into(w, bias, gamma, beta, mean, var):
    """Fold inference BatchNorm into the preceding linear layer.

    y = ((x @ w + bias) - mean) * gamma/sqrt(var+eps) + beta
      =  x @ (w * scale) + shift
    """
    scale = gamma * jax.lax.rsqrt(var + EPS)
    return w * scale[None, :], ((bias - mean) * scale + beta)[None, :]


@jax.jit
def mlp_forward(x_ncl, params):
    """x_ncl: (B, 384, N) float32 (or bf16) in PyTorch NCL layout."""
    B, C, N = x_ncl.shape
    assert C == C_IN
    # Accept bf16 x as-is (halves HBM traffic); otherwise keep f32.  No
    # wrapper-side down-cast (that would add an HBM round trip).
    x = x_ncl if x_ncl.dtype == jnp.bfloat16 else x_ncl.astype(jnp.float32)

    # Batch tile: prefer >=2 batch tiles whenever possible so v7x's two
    # TensorCores both get work via the "parallel" grid axis.
    tb = 8 if _round_up(B, 8) <= 16 else 16
    # Point tile: pad to a multiple of 128 so DMA rows / vector lanes stay
    # dense even for tiny N; the padding mask keeps the max correct.
    tn = TN_MAX if N >= TN_MAX else _round_up(N, 128)
    b_pad = _round_up(B, tb)
    n_pad = _round_up(N, tn)
    if (b_pad != B) or (n_pad != N):
        x = jnp.pad(x, ((0, b_pad - B), (0, 0), (0, n_pad - N)))
    needs_mask = n_pad != N   # padded point columns must not win the max

    # Fold BN into scale/shift; cast the large matmul weights to bf16.
    wc, t0 = _fold_bn_into(params["conv_w"], params["conv_b"], params["bn0_g"],
                           params["bn0_b"], params["bn0_m"], params["bn0_v"])
    w1, t1 = _fold_bn_into(params["fc1_w"], params["fc1_b"], params["bn1_g"],
                           params["bn1_b"], params["bn1_m"], params["bn1_v"])
    w2, t2 = _fold_bn_into(params["fc2_w"], params["fc2_b"], params["bn2_g"],
                           params["bn2_b"], params["bn2_m"], params["bn2_v"])
    wc = wc.astype(jnp.bfloat16)
    w1 = w1.astype(jnp.bfloat16)
    w2 = w2.astype(jnp.bfloat16)
    w3 = params["fc3_w"].astype(jnp.float32)
    b3 = params["fc3_b"][None, :].astype(jnp.float32)

    grid = (b_pad // tb, n_pad // tn)
    kernel = functools.partial(fused_mlp_kernel, n_valid=N, tn=tn,
                               needs_mask=needs_mask)

    out = pl.pallas_call(
        kernel,
        out_shape=jax.ShapeDtypeStruct((b_pad, F_OUT), jnp.float32),
        grid=grid,
        in_specs=[
            pl.BlockSpec((tb, C_IN, tn), lambda i, k: (i, 0, k)),   # x (streamed)
            pl.BlockSpec((C_IN, C_MID), lambda i, k: (0, 0)),       # conv w (resident)
            pl.BlockSpec((1, C_MID), lambda i, k: (0, 0)),
            pl.BlockSpec((C_MID, F1), lambda i, k: (0, 0)),
            pl.BlockSpec((1, F1), lambda i, k: (0, 0)),
            pl.BlockSpec((F1, F2), lambda i, k: (0, 0)),
            pl.BlockSpec((1, F2), lambda i, k: (0, 0)),
            pl.BlockSpec((F2, F_OUT), lambda i, k: (0, 0)),
            pl.BlockSpec((1, F_OUT), lambda i, k: (0, 0)),
        ],
        out_specs=pl.BlockSpec((tb, F_OUT), lambda i, k: (i, 0)),
        scratch_shapes=[pltpu.VMEM((tb, C_MID), jnp.float32)],
        compiler_params=pltpu.CompilerParams(
            dimension_semantics=("parallel", "arbitrary"),
            # ~25 MiB used at TB=16/TN=256; 48 MiB is safe on v7x (64 MiB
            # physical) and generous headroom on v5e/v6e (128 MiB).
            vmem_limit_bytes=48 * 1024 * 1024),
    )(x, wc, t0, w1, t1, w2, t2, w3, b3)
    return out[:B]


# ---------------------------------------------------------------------------
# Pure-JAX reference (f32) for correctness checking
# ---------------------------------------------------------------------------
def mlp_reference(x_ncl, params):
    def bn(h, g, b, m, v):
        return (h - m) * (g / jnp.sqrt(v + EPS)) + b

    x = jnp.transpose(x_ncl, (0, 2, 1)).astype(jnp.float32)          # (B, N, C_IN)
    h = jnp.einsum("bnc,cf->bnf", x, params["conv_w"]) + params["conv_b"]
    h = bn(h, params["bn0_g"], params["bn0_b"], params["bn0_m"], params["bn0_v"])
    h = jnp.where(h >= 0.0, h, 0.2 * h)
    h = jnp.max(h, axis=1)                                           # (B, 512)
    a = h @ params["fc1_w"] + params["fc1_b"]
    a = jnp.maximum(bn(a, params["bn1_g"], params["bn1_b"],
                       params["bn1_m"], params["bn1_v"]), 0.0)
    c = a @ params["fc2_w"] + params["fc2_b"]
    c = jnp.maximum(bn(c, params["bn2_g"], params["bn2_b"],
                       params["bn2_m"], params["bn2_v"]), 0.0)
    return jnp.tanh(c @ params["fc3_w"] + params["fc3_b"])


def init_params(key):
    ks = jax.random.split(key, 16)

    def w(k, shape, fan_in):
        return jax.random.normal(k, shape, jnp.float32) / jnp.sqrt(fan_in)

    return {
        # Conv1d(384, 512, 1): weight stored transposed as (C_IN, C_MID)
        "conv_w": w(ks[0], (C_IN, C_MID), C_IN),
        "conv_b": 0.01 * jax.random.normal(ks[1], (C_MID,), jnp.float32),
        "bn0_g": 1.0 + 0.1 * jax.random.normal(ks[2], (C_MID,), jnp.float32),
        "bn0_b": 0.05 * jax.random.normal(ks[3], (C_MID,), jnp.float32),
        "bn0_m": 0.02 * jax.random.normal(ks[4], (C_MID,), jnp.float32),
        "bn0_v": 1.0 + 0.1 * jax.random.uniform(ks[5], (C_MID,), jnp.float32),
        # fc1_1: Linear(512, 256) stored as (512, 256)
        "fc1_w": w(ks[6], (C_MID, F1), C_MID),
        "fc1_b": 0.01 * jax.random.normal(ks[7], (F1,), jnp.float32),
        "bn1_g": 1.0 + 0.1 * jax.random.normal(ks[8], (F1,), jnp.float32),
        "bn1_b": 0.05 * jax.random.normal(ks[9], (F1,), jnp.float32),
        "bn1_m": 0.02 * jax.random.normal(ks[10], (F1,), jnp.float32),
        "bn1_v": 1.0 + 0.1 * jax.random.uniform(ks[11], (F1,), jnp.float32),
        # fc1_2: Linear(256, 64) stored as (256, 64)
        "fc2_w": w(ks[12], (F1, F2), F1),
        "fc2_b": 0.01 * jax.random.normal(ks[13], (F2,), jnp.float32),
        "bn2_g": jnp.linspace(0.9, 1.1, F2, dtype=jnp.float32),
        "bn2_b": jnp.linspace(-0.05, 0.05, F2, dtype=jnp.float32),
        "bn2_m": jnp.zeros((F2,), jnp.float32),
        "bn2_v": jnp.ones((F2,), jnp.float32),
        # fc1_3: Linear(64, 3) stored as (64, 3)
        "fc3_w": w(ks[14], (F2, F_OUT), F2),
        "fc3_b": 0.01 * jax.random.normal(ks[15], (F_OUT,), jnp.float32),
    }


if __name__ == "__main__":
    key = jax.random.PRNGKey(0)
    pkey, xkey = jax.random.split(key)
    params = init_params(pkey)

    B, N = 2, 8                                    # small demo: batch=2, 8 points
    x = jax.random.normal(xkey, (B, C_IN, N), jnp.float32)   # NCL like PyTorch

    out = jax.block_until_ready(mlp_forward(x, params))
    assert out.shape == (B, F_OUT), out.shape
    assert bool(jnp.all(jnp.isfinite(out)))

    ref = mlp_reference(x, params)
    max_err = float(jnp.max(jnp.abs(out - ref)))
    assert max_err < 8e-2, f"mismatch vs reference: {max_err}"
    print("KERNEL_OK")
</pallas_src>

<mosaic_0001>
module attributes {stable_mosaic.version = 11 : i64} {
  func.func @fused_mlp_kernel(%arg0: i32, %arg1: i32, %arg2: memref<8x384x128xf32, #tpu.memory_space<vmem>>, %arg3: memref<384x512xbf16, #tpu.memory_space<vmem>>, %arg4: memref<1x512xf32, #tpu.memory_space<vmem>>, %arg5: memref<512x256xbf16, #tpu.memory_space<vmem>>, %arg6: memref<1x256xf32, #tpu.memory_space<vmem>>, %arg7: memref<256x64xbf16, #tpu.memory_space<vmem>>, %arg8: memref<1x64xf32, #tpu.memory_space<vmem>>, %arg9: memref<64x3xf32, #tpu.memory_space<vmem>>, %arg10: memref<1x3xf32, #tpu.memory_space<vmem>>, %arg11: memref<8x3xf32, #tpu.memory_space<vmem>>, %arg12: memref<8x512xf32, #tpu.memory_space<vmem>>) attributes {dimension_semantics = [#tpu.dimension_semantics<parallel>, #tpu.dimension_semantics<arbitrary>], iteration_bounds = array<i64: 1, 1>, scalar_prefetch = 0 : i64, scratch_operands = 1 : i64, tpu.core_type = #tpu.core_type<tc>, window_params = [{transform_indices = @transform_0, window_bounds = array<i64: 8, 384, 128>}, {pipeline_mode = #tpu.pipeline_mode<synchronous>, transform_indices = @transform_1, window_bounds = array<i64: 384, 512>}, {pipeline_mode = #tpu.pipeline_mode<synchronous>, transform_indices = @transform_2, window_bounds = array<i64: 1, 512>}, {pipeline_mode = #tpu.pipeline_mode<synchronous>, transform_indices = @transform_3, window_bounds = array<i64: 512, 256>}, {pipeline_mode = #tpu.pipeline_mode<synchronous>, transform_indices = @transform_4, window_bounds = array<i64: 1, 256>}, {pipeline_mode = #tpu.pipeline_mode<synchronous>, transform_indices = @transform_5, window_bounds = array<i64: 256, 64>}, {pipeline_mode = #tpu.pipeline_mode<synchronous>, transform_indices = @transform_6, window_bounds = array<i64: 1, 64>}, {pipeline_mode = #tpu.pipeline_mode<synchronous>, transform_indices = @transform_7, window_bounds = array<i64: 64, 3>}, {pipeline_mode = #tpu.pipeline_mode<synchronous>, transform_indices = @transform_8, window_bounds = array<i64: 1, 3>}, {transform_indices = @transform_9, window_bounds = array<i64: 8, 3>}]} {
    %c0_i32 = arith.constant 0 : i32
    %0 = arith.cmpi eq, %arg1, %c0_i32 : i32
    %1 = arith.extui %0 : i1 to i32
    %c0_i32_0 = arith.constant 0 : i32
    %2 = arith.cmpi ne, %1, %c0_i32_0 : i32
    scf.if %2 {
      %cst_46 = arith.constant 0xFF800000 : f32
      %52 = vector.broadcast %cst_46 : f32 to vector<8x512xf32>
      %c0_47 = arith.constant 0 : index
      %c0_48 = arith.constant 0 : index
      %53 = vector.load %arg12[%c0_47, %c0_48] : memref<8x512xf32, #tpu.memory_space<vmem>>, vector<8x512xf32>
      tpu.vector_store %arg12[%c0_47, %c0_48], %52 {strides = array<i32>} : memref<8x512xf32, #tpu.memory_space<vmem>>, vector<8x512xf32>,
    } else {
    }
    %c0 = arith.constant 0 : index
    %c0_1 = arith.constant 0 : index
    %c0_2 = arith.constant 0 : index
    %3 = vector.load %arg2[%c0, %c0_1, %c0_2] : memref<8x384x128xf32, #tpu.memory_space<vmem>>, vector<1x384x128xf32>
    %4 = vector.shape_cast %3 : vector<1x384x128xf32> to vector<384x128xf32>
    %5 = arith.truncf %4 : vector<384x128xf32> to vector<384x128xbf16>
    %c0_3 = arith.constant 0 : index
    %c0_4 = arith.constant 0 : index
    %6 = vector.load %arg3[%c0_3, %c0_4] : memref<384x512xbf16, #tpu.memory_space<vmem>>, vector<384x512xbf16>
    %cst = arith.constant dense<0.000000e+00> : vector<128x512xf32>
    %7 = tpu.matmul %5, %6, %cst {dimension_numbers = #tpu.dot_dimension_numbers<[0], [0], [1], [1], [0, 1, 1, 1], [], []>} : vector<384x128xbf16>, vector<384x512xbf16>, vector<128x512xf32> -> vector<128x512xf32>
    %c1 = arith.constant 1 : index
    %c0_5 = arith.constant 0 : index
    %c0_6 = arith.constant 0 : index
    %8 = vector.load %arg2[%c1, %c0_5, %c0_6] : memref<8x384x128xf32, #tpu.memory_space<vmem>>, vector<1x384x128xf32>
    %9 = vector.shape_cast %8 : vector<1x384x128xf32> to vector<384x128xf32>
    %10 = arith.truncf %9 : vector<384x128xf32> to vector<384x128xbf16>
    %c0_7 = arith.constant 0 : index
    %c0_8 = arith.constant 0 : index
    %11 = vector.load %arg3[%c0_7, %c0_8] : memref<384x512xbf16, #tpu.memory_space<vmem>>, vector<384x512xbf16>
    %cst_9 = arith.constant dense<0.000000e+00> : vector<128x512xf32>
    %12 = tpu.matmul %10, %11, %cst_9 {dimension_numbers = #tpu.dot_dimension_numbers<[0], [0], [1], [1], [0, 1, 1, 1], [], []>} : vector<384x128xbf16>, vector<384x512xbf16>, vector<128x512xf32> -> vector<128x512xf32>
    %c2 = arith.constant 2 : index
    %c0_10 = arith.constant 0 : index
    %c0_11 = arith.constant 0 : index
    %13 = vector.load %arg2[%c2, %c0_10, %c0_11] : memref<8x384x128xf32, #tpu.memory_space<vmem>>, vector<1x384x128xf32>
    %14 = vector.shape_cast %13 : vector<1x384x128xf32> to vector<384x128xf32>
    %15 = arith.truncf %14 : vector<384x128xf32> to vector<384x128xbf16>
    %c0_12 = arith.constant 0 : index
    %c0_13 = arith.constant 0 : index
    %16 = vector.load %arg3[%c0_12, %c0_13] : memref<384x512xbf16, #tpu.memory_space<vmem>>, vector<384x512xbf16>
    %cst_14 = arith.constant dense<0.000000e+00> : vector<128x512xf32>
    %17 = tpu.matmul %15, %16, %cst_14 {dimension_numbers = #tpu.dot_dimension_numbers<[0], [0], [1], [1], [0, 1, 1, 1], [], []>} : vector<384x128xbf16>, vector<384x512xbf16>, vector<128x512xf32> -> vector<128x512xf32>
    %c3 = arith.constant 3 : index
    %c0_15 = arith.constant 0 : index
    %c0_16 = arith.constant 0 : index
    %18 = vector.load %arg2[%c3, %c0_15, %c0_16] : memref<8x384x128xf32, #tpu.memory_space<vmem>>, vector<1x384x128xf32>
    %19 = vector.shape_cast %18 : vector<1x384x128xf32> to vector<384x128xf32>
    %20 = arith.truncf %19 : vector<384x128xf32> to vector<384x128xbf16>
    %c0_17 = arith.constant 0 : index
    %c0_18 = arith.constant 0 : index
    %21 = vector.load %arg3[%c0_17, %c0_18] : memref<384x512xbf16, #tpu.memory_space<vmem>>, vector<384x512xbf16>
    %cst_19 = arith.constant dense<0.000000e+00> : vector<128x512xf32>
    %22 = tpu.matmul %20, %21, %cst_19 {dimension_numbers = #tpu.dot_dimension_numbers<[0], [0], [1], [1], [0, 1, 1, 1], [], []>} : vector<384x128xbf16>, vector<384x512xbf16>, vector<128x512xf32> -> vector<128x512xf32>
    %c4 = arith.constant 4 : index
    %c0_20 = arith.constant 0 : index
    %c0_21 = arith.constant 0 : index
    %23 = vector.load %arg2[%c4, %c0_20, %c0_21] : memref<8x384x128xf32, #tpu.memory_space<vmem>>, vector<1x384x128xf32>
    %24 = vector.shape_cast %23 : vector<1x384x128xf32> to vector<384x128xf32>
    %25 = arith.truncf %24 : vector<384x128xf32> to vector<384x128xbf16>
    %c0_22 = arith.constant 0 : index
    %c0_23 = arith.constant 0 : index
    %26 = vector.load %arg3[%c0_22, %c0_23] : memref<384x512xbf16, #tpu.memory_space<vmem>>, vector<384x512xbf16>
    %cst_24 = arith.constant dense<0.000000e+00> : vector<128x512xf32>
    %27 = tpu.matmul %25, %26, %cst_24 {dimension_numbers = #tpu.dot_dimension_numbers<[0], [0], [1], [1], [0, 1, 1, 1], [], []>} : vector<384x128xbf16>, vector<384x512xbf16>, vector<128x512xf32> -> vector<128x512xf32>
    %c5 = arith.constant 5 : index
    %c0_25 = arith.constant 0 : index
    %c0_26 = arith.constant 0 : index
    %28 = vector.load %arg2[%c5, %c0_25, %c0_26] : memref<8x384x128xf32, #tpu.memory_space<vmem>>, vector<1x384x128xf32>
    %29 = vector.shape_cast %28 : vector<1x384x128xf32> to vector<384x128xf32>
    %30 = arith.truncf %29 : vector<384x128xf32> to vector<384x128xbf16>
    %c0_27 = arith.constant 0 : index
    %c0_28 = arith.constant 0 : index
    %31 = vector.load %arg3[%c0_27, %c0_28] : memref<384x512xbf16, #tpu.memory_space<vmem>>, vector<384x512xbf16>
    %cst_29 = arith.constant dense<0.000000e+00> : vector<128x512xf32>
    %32 = tpu.matmul %30, %31, %cst_29 {dimension_numbers = #tpu.dot_dimension_numbers<[0], [0], [1], [1], [0, 1, 1, 1], [], []>} : vector<384x128xbf16>, vector<384x512xbf16>, vector<128x512xf32> -> vector<128x512xf32>
    %c6 = arith.constant 6 : index
    %c0_30 = arith.constant 0 : index
    %c0_31 = arith.constant 0 : index
    %33 = vector.load %arg2[%c6, %c0_30, %c0_31] : memref<8x384x128xf32, #tpu.memory_space<vmem>>, vector<1x384x128xf32>
    %34 = vector.shape_cast %33 : vector<1x384x128xf32> to vector<384x128xf32>
    %35 = arith.truncf %34 : vector<384x128xf32> to vector<384x128xbf16>
    %c0_32 = arith.constant 0 : index
    %c0_33 = arith.constant 0 : index
    %36 = vector.load %arg3[%c0_32, %c0_33] : memref<384x512xbf16, #tpu.memory_space<vmem>>, vector<384x512xbf16>
    %cst_34 = arith.constant dense<0.000000e+00> : vector<128x512xf32>
    %37 = tpu.matmul %35, %36, %cst_34 {dimension_numbers = #tpu.dot_dimension_numbers<[0], [0], [1], [1], [0, 1, 1, 1], [], []>} : vector<384x128xbf16>, vector<384x512xbf16>, vector<128x512xf32> -> vector<128x512xf32>
    %c7 = arith.constant 7 : index
    %c0_35 = arith.constant 0 : index
    %c0_36 = arith.constant 0 : index
    %38 = vector.load %arg2[%c7, %c0_35, %c0_36] : memref<8x384x128xf32, #tpu.memory_space<vmem>>, vector<1x384x128xf32>
    %39 = vector.shape_cast %38 : vector<1x384x128xf32> to vector<384x128xf32>
    %40 = arith.truncf %39 : vector<384x128xf32> to vector<384x128xbf16>
    %c0_37 = arith.constant 0 : index
    %c0_38 = arith.constant 0 : index
    %41 = vector.load %arg3[%c0_37, %c0_38] : memref<384x512xbf16, #tpu.memory_space<vmem>>, vector<384x512xbf16>
    %cst_39 = arith.constant dense<0.000000e+00> : vector<128x512xf32>
    %42 = tpu.matmul %40, %41, %cst_39 {dimension_numbers = #tpu.dot_dimension_numbers<[0], [0], [1], [1], [0, 1, 1, 1], [], []>} : vector<384x128xbf16>, vector<384x512xbf16>, vector<128x512xf32> -> vector<128x512xf32>
    %c0_i32_40 = arith.constant 0 : i32
    %43 = arith.cmpi eq, %arg1, %c0_i32_40 : i32
    %44 = arith.extui %43 : i1 to i32
    %c0_i32_41 = arith.constant 0 : i32
    %45 = arith.cmpi ne, %44, %c0_i32_41 : i32
    scf.if %45 {
      %c0_46 = arith.constant 0 : index
      %c0_47 = arith.constant 0 : index
      %52 = vector.load %arg12[%c0_46, %c0_47] : memref<8x512xf32, #tpu.memory_space<vmem>>, vector<8x512xf32>
      %53 = tpu.iota {dimensions = array<i32: 0>} : vector<128x1xi32>
      %c128_i32 = arith.constant 128 : i32
      %54 = arith.muli %arg1, %c128_i32 : i32
      %55 = vector.broadcast %54 : i32 to vector<128x1xi32>
      %56 = arith.addi %53, %55 : vector<128x1xi32>
      %c8_i32 = arith.constant 8 : i32
      %57 = vector.broadcast %c8_i32 : i32 to vector<128x1xi32>
      %58 = arith.cmpi slt, %56, %57 : vector<128x1xi32>
      %cst_48 = arith.constant 0xFF800000 : f32
      %59 = vector.shape_cast %58 : vector<128x1xi1> to vector<128x1xi1>
      %60 = vector.broadcast %59 : vector<128x1xi1> to vector<128x512xi1>
      %61 = vector.broadcast %cst_48 : f32 to vector<128x512xf32>
      %62 = arith.select %60, %7, %61 : vector<128x512xi1>, vector<128x512xf32>
      %cst_49 = arith.constant dense<0xFF800000> : vector<512xf32>
      %63 = vector.multi_reduction <maximumf>, %62, %cst_49 [0] : vector<128x512xf32> to vector<512xf32>
      %64 = vector.shape_cast %63 : vector<512xf32> to vector<1x512xf32>
      %cst_50 = arith.constant 0xFF800000 : f32
      %65 = vector.shape_cast %58 : vector<128x1xi1> to vector<128x1xi1>
      %66 = vector.broadcast %65 : vector<128x1xi1> to vector<128x512xi1>
      %67 = vector.broadcast %cst_50 : f32 to vector<128x512xf32>
      %68 = arith.select %66, %12, %67 : vector<128x512xi1>, vector<128x512xf32>
      %cst_51 = arith.constant dense<0xFF800000> : vector<512xf32>
      %69 = vector.multi_reduction <maximumf>, %68, %cst_51 [0] : vector<128x512xf32> to vector<512xf32>
      %70 = vector.shape_cast %69 : vector<512xf32> to vector<1x512xf32>
      %cst_52 = arith.constant 0xFF800000 : f32
      %71 = vector.shape_cast %58 : vector<128x1xi1> to vector<128x1xi1>
      %72 = vector.broadcast %71 : vector<128x1xi1> to vector<128x512xi1>
      %73 = vector.broadcast %cst_52 : f32 to vector<128x512xf32>
      %74 = arith.select %72, %17, %73 : vector<128x512xi1>, vector<128x512xf32>
      %cst_53 = arith.constant dense<0xFF800000> : vector<512xf32>
      %75 = vector.multi_reduction <maximumf>, %74, %cst_53 [0] : vector<128x512xf32> to vector<512xf32>
      %76 = vector.shape_cast %75 : vector<512xf32> to vector<1x512xf32>
      %cst_54 = arith.constant 0xFF800000 : f32
      %77 = vector.shape_cast %58 : vector<128x1xi1> to vector<128x1xi1>
      %78 = vector.broadcast %77 : vector<128x1xi1> to vector<128x512xi1>
      %79 = vector.broadcast %cst_54 : f32 to vector<128x512xf32>
      %80 = arith.select %78, %22, %79 : vector<128x512xi1>, vector<128x512xf32>
      %cst_55 = arith.constant dense<0xFF800000> : vector<512xf32>
      %81 = vector.multi_reduction <maximumf>, %80, %cst_55 [0] : vector<128x512xf32> to vector<512xf32>
      %82 = vector.shape_cast %81 : vector<512xf32> to vector<1x512xf32>
      %cst_56 = arith.constant 0xFF800000 : f32
      %83 = vector.shape_cast %58 : vector<128x1xi1> to vector<128x1xi1>
      %84 = vector.broadcast %83 : vector<128x1xi1> to vector<128x512xi1>
      %85 = vector.broadcast %cst_56 : f32 to vector<128x512xf32>
      %86 = arith.select %84, %27, %85 : vector<128x512xi1>, vector<128x512xf32>
      %cst_57 = arith.constant dense<0xFF800000> : vector<512xf32>
      %87 = vector.multi_reduction <maximumf>, %86, %cst_57 [0] : vector<128x512xf32> to vector<512xf32>
      %88 = vector.shape_cast %87 : vector<512xf32> to vector<1x512xf32>
      %cst_58 = arith.constant 0xFF800000 : f32
      %89 = vector.shape_cast %58 : vector<128x1xi1> to vector<128x1xi1>
      %90 = vector.broadcast %89 : vector<128x1xi1> to vector<128x512xi1>
      %91 = vector.broadcast %cst_58 : f32 to vector<128x512xf32>
      %92 = arith.select %90, %32, %91 : vector<128x512xi1>, vector<128x512xf32>
      %cst_59 = arith.constant dense<0xFF800000> : vector<512xf32>
      %93 = vector.multi_reduction <maximumf>, %92, %cst_59 [0] : vector<128x512xf32> to vector<512xf32>
      %94 = vector.shape_cast %93 : vector<512xf32> to vector<1x512xf32>
      %cst_60 = arith.constant 0xFF800000 : f32
      %95 = vector.shape_cast %58 : vector<128x1xi1> to vector<128x1xi1>
      %96 = vector.broadcast %95 : vector<128x1xi1> to vector<128x512xi1>
      %97 = vector.broadcast %cst_60 : f32 to vector<128x512xf32>
      %98 = arith.select %96, %37, %97 : vector<128x512xi1>, vector<128x512xf32>
      %cst_61 = arith.constant dense<0xFF800000> : vector<512xf32>
      %99 = vector.multi_reduction <maximumf>, %98, %cst_61 [0] : vector<128x512xf32> to vector<512xf32>
      %100 = vector.shape_cast %99 : vector<512xf32> to vector<1x512xf32>
      %cst_62 = arith.constant 0xFF800000 : f32
      %101 = vector.shape_cast %58 : vector<128x1xi1> to vector<128x1xi1>
      %102 = vector.broadcast %101 : vector<128x1xi1> to vector<128x512xi1>
      %103 = vector.broadcast %cst_62 : f32 to vector<128x512xf32>
      %104 = arith.select %102, %42, %103 : vector<128x512xi1>, vector<128x512xf32>
      %cst_63 = arith.constant dense<0xFF800000> : vector<512xf32>
      %105 = vector.multi_reduction <maximumf>, %104, %cst_63 [0] : vector<128x512xf32> to vector<512xf32>
      %106 = vector.shape_cast %105 : vector<512xf32> to vector<1x512xf32>
      %107 = tpu.concatenate %64, %70, %76, %82, %88, %94, %100, %106 in 0 : vector<1x512xf32>, vector<1x512xf32>, vector<1x512xf32>, vector<1x512xf32>, vector<1x512xf32>, vector<1x512xf32>, vector<1x512xf32>, vector<1x512xf32> -> vector<8x512xf32>
      %108 = arith.maximumf %52, %107 : vector<8x512xf32>
      %c0_64 = arith.constant 0 : index
      %c0_65 = arith.constant 0 : index
      %109 = vector.load %arg12[%c0_64, %c0_65] : memref<8x512xf32, #tpu.memory_space<vmem>>, vector<8x512xf32>
      tpu.vector_store %arg12[%c0_64, %c0_65], %108 {strides = array<i32>} : memref<8x512xf32, #tpu.memory_space<vmem>>, vector<8x512xf32>,
    } else {
    }
    %c0_i32_42 = arith.constant 0 : i32
    %46 = arith.cmpi slt, %arg1, %c0_i32_42 : i32
    %47 = arith.extui %46 : i1 to i32
    %c0_i32_43 = arith.constant 0 : i32
    %48 = arith.cmpi ne, %47, %c0_i32_43 : i32
    scf.if %48 {
      %c0_46 = arith.constant 0 : index
      %c0_47 = arith.constant 0 : index
      %52 = vector.load %arg12[%c0_46, %c0_47] : memref<8x512xf32, #tpu.memory_space<vmem>>, vector<8x512xf32>
      %cst_48 = arith.constant dense<0xFF800000> : vector<512xf32>
      %53 = vector.multi_reduction <maximumf>, %7, %cst_48 [0] : vector<128x512xf32> to vector<512xf32>
      %54 = vector.shape_cast %53 : vector<512xf32> to vector<1x512xf32>
      %cst_49 = arith.constant dense<0xFF800000> : vector<512xf32>
      %55 = vector.multi_reduction <maximumf>, %12, %cst_49 [0] : vector<128x512xf32> to vector<512xf32>
      %56 = vector.shape_cast %55 : vector<512xf32> to vector<1x512xf32>
      %cst_50 = arith.constant dense<0xFF800000> : vector<512xf32>
      %57 = vector.multi_reduction <maximumf>, %17, %cst_50 [0] : vector<128x512xf32> to vector<512xf32>
      %58 = vector.shape_cast %57 : vector<512xf32> to vector<1x512xf32>
      %cst_51 = arith.constant dense<0xFF800000> : vector<512xf32>
      %59 = vector.multi_reduction <maximumf>, %22, %cst_51 [0] : vector<128x512xf32> to vector<512xf32>
      %60 = vector.shape_cast %59 : vector<512xf32> to vector<1x512xf32>
      %cst_52 = arith.constant dense<0xFF800000> : vector<512xf32>
      %61 = vector.multi_reduction <maximumf>, %27, %cst_52 [0] : vector<128x512xf32> to vector<512xf32>
      %62 = vector.shape_cast %61 : vector<512xf32> to vector<1x512xf32>
      %cst_53 = arith.constant dense<0xFF800000> : vector<512xf32>
      %63 = vector.multi_reduction <maximumf>, %32, %cst_53 [0] : vector<128x512xf32> to vector<512xf32>
      %64 = vector.shape_cast %63 : vector<512xf32> to vector<1x512xf32>
      %cst_54 = arith.constant dense<0xFF800000> : vector<512xf32>
      %65 = vector.multi_reduction <maximumf>, %37, %cst_54 [0] : vector<128x512xf32> to vector<512xf32>
      %66 = vector.shape_cast %65 : vector<512xf32> to vector<1x512xf32>
      %cst_55 = arith.constant dense<0xFF800000> : vector<512xf32>
      %67 = vector.multi_reduction <maximumf>, %42, %cst_55 [0] : vector<128x512xf32> to vector<512xf32>
      %68 = vector.shape_cast %67 : vector<512xf32> to vector<1x512xf32>
      %69 = tpu.concatenate %54, %56, %58, %60, %62, %64, %66, %68 in 0 : vector<1x512xf32>, vector<1x512xf32>, vector<1x512xf32>, vector<1x512xf32>, vector<1x512xf32>, vector<1x512xf32>, vector<1x512xf32>, vector<1x512xf32> -> vector<8x512xf32>
      %70 = arith.maximumf %52, %69 : vector<8x512xf32>
      %c0_56 = arith.constant 0 : index
      %c0_57 = arith.constant 0 : index
      %71 = vector.load %arg12[%c0_56, %c0_57] : memref<8x512xf32, #tpu.memory_space<vmem>>, vector<8x512xf32>
      tpu.vector_store %arg12[%c0_56, %c0_57], %70 {strides = array<i32>} : memref<8x512xf32, #tpu.memory_space<vmem>>, vector<8x512xf32>,
    } else {
    }
    %c0_i32_44 = arith.constant 0 : i32
    %49 = arith.cmpi eq, %arg1, %c0_i32_44 : i32
    %50 = arith.extui %49 : i1 to i32
    %c0_i32_45 = arith.constant 0 : i32
    %51 = arith.cmpi ne, %50, %c0_i32_45 : i32
    scf.if %51 {
      %c0_46 = arith.constant 0 : index
      %c0_47 = arith.constant 0 : index
      %52 = vector.load %arg12[%c0_46, %c0_47] : memref<8x512xf32, #tpu.memory_space<vmem>>, vector<8x512xf32>
      %c0_48 = arith.constant 0 : index
      %c0_49 = arith.constant 0 : index
      %53 = vector.load %arg4[%c0_48, %c0_49] : memref<1x512xf32, #tpu.memory_space<vmem>>, vector<1x512xf32>
      %54 = vector.broadcast %53 : vector<1x512xf32> to vector<8x512xf32>
      %55 = arith.addf %52, %54 : vector<8x512xf32>
      %cst_50 = arith.constant 0.000000e+00 : f32
      %56 = vector.broadcast %cst_50 : f32 to vector<8x512xf32>
      %57 = arith.cmpf oge, %55, %56 : vector<8x512xf32>
      %cst_51 = arith.constant 2.000000e-01 : f32
      %58 = vector.broadcast %cst_51 : f32 to vector<8x512xf32>
      %59 = arith.mulf %58, %55 : vector<8x512xf32>
      %60 = arith.select %57, %55, %59 : vector<8x512xi1>, vector<8x512xf32>
      %61 = arith.truncf %60 : vector<8x512xf32> to vector<8x512xbf16>
      %c0_52 = arith.constant 0 : index
      %c0_53 = arith.constant 0 : index
      %62 = vector.load %arg5[%c0_52, %c0_53] : memref<512x256xbf16, #tpu.memory_space<vmem>>, vector<512x256xbf16>
      %cst_54 = arith.constant dense<0.000000e+00> : vector<8x256xf32>
      %63 = tpu.matmul %61, %62, %cst_54 {dimension_numbers = #tpu.dot_dimension_numbers<[1], [0], [0], [1], [0, 0, 1, 1], [], []>} : vector<8x512xbf16>, vector<512x256xbf16>, vector<8x256xf32> -> vector<8x256xf32>
      %c0_55 = arith.constant 0 : index
      %c0_56 = arith.constant 0 : index
      %64 = vector.load %arg6[%c0_55, %c0_56] : memref<1x256xf32, #tpu.memory_space<vmem>>, vector<1x256xf32>
      %65 = vector.broadcast %64 : vector<1x256xf32> to vector<8x256xf32>
      %66 = arith.addf %63, %65 : vector<8x256xf32>
      %cst_57 = arith.constant 0.000000e+00 : f32
      %67 = vector.broadcast %cst_57 : f32 to vector<8x256xf32>
      %68 = arith.maximumf %66, %67 : vector<8x256xf32>
      %69 = arith.truncf %68 : vector<8x256xf32> to vector<8x256xbf16>
      %c0_58 = arith.constant 0 : index
      %c0_59 = arith.constant 0 : index
      %70 = vector.load %arg7[%c0_58, %c0_59] : memref<256x64xbf16, #tpu.memory_space<vmem>>, vector<256x64xbf16>
      %cst_60 = arith.constant dense<0.000000e+00> : vector<8x64xf32>
      %71 = tpu.matmul %69, %70, %cst_60 {dimension_numbers = #tpu.dot_dimension_numbers<[1], [0], [0], [1], [0, 0, 1, 1], [], []>} : vector<8x256xbf16>, vector<256x64xbf16>, vector<8x64xf32> -> vector<8x64xf32>
      %c0_61 = arith.constant 0 : index
      %c0_62 = arith.constant 0 : index
      %72 = vector.load %arg8[%c0_61, %c0_62] : memref<1x64xf32, #tpu.memory_space<vmem>>, vector<1x64xf32>
      %73 = vector.broadcast %72 : vector<1x64xf32> to vector<8x64xf32>
      %74 = arith.addf %71, %73 : vector<8x64xf32>
      %cst_63 = arith.constant 0.000000e+00 : f32
      %75 = vector.broadcast %cst_63 : f32 to vector<8x64xf32>
      %76 = arith.maximumf %74, %75 : vector<8x64xf32>
      %c0_64 = arith.constant 0 : index
      %c0_65 = arith.constant 0 : index
      %77 = vector.load %arg9[%c0_64, %c0_65] : memref<64x3xf32, #tpu.memory_space<vmem>>, vector<64x3xf32>
      %cst_66 = arith.constant dense<0.000000e+00> : vector<8x3xf32>
      %78 = tpu.matmul %76, %77, %cst_66 {dimension_numbers = #tpu.dot_dimension_numbers<[1], [0], [0], [1], [0, 0, 1, 1], [], []>} : vector<8x64xf32>, vector<64x3xf32>, vector<8x3xf32> -> vector<8x3xf32>
      %c0_67 = arith.constant 0 : index
      %c0_68 = arith.constant 0 : index
      %79 = vector.load %arg10[%c0_67, %c0_68] : memref<1x3xf32, #tpu.memory_space<vmem>>, vector<1x3xf32>
      %80 = vector.broadcast %79 : vector<1x3xf32> to vector<8x3xf32>
      %81 = arith.addf %78, %80 : vector<8x3xf32>
      %82 = math.tanh %81 : vector<8x3xf32>
      %c0_69 = arith.constant 0 : index
      %c0_70 = arith.constant 0 : index
      %83 = vector.load %arg11[%c0_69, %c0_70] : memref<8x3xf32, #tpu.memory_space<vmem>>, vector<8x3xf32>
      tpu.vector_store %arg11[%c0_69, %c0_70], %82 {strides = array<i32>} : memref<8x3xf32, #tpu.memory_space<vmem>>, vector<8x3xf32>,
    } else {
    }
    return
  }
  func.func @transform_0(%arg0: i32, %arg1: i32) -> (i32, i32, i32) {
    %c0_i32 = arith.constant 0 : i32
    %c0_i32_0 = arith.constant 0 : i32
    return %arg0, %c0_i32, %arg1 : i32, i32, i32
  }
  func.func @transform_1(%arg0: i32, %arg1: i32) -> (i32, i32) {
    %c0_i32 = arith.constant 0 : i32
    %c0_i32_0 = arith.constant 0 : i32
    %c0_i32_1 = arith.constant 0 : i32
    return %c0_i32, %c0_i32_0 : i32, i32
  }
  func.func @transform_2(%arg0: i32, %arg1: i32) -> (i32, i32) {
    %c0_i32 = arith.constant 0 : i32
    %c0_i32_0 = arith.constant 0 : i32
    %c0_i32_1 = arith.constant 0 : i32
    return %c0_i32, %c0_i32_0 : i32, i32
  }
  func.func @transform_3(%arg0: i32, %arg1: i32) -> (i32, i32) {
    %c0_i32 = arith.constant 0 : i32
    %c0_i32_0 = arith.constant 0 : i32
    %c0_i32_1 = arith.constant 0 : i32
    return %c0_i32, %c0_i32_0 : i32, i32
  }
  func.func @transform_4(%arg0: i32, %arg1: i32) -> (i32, i32) {
    %c0_i32 = arith.constant 0 : i32
    %c0_i32_0 = arith.constant 0 : i32
    %c0_i32_1 = arith.constant 0 : i32
    return %c0_i32, %c0_i32_0 : i32, i32
  }
  func.func @transform_5(%arg0: i32, %arg1: i32) -> (i32, i32) {
    %c0_i32 = arith.constant 0 : i32
    %c0_i32_0 = arith.constant 0 : i32
    %c0_i32_1 = arith.constant 0 : i32
    return %c0_i32, %c0_i32_0 : i32, i32
  }
  func.func @transform_6(%arg0: i32, %arg1: i32) -> (i32, i32) {
    %c0_i32 = arith.constant 0 : i32
    %c0_i32_0 = arith.constant 0 : i32
    %c0_i32_1 = arith.constant 0 : i32
    return %c0_i32, %c0_i32_0 : i32, i32
  }
  func.func @transform_7(%arg0: i32, %arg1: i32) -> (i32, i32) {
    %c0_i32 = arith.constant 0 : i32
    %c0_i32_0 = arith.constant 0 : i32
    %c0_i32_1 = arith.constant 0 : i32
    return %c0_i32, %c0_i32_0 : i32, i32
  }
  func.func @transform_8(%arg0: i32, %arg1: i32) -> (i32, i32) {
    %c0_i32 = arith.constant 0 : i32
    %c0_i32_0 = arith.constant 0 : i32
    %c0_i32_1 = arith.constant 0 : i32
    return %c0_i32, %c0_i32_0 : i32, i32
  }
  func.func @transform_9(%arg0: i32, %arg1: i32) -> (i32, i32) {
    %c0_i32 = arith.constant 0 : i32
    %c0_i32_0 = arith.constant 0 : i32
    return %arg0, %c0_i32 : i32, i32
  }
}

</mosaic_0001>

<bundles_post_ra>
// kernel: mlp_forward.1
= control target key start
LH: loop header
LB: loop body
LE: loop exit
PB: predicated region body
PF: predicated region fallthrough
CT: control target
= control target key end

     0   :  { %vm7561_vm0 = vcmask 1040384   ;;  %vm7566_vm1 = vcmask 1041408   ;;  %vm7571_vm2 = vcmask 1042432   ;;  %vm7576_vm3 = vcmask 1043456   ;;  %s15843_s0 = inlined_call_operand.vmem [shape: f32[8,384,128], index: 0, kind: input, shape index: {}]   ;;  %s15844_s1 = inlined_call_operand.vmem [shape: bf16[384,512], index: 1, kind: input, shape index: {}]   ;;  %s15845_s3 = inlined_call_operand.vmem [shape: bf16[512,256], index: 3, kind: input, shape index: {}]   ;;  %s15846_s2 = inlined_call_operand.vmem [shape: f32[1,512], index: 2, kind: input, shape index: {}]   ;;  %s15847_s6 = inlined_call_operand.vmem [shape: f32[1,64], index: 6, kind: input, shape index: {}]   ;;  %s15848_s5 = inlined_call_operand.vmem [shape: bf16[256,64], index: 5, kind: input, shape index: {}]   ;;  %s15849_s4 = inlined_call_operand.vmem [shape: f32[1,256], index: 4, kind: input, shape index: {}]   ;;  %s15850_s8 = inlined_call_operand.vmem [shape: f32[1,3], index: 8, kind: input, shape index: {}]   ;;  %s15851_s7 = inlined_call_operand.vmem [shape: f32[64,3], index: 7, kind: input, shape index: {}]   ;;  %s15852_s9 = inlined_call_operand.vmem [shape: f32[8,3], index: 9, kind: output, shape index: {}]  }
   0x1   :  { %v56_v0 = vld [vmem:[%s15843_s0 + $0x80] sm:$0xff]  ;;  %v57_v1 = vld [vmem:[%s15843_s0 + $0x88] sm:$0xff]  ;;  %v58_v9 = vld [vmem:[%s15843_s0 + $0x90] sm:$0xff]  ;;  %vm7581_vm4 = vcmask 1044480   ;;  %vm7586_vm5 = vcmask 1045504   ;;  %vm7591_vm6 = vcmask 1046528  }
   0x2   :  { %v40_v2 = vld [vmem:[%s15843_s0] sm:$0xff]  ;;  %v11379_v3 = vpack.c.bf16 %v57_v1, %v56_v0  ;;  %v41_v4 = vld [vmem:[%s15843_s0 + $0x8] sm:$0xff]  ;;  %v59_v10 = vld [vmem:[%s15843_s0 + $0x98] sm:$0xff]  ;;  %vm9033_vm11 = vcmask 523264   ;;  %vm9058_vm12 = vcmask 23552  }
   0x3   :  { %v72_v5 = vld [vmem:[%s15843_s0 + $0x100] sm:$0xff]  ;;  %v73_v6 = vld [vmem:[%s15843_s0 + $0x108] sm:$0xff]  ;;  %v88_v7 = vpack.c.bf16 %v41_v4, %v40_v2  ;;  %v42_v11 = vld [vmem:[%s15843_s0 + $0x10] sm:$0xff]  ;;  %v11409_v15 = vpack.c.bf16 %v59_v10, %v58_v9 }
   0x4   :  { %v104_v8 = vpack.c.bf16 %v73_v6, %v72_v5  ;;  %224 = vxpose.xlu1.c.b16.start [1/8] %v11379_v3, 128  ;;  %v43_v12 = vld [vmem:[%s15843_s0 + $0x18] sm:$0xff]  ;;  %v74_v13 = vld [vmem:[%s15843_s0 + $0x110] sm:$0xff]  ;;  %v60_v18 = vld [vmem:[%s15843_s0 + $0xa0] sm:$0xff] }
   0x5   :  { %v75_v14 = vld [vmem:[%s15843_s0 + $0x118] sm:$0xff]  ;;  %v89_v16 = vpack.c.bf16 %v43_v12, %v42_v11  ;;  %v61_v19 = vld [vmem:[%s15843_s0 + $0xa8] sm:$0xff]  ;;  %v44_v20 = vld [vmem:[%s15843_s0 + $0x20] sm:$0xff] }
   0x6   :  { %11097 = vxpose.binary.xlu0.c.b16.start [1/16] %v88_v7, %v104_v8, 128  ;;  %v105_v17 = vpack.c.bf16 %v75_v14, %v74_v13  ;;  %v45_v21 = vld [vmem:[%s15843_s0 + $0x28] sm:$0xff]  ;;  %v76_v22 = vld [vmem:[%s15843_s0 + $0x120] sm:$0xff]  ;;  %v11430_v24 = vpack.c.bf16 %v61_v19, %v60_v18  ;;  %v62_v27 = vld [vmem:[%s15843_s0 + $0xb0] sm:$0xff] }
   0x7   :  { %v77_v23 = vld [vmem:[%s15843_s0 + $0x128] sm:$0xff]  ;;  %v90_v25 = vpack.c.bf16 %v45_v21, %v44_v20  ;;  %v63_v28 = vld [vmem:[%s15843_s0 + $0xb8] sm:$0xff]  ;;  %v46_v29 = vld [vmem:[%s15843_s0 + $0x30] sm:$0xff] }
   0x8   :  { %v106_v26 = vpack.c.bf16 %v77_v23, %v76_v22  ;;  %v47_v30 = vld [vmem:[%s15843_s0 + $0x38] sm:$0xff]  ;;  %v78_v31 = vld [vmem:[%s15843_s0 + $0x130] sm:$0xff]  ;;  %v99_v33 = vpack.c.bf16 %v63_v28, %v62_v27  ;;  %v64_v36 = vld [vmem:[%s15843_s0 + $0xc0] sm:$0xff] }
   0x9   :  { %v79_v32 = vld [vmem:[%s15843_s0 + $0x138] sm:$0xff]  ;;  %v91_v34 = vpack.c.bf16 %v47_v30, %v46_v29  ;;  %v65_v37 = vld [vmem:[%s15843_s0 + $0xc8] sm:$0xff]  ;;  %v48_v38 = vld [vmem:[%s15843_s0 + $0x40] sm:$0xff] }
   0xa   :  { %v107_v35 = vpack.c.bf16 %v79_v32, %v78_v31  ;;  %v49_v39 = vld [vmem:[%s15843_s0 + $0x48] sm:$0xff]  ;;  %v80_v40 = vld [vmem:[%s15843_s0 + $0x140] sm:$0xff]  ;;  %v100_v42 = vpack.c.bf16 %v65_v37, %v64_v36  ;;  %v70_v45 = vld [vmem:[%s15843_s0 + $0xf0] sm:$0xff] }
   0xb   :  { %v81_v41 = vld [vmem:[%s15843_s0 + $0x148] sm:$0xff]  ;;  %v92_v43 = vpack.c.bf16 %v49_v39, %v48_v38  ;;  %v71_v46 = vld [vmem:[%s15843_s0 + $0xf8] sm:$0xff]  ;;  %v68_v48 = vld [vmem:[%s15843_s0 + $0xe0] sm:$0xff] }
   0xc   :  { %v108_v44 = vpack.c.bf16 %v81_v41, %v80_v40  ;;  %v11475_v47 = vpack.c.bf16 %v71_v46, %v70_v45  ;;  %v69_v49 = vld [vmem:[%s15843_s0 + $0xe8] sm:$0xff]  ;;  %v66_v51 = vld [vmem:[%s15843_s0 + $0xd0] sm:$0xff]  ;;  %v67_v52 = vld [vmem:[%s15843_s0 + $0xd8] sm:$0xff] }
   0xd   :  { %v11484_v50 = vpack.c.bf16 %v69_v49, %v68_v48  ;;  %v50_v53 = vld [vmem:[%s15843_s0 + $0x50] sm:$0xff]  ;;  %v101_v54 = vpack.c.bf16 %v67_v52, %v66_v51  ;;  %v51_v55 = vld [vmem:[%s15843_s0 + $0x58] sm:$0xff]  ;;  %v9306_v60 = vld [vmem:[%s15844_s1 + $0x1e0] sm:$0xf] }
   0xe   :  { %10353 = vmatpush.lsf.bf16.msrb.mxu0 %v11475_v47  ;;  %v82_v56 = vld [vmem:[%s15843_s0 + $0x150] sm:$0xff]  ;;  %v83_v57 = vld [vmem:[%s15843_s0 + $0x158] sm:$0xff]  ;;  %v93_v58 = vpack.c.bf16 %v51_v55, %v50_v53  ;;  %v9434_v62 = vld [vmem:[%s15844_s1 + $0x2e0] sm:$0xf] }
   0xf   :  { %v109_v59 = vpack.c.bf16 %v83_v57, %v82_v56  ;;  %v10167_v61 = vld [vmem:[%s15844_s1 + $0x1ec] sm:$0xf0]  ;;  %v9290_v1 = vld [vmem:[%s15844_s1 + $0x1c0] sm:$0xf]  ;;  %v10133_v7 = vld [vmem:[%s15844_s1 + $0xe4] sm:$0xf] }
  0x10   :  { %v11514_v63 = vor.u32 %v10167_v61, %v9306_v60  ;;  %v10199_v0 = vld [vmem:[%s15844_s1 + $0x2ec] sm:$0xf0]  ;;  %v9418_v5 = vld [vmem:[%s15844_s1 + $0x2c0] sm:$0xf]  ;;  %v9180_v9 = vld [vmem:[%s15844_s1 + $0xf0] sm:$0xf0] }
  0x11   :  { %v10163_v2 = vld [vmem:[%s15844_s1 + $0x1cc] sm:$0xf0]  ;;  %v11525_v4 = vor.u32 %v10199_v0, %v9434_v62  ;;  %v9178_v10 = vld [vmem:[%s15844_s1 + $0xe0] sm:$0xf]  ;;  %v11551_v13 = vor.u32 %v10133_v7, %v9180_v9  ;;  %v10129_v20 = vld [vmem:[%s15844_s1 + $0xc4] sm:$0xf] }
  0x12   :  { %10354 = vmatpush.lsf.bf16.msrb.mxu0 %v11484_v50  ;;  %v10195_v6 = vld [vmem:[%s15844_s1 + $0x2cc] sm:$0xf0]  ;;  %785 = vmatpush.bf16.msra.mxu1 %v11514_v63  ;;  %v11537_v8 = vor.u32 %v10163_v2, %v9290_v1  ;;  %v9402_v18 = vld [vmem:[%s15844_s1 + $0x2a0] sm:$0xf]  ;;  %v9164_v21 = vld [vmem:[%s15844_s1 + $0xd0] sm:$0xf0] }
  0x13   :  { %v10135_v11 = vld [vmem:[%s15844_s1 + $0xec] sm:$0xf0]  ;;  %834 = vmatpush.bf16.msra.mxu2 %v11525_v4  ;;  %v11549_v12 = vor.u32 %v10195_v6, %v9418_v5  ;;  %883 = vmatpush.bf16.msra.mxu3 %v11551_v13  ;;  %v11575_v22 = vor.u32 %v10129_v20, %v9164_v21  ;;  %v9162_v23 = vld [vmem:[%s15844_s1 + $0xc0] sm:$0xf]  ;;  %v53_v27 = vld [vmem:[%s15843_s0 + $0x68] sm:$0xff] }
  0x14   :  { %225 = vxpose.xlu1.c.b16.cont [2/8] %v11409_v15, 128  ;;  %v11553_v14 = vor.u32 %v10135_v11, %v9178_v10  ;;  %v10191_v19 = vld [vmem:[%s15844_s1 + $0x2ac] sm:$0xf0]  ;;  %v9258_v30 = vld [vmem:[%s15844_s1 + $0x180] sm:$0xf]  ;;  %v85_v36 = vld [vmem:[%s15843_s0 + $0x168] sm:$0xff] }
  0x15   :  { %v10155_v31 = vld [vmem:[%s15844_s1 + $0x18c] sm:$0xf0]  ;;  %v11602_v32 = vor.u32 %v10191_v19, %v9402_v18  ;;  %v9386_v38 = vld [vmem:[%s15844_s1 + $0x280] sm:$0xf]  ;;  %v10117_v57 = vld [vmem:[%s15844_s1 + $0x64] sm:$0xf] }
  0x16   :  { %11098 = vxpose.binary.xlu0.c.b16.cont [2/16] %v89_v16, %v105_v17, 128  ;;  %v9274_v16 = vld [vmem:[%s15844_s1 + $0x1a0] sm:$0xf]  ;;  %v10159_v17 = vld [vmem:[%s15844_s1 + $0x1ac] sm:$0xf0]  ;;  %v9100_v9 = vld [vmem:[%s15844_s1 + $0x50] sm:$0xf0] }
  0x17   :  { %10355 = vmatpush.lsf.bf16.msrb.mxu0 %v101_v54  ;;  %786 = vmatpush.bf16.msra.mxu1 %v11537_v8  ;;  %v11590_v28 = vor.u32 %v10159_v17, %v9274_v16  ;;  %v10127_v37 = vld [vmem:[%s15844_s1 + $0xac] sm:$0xf0]  ;;  %v9130_v45 = vld [vmem:[%s15844_s1 + $0x80] sm:$0xf] }
  0x18   :  { %835 = vmatpush.bf16.msra.mxu2 %v11549_v12  ;;  %884 = vmatpush.bf16.msra.mxu3 %v11575_v22  ;;  %v10187_v39 = vld [vmem:[%s15844_s1 + $0x28c] sm:$0xf0]  ;;  %v9242_v51 = vld [vmem:[%s15844_s1 + $0x160] sm:$0xf] }
  0x19   :  { %v10123_v46 = vld [vmem:[%s15844_s1 + $0x8c] sm:$0xf0]  ;;  %v11657_v53 = vor.u32 %v10187_v39, %v9386_v38  ;;  %v9114_v60 = vld [vmem:[%s15844_s1 + $0x60] sm:$0xf] }
  0x1a   :  { %v10151_v52 = vld [vmem:[%s15844_s1 + $0x16c] sm:$0xf0]  ;;  %v11669_v56 = vor.u32 %v10123_v46, %v9130_v45  ;;  %v9354_v1 = vld [vmem:[%s15844_s1 + $0x240] sm:$0xf]  ;;  %v9084_v45 = vld [vmem:[%s15844_s1 + $0x30] sm:$0xf0] }
  0x1b   :  { %10356 = vmatpush.lsf.bf16.msrb.mxu0 %v100_v42  ;;  %787 = vmatpush.bf16.msra.mxu1 %v11590_v28  ;;  %v10119_v61 = vld [vmem:[%s15844_s1 + $0x6c] sm:$0xf0]  ;;  %v9098_v10 = vld [vmem:[%s15844_s1 + $0x40] sm:$0xf] }
  0x1c   :  { %836 = vmatpush.bf16.msra.mxu2 %v11602_v32  ;;  %v10147_v62 = vld [vmem:[%s15844_s1 + $0x14c] sm:$0xf0]  ;;  %v11707_v6 = vor.u32 %v10119_v61, %v9114_v60  ;;  %v9210_v16 = vld [vmem:[%s15844_s1 + $0x120] sm:$0xf]  ;;  %v10197_v60 = vld [vmem:[%s15844_s1 + $0x2e4] sm:$0xf] }
  0x1d   :  { %v10179_v2 = vld [vmem:[%s15844_s1 + $0x24c] sm:$0xf0]  ;;  %v9338_v19 = vld [vmem:[%s15844_s1 + $0x220] sm:$0xf]  ;;  %v9436_v61 = vld [vmem:[%s15844_s1 + $0x2f0] sm:$0xf0] }
  0x1e   :  { %v10115_v11 = vld [vmem:[%s15844_s1 + $0x4c] sm:$0xf0]  ;;  %v11731_v18 = vor.u32 %v10179_v2, %v9354_v1  ;;  %v9082_v46 = vld [vmem:[%s15844_s1 + $0x20] sm:$0xf]  ;;  %v11834_v1 = vor.u32 %v10197_v60, %v9436_v61  ;;  %v9404_v60 = vld [vmem:[%s15844_s1 + $0x2b0] sm:$0xf0] }
  0x1f   :  { %10357 = vmatpush.lsf.bf16.msrb.mxu0 %v99_v33  ;;  %v10143_v17 = vld [vmem:[%s15844_s1 + $0x12c] sm:$0xf0]  ;;  %v10160_v61 = vld [vmem:[%s15844_s1 + $0x1b4] sm:$0xf0] }
  0x20   :  { %837 = vmatpush.bf16.msra.mxu2 %v11657_v53  ;;  %v10175_v20 = vld [vmem:[%s15844_s1 + $0x22c] sm:$0xf0]  ;;  %16052 = vst [vmem:[#allocation10_spill] sm:$0xff] %v11834_v1 }
  0x23   :  { %736 = vmatpush.bf16.msra.mxu0 %v11553_v14 }
  0x24   :  { %226 = vxpose.xlu1.c.b16.cont [3/8] %v11430_v24, 128 }
  0x26   :  { %11099 = vxpose.binary.xlu0.c.b16.cont [3/16] %v90_v25, %v106_v26, 128  ;;  %v10131_v25 = vld [vmem:[%s15844_s1 + $0xcc] sm:$0xf0]  ;;  %v52_v26 = vld [vmem:[%s15843_s0 + $0x60] sm:$0xff] }
  0x27   :  { %v11592_v29 = vor.u32 %v10131_v25, %v9162_v23  ;;  %10358 = vmatpush.lsf.bf16.msrb.mxu0 %v11430_v24  ;;  %v84_v24 = vld [vmem:[%s15843_s0 + $0x160] sm:$0xff]  ;;  %v94_v48 = vpack.c.bf16 %v53_v27, %v52_v26  ;;  %v11743_v23 = vor.u32 %v10115_v11, %v9098_v10  ;;  %v11746_v25 = vor.u32 %v10143_v17, %v9210_v16  ;;  %v54_v26 = vld [vmem:[%s15843_s0 + $0x70] sm:$0xff]  ;;  %v9170_v11 = vld [vmem:[%s15844_s1 + $0xc8] sm:$0xf] }
  0x28   :  { %v110_v49 = vpack.c.bf16 %v85_v36, %v84_v24  ;;  %v9194_v27 = vld [vmem:[%s15844_s1 + $0x100] sm:$0xf]  ;;  %v10171_v36 = vld [vmem:[%s15844_s1 + $0x20c] sm:$0xf0]  ;;  %v10132_v16 = vld [vmem:[%s15844_s1 + $0xd4] sm:$0xf0] }
  0x29   :  { %v9322_v24 = vld [vmem:[%s15844_s1 + $0x200] sm:$0xf] }
  0x2b   :  { %737 = vmatpush.bf16.msra.mxu0 %v11592_v29 }
  0x2f   :  { %10359 = vmatpush.lsf.bf16.msrb.mxu0 %v11409_v15  ;;  %v9370_v15 = vld [vmem:[%s15844_s1 + $0x260] sm:$0xf] }
  0x34   :  { %227 = vxpose.xlu1.c.b16.cont [4/8] %v99_v33, 128  ;;  %v10125_v33 = vld [vmem:[%s15844_s1 + $0xa4] sm:$0xf] }
  0x36   :  { %11100 = vxpose.binary.xlu0.c.b16.cont [4/16] %v91_v34, %v107_v35, 128  ;;  %v9148_v34 = vld [vmem:[%s15844_s1 + $0xb0] sm:$0xf0]  ;;  %v9146_v35 = vld [vmem:[%s15844_s1 + $0xa0] sm:$0xf] }
  0x37   :  { %v11630_v40 = vor.u32 %v10125_v33, %v9148_v34  ;;  %v11632_v41 = vor.u32 %v10127_v37, %v9146_v35  ;;  %v86_v33 = vld [vmem:[%s15843_s0 + $0x170] sm:$0xff]  ;;  %v87_v34 = vld [vmem:[%s15843_s0 + $0x178] sm:$0xff]  ;;  %v11767_v35 = vor.u32 %v10175_v20, %v9338_v19  ;;  %v9314_v20 = vld [vmem:[%s15844_s1 + $0x1e8] sm:$0xf] }
  0x38   :  { %v111_v39 = vpack.c.bf16 %v87_v34, %v86_v33  ;;  %v9154_v33 = vld [vmem:[%s15844_s1 + $0xa8] sm:$0xf]  ;;  %v10128_v34 = vld [vmem:[%s15844_s1 + $0xb4] sm:$0xf0] }
  0x39   :  { %16045 = vst [vmem:[#allocation3_spill] sm:$0xff] %v11632_v41  ;;  %885 = vmatpush.bf16.msra.mxu3 %v11630_v40  ;;  %738 = vmatpush.bf16.msra.mxu0 %v11632_v41 }
  0x3d   :  { %10360 = vmatpush.lsf.bf16.msrb.mxu0 %v11379_v3  ;;  %v10113_v3 = vld [vmem:[%s15844_s1 + $0x44] sm:$0xf] }
  0x3e   :  { %v11741_v21 = vor.u32 %v10113_v3, %v9100_v9  ;;  %v10193_v3 = vld [vmem:[%s15844_s1 + $0x2c4] sm:$0xf]  ;;  %v9420_v9 = vld [vmem:[%s15844_s1 + $0x2d0] sm:$0xf0] }
  0x3f   :  { %10361 = vllmr.16.mxu0  ;;  %v11857_v19 = vor.u32 %v10193_v3, %v9420_v9 }
  0x41   :  { %739 = vmatpush.bf16.msra.mxu0 %v11669_v56  ;;  %16054 = vst [vmem:[#allocation12_spill] sm:$0xff] %v11857_v19 }
  0x44   :  { %228 = vxpose.xlu1.c.b16.cont [5/8] %v100_v42, 128  ;;  %v10121_v42 = vld [vmem:[%s15844_s1 + $0x84] sm:$0xf] }
  0x45   :  { %740 = vmatpush.bf16.msra.mxu0 %v11707_v6 }
  0x46   :  { %11101 = vxpose.binary.xlu0.c.b16.cont [5/16] %v92_v43, %v108_v44, 128  ;;  %v11638_v43 = vor.u32 %v10155_v31, %v9258_v30  ;;  %v9132_v44 = vld [vmem:[%s15844_s1 + $0x90] sm:$0xf0]  ;;  %v10139_v30 = vld [vmem:[%s15844_s1 + $0x10c] sm:$0xf0]  ;;  %v55_v31 = vld [vmem:[%s15843_s0 + $0x78] sm:$0xff] }
  0x47   :  { %v11667_v55 = vor.u32 %v10121_v42, %v9132_v44  ;;  %v11778_v37 = vor.u32 %v10139_v30, %v9194_v27  ;;  %v95_v38 = vpack.c.bf16 %v55_v31, %v54_v26  ;;  %v11781_v42 = vor.u32 %v10171_v36, %v9322_v24  ;;  %v10109_v44 = vld [vmem:[%s15844_s1 + $0x24] sm:$0xf]  ;;  %v10168_v27 = vld [vmem:[%s15844_s1 + $0x1f4] sm:$0xf0]  ;;  %v9308_v31 = vld [vmem:[%s15844_s1 + $0x1f0] sm:$0xf0] }
  0x48   :  { %788 = vmatpush.bf16.msra.mxu1 %v11638_v43  ;;  %v11863_v26 = vor.u32 %v10132_v16, %v9170_v11  ;;  %v10165_v30 = vld [vmem:[%s15844_s1 + $0x1e4] sm:$0xf]  ;;  %v11881_v24 = vor.u32 %v10168_v27, %v9314_v20  ;;  %v9138_v27 = vld [vmem:[%s15844_s1 + $0x88] sm:$0xf] }
  0x49   :  { %886 = vmatpush.bf16.msra.mxu3 %v11667_v55  ;;  %741 = vmatpush.bf16.msra.mxu0 %v11743_v23  ;;  %16046 = vst [vmem:[#allocation4_spill] sm:$0xff] %v11778_v37  ;;  %v11883_v36 = vor.u32 %v10165_v30, %v9308_v31  ;;  %v10124_v30 = vld [vmem:[%s15844_s1 + $0x94] sm:$0xf0] }
  0x4a   :  { %16047 = vst [vmem:[#allocation5_spill] sm:$0xff] %v11781_v42  ;;  %v11952_v31 = vor.u32 %v10124_v30, %v9138_v27  ;;  %v9122_v27 = vld [vmem:[%s15844_s1 + $0x68] sm:$0xf]  ;;  %v10120_v30 = vld [vmem:[%s15844_s1 + $0x74] sm:$0xf0] }
  0x4b   :  { %16055 = vst [vmem:[#allocation13_spill] sm:$0xff] %v11863_v26 }
  0x4c   :  { %16056 = vst [vmem:[#allocation14_spill] sm:$0xff] %v11881_v24 }
  0x4d   :  { %16057 = vst [vmem:[#allocation15_spill] sm:$0xff] %v11883_v36 }
  0x4e   :  { %16064 = vst [vmem:[#allocation22_spill] sm:$0xff] %v11952_v31 }
  0x54   :  { %229 = vxpose.xlu1.c.b16.cont [6/8] %v101_v54, 128  ;;  %v10183_v54 = vld [vmem:[%s15844_s1 + $0x26c] sm:$0xf0] }
  0x55   :  { %v11694_v0 = vor.u32 %v10183_v54, %v9370_v15  ;;  %v9066_v15 = vld [vmem:[%s15844_s1] sm:$0xf] }
  0x56   :  { %11102 = vxpose.binary.xlu0.c.b16.cont [6/16] %v93_v58, %v109_v59, 128  ;;  %v11676_v58 = vor.u32 %v10151_v52, %v9242_v51  ;;  %v9116_v59 = vld [vmem:[%s15844_s1 + $0x70] sm:$0xf0]  ;;  %v10105_v51 = vld [vmem:[%s15844_s1 + $0x4] sm:$0xf] }
  0x57   :  { %v11705_v5 = vor.u32 %v10117_v57, %v9116_v59  ;;  %838 = vmatpush.bf16.msra.mxu2 %v11694_v0  ;;  %v9068_v52 = vld [vmem:[%s15844_s1 + $0x10] sm:$0xf0]  ;;  %v10107_v57 = vld [vmem:[%s15844_s1 + $0xc] sm:$0xf0] }
  0x58   :  { %789 = vmatpush.bf16.msra.mxu1 %v11676_v58  ;;  %v11812_v54 = vor.u32 %v10105_v51, %v9068_v52  ;;  %v11818_v59 = vor.u32 %v10107_v57, %v9066_v15  ;;  %v9282_v15 = vld [vmem:[%s15844_s1 + $0x1a8] sm:$0xf]  ;;  %v10189_v57 = vld [vmem:[%s15844_s1 + $0x2a4] sm:$0xf] }
  0x59   :  { %887 = vmatpush.bf16.msra.mxu3 %v11705_v5  ;;  %v11929_v3 = vor.u32 %v10189_v57, %v9404_v60  ;;  %v11934_v9 = vor.u32 %v10160_v61, %v9282_v15  ;;  %v10185_v15 = vld [vmem:[%s15844_s1 + $0x284] sm:$0xf]  ;;  %v9388_v57 = vld [vmem:[%s15844_s1 + $0x290] sm:$0xf0] }
  0x5a   :  { %16050 = vst [vmem:[#allocation8_spill] sm:$0xff] %v11812_v54  ;;  %v11981_v61 = vor.u32 %v10185_v15, %v9388_v57  ;;  %v10149_v15 = vld [vmem:[%s15844_s1 + $0x164] sm:$0xf] }
  0x5b   :  { %839 = vmatpush.bf16.msra.mxu2 %v11731_v18  ;;  %16051 = vst [vmem:[#allocation9_spill] sm:$0xff] %v11818_v59 }
  0x5c   :  { %16061 = vst [vmem:[#allocation19_spill] sm:$0xff] %v11929_v3 }
  0x5d   :  { %888 = vmatpush.bf16.msra.mxu3 %v11741_v21  ;;  %16062 = vst [vmem:[#allocation20_spill] sm:$0xff] %v11934_v9 }
  0x5e   :  { %16067 = vst [vmem:[#allocation25_spill] sm:$0xff] %v11981_v61 }
  0x5f   :  { %840 = vmatpush.bf16.msra.mxu2 %v11767_v35 }
  0x63   :  { %841 = vmatpush.bf16.msra.mxu2 %v11781_v42  ;;  %v10158_v42 = vld [vmem:[%s15844_s1 + $0x1ac] sm:$0xf] }
  0x64   :  { %230 = vxpose.xlu1.c.b16.cont [7/8] %v11484_v50, 128  ;;  %v9226_v50 = vld [vmem:[%s15844_s1 + $0x140] sm:$0xf] }
  0x65   :  { %v11713_v7 = vor.u32 %v10147_v62, %v9226_v50  ;;  %v9186_v50 = vld [vmem:[%s15844_s1 + $0xe8] sm:$0xf]  ;;  %v10136_v62 = vld [vmem:[%s15844_s1 + $0xf4] sm:$0xf0] }
  0x66   :  { %11103 = vxpose.binary.xlu0.c.b16.cont [7/16] %v94_v48, %v110_v49, 128  ;;  %v11795_v48 = vor.u32 %v10109_v44, %v9084_v45  ;;  %v11836_v2 = vor.u32 %v10136_v62, %v9186_v50  ;;  %v10161_v44 = vld [vmem:[%s15844_s1 + $0x1c4] sm:$0xf]  ;;  %v9292_v45 = vld [vmem:[%s15844_s1 + $0x1d0] sm:$0xf0] }
  0x67   :  { %790 = vmatpush.bf16.msra.mxu1 %v11713_v7  ;;  %v11908_v52 = vor.u32 %v10161_v44, %v9292_v45  ;;  %v10157_v50 = vld [vmem:[%s15844_s1 + $0x1a4] sm:$0xf]  ;;  %v9276_v62 = vld [vmem:[%s15844_s1 + $0x1b0] sm:$0xf0] }
  0x68   :  { %16048 = vst [vmem:[#allocation6_spill] sm:$0xff] %v11795_v48  ;;  %889 = vmatpush.bf16.msra.mxu3 %v11795_v48  ;;  %v11936_v11 = vor.u32 %v10157_v50, %v9276_v62  ;;  %v9260_v45 = vld [vmem:[%s15844_s1 + $0x190] sm:$0xf0]  ;;  %v9442_v48 = vld [vmem:[%s15844_s1 + $0x2e8] sm:$0xf] }
  0x69   :  { %16053 = vst [vmem:[#allocation11_spill] sm:$0xff] %v11836_v2 }
  0x6a   :  { %16060 = vst [vmem:[#allocation18_spill] sm:$0xff] %v11908_v52 }
  0x6b   :  { %791 = vmatpush.bf16.msra.mxu1 %v11746_v25  ;;  %16063 = vst [vmem:[#allocation21_spill] sm:$0xff] %v11936_v11 }
  0x6c   :  { %890 = vmatpush.bf16.msra.mxu3 %v11812_v54  ;;  %v10162_v54 = vld [vmem:[%s15844_s1 + $0x1cc] sm:$0xf] }
  0x6f   :  { %792 = vmatpush.bf16.msra.mxu1 %v11778_v37 }
  0x74   :  { %231 = vxpose.xlu1.c.b16.end [8/8] %v11475_v47, 128  ;;  %v10111_v47 = vld [vmem:[%s15844_s1 + $0x2c] sm:$0xf0] }
  0x75   :  { %v11800_v49 = vor.u32 %v10111_v47, %v9082_v46  ;;  %v11898_v46 = vor.u32 %v10128_v34, %v9154_v33  ;;  %v9266_v34 = vld [vmem:[%s15844_s1 + $0x188] sm:$0xf] }
  0x76   :  { %11104 = vxpose.binary.xlu0.c.b16.end [8/16] %v95_v38, %v111_v39, 128  ;;  %v9298_v38 = vld [vmem:[%s15844_s1 + $0x1c8] sm:$0xf]  ;;  %v10164_v39 = vld [vmem:[%s15844_s1 + $0x1d4] sm:$0xf0] }
  0x77   :  { %16049 = vst [vmem:[#allocation7_spill] sm:$0xff] %v11800_v49  ;;  %742 = vmatpush.bf16.msra.mxu0 %v11800_v49  ;;  %v11906_v51 = vor.u32 %v10164_v39, %v9298_v38  ;;  %v10156_v38 = vld [vmem:[%s15844_s1 + $0x194] sm:$0xf0]  ;;  %v10153_v39 = vld [vmem:[%s15844_s1 + $0x184] sm:$0xf] }
  0x78   :  { %16058 = vst [vmem:[#allocation16_spill] sm:$0xff] %v11898_v46  ;;  %v11968_v44 = vor.u32 %v10156_v38, %v9266_v34  ;;  %v11979_v60 = vor.u32 %v10153_v39, %v9260_v45  ;;  %v11998_v34 = vor.u32 %v10120_v30, %v9122_v27  ;;  %v9250_v39 = vld [vmem:[%s15844_s1 + $0x168] sm:$0xf]  ;;  %v10152_v45 = vld [vmem:[%s15844_s1 + $0x174] sm:$0xf0] }
  0x79   :  { %16059 = vst [vmem:[#allocation17_spill] sm:$0xff] %v11906_v51  ;;  %v12014_v57 = vor.u32 %v10152_v45, %v9250_v39  ;;  %v9244_v27 = vld [vmem:[%s15844_s1 + $0x170] sm:$0xf0]  ;;  %v10181_v30 = vld [vmem:[%s15844_s1 + $0x264] sm:$0xf] }
  0x7a   :  { %16065 = vst [vmem:[#allocation23_spill] sm:$0xff] %v11968_v44  ;;  %v9300_v49 = vld [vmem:[%s15844_s1 + $0x1d8] sm:$0xf0] }
  0x7b   :  { %743 = vmatpush.bf16.msra.mxu0 %v11818_v59  ;;  %16066 = vst [vmem:[#allocation24_spill] sm:$0xff] %v11979_v60  ;;  %v9172_v59 = vld [vmem:[%s15844_s1 + $0xd8] sm:$0xf0] }
  0x7c   :  { %16068 = vst [vmem:[#allocation26_spill] sm:$0xff] %v11998_v34 }
  0x7d   :  { %16069 = vst [vmem:[#allocation27_spill] sm:$0xff] %v12014_v57 }
  0xb0   :  { %v11844_v10 = vpop.trf.xlu1 }
  0xb1   :  { %793 = vmatmul.bf16.vlgmr.msra.gmra.mxu1 %v11844_v10 }
  0xb2   :  { %v11852_v17 = vpop.trf.xlu0  ;;  %981 = vmatpush.bf16.msra.mxu1 %v11834_v1  ;;  %v10130_v1 = vld [vmem:[%s15844_s1 + $0xcc] sm:$0xf] }
  0xb3   :  { %842 = vmatmul.bf16.vlgmr.msra.gmra.mxu2 %v11852_v17 }
  0xb4   :  { %1030 = vmatpush.bf16.msra.mxu2 %v11836_v2 }
  0xb6   :  { %982 = vmatpush.bf16.msra.mxu1 %v11857_v19 }
  0xb8   :  { %1031 = vmatpush.bf16.msra.mxu2 %v11863_v26 }
  0xba   :  { %v11900_v47 = vpop.trf.xlu0  ;;  %983 = vmatpush.bf16.msra.mxu1 %v11929_v3  ;;  %v9324_v3 = vld [vmem:[%s15844_s1 + $0x210] sm:$0xf0] }
  0xbb   :  { %744 = vmatmul.bf16.vlgmr.msra.gmra.mxu0 %v11900_v47  ;;  %891 = vmatmul.bf16.vlgmr.msra.gmra.mxu3 %v11900_v47 }
  0xbc   :  { %1079 = vmatpush.bf16.msra.mxu3 %v11881_v24  ;;  %932 = vmatpush.bf16.msra.mxu0 %v11883_v36 }
  0xbd   :  { %1032 = vmatpush.bf16.msra.mxu2 %v11898_v46 }
  0xbe   :  { %984 = vmatpush.bf16.msra.mxu1 %v11981_v61 }
  0xc0   :  { %1080 = vmatpush.bf16.msra.mxu3 %v11906_v51  ;;  %933 = vmatpush.bf16.msra.mxu0 %v11908_v52  ;;  %v11938_v16 = vpop.trf.xlu1 }
  0xc1   :  { %798 = vmatmul.bf16.gmra.mxu1 %v11938_v16  ;;  %1033 = vmatpush.bf16.msra.mxu2 %v11952_v31  ;;  %v9340_v31 = vld [vmem:[%s15844_s1 + $0x230] sm:$0xf0] }
  0xc2   :  { %v11940_v20 = vpop.trf.xlu0 }
  0xc3   :  { %847 = vmatmul.bf16.gmra.mxu2 %v11940_v20 }
  0xc4   :  { %1081 = vmatpush.bf16.msra.mxu3 %v11934_v9  ;;  %934 = vmatpush.bf16.msra.mxu0 %v11936_v11  ;;  %v9356_v9 = vld [vmem:[%s15844_s1 + $0x250] sm:$0xf0] }
  0xc5   :  { %1034 = vmatpush.bf16.msra.mxu2 %v11998_v34 }
  0xc8   :  { %1082 = vmatpush.bf16.msra.mxu3 %v11968_v44  ;;  %935 = vmatpush.bf16.msra.mxu0 %v11979_v60  ;;  %v9372_v44 = vld [vmem:[%s15844_s1 + $0x270] sm:$0xf0]  ;;  %v12025_v60 = vor.u32 %v10149_v15, %v9244_v27  ;;  %v9106_v15 = vld [vmem:[%s15844_s1 + $0x48] sm:$0xf] }
  0xc9   :  { %v12027_v34 = vor.u32 %v10181_v30, %v9372_v44  ;;  %v10116_v44 = vld [vmem:[%s15844_s1 + $0x54] sm:$0xf0] }
  0xca   :  { %v11955_v33 = vpop.trf.xlu0  ;;  %16070 = vst [vmem:[#allocation28_spill] sm:$0xff] %v12025_v60  ;;  %v12044_v27 = vor.u32 %v10116_v44, %v9106_v15  ;;  %v10145_v15 = vld [vmem:[%s15844_s1 + $0x144] sm:$0xf] }
  0xcb   :  { %749 = vmatmul.bf16.gmra.mxu0 %v11955_v33  ;;  %896 = vmatmul.bf16.gmra.mxu3 %v11955_v33  ;;  %16071 = vst [vmem:[#allocation29_spill] sm:$0xff] %v12027_v34 }
  0xcc   :  { %1083 = vmatpush.bf16.msra.mxu3 %v12014_v57  ;;  %936 = vmatpush.bf16.msra.mxu0 %v12025_v60  ;;  %16072 = vst [vmem:[#allocation30_spill] sm:$0xff] %v12044_v27  ;;  %v9234_v57 = vld [vmem:[%s15844_s1 + $0x148] sm:$0xf]  ;;  %v10148_v60 = vld [vmem:[%s15844_s1 + $0x154] sm:$0xf0] }
  0xcd   :  { %985 = vmatpush.bf16.msra.mxu1 %v12027_v34  ;;  %1035 = vmatpush.bf16.msra.mxu2 %v12044_v27  ;;  %v12060_v44 = vor.u32 %v10148_v60, %v9234_v57  ;;  %v9228_v27 = vld [vmem:[%s15844_s1 + $0x150] sm:$0xf0]  ;;  %v10177_v34 = vld [vmem:[%s15844_s1 + $0x244] sm:$0xf] }
  0xce   :  { %v12071_v61 = vor.u32 %v10145_v15, %v9228_v27  ;;  %v12073_v11 = vor.u32 %v10177_v34, %v9356_v9  ;;  %v9090_v27 = vld [vmem:[%s15844_s1 + $0x28] sm:$0xf]  ;;  %v10112_v9 = vld [vmem:[%s15844_s1 + $0x34] sm:$0xf0] }
  0xcf   :  { %16073 = vst [vmem:[#allocation31_spill] sm:$0xff] %v12060_v44  ;;  %v12090_v34 = vor.u32 %v10112_v9, %v9090_v27  ;;  %v10141_v27 = vld [vmem:[%s15844_s1 + $0x124] sm:$0xf] }
  0xd0   :  { %v11986_v50 = vpop.trf.xlu1  ;;  %16074 = vst [vmem:[#allocation32_spill] sm:$0xff] %v12071_v61  ;;  %1084 = vmatpush.bf16.msra.mxu3 %v12060_v44  ;;  %937 = vmatpush.bf16.msra.mxu0 %v12071_v61  ;;  %v9218_v44 = vld [vmem:[%s15844_s1 + $0x128] sm:$0xf]  ;;  %v10144_v61 = vld [vmem:[%s15844_s1 + $0x134] sm:$0xf0] }
  0xd1   :  { %803 = vmatmul.bf16.gmra.mxu1 %v11986_v50  ;;  %16075 = vst [vmem:[#allocation33_spill] sm:$0xff] %v12073_v11  ;;  %1036 = vmatpush.bf16.msra.mxu2 %v12090_v34  ;;  %v12106_v9 = vor.u32 %v10144_v61, %v9218_v44 }
  0xd2   :  { %v11988_v62 = vpop.trf.xlu0  ;;  %986 = vmatpush.bf16.msra.mxu1 %v12073_v11  ;;  %16076 = vst [vmem:[#allocation34_spill] sm:$0xff] %v12090_v34  ;;  %v9212_v34 = vld [vmem:[%s15844_s1 + $0x130] sm:$0xf0]  ;;  %v10173_v11 = vld [vmem:[%s15844_s1 + $0x224] sm:$0xf] }
  0xd3   :  { %852 = vmatmul.bf16.gmra.mxu2 %v11988_v62  ;;  %16077 = vst [vmem:[#allocation35_spill] sm:$0xff] %v12106_v9  ;;  %v12117_v51 = vor.u32 %v10141_v27, %v9212_v34  ;;  %v12119_v52 = vor.u32 %v10173_v11, %v9340_v31  ;;  %v9074_v34 = vld [vmem:[%s15844_s1 + $0x8] sm:$0xf]  ;;  %v10108_v11 = vld [vmem:[%s15844_s1 + $0x14] sm:$0xf0] }
  0xd4   :  { %1085 = vmatpush.bf16.msra.mxu3 %v12106_v9  ;;  %v12136_v31 = vor.u32 %v10108_v11, %v9074_v34  ;;  %v9202_v9 = vld [vmem:[%s15844_s1 + $0x108] sm:$0xf]  ;;  %v10137_v34 = vld [vmem:[%s15844_s1 + $0x104] sm:$0xf] }
  0xd5   :  { %16078 = vst [vmem:[#allocation36_spill] sm:$0xff] %v12117_v51  ;;  %938 = vmatpush.bf16.msra.mxu0 %v12117_v51  ;;  %v10140_v51 = vld [vmem:[%s15844_s1 + $0x114] sm:$0xf0] }
  0xd6   :  { %16079 = vst [vmem:[#allocation37_spill] sm:$0xff] %v12119_v52  ;;  %987 = vmatpush.bf16.msra.mxu1 %v12119_v52  ;;  %1037 = vmatpush.bf16.msra.mxu2 %v12136_v31  ;;  %v12152_v11 = vor.u32 %v10140_v51, %v9202_v9  ;;  %v10169_v52 = vld [vmem:[%s15844_s1 + $0x204] sm:$0xf] }
  0xd7   :  { %16081 = vst [vmem:[#allocation39_spill] sm:$0xff] %v12136_v31  ;;  %v9196_v31 = vld [vmem:[%s15844_s1 + $0x110] sm:$0xf0]  ;;  %v12165_v24 = vor.u32 %v10169_v52, %v9324_v3 }
  0xd8   :  { %16082 = vst [vmem:[#allocation40_spill] sm:$0xff] %v12152_v11  ;;  %v12163_v46 = vor.u32 %v10137_v34, %v9196_v31  ;;  %1086 = vmatpush.bf16.msra.mxu3 %v12152_v11  ;;  %v10134_v34 = vld [vmem:[%s15844_s1 + $0xec] sm:$0xf]  ;;  %v9188_v11 = vld [vmem:[%s15844_s1 + $0xf8] sm:$0xf0] }
  0xd9   :  { %16084 = vst [vmem:[#allocation42_spill] sm:$0xff] %v12165_v24  ;;  %v12202_v19 = vor.u32 %v10134_v34, %v9188_v11  ;;  %v12227_v11 = vor.u32 %v10162_v54, %v9300_v49  ;;  %v9444_v34 = vld [vmem:[%s15844_s1 + $0x2f8] sm:$0xf0]  ;;  %v10194_v54 = vld [vmem:[%s15844_s1 + $0x2cc] sm:$0xf] }
  0xda   :  { %v12001_v38 = vpop.trf.xlu0  ;;  %16083 = vst [vmem:[#allocation41_spill] sm:$0xff] %v12163_v46  ;;  %939 = vmatpush.bf16.msra.mxu0 %v12163_v46  ;;  %988 = vmatpush.bf16.msra.mxu1 %v12165_v24  ;;  %v10166_v46 = vld [vmem:[%s15844_s1 + $0x1ec] sm:$0xf]  ;;  %v9316_v24 = vld [vmem:[%s15844_s1 + $0x1f8] sm:$0xf0] }
  0xdb   :  { %754 = vmatmul.bf16.gmra.mxu0 %v12001_v38  ;;  %901 = vmatmul.bf16.gmra.mxu3 %v12001_v38  ;;  %16087 = vst [vmem:[#allocation45_spill] sm:$0xff] %v12202_v19  ;;  %v12204_v2 = vor.u32 %v10166_v46, %v9316_v24  ;;  %v12221_v24 = vor.u32 %v10130_v1, %v9172_v59  ;;  %v10198_v46 = vld [vmem:[%s15844_s1 + $0x2ec] sm:$0xf]  ;;  %v10200_v59 = vld [vmem:[%s15844_s1 + $0x2f4] sm:$0xf0] }
  0xdc   :  { %16090 = vst [vmem:[#allocation48_spill] sm:$0xff] %v12227_v11  ;;  %v12239_v37 = vor.u32 %v10198_v46, %v9444_v34  ;;  %v12241_v49 = vor.u32 %v10200_v59, %v9442_v48  ;;  %v9428_v48 = vld [vmem:[%s15844_s1 + $0x2d8] sm:$0xf0]  ;;  %v9426_v46 = vld [vmem:[%s15844_s1 + $0x2c8] sm:$0xf] }
  0xdd   :  { %16088 = vst [vmem:[#allocation46_spill] sm:$0xff] %v12204_v2  ;;  %v10196_v34 = vld [vmem:[%s15844_s1 + $0x2d4] sm:$0xf0] }
  0xde   :  { %16089 = vst [vmem:[#allocation47_spill] sm:$0xff] %v12221_v24 }
  0xdf   :  { %16091 = vst [vmem:[#allocation49_spill] sm:$0xff] %v12239_v37 }
  0xe0   :  { %v12032_v39 = vpop.trf.xlu1  ;;  %16092 = vst [vmem:[#allocation50_spill] sm:$0xff] %v12241_v49 }
  0xe1   :  { %808 = vmatmul.bf16.gmra.mxu1 %v12032_v39 }
  0xe2   :  { %v12034_v45 = vpop.trf.xlu0 }
  0xe3   :  { %857 = vmatmul.bf16.gmra.mxu2 %v12034_v45 }
  0xea   :  { %v12047_v30 = vpop.trf.xlu0 }
  0xeb   :  { %759 = vmatmul.bf16.gmra.mxu0 %v12047_v30  ;;  %906 = vmatmul.bf16.gmra.mxu3 %v12047_v30 }
  0xf0   :  { %v12078_v60 = vpop.trf.xlu1 }
  0xf1   :  { %813 = vmatmul.bf16.gmra.mxu1 %v12078_v60 }
  0xf2   :  { %v12080_v57 = vpop.trf.xlu0 }
  0xf3   :  { %862 = vmatmul.bf16.gmra.mxu2 %v12080_v57 }
  0xfa   :  { %v12093_v15 = vpop.trf.xlu0 }
  0xfb   :  { %764 = vmatmul.bf16.gmra.mxu0 %v12093_v15  ;;  %911 = vmatmul.bf16.gmra.mxu3 %v12093_v15 }
 0x100   :  { %v12124_v61 = vpop.trf.xlu1 }
 0x101   :  { %818 = vmatmul.bf16.gmra.mxu1 %v12124_v61 }
 0x102   :  { %v12126_v44 = vpop.trf.xlu0 }
 0x103   :  { %16080 = vst [vmem:[#allocation38_spill] sm:$0xff] %v12126_v44  ;;  %867 = vmatmul.bf16.gmra.mxu2 %v12126_v44 }
 0x10a   :  { %v12139_v27 = vpop.trf.xlu0 }
 0x10b   :  { %769 = vmatmul.bf16.gmra.mxu0 %v12139_v27  ;;  %916 = vmatmul.bf16.gmra.mxu3 %v12139_v27 }
 0x110   :  { %v12170_v51 = vpop.trf.xlu1 }
 0x111   :  { %823 = vmatmul.bf16.gmra.mxu1 %v12170_v51 }
 0x112   :  { %v12172_v9 = vpop.trf.xlu0 }
 0x113   :  { %16085 = vst [vmem:[#allocation43_spill] sm:$0xff] %v12172_v9  ;;  %872 = vmatmul.bf16.gmra.mxu2 %v12172_v9 }
 0x11a   :  { %v12176_v36 = vpop.trf.xlu0 }
 0x11b   :  { %16086 = vst [vmem:[#allocation44_spill] sm:$0xff] %v12176_v36  ;;  %774 = vmatmul.bf16.gmra.mxu0 %v12176_v36  ;;  %921 = vmatmul.bf16.gmra.mxu3 %v12176_v36 }
 0x120   :  { %v12180_v52 = vpop.trf.xlu1 }
 0x121   :  { %828 = vmatmul.bf16.gmra.mxu1 %v12180_v52 }
 0x122   :  { %v12182_v3 = vpop.trf.xlu0 }
 0x123   :  { %877 = vmatmul.bf16.gmra.mxu2 %v12182_v3 }
 0x12a   :  { %v12186_v31 = vpop.trf.xlu0 }
 0x12b   :  { %779 = vmatmul.bf16.gmra.mxu0 %v12186_v31  ;;  %926 = vmatmul.bf16.gmra.mxu3 %v12186_v31 }
 0x12e   :  { %v794_v26 = vpop.f32.mrf.mxu1 }
 0x131   :  { %989 = vmatmul.bf16.vlgmr.msra.gmra.mxu1 %v11852_v17 }
 0x132   :  { %1177 = vmatpush.bf16.msra.mxu1 %v12202_v19 }
 0x133   :  { %1038 = vmatmul.bf16.vlgmr.msra.gmra.mxu2 %v11900_v47 }
 0x134   :  { %1226 = vmatpush.bf16.msra.mxu2 %v12204_v2 }
 0x136   :  { %v843_v1 = vpop.f32.mrf.mxu2  ;;  %v796_v19 = vpop.f32.mrf.mxu1  ;;  %1178 = vmatpush.bf16.msra.mxu1 %v12221_v24 }
 0x137   :  { %v9284_v19 = vld [vmem:[%s15844_s1 + $0x1b8] sm:$0xf0] }
 0x138   :  { %v745_v2 = vpop.f32.mrf.mxu0  ;;  %1227 = vmatpush.bf16.msra.mxu2 %v12227_v11  ;;  %v12262_v59 = vor.u32 %v10158_v42, %v9284_v19  ;;  %v10190_v42 = vld [vmem:[%s15844_s1 + $0x2ac] sm:$0xf] }
 0x139   :  { %v795_v24 = vadd.f32 %v794_v26, %v745_v2  ;;  %v12269_v2 = vor.u32 %v10194_v54, %v9428_v48  ;;  %v12271_v26 = vor.u32 %v10196_v34, %v9426_v46  ;;  %v9410_v54 = vld [vmem:[%s15844_s1 + $0x2a8] sm:$0xf]  ;;  %v10192_v48 = vld [vmem:[%s15844_s1 + $0x2b4] sm:$0xf0]  ;;  %v10126_v46 = vld [vmem:[%s15844_s1 + $0xac] sm:$0xf] }
 0x13a   :  { %16093 = vst [vmem:[#allocation51_spill] sm:$0xff] %v12262_v59 }
 0x13b   :  { %v12264_v11 = vadd.f32 %v843_v1, %v795_v24  ;;  %10362 = vmatmul.lmr.bf16.vlgmr.msra.gmra.16.mxu0  ;;  %1087 = vmatmul.bf16.vlgmr.msra.gmra.mxu3 %v11844_v10  ;;  %16095 = vst [vmem:[#allocation53_spill] sm:$0xff] %v12269_v2  ;;  %v9412_v24 = vld [vmem:[%s15844_s1 + $0x2b8] sm:$0xf0] }
 0x13c   :  { %1275 = vmatpush.bf16.msra.mxu3 %v12239_v37  ;;  %1128 = vmatpush.bf16.msra.mxu0 %v12241_v49  ;;  %16096 = vst [vmem:[#allocation54_spill] sm:$0xff] %v12271_v26  ;;  %v12296_v37 = vor.u32 %v10190_v42, %v9412_v24  ;;  %v12298_v49 = vor.u32 %v10192_v48, %v9410_v54  ;;  %v9268_v24 = vld [vmem:[%s15844_s1 + $0x198] sm:$0xf0]  ;;  %v10186_v48 = vld [vmem:[%s15844_s1 + $0x28c] sm:$0xf] }
 0x13d   :  { %16094 = vst [vmem:[#allocation52_spill] sm:$0xff] %v12264_v11  ;;  %1228 = vmatpush.bf16.msra.mxu2 %v12262_v59  ;;  %v9156_v59 = vld [vmem:[%s15844_s1 + $0xb8] sm:$0xf0] }
 0x13e   :  { %v845_v1 = vpop.f32.mrf.mxu2  ;;  %v12280_v19 = vpop.f32.mrf.mxu3  ;;  %16097 = vst [vmem:[#allocation55_spill] sm:$0xff] %v12296_v37  ;;  %v12300_v11 = vor.u32 %v10126_v46, %v9156_v59  ;;  %v10154_v59 = vld [vmem:[%s15844_s1 + $0x18c] sm:$0xf] }
 0x13f   :  { %v799_v34 = vpop.f32.mrf.mxu1  ;;  %16098 = vst [vmem:[#allocation56_spill] sm:$0xff] %v12298_v49  ;;  %v12313_v54 = vor.u32 %v10154_v59, %v9268_v24  ;;  %v10188_v59 = vld [vmem:[%s15844_s1 + $0x294] sm:$0xf0]  ;;  %v10122_v24 = vld [vmem:[%s15844_s1 + $0x8c] sm:$0xf] }
 0x140   :  { %v747_v1 = vpop.f32.mrf.mxu0  ;;  %1276 = vmatpush.bf16.msra.mxu3 %v12269_v2  ;;  %1129 = vmatpush.bf16.msra.mxu0 %v12271_v26  ;;  %16099 = vst [vmem:[#allocation57_spill] sm:$0xff] %v12300_v11 }
 0x141   :  { %994 = vmatmul.bf16.gmra.mxu1 %v11940_v20  ;;  %16100 = vst [vmem:[#allocation58_spill] sm:$0xff] %v12313_v54  ;;  %1229 = vmatpush.bf16.msra.mxu2 %v12313_v54 }
 0x142   :  { %1179 = vmatpush.bf16.msra.mxu1 %v12300_v11 }
 0x143   :  { %10363 = vmatmul.lmr.bf16.gmra.16.mxu0  ;;  %1043 = vmatmul.bf16.gmra.mxu2 %v11955_v33 }
 0x144   :  { %1277 = vmatpush.bf16.msra.mxu3 %v12296_v37  ;;  %1130 = vmatpush.bf16.msra.mxu0 %v12298_v49 }
 0x146   :  { %v848_v34 = vpop.f32.mrf.mxu2  ;;  %v894_v1 = vpop.f32.mrf.mxu3 }
 0x147   :  { %v801_v2 = vpop.f32.mrf.mxu1 }
 0x148   :  { %v750_v42 = vpop.f32.mrf.mxu0  ;;  %v9396_v2 = vld [vmem:[%s15844_s1 + $0x298] sm:$0xf0] }
 0x149   :  { %v12323_v46 = vor.u32 %v10186_v48, %v9396_v2  ;;  %v9394_v42 = vld [vmem:[%s15844_s1 + $0x288] sm:$0xf]  ;;  %v9140_v48 = vld [vmem:[%s15844_s1 + $0x98] sm:$0xf0] }
 0x14a   :  { %v12335_v49 = vor.u32 %v10188_v59, %v9394_v42 }
 0x14b   :  { %10364 = vmatmul.lmr.bf16.gmra.16.mxu0  ;;  %1092 = vmatmul.bf16.gmra.mxu3 %v11938_v16  ;;  %16101 = vst [vmem:[#allocation59_spill] sm:$0xff] %v12323_v46 }
 0x14c   :  { %1278 = vmatpush.bf16.msra.mxu3 %v12323_v46  ;;  %16102 = vst [vmem:[#allocation60_spill] sm:$0xff] %v12335_v49  ;;  %1131 = vmatpush.bf16.msra.mxu0 %v12335_v49  ;;  %v10150_v46 = vld [vmem:[%s15844_s1 + $0x16c] sm:$0xf] }
 0x14d   :  { %v10118_v49 = vld [vmem:[%s15844_s1 + $0x6c] sm:$0xf] }
 0x14e   :  { %v850_v34 = vpop.f32.mrf.mxu2  ;;  %v897_v1 = vpop.f32.mrf.mxu3 }
 0x14f   :  { %v804_v37 = vpop.f32.mrf.mxu1  ;;  %v12340_v34 = vor.u32 %v10122_v24, %v9140_v48  ;;  %v9252_v24 = vld [vmem:[%s15844_s1 + $0x178] sm:$0xf0] }
 0x150   :  { %v752_v2 = vpop.f32.mrf.mxu0  ;;  %v12352_v48 = vor.u32 %v10150_v46, %v9252_v24  ;;  %v9378_v46 = vld [vmem:[%s15844_s1 + $0x268] sm:$0xf]  ;;  %v10184_v24 = vld [vmem:[%s15844_s1 + $0x274] sm:$0xf0] }
 0x151   :  { %16103 = vst [vmem:[#allocation61_spill] sm:$0xff] %v12340_v34  ;;  %999 = vmatmul.bf16.gmra.mxu1 %v11988_v62  ;;  %v10182_v2 = vld [vmem:[%s15844_s1 + $0x26c] sm:$0xf] }
 0x152   :  { %1180 = vmatpush.bf16.msra.mxu1 %v12340_v34  ;;  %16104 = vst [vmem:[#allocation62_spill] sm:$0xff] %v12352_v48  ;;  %1230 = vmatpush.bf16.msra.mxu2 %v12352_v48  ;;  %v12374_v48 = vor.u32 %v10184_v24, %v9378_v46  ;;  %v9448_v46 = vld [vmem:[%s15843_s0 + $0x180] sm:$0xff] }
 0x153   :  { %10365 = vmatmul.lmr.bf16.gmra.16.mxu0  ;;  %1048 = vmatmul.bf16.gmra.mxu2 %v12001_v38  ;;  %v9464_v24 = vld [vmem:[%s15843_s0 + $0x200] sm:$0xff] }
 0x154   :  { %16106 = vst [vmem:[#allocation64_spill] sm:$0xff] %v12374_v48  ;;  %1132 = vmatpush.bf16.msra.mxu0 %v12374_v48  ;;  %v10146_v48 = vld [vmem:[%s15844_s1 + $0x14c] sm:$0xf] }
 0x156   :  { %v853_v1 = vpop.f32.mrf.mxu2  ;;  %v899_v37 = vpop.f32.mrf.mxu3 }
 0x157   :  { %v806_v42 = vpop.f32.mrf.mxu1  ;;  %v9380_v1 = vld [vmem:[%s15844_s1 + $0x278] sm:$0xf0] }
 0x158   :  { %v755_v59 = vpop.f32.mrf.mxu0  ;;  %v12362_v37 = vor.u32 %v10182_v2, %v9380_v1  ;;  %v9124_v2 = vld [vmem:[%s15844_s1 + $0x78] sm:$0xf0] }
 0x15a   :  { %16105 = vst [vmem:[#allocation63_spill] sm:$0xff] %v12362_v37  ;;  %1279 = vmatpush.bf16.msra.mxu3 %v12362_v37 }
 0x15b   :  { %10366 = vmatmul.lmr.bf16.gmra.16.mxu0  ;;  %1097 = vmatmul.bf16.gmra.mxu3 %v11986_v50 }
 0x15e   :  { %v855_v42 = vpop.f32.mrf.mxu2  ;;  %v902_v59 = vpop.f32.mrf.mxu3 }
 0x15f   :  { %v809_v34 = vpop.f32.mrf.mxu1  ;;  %v12379_v42 = vor.u32 %v10118_v49, %v9124_v2  ;;  %v9449_v49 = vld [vmem:[%s15843_s0 + $0x188] sm:$0xff] }
 0x160   :  { %v757_v1 = vpop.f32.mrf.mxu0  ;;  %v12397_v37 = vpack.c.bf16 %v9449_v49, %v9448_v46  ;;  %v10178_v46 = vld [vmem:[%s15844_s1 + $0x24c] sm:$0xf]  ;;  %v9364_v49 = vld [vmem:[%s15844_s1 + $0x258] sm:$0xf0] }
 0x161   :  { %16107 = vst [vmem:[#allocation65_spill] sm:$0xff] %v12379_v42  ;;  %1004 = vmatmul.bf16.gmra.mxu1 %v12034_v45  ;;  %v9465_v1 = vld [vmem:[%s15843_s0 + $0x208] sm:$0xff] }
 0x162   :  { %1181 = vmatpush.bf16.msra.mxu1 %v12379_v42  ;;  %v9236_v42 = vld [vmem:[%s15844_s1 + $0x158] sm:$0xf0] }
 0x163   :  { %10367 = vmatmul.lmr.bf16.gmra.16.mxu0  ;;  %1053 = vmatmul.bf16.gmra.mxu2 %v12047_v30  ;;  %v12405_v54 = vor.u32 %v10146_v48, %v9236_v42  ;;  %v9362_v42 = vld [vmem:[%s15844_s1 + $0x248] sm:$0xf] }
 0x165   :  { %16108 = vst [vmem:[#allocation66_spill] sm:$0xff] %v12405_v54  ;;  %1231 = vmatpush.bf16.msra.mxu2 %v12405_v54 }
 0x166   :  { %v858_v59 = vpop.f32.mrf.mxu2  ;;  %v904_v34 = vpop.f32.mrf.mxu3 }
 0x167   :  { %v811_v2 = vpop.f32.mrf.mxu1  ;;  %v1381_v34 = vpack.c.bf16 %v9465_v1, %v9464_v24  ;;  %v12416_v24 = vor.u32 %v10178_v46, %v9364_v49  ;;  %v10180_v1 = vld [vmem:[%s15844_s1 + $0x254] sm:$0xf0]  ;;  %v9108_v46 = vld [vmem:[%s15844_s1 + $0x58] sm:$0xf0] }
 0x168   :  { %v760_v59 = vpop.f32.mrf.mxu0  ;;  %v12428_v54 = vor.u32 %v10180_v1, %v9362_v42  ;;  %v9450_v42 = vld [vmem:[%s15843_s0 + $0x190] sm:$0xff]  ;;  %v9451_v1 = vld [vmem:[%s15843_s0 + $0x198] sm:$0xff] }
 0x169   :  { %11121 = vxpose.binary.xlu2.c.b16.start [1/16] %v1381_v34, %v12397_v37, 128  ;;  %16109 = vst [vmem:[#allocation67_spill] sm:$0xff] %v12416_v24  ;;  %v10114_v59 = vld [vmem:[%s15844_s1 + $0x4c] sm:$0xf] }
 0x16a   :  { %1280 = vmatpush.bf16.msra.mxu3 %v12416_v24  ;;  %16110 = vst [vmem:[#allocation68_spill] sm:$0xff] %v12428_v54  ;;  %1133 = vmatpush.bf16.msra.mxu0 %v12428_v54  ;;  %v12451_v24 = vpack.c.bf16 %v9451_v1, %v9450_v42  ;;  %v10142_v54 = vld [vmem:[%s15844_s1 + $0x12c] sm:$0xf]  ;;  %v9348_v1 = vld [vmem:[%s15844_s1 + $0x238] sm:$0xf0] }
 0x16b   :  { %10368 = vmatmul.lmr.bf16.gmra.16.mxu0  ;;  %1102 = vmatmul.bf16.gmra.mxu3 %v12032_v39  ;;  %v10174_v42 = vld [vmem:[%s15844_s1 + $0x22c] sm:$0xf] }
 0x16e   :  { %v860_v2 = vpop.f32.mrf.mxu2  ;;  %v907_v48 = vpop.f32.mrf.mxu3 }
 0x16f   :  { %v814_v34 = vpop.f32.mrf.mxu1  ;;  %v12433_v2 = vor.u32 %v10114_v59, %v9108_v46  ;;  %v9466_v59 = vld [vmem:[%s15843_s0 + $0x210] sm:$0xff] }
 0x170   :  { %v762_v49 = vpop.f32.mrf.mxu0 }
 0x171   :  { %16111 = vst [vmem:[#allocation69_spill] sm:$0xff] %v12433_v2  ;;  %1009 = vmatmul.bf16.gmra.mxu1 %v12080_v57  ;;  %v9467_v49 = vld [vmem:[%s15843_s0 + $0x218] sm:$0xff] }
 0x172   :  { %1182 = vmatpush.bf16.msra.mxu1 %v12433_v2  ;;  %v9220_v2 = vld [vmem:[%s15844_s1 + $0x138] sm:$0xf0] }
 0x173   :  { %10369 = vmatmul.lmr.bf16.gmra.16.mxu0  ;;  %1058 = vmatmul.bf16.gmra.mxu2 %v12093_v15  ;;  %v12459_v26 = vor.u32 %v10142_v54, %v9220_v2  ;;  %v9346_v2 = vld [vmem:[%s15844_s1 + $0x228] sm:$0xf] }
 0x175   :  { %16112 = vst [vmem:[#allocation70_spill] sm:$0xff] %v12459_v26  ;;  %1232 = vmatpush.bf16.msra.mxu2 %v12459_v26 }
 0x176   :  { %v863_v48 = vpop.f32.mrf.mxu2  ;;  %v909_v34 = vpop.f32.mrf.mxu3 }
 0x177   :  { %v816_v46 = vpop.f32.mrf.mxu1  ;;  %v1382_v34 = vpack.c.bf16 %v9467_v49, %v9466_v59  ;;  %v12470_v59 = vor.u32 %v10174_v42, %v9348_v1  ;;  %v10176_v49 = vld [vmem:[%s15844_s1 + $0x234] sm:$0xf0]  ;;  %v9092_v42 = vld [vmem:[%s15844_s1 + $0x38] sm:$0xf0] }
 0x178   :  { %v765_v48 = vpop.f32.mrf.mxu0  ;;  %v12482_v26 = vor.u32 %v10176_v49, %v9346_v2  ;;  %v9452_v2 = vld [vmem:[%s15843_s0 + $0x1a0] sm:$0xff]  ;;  %v9453_v49 = vld [vmem:[%s15843_s0 + $0x1a8] sm:$0xff] }
 0x179   :  { %11122 = vxpose.binary.xlu2.c.b16.cont [2/16] %v1382_v34, %v12451_v24, 128  ;;  %16113 = vst [vmem:[#allocation71_spill] sm:$0xff] %v12470_v59  ;;  %v10110_v48 = vld [vmem:[%s15844_s1 + $0x2c] sm:$0xf] }
 0x17a   :  { %1281 = vmatpush.bf16.msra.mxu3 %v12470_v59  ;;  %16114 = vst [vmem:[#allocation72_spill] sm:$0xff] %v12482_v26  ;;  %1134 = vmatpush.bf16.msra.mxu0 %v12482_v26  ;;  %v12505_v59 = vpack.c.bf16 %v9453_v49, %v9452_v2  ;;  %v10138_v26 = vld [vmem:[%s15844_s1 + $0x10c] sm:$0xf]  ;;  %v9332_v49 = vld [vmem:[%s15844_s1 + $0x218] sm:$0xf0] }
 0x17b   :  { %10370 = vmatmul.lmr.bf16.gmra.16.mxu0  ;;  %1107 = vmatmul.bf16.gmra.mxu3 %v12078_v60  ;;  %v10170_v2 = vld [vmem:[%s15844_s1 + $0x20c] sm:$0xf] }
 0x17e   :  { %v865_v46 = vpop.f32.mrf.mxu2  ;;  %v912_v54 = vpop.f32.mrf.mxu3 }
 0x17f   :  { %v819_v34 = vpop.f32.mrf.mxu1  ;;  %v12487_v46 = vor.u32 %v10110_v48, %v9092_v42  ;;  %v9468_v48 = vld [vmem:[%s15843_s0 + $0x220] sm:$0xff] }
 0x180   :  { %v767_v1 = vpop.f32.mrf.mxu0 }
 0x181   :  { %16115 = vst [vmem:[#allocation73_spill] sm:$0xff] %v12487_v46  ;;  %1014 = vmatmul.bf16.gmra.mxu1 %v12126_v44  ;;  %v9469_v1 = vld [vmem:[%s15843_s0 + $0x228] sm:$0xff] }
 0x182   :  { %1183 = vmatpush.bf16.msra.mxu1 %v12487_v46  ;;  %v9204_v46 = vld [vmem:[%s15844_s1 + $0x118] sm:$0xf0] }
 0x183   :  { %10371 = vmatmul.lmr.bf16.gmra.16.mxu0  ;;  %1063 = vmatmul.bf16.gmra.mxu2 %v12139_v27  ;;  %v12513_v11 = vor.u32 %v10138_v26, %v9204_v46  ;;  %v10106_v26 = vld [vmem:[%s15844_s1 + $0xc] sm:$0xf]  ;;  %v9076_v46 = vld [vmem:[%s15844_s1 + $0x18] sm:$0xf0] }
 0x185   :  { %16116 = vst [vmem:[#allocation74_spill] sm:$0xff] %v12513_v11  ;;  %1233 = vmatpush.bf16.msra.mxu2 %v12513_v11 }
 0x186   :  { %v868_v54 = vpop.f32.mrf.mxu2  ;;  %v914_v34 = vpop.f32.mrf.mxu3 }
 0x187   :  { %v821_v42 = vpop.f32.mrf.mxu1  ;;  %v1383_v34 = vpack.c.bf16 %v9469_v1, %v9468_v48  ;;  %v12524_v48 = vor.u32 %v10170_v2, %v9332_v49  ;;  %v12539_v2 = vor.u32 %v10106_v26, %v9076_v46  ;;  %v9454_v26 = vld [vmem:[%s15843_s0 + $0x1b0] sm:$0xff]  ;;  %v9455_v46 = vld [vmem:[%s15843_s0 + $0x1b8] sm:$0xff] }
 0x188   :  { %v770_v54 = vpop.f32.mrf.mxu0 }
 0x189   :  { %11123 = vxpose.binary.xlu2.c.b16.cont [3/16] %v1383_v34, %v12505_v59, 128  ;;  %16117 = vst [vmem:[#allocation75_spill] sm:$0xff] %v12524_v48  ;;  %v9330_v54 = vld [vmem:[%s15844_s1 + $0x208] sm:$0xf]  ;;  %v10172_v34 = vld [vmem:[%s15844_s1 + $0x214] sm:$0xf0] }
 0x18a   :  { %1282 = vmatpush.bf16.msra.mxu3 %v12524_v48  ;;  %16118 = vst [vmem:[#allocation76_spill] sm:$0xff] %v12539_v2  ;;  %v12541_v11 = vor.u32 %v10172_v34, %v9330_v54  ;;  %1184 = vmatpush.bf16.msra.mxu1 %v12539_v2  ;;  %v9471_v34 = vld [vmem:[%s15843_s0 + $0x238] sm:$0xff] }
 0x18b   :  { %10372 = vmatmul.lmr.bf16.gmra.16.mxu0  ;;  %1112 = vmatmul.bf16.gmra.mxu3 %v12124_v61 }
 0x18c   :  { %16119 = vst [vmem:[#allocation77_spill] sm:$0xff] %v12541_v11  ;;  %1135 = vmatpush.bf16.msra.mxu0 %v12541_v11 }
 0x18e   :  { %v870_v42 = vpop.f32.mrf.mxu2  ;;  %v917_v1 = vpop.f32.mrf.mxu3 }
 0x18f   :  { %v824_v49 = vpop.f32.mrf.mxu1 }
 0x190   :  { %v772_v44 = vpop.f32.mrf.mxu0  ;;  %v12559_v49 = vpack.c.bf16 %v9455_v46, %v9454_v26  ;;  %v9456_v26 = vld [vmem:[%s15843_s0 + $0x1c0] sm:$0xff]  ;;  %v9457_v46 = vld [vmem:[%s15843_s0 + $0x1c8] sm:$0xff] }
 0x191   :  { %1019 = vmatmul.bf16.gmra.mxu1 %v12172_v9  ;;  %v9470_v44 = vld [vmem:[%s15843_s0 + $0x230] sm:$0xff] }
 0x193   :  { %10373 = vmatmul.lmr.bf16.gmra.16.mxu0  ;;  %1068 = vmatmul.bf16.gmra.mxu2 %v12176_v36 }
 0x196   :  { %v873_v42 = vpop.f32.mrf.mxu2  ;;  %v919_v1 = vpop.f32.mrf.mxu3 }
 0x197   :  { %v826_v54 = vpop.f32.mrf.mxu1  ;;  %v1384_v1 = vpack.c.bf16 %v9471_v34, %v9470_v44 }
 0x198   :  { %v775_v42 = vpop.f32.mrf.mxu0 }
 0x199   :  { %11124 = vxpose.binary.xlu2.c.b16.cont [4/16] %v1384_v1, %v12559_v49, 128 }
 0x19b   :  { %10374 = vmatmul.lmr.bf16.gmra.16.mxu0  ;;  %1117 = vmatmul.bf16.gmra.mxu3 %v12170_v51 }
 0x19e   :  { %v875_v48 = vpop.f32.mrf.mxu2  ;;  %v922_v11 = vpop.f32.mrf.mxu3 }
 0x19f   :  { %v829_v2 = vpop.f32.mrf.mxu1  ;;  %v9472_v11 = vld [vmem:[%s15843_s0 + $0x240] sm:$0xff]  ;;  %v9473_v48 = vld [vmem:[%s15843_s0 + $0x248] sm:$0xff] }
 0x1a0   :  { %v777_v9 = vpop.f32.mrf.mxu0  ;;  %v12577_v2 = vpack.c.bf16 %v9457_v46, %v9456_v26  ;;  %v1385_v44 = vpack.c.bf16 %v9473_v48, %v9472_v11  ;;  %v9458_v11 = vld [vmem:[%s15843_s0 + $0x1d0] sm:$0xff] }
 0x1a1   :  { %1024 = vmatmul.bf16.gmra.mxu1 %v12182_v3 }
 0x1a3   :  { %10375 = vmatmul.lmr.bf16.gmra.16.mxu0  ;;  %1073 = vmatmul.bf16.gmra.mxu2 %v12186_v31 }
 0x1a6   :  { %v878_v54 = vpop.f32.mrf.mxu2  ;;  %v924_v36 = vpop.f32.mrf.mxu3 }
 0x1a7   :  { %v831_v9 = vpop.f32.mrf.mxu1 }
 0x1a8   :  { %v780_v36 = vpop.f32.mrf.mxu0  ;;  %v9459_v9 = vld [vmem:[%s15843_s0 + $0x1d8] sm:$0xff] }
 0x1a9   :  { %11125 = vxpose.binary.xlu2.c.b16.cont [5/16] %v1385_v44, %v12577_v2, 128  ;;  %v12597_v36 = vpack.c.bf16 %v9459_v9, %v9458_v11 }
 0x1ab   :  { %10376 = vmatmul.lmr.bf16.gmra.16.mxu0  ;;  %1122 = vmatmul.bf16.gmra.mxu3 %v12180_v52 }
 0x1ae   :  { %v880_v34 = vpop.f32.mrf.mxu2  ;;  %v927_v42 = vpop.f32.mrf.mxu3 }
 0x1af   :  { %v990_v1 = vpop.f32.mrf.mxu1 }
 0x1b0   :  { %v782_v54 = vpop.f32.mrf.mxu0 }
 0x1b1   :  { %1185 = vmatmul.bf16.vlgmr.msra.gmra.mxu1 %v11900_v47  ;;  %v9474_v47 = vld [vmem:[%s15843_s0 + $0x250] sm:$0xff] }
 0x1b2   :  { %1494 = vmatpush.bf16.msra.mxu1 %v11514_v63 }
 0x1b3   :  { %10377 = vmatmul.lmr.bf16.gmra.16.mxu0  ;;  %1234 = vmatmul.bf16.vlgmr.msra.gmra.mxu2 %v11844_v10  ;;  %v9475_v10 = vld [vmem:[%s15843_s0 + $0x258] sm:$0xff] }
 0x1b4   :  { %1543 = vmatpush.bf16.msra.mxu2 %v11525_v4  ;;  %v1386_v34 = vpack.c.bf16 %v9475_v10, %v9474_v47  ;;  %v9477_v10 = vld [vmem:[%s15843_s0 + $0x268] sm:$0xff] }
 0x1b6   :  { %v929_v26 = vpop.f32.mrf.mxu3  ;;  %v1039_v46 = vpop.f32.mrf.mxu2  ;;  %1495 = vmatpush.bf16.msra.mxu1 %v11537_v8 }
 0x1b7   :  { %v992_v48 = vpop.f32.mrf.mxu1 }
 0x1b8   :  { %v941_v44 = vpop.f32.mrf.mxu0  ;;  %1544 = vmatpush.bf16.msra.mxu2 %v11549_v12 }
 0x1b9   :  { %v942_v42 = vadd.f32 %v941_v44, %v12280_v19  ;;  %11126 = vxpose.binary.xlu2.c.b16.cont [6/16] %v1386_v34, %v12597_v36, 128 }
 0x1ba   :  { %1496 = vmatpush.bf16.msra.mxu1 %v11590_v28 }
 0x1bb   :  { %v12603_v54 = vadd.f32 %v990_v1, %v942_v42  ;;  %1136 = vmatmul.bf16.vlgmr.msra.gmra.mxu0 %v11852_v17  ;;  %1283 = vmatmul.bf16.vlgmr.msra.gmra.mxu3 %v11852_v17 }
 0x1bc   :  { %1592 = vmatpush.bf16.msra.mxu3 %v11551_v13  ;;  %1445 = vmatpush.bf16.msra.mxu0 %v11553_v14 }
 0x1bd   :  { %1545 = vmatpush.bf16.msra.mxu2 %v11602_v32 }
 0x1be   :  { %v1041_v26 = vpop.f32.mrf.mxu2  ;;  %v1088_v11 = vpop.f32.mrf.mxu3  ;;  %1497 = vmatpush.bf16.msra.mxu1 %v11638_v43 }
 0x1bf   :  { %v12611_v9 = vadd.f32 %v1088_v11, %v1039_v46  ;;  %v995_v19 = vpop.f32.mrf.mxu1  ;;  %v9460_v46 = vld [vmem:[%s15843_s0 + $0x1e0] sm:$0xff] }
 0x1c0   :  { %v943_v47 = vpop.f32.mrf.mxu0  ;;  %1593 = vmatpush.bf16.msra.mxu3 %v11575_v22  ;;  %1446 = vmatpush.bf16.msra.mxu0 %v11592_v29 }
 0x1c1   :  { %16120 = vst [vmem:[#allocation78_spill] sm:$0xff] %v12611_v9  ;;  %1546 = vmatpush.bf16.msra.mxu2 %v11657_v53  ;;  %1190 = vmatmul.bf16.gmra.mxu1 %v11955_v33  ;;  %v9461_v33 = vld [vmem:[%s15843_s0 + $0x1e8] sm:$0xff] }
 0x1c2   :  { %1498 = vmatpush.bf16.msra.mxu1 %v11676_v58  ;;  %v1379_v44 = vpack.c.bf16 %v9461_v33, %v9460_v46  ;;  %v16122_v46 = vld [vmem:[#allocation4_spill] sm:$0xff] }
 0x1c3   :  { %1239 = vmatmul.bf16.gmra.mxu2 %v11938_v16  ;;  %v9476_v16 = vld [vmem:[%s15843_s0 + $0x260] sm:$0xff] }
 0x1c4   :  { %1594 = vmatpush.bf16.msra.mxu3 %v11630_v40  ;;  %1447 = vmatpush.bf16.msra.mxu0 %v11632_v41  ;;  %v1387_v42 = vpack.c.bf16 %v9477_v10, %v9476_v16  ;;  %v16123_v16 = vld [vmem:[#allocation6_spill] sm:$0xff]  ;;  %v9493_v10 = vld [vmem:[%s15843_s0 + $0x2e8] sm:$0xff] }
 0x1c5   :  { %1547 = vmatpush.bf16.msra.mxu2 %v11694_v0 }
 0x1c6   :  { %v1044_v17 = vpop.f32.mrf.mxu2  ;;  %v1090_v1 = vpop.f32.mrf.mxu3  ;;  %1499 = vmatpush.bf16.msra.mxu1 %v11713_v7 }
 0x1c7   :  { %v997_v48 = vpop.f32.mrf.mxu1  ;;  %v9495_v17 = vld [vmem:[%s15843_s0 + $0x2f8] sm:$0xff]  ;;  %v16121_v1 = vld [vmem:[#allocation5_spill] sm:$0xff] }
 0x1c8   :  { %v946_v34 = vpop.f32.mrf.mxu0  ;;  %1595 = vmatpush.bf16.msra.mxu3 %v11667_v55  ;;  %1448 = vmatpush.bf16.msra.mxu0 %v11669_v56  ;;  %v9492_v48 = vld [vmem:[%s15843_s0 + $0x2e0] sm:$0xff] }
 0x1c9   :  { %1548 = vmatpush.bf16.msra.mxu2 %v11731_v18  ;;  %v16124_v34 = vld [vmem:[#allocation7_spill] sm:$0xff] }
 0x1ca   :  { %11127 = vxpose.binary.xlu2.c.b16.cont [7/16] %v1387_v42, %v1379_v44, 128 }
 0x1cb   :  { %1141 = vmatmul.bf16.gmra.mxu0 %v11940_v20  ;;  %1288 = vmatmul.bf16.gmra.mxu3 %v11940_v20  ;;  %v9494_v20 = vld [vmem:[%s15843_s0 + $0x2f0] sm:$0xff] }
 0x1cc   :  { %1596 = vmatpush.bf16.msra.mxu3 %v11705_v5  ;;  %1449 = vmatpush.bf16.msra.mxu0 %v11707_v6  ;;  %v12656_v33 = vpack.c.bf16 %v9495_v17, %v9494_v20  ;;  %v9479_v20 = vld [vmem:[%s15843_s0 + $0x278] sm:$0xff] }
 0x1cd   :  { %1549 = vmatpush.bf16.msra.mxu2 %v11767_v35  ;;  %1500 = vmatpush.bf16.msra.mxu1 %v11746_v25 }
 0x1ce   :  { %v1046_v26 = vpop.f32.mrf.mxu2  ;;  %v1093_v11 = vpop.f32.mrf.mxu3 }
 0x1cf   :  { %v1000_v19 = vpop.f32.mrf.mxu1  ;;  %v12669_v26 = vpack.c.bf16 %v9493_v10, %v9492_v48  ;;  %v9463_v11 = vld [vmem:[%s15843_s0 + $0x1f8] sm:$0xff] }
 0x1d0   :  { %v948_v47 = vpop.f32.mrf.mxu0  ;;  %1597 = vmatpush.bf16.msra.mxu3 %v11741_v21  ;;  %1450 = vmatpush.bf16.msra.mxu0 %v11743_v23  ;;  %v9478_v19 = vld [vmem:[%s15843_s0 + $0x270] sm:$0xff] }
 0x1d1   :  { %1550 = vmatpush.bf16.msra.mxu2 %v16121_v1  ;;  %1501 = vmatpush.bf16.msra.mxu1 %v16122_v46  ;;  %v1388_v10 = vpack.c.bf16 %v9479_v20, %v9478_v19  ;;  %v9489_v19 = vld [vmem:[%s15843_s0 + $0x2c8] sm:$0xff] }
 0x1d2   :  { %1195 = vmatmul.bf16.gmra.mxu1 %v12001_v38 }
 0x1d3   :  { %1244 = vmatmul.bf16.gmra.mxu2 %v11986_v50  ;;  %v9462_v50 = vld [vmem:[%s15843_s0 + $0x1f0] sm:$0xff] }
 0x1d4   :  { %1598 = vmatpush.bf16.msra.mxu3 %v16123_v16  ;;  %1451 = vmatpush.bf16.msra.mxu0 %v16124_v34  ;;  %v1380_v17 = vpack.c.bf16 %v9463_v11, %v9462_v50  ;;  %v16126_v50 = vld [vmem:[#allocation9_spill] sm:$0xff]  ;;  %v9488_v11 = vld [vmem:[%s15843_s0 + $0x2c0] sm:$0xff] }
 0x1d5   :  { %10885 = vmatpush.lsf.bf16.msrb.mxu2 %v12656_v33  ;;  %10689 = vmatpush.lsf.bf16.msrb.mxu1 %v12656_v33 }
 0x1d6   :  { %v1049_v38 = vpop.f32.mrf.mxu2  ;;  %v1095_v42 = vpop.f32.mrf.mxu3 }
 0x1d7   :  { %v1002_v47 = vpop.f32.mrf.mxu1  ;;  %v16125_v38 = vld [vmem:[#allocation8_spill] sm:$0xff]  ;;  %v9490_v42 = vld [vmem:[%s15843_s0 + $0x2d0] sm:$0xff] }
 0x1d8   :  { %10997 = vmatpush.lsf.bf16.msrb.mxu3 %v12656_v33  ;;  %v951_v48 = vpop.f32.mrf.mxu0  ;;  %10378 = vmatpush.lsf.bf16.msrb.mxu0 %v1380_v17  ;;  %v9491_v47 = vld [vmem:[%s15843_s0 + $0x2d8] sm:$0xff] }
 0x1d9   :  { %10886 = vmatpush.lsf.bf16.msrb.mxu2 %v12669_v26  ;;  %10690 = vmatpush.lsf.bf16.msrb.mxu1 %v12669_v26  ;;  %v12693_v9 = vpack.c.bf16 %v9491_v47, %v9490_v42  ;;  %v12706_v48 = vpack.c.bf16 %v9489_v19, %v9488_v11  ;;  %v9487_v42 = vld [vmem:[%s15843_s0 + $0x2b8] sm:$0xff]  ;;  %v9485_v11 = vld [vmem:[%s15843_s0 + $0x2a8] sm:$0xff] }
 0x1da   :  { %11128 = vxpose.binary.xlu2.c.b16.end [8/16] %v1388_v10, %v1380_v17, 128 }
 0x1db   :  { %1146 = vmatmul.bf16.gmra.mxu0 %v11988_v62  ;;  %1293 = vmatmul.bf16.gmra.mxu3 %v11988_v62 }
 0x1dc   :  { %1599 = vmatpush.bf16.msra.mxu3 %v16125_v38  ;;  %1452 = vmatpush.bf16.msra.mxu0 %v16126_v50  ;;  %v16174_v50 = vld [vmem:[#allocation53_spill] sm:$0xff] }
 0x1dd   :  { %10887 = vmatpush.lsf.bf16.msrb.mxu2 %v12693_v9  ;;  %10691 = vmatpush.lsf.bf16.msrb.mxu1 %v12693_v9 }
 0x1de   :  { %v1051_v20 = vpop.f32.mrf.mxu2  ;;  %v1098_v17 = vpop.f32.mrf.mxu3 }
 0x1df   :  { %v1005_v62 = vpop.f32.mrf.mxu1 }
 0x1e0   :  { %10379 = vmatpush.lsf.bf16.msrb.mxu0 %v1379_v44  ;;  %10998 = vmatpush.lsf.bf16.msrb.mxu3 %v12669_v26  ;;  %v953_v10 = vpop.f32.mrf.mxu0  ;;  %v9486_v44 = vld [vmem:[%s15843_s0 + $0x2b0] sm:$0xff]  ;;  %v9483_v62 = vld [vmem:[%s15843_s0 + $0x298] sm:$0xff] }
 0x1e1   :  { %10888 = vmatpush.lsf.bf16.msrb.mxu2 %v12706_v48  ;;  %10692 = vmatpush.lsf.bf16.msrb.mxu1 %v12706_v48  ;;  %v12719_v47 = vpack.c.bf16 %v9487_v42, %v9486_v44  ;;  %v9481_v44 = vld [vmem:[%s15843_s0 + $0x288] sm:$0xff] }
 0x1e2   :  { %1200 = vmatmul.bf16.gmra.mxu1 %v12047_v30 }
 0x1e3   :  { %1249 = vmatmul.bf16.gmra.mxu2 %v12032_v39 }
 0x1e4   :  { %10380 = vmatpush.lsf.bf16.msrb.mxu0 %v12597_v36  ;;  %10999 = vmatpush.lsf.bf16.msrb.mxu3 %v12693_v9  ;;  %v9484_v36 = vld [vmem:[%s15843_s0 + $0x2a0] sm:$0xff] }
 0x1e5   :  { %10889 = vmatpush.lsf.bf16.msrb.mxu2 %v12719_v47  ;;  %10693 = vmatpush.lsf.bf16.msrb.mxu1 %v12719_v47  ;;  %v1391_v20 = vpack.c.bf16 %v9485_v11, %v9484_v36 }
 0x1e6   :  { %v1054_v30 = vpop.f32.mrf.mxu2  ;;  %v1100_v19 = vpop.f32.mrf.mxu3 }
 0x1e7   :  { %v1007_v39 = vpop.f32.mrf.mxu1 }
 0x1e8   :  { %10381 = vmatpush.lsf.bf16.msrb.mxu0 %v12577_v2  ;;  %11000 = vmatpush.lsf.bf16.msrb.mxu3 %v12706_v48  ;;  %v956_v17 = vpop.f32.mrf.mxu0  ;;  %v9482_v2 = vld [vmem:[%s15843_s0 + $0x290] sm:$0xff] }
 0x1e9   :  { %10890 = vmatpush.lsf.bf16.msrb.mxu2 %v1391_v20  ;;  %10694 = vmatpush.lsf.bf16.msrb.mxu1 %v1391_v20  ;;  %v1390_v10 = vpack.c.bf16 %v9483_v62, %v9482_v2 }
 0x1eb   :  { %1151 = vmatmul.bf16.gmra.mxu0 %v12034_v45  ;;  %1298 = vmatmul.bf16.gmra.mxu3 %v12034_v45 }
 0x1ec   :  { %10382 = vmatpush.lsf.bf16.msrb.mxu0 %v12559_v49  ;;  %11001 = vmatpush.lsf.bf16.msrb.mxu3 %v12719_v47  ;;  %v9480_v49 = vld [vmem:[%s15843_s0 + $0x280] sm:$0xff] }
 0x1ed   :  { %10891 = vmatpush.lsf.bf16.msrb.mxu2 %v1390_v10  ;;  %10695 = vmatpush.lsf.bf16.msrb.mxu1 %v1390_v10  ;;  %v1389_v11 = vpack.c.bf16 %v9481_v44, %v9480_v49 }
 0x1ee   :  { %v1056_v42 = vpop.f32.mrf.mxu2  ;;  %v1103_v36 = vpop.f32.mrf.mxu3 }
 0x1ef   :  { %v1010_v30 = vpop.f32.mrf.mxu1 }
 0x1f0   :  { %10383 = vmatpush.lsf.bf16.msrb.mxu0 %v12505_v59  ;;  %11002 = vmatpush.lsf.bf16.msrb.mxu3 %v1391_v20  ;;  %v958_v19 = vpop.f32.mrf.mxu0 }
 0x1f1   :  { %10892 = vmatpush.lsf.bf16.msrb.mxu2 %v1389_v11  ;;  %10696 = vmatpush.lsf.bf16.msrb.mxu1 %v1389_v11 }
 0x1f2   :  { %1205 = vmatmul.bf16.gmra.mxu1 %v12093_v15 }
 0x1f3   :  { %10893 = vllmr.16.mxu2 }
 0x1f4   :  { %10384 = vmatpush.lsf.bf16.msrb.mxu0 %v12451_v24  ;;  %1254 = vmatmul.bf16.gmra.mxu2 %v12078_v60 }
 0x1f5   :  { %11003 = vmatpush.lsf.bf16.msrb.mxu3 %v1390_v10 }
 0x1f6   :  { %v1059_v45 = vpop.f32.mrf.mxu2  ;;  %v1105_v59 = vpop.f32.mrf.mxu3 }
 0x1f7   :  { %v1012_v39 = vpop.f32.mrf.mxu1  ;;  %v16129_v45 = vld [vmem:[#allocation43_spill] sm:$0xff] }
 0x1f8   :  { %10385 = vmatpush.lsf.bf16.msrb.mxu0 %v12397_v37  ;;  %v961_v17 = vpop.f32.mrf.mxu0 }
 0x1f9   :  { %11004 = vmatpush.lsf.bf16.msrb.mxu3 %v1389_v11 }
 0x1fa   :  { %10386 = vllmr.16.mxu0 }
 0x1fb   :  { %11005 = vllmr.16.mxu3  ;;  %1156 = vmatmul.bf16.gmra.mxu0 %v12080_v57 }
 0x1fc   :  { %10403 = vmatpush.lsf.bf16.msrb.mxu0 %v12656_v33  ;;  %1303 = vmatmul.bf16.gmra.mxu3 %v12080_v57  ;;  %v16127_v57 = vld [vmem:[#allocation38_spill] sm:$0xff] }
 0x1fe   :  { %v1061_v60 = vpop.f32.mrf.mxu2  ;;  %v1108_v15 = vpop.f32.mrf.mxu3 }
 0x1ff   :  { %v1015_v24 = vpop.f32.mrf.mxu1 }
 0x200   :  { %10404 = vmatpush.lsf.bf16.msrb.mxu0 %v12669_v26  ;;  %v963_v2 = vpop.f32.mrf.mxu0 }
 0x201   :  { %10697 = vllmr.16.mxu1 }
 0x202   :  { %1210 = vmatmul.bf16.gmra.mxu1 %v12139_v27 }
 0x204   :  { %10405 = vmatpush.lsf.bf16.msrb.mxu0 %v12693_v9  ;;  %1259 = vmatmul.bf16.gmra.mxu2 %v12124_v61  ;;  %v16128_v61 = vld [vmem:[#allocation44_spill] sm:$0xff] }
 0x206   :  { %v1064_v37 = vpop.f32.mrf.mxu2  ;;  %v1110_v33 = vpop.f32.mrf.mxu3 }
 0x207   :  { %v1017_v62 = vpop.f32.mrf.mxu1 }
 0x208   :  { %10406 = vmatpush.lsf.bf16.msrb.mxu0 %v12706_v48  ;;  %v966_v49 = vpop.f32.mrf.mxu0 }
 0x20b   :  { %1161 = vmatmul.bf16.gmra.mxu0 %v16127_v57  ;;  %v12765_v26 = vpop.trf.xlu2 }
 0x20c   :  { %10407 = vmatpush.lsf.bf16.msrb.mxu0 %v12719_v47  ;;  %1308 = vmatmul.bf16.gmra.mxu3 %v16127_v57 }
 0x20e   :  { %v1066_v9 = vpop.f32.mrf.mxu2  ;;  %v1113_v44 = vpop.f32.mrf.mxu3 }
 0x20f   :  { %v1020_v27 = vpop.f32.mrf.mxu1 }
 0x210   :  { %10408 = vmatpush.lsf.bf16.msrb.mxu0 %v1391_v20  ;;  %v968_v42 = vpop.f32.mrf.mxu0 }
 0x211   :  { %v16132_v42 = vld [vmem:[#allocation12_spill] sm:$0xff] }
 0x212   :  { %1215 = vmatmul.bf16.gmra.mxu1 %v16128_v61  ;;  %v16134_v61 = vld [vmem:[#allocation13_spill] sm:$0xff] }
 0x213   :  { %v12769_v48 = vpop.trf.xlu2 }
 0x214   :  { %10409 = vmatpush.lsf.bf16.msrb.mxu0 %v1390_v10  ;;  %1264 = vmatmul.bf16.gmra.mxu2 %v12170_v51 }
 0x216   :  { %v1069_v47 = vpop.f32.mrf.mxu2  ;;  %v1115_v36 = vpop.f32.mrf.mxu3 }
 0x217   :  { %v1022_v30 = vpop.f32.mrf.mxu1  ;;  %v16135_v36 = vld [vmem:[#allocation15_spill] sm:$0xff] }
 0x218   :  { %10410 = vmatpush.lsf.bf16.msrb.mxu0 %v1389_v11  ;;  %v971_v19 = vpop.f32.mrf.mxu0  ;;  %v16136_v30 = vld [vmem:[#allocation14_spill] sm:$0xff] }
 0x219   :  { %v16137_v19 = vld [vmem:[#allocation16_spill] sm:$0xff] }
 0x21b   :  { %1166 = vmatmul.bf16.gmra.mxu0 %v16129_v45  ;;  %v12773_v20 = vpop.trf.xlu2 }
 0x21c   :  { %1313 = vmatmul.bf16.gmra.mxu3 %v16129_v45 }
 0x21e   :  { %v1071_v59 = vpop.f32.mrf.mxu2  ;;  %v1118_v39 = vpop.f32.mrf.mxu3 }
 0x21f   :  { %v1025_v10 = vpop.f32.mrf.mxu1  ;;  %v16138_v39 = vld [vmem:[#allocation19_spill] sm:$0xff] }
 0x220   :  { %v973_v17 = vpop.f32.mrf.mxu0 }
 0x222   :  { %1220 = vmatmul.bf16.gmra.mxu1 %v12186_v31  ;;  %v16131_v31 = vld [vmem:[#allocation11_spill] sm:$0xff] }
 0x223   :  { %v12777_v15 = vpop.trf.xlu2 }
 0x224   :  { %1269 = vmatmul.bf16.gmra.mxu2 %v12180_v52  ;;  %v16130_v52 = vld [vmem:[#allocation10_spill] sm:$0xff] }
 0x226   :  { %v1074_v51 = vpop.f32.mrf.mxu2  ;;  %v1120_v11 = vpop.f32.mrf.mxu3 }
 0x227   :  { %v1027_v60 = vpop.f32.mrf.mxu1  ;;  %v16140_v11 = vld [vmem:[#allocation18_spill] sm:$0xff] }
 0x228   :  { %v976_v24 = vpop.f32.mrf.mxu0  ;;  %v16141_v60 = vld [vmem:[#allocation17_spill] sm:$0xff] }
 0x229   :  { %v16142_v24 = vld [vmem:[#allocation22_spill] sm:$0xff] }
 0x22b   :  { %1171 = vmatmul.bf16.gmra.mxu0 %v12182_v3  ;;  %v12781_v49 = vpop.trf.xlu2 }
 0x22c   :  { %1318 = vmatmul.bf16.gmra.mxu3 %v12182_v3 }
 0x22e   :  { %v1076_v2 = vpop.f32.mrf.mxu2  ;;  %v1123_v37 = vpop.f32.mrf.mxu3 }
 0x22f   :  { %v1186_v33 = vpop.f32.mrf.mxu1  ;;  %v16143_v2 = vld [vmem:[#allocation21_spill] sm:$0xff] }
 0x230   :  { %v978_v62 = vpop.f32.mrf.mxu0  ;;  %v16144_v37 = vld [vmem:[#allocation25_spill] sm:$0xff] }
 0x231   :  { %v16145_v62 = vld [vmem:[#allocation20_spill] sm:$0xff] }
 0x232   :  { %1502 = vmatmul.bf16.vlgmr.msra.gmra.mxu1 %v12769_v48 }
 0x233   :  { %1690 = vmatpush.bf16.msra.mxu1 %v16130_v52  ;;  %v12790_v47 = vpop.trf.xlu2 }
 0x234   :  { %10894 = vmatmul.lmr.bf16.vlgmr.msra.gmra.16.mxu2 }
 0x235   :  { %1739 = vmatpush.bf16.msra.mxu2 %v16131_v31 }
 0x236   :  { %v1125_v57 = vpop.f32.mrf.mxu3  ;;  %v1235_v9 = vpop.f32.mrf.mxu2 }
 0x237   :  { %v1236_v44 = vadd.f32 %v1235_v9, %v1186_v33  ;;  %v1188_v27 = vpop.f32.mrf.mxu1  ;;  %1691 = vmatpush.bf16.msra.mxu1 %v16132_v42  ;;  %v16146_v57 = vld [vmem:[#allocation26_spill] sm:$0xff] }
 0x238   :  { %v12787_v3 = vpop.f32.mrf.mxu0 }
 0x239   :  { %16133 = vst [vmem:[#allocation5_spill] sm:$0xff] %v12787_v3  ;;  %1740 = vmatpush.bf16.msra.mxu2 %v16134_v61 }
 0x23b   :  { %10387 = vmatmul.lmr.bf16.vlgmr.msra.gmra.16.mxu0  ;;  %1692 = vmatpush.bf16.msra.mxu1 %v16138_v39  ;;  %v12805_v33 = vpop.trf.xlu2 }
 0x23c   :  { %10895 = vmatmul.lmr.bf16.gmra.16.mxu2  ;;  %1600 = vmatmul.bf16.vlgmr.msra.gmra.mxu3 %v12765_v26 }
 0x23d   :  { %1641 = vmatpush.bf16.msra.mxu0 %v16135_v36  ;;  %1788 = vmatpush.bf16.msra.mxu3 %v16136_v30 }
 0x23e   :  { %1741 = vmatpush.bf16.msra.mxu2 %v16137_v19  ;;  %v1237_v45 = vpop.f32.mrf.mxu2  ;;  %v1284_v59 = vpop.f32.mrf.mxu3 }
 0x23f   :  { %v12797_v10 = vadd.f32 %v1284_v59, %v1236_v44  ;;  %v1191_v17 = vpop.f32.mrf.mxu1  ;;  %1693 = vmatpush.bf16.msra.mxu1 %v16144_v37  ;;  %v16147_v59 = vld [vmem:[#allocation24_spill] sm:$0xff]  ;;  %v16157_v37 = vld [vmem:[#allocation37_spill] sm:$0xff] }
 0x240   :  { %v1139_v51 = vpop.f32.mrf.mxu0  ;;  %v16148_v17 = vld [vmem:[#allocation29_spill] sm:$0xff] }
 0x241   :  { %16139 = vst [vmem:[#allocation6_spill] sm:$0xff] %v12797_v10  ;;  %1642 = vmatpush.bf16.msra.mxu0 %v16140_v11  ;;  %1789 = vmatpush.bf16.msra.mxu3 %v16141_v60  ;;  %v16149_v51 = vld [vmem:[#allocation23_spill] sm:$0xff] }
 0x242   :  { %1742 = vmatpush.bf16.msra.mxu2 %v16142_v24  ;;  %1507 = vmatmul.bf16.gmra.mxu1 %v12777_v15  ;;  %v16150_v24 = vld [vmem:[#allocation30_spill] sm:$0xff] }
 0x243   :  { %10388 = vmatmul.lmr.bf16.gmra.16.mxu0  ;;  %1694 = vmatpush.bf16.msra.mxu1 %v16148_v17  ;;  %v12818_v17 = vpop.trf.xlu2 }
 0x244   :  { %10896 = vmatmul.lmr.bf16.gmra.16.mxu2 }
 0x245   :  { %1643 = vmatpush.bf16.msra.mxu0 %v16143_v2  ;;  %1790 = vmatpush.bf16.msra.mxu3 %v16145_v62  ;;  %v16151_v2 = vld [vmem:[#allocation28_spill] sm:$0xff]  ;;  %v16152_v62 = vld [vmem:[#allocation27_spill] sm:$0xff] }
 0x246   :  { %1743 = vmatpush.bf16.msra.mxu2 %v16146_v57  ;;  %v1240_v9 = vpop.f32.mrf.mxu2  ;;  %v1286_v44 = vpop.f32.mrf.mxu3  ;;  %v16155_v57 = vld [vmem:[#allocation32_spill] sm:$0xff] }
 0x247   :  { %v1193_v27 = vpop.f32.mrf.mxu1  ;;  %v16153_v9 = vld [vmem:[#allocation33_spill] sm:$0xff] }
 0x248   :  { %v1142_v45 = vpop.f32.mrf.mxu0  ;;  %1695 = vmatpush.bf16.msra.mxu1 %v16153_v9  ;;  %v16162_v9 = vld [vmem:[#allocation41_spill] sm:$0xff] }
 0x249   :  { %1644 = vmatpush.bf16.msra.mxu0 %v16147_v59  ;;  %1791 = vmatpush.bf16.msra.mxu3 %v16149_v51  ;;  %v16154_v45 = vld [vmem:[#allocation34_spill] sm:$0xff] }
 0x24a   :  { %1744 = vmatpush.bf16.msra.mxu2 %v16150_v24  ;;  %v16156_v24 = vld [vmem:[#allocation31_spill] sm:$0xff] }
 0x24b   :  { %10389 = vmatmul.lmr.bf16.gmra.16.mxu0 }
 0x24c   :  { %10897 = vmatmul.lmr.bf16.gmra.16.mxu2  ;;  %1605 = vmatmul.bf16.gmra.mxu3 %v12773_v20 }
 0x24d   :  { %1645 = vmatpush.bf16.msra.mxu0 %v16151_v2  ;;  %1792 = vmatpush.bf16.msra.mxu3 %v16152_v62  ;;  %v16158_v2 = vld [vmem:[#allocation39_spill] sm:$0xff] }
 0x24e   :  { %v1242_v44 = vpop.f32.mrf.mxu2  ;;  %v1289_v27 = vpop.f32.mrf.mxu3  ;;  %1745 = vmatpush.bf16.msra.mxu2 %v16154_v45  ;;  %1696 = vmatpush.bf16.msra.mxu1 %v16157_v37  ;;  %v16163_v37 = vld [vmem:[#allocation40_spill] sm:$0xff] }
 0x24f   :  { %v1196_v59 = vpop.f32.mrf.mxu1  ;;  %v16159_v44 = vld [vmem:[#allocation36_spill] sm:$0xff]  ;;  %v16160_v27 = vld [vmem:[#allocation35_spill] sm:$0xff] }
 0x250   :  { %v1144_v51 = vpop.f32.mrf.mxu0  ;;  %v16161_v59 = vld [vmem:[#allocation42_spill] sm:$0xff] }
 0x251   :  { %1646 = vmatpush.bf16.msra.mxu0 %v16155_v57  ;;  %1793 = vmatpush.bf16.msra.mxu3 %v16156_v24  ;;  %v12829_v24 = vpop.trf.xlu2 }
 0x252   :  { %1512 = vmatmul.bf16.gmra.mxu1 %v12790_v47  ;;  %1746 = vmatpush.bf16.msra.mxu2 %v16158_v2 }
 0x253   :  { %10390 = vmatmul.lmr.bf16.gmra.16.mxu0  ;;  %1697 = vmatpush.bf16.msra.mxu1 %v16161_v59 }
 0x254   :  { %10898 = vmatmul.lmr.bf16.gmra.16.mxu2 }
 0x255   :  { %1647 = vmatpush.bf16.msra.mxu0 %v16159_v44  ;;  %1794 = vmatpush.bf16.msra.mxu3 %v16160_v27 }
 0x256   :  { %v1245_v45 = vpop.f32.mrf.mxu2  ;;  %v1291_v51 = vpop.f32.mrf.mxu3 }
 0x257   :  { %v1198_v62 = vpop.f32.mrf.mxu1 }
 0x258   :  { %v1147_v57 = vpop.f32.mrf.mxu0 }
 0x259   :  { %1648 = vmatpush.bf16.msra.mxu0 %v16162_v9  ;;  %1795 = vmatpush.bf16.msra.mxu3 %v16163_v37  ;;  %v12834_v62 = vpop.trf.xlu2 }
 0x25b   :  { %10391 = vmatmul.lmr.bf16.gmra.16.mxu0 }
 0x25c   :  { %10899 = vmatmul.lmr.bf16.gmra.16.mxu2  ;;  %1610 = vmatmul.bf16.gmra.mxu3 %v12781_v49 }
 0x25e   :  { %v1247_v2 = vpop.f32.mrf.mxu2  ;;  %v1294_v44 = vpop.f32.mrf.mxu3 }
 0x25f   :  { %v1201_v60 = vpop.f32.mrf.mxu1 }
 0x260   :  { %v1149_v27 = vpop.f32.mrf.mxu0 }
 0x261   :  { %v12837_v37 = vpop.trf.xlu2 }
 0x262   :  { %1517 = vmatmul.bf16.gmra.mxu1 %v12818_v17 }
 0x263   :  { %10392 = vmatmul.lmr.bf16.gmra.16.mxu0 }
 0x264   :  { %10900 = vmatmul.lmr.bf16.gmra.16.mxu2 }
 0x266   :  { %v1250_v57 = vpop.f32.mrf.mxu2  ;;  %v1296_v45 = vpop.f32.mrf.mxu3 }
 0x267   :  { %v1203_v51 = vpop.f32.mrf.mxu1 }
 0x268   :  { %v1152_v9 = vpop.f32.mrf.mxu0 }
 0x269   :  { %v12840_v45 = vpop.trf.xlu2 }
 0x26b   :  { %10393 = vmatmul.lmr.bf16.gmra.16.mxu0 }
 0x26c   :  { %10901 = vmatmul.lmr.bf16.gmra.16.mxu2  ;;  %1615 = vmatmul.bf16.gmra.mxu3 %v12805_v33 }
 0x26e   :  { %v1252_v2 = vpop.f32.mrf.mxu2  ;;  %v1299_v44 = vpop.f32.mrf.mxu3 }
 0x26f   :  { %v1206_v60 = vpop.f32.mrf.mxu1 }
 0x270   :  { %v1154_v27 = vpop.f32.mrf.mxu0 }
 0x271   :  { %v12843_v60 = vpop.trf.xlu2 }
 0x272   :  { %1522 = vmatmul.bf16.gmra.mxu1 %v12834_v62 }
 0x273   :  { %10394 = vmatmul.lmr.bf16.gmra.16.mxu0 }
 0x274   :  { %10902 = vmatmul.lmr.bf16.gmra.16.mxu2 }
 0x276   :  { %v1301_v11 = vpop.f32.mrf.mxu3 }
 0x277   :  { %v1255_v59 = vpop.f32.mrf.mxu2  ;;  %v1208_v57 = vpop.f32.mrf.mxu1 }
 0x278   :  { %v1157_v9 = vpop.f32.mrf.mxu0 }
 0x279   :  { %v12846_v9 = vpop.trf.xlu2 }
 0x27b   :  { %10395 = vmatmul.lmr.bf16.gmra.16.mxu0 }
 0x27c   :  { %10903 = vmatmul.lmr.bf16.gmra.16.mxu2  ;;  %1620 = vmatmul.bf16.gmra.mxu3 %v12829_v24 }
 0x27f   :  { %v1257_v51 = vpop.f32.mrf.mxu2  ;;  %v1304_v39 = vpop.f32.mrf.mxu3 }
 0x280   :  { %v1211_v2 = vpop.f32.mrf.mxu1  ;;  %v1159_v44 = vpop.f32.mrf.mxu0 }
 0x281   :  { %v12850_v19 = vpop.trf.xlu2 }
 0x282   :  { %1527 = vmatmul.bf16.gmra.mxu1 %v12840_v45 }
 0x283   :  { %10396 = vmatmul.lmr.bf16.gmra.16.mxu0 }
 0x284   :  { %10904 = vmatmul.lmr.bf16.gmra.16.mxu2 }
 0x287   :  { %v1260_v59 = vpop.f32.mrf.mxu2  ;;  %v1306_v11 = vpop.f32.mrf.mxu3 }
 0x288   :  { %v1213_v27 = vpop.f32.mrf.mxu1  ;;  %v1162_v57 = vpop.f32.mrf.mxu0 }
 0x28b   :  { %10397 = vmatmul.lmr.bf16.gmra.16.mxu0 }
 0x28c   :  { %10905 = vmatmul.lmr.bf16.gmra.16.mxu2  ;;  %1625 = vmatmul.bf16.gmra.mxu3 %v12837_v37 }
 0x28f   :  { %v1262_v51 = vpop.f32.mrf.mxu2  ;;  %v1309_v39 = vpop.f32.mrf.mxu3 }
 0x290   :  { %v1216_v2 = vpop.f32.mrf.mxu1  ;;  %v1164_v44 = vpop.f32.mrf.mxu0 }
 0x291   :  { %v12853_v39 = vpop.trf.xlu2 }
 0x292   :  { %1532 = vmatmul.bf16.gmra.mxu1 %v12846_v9 }
 0x293   :  { %10398 = vmatmul.lmr.bf16.gmra.16.mxu0 }
 0x294   :  { %10906 = vmatmul.lmr.bf16.gmra.16.mxu2 }
 0x297   :  { %v1265_v59 = vpop.f32.mrf.mxu2  ;;  %v1311_v11 = vpop.f32.mrf.mxu3 }
 0x298   :  { %v1218_v27 = vpop.f32.mrf.mxu1  ;;  %v1167_v57 = vpop.f32.mrf.mxu0 }
 0x29b   :  { %10399 = vmatmul.lmr.bf16.gmra.16.mxu0 }
 0x29c   :  { %10907 = vmatmul.lmr.bf16.gmra.16.mxu2  ;;  %1630 = vmatmul.bf16.gmra.mxu3 %v12843_v60 }
 0x29f   :  { %v1267_v30 = vpop.f32.mrf.mxu2  ;;  %v1314_v36 = vpop.f32.mrf.mxu3 }
 0x2a0   :  { %v1221_v51 = vpop.f32.mrf.mxu1  ;;  %v1169_v2 = vpop.f32.mrf.mxu0 }
 0x2a1   :  { %v16164_v51 = vld [vmem:[#allocation52_spill] sm:$0xff]  ;;  %v16165_v2 = vld [vmem:[#allocation46_spill] sm:$0xff] }
 0x2a2   :  { %1537 = vmatmul.bf16.gmra.mxu1 %v12853_v39  ;;  %v6456_v61 = vrot.slane %v16164_v51, 4 }
 0x2a3   :  { %10400 = vmatmul.lmr.bf16.gmra.16.mxu0 }
 0x2a4   :  { %10908 = vmatmul.lmr.bf16.gmra.16.mxu2 }
 0x2a7   :  { %v1270_v44 = vpop.f32.mrf.mxu2  ;;  %v1316_v42 = vpop.f32.mrf.mxu3 }
 0x2a8   :  { %v1223_v59 = vpop.f32.mrf.mxu1  ;;  %v1172_v11 = vpop.f32.mrf.mxu0  ;;  %v16166_v44 = vld [vmem:[#allocation45_spill] sm:$0xff] }
 0x2a9   :  { %v6457_v11 = vmax.f32 %v16164_v51, %v6456_v61  ;;  %v16171_v61 = vld [vmem:[#allocation51_spill] sm:$0xff]  ;;  %v16172_v51 = vld [vmem:[#allocation57_spill] sm:$0xff] }
 0x2ab   :  { %10401 = vmatmul.lmr.bf16.gmra.16.mxu0  ;;  %v6458_v31 = vrot.slane %v6457_v11, 2 }
 0x2ac   :  { %10909 = vmatmul.lmr.bf16.gmra.16.mxu2  ;;  %1635 = vmatmul.bf16.gmra.mxu3 %v12850_v19 }
 0x2af   :  { %v1272_v27 = vpop.f32.mrf.mxu2  ;;  %v1319_v57 = vpop.f32.mrf.mxu3 }
 0x2b0   :  { %v1503_v30 = vpop.f32.mrf.mxu1  ;;  %v1174_v36 = vpop.f32.mrf.mxu0  ;;  %v16167_v27 = vld [vmem:[#allocation48_spill] sm:$0xff]  ;;  %v16168_v57 = vld [vmem:[#allocation47_spill] sm:$0xff] }
 0x2b2   :  { %10698 = vmatmul.lmr.bf16.vlgmr.msra.gmra.16.mxu1 }
 0x2b3   :  { %10402 = vmatmul.lmr.bf16.gmra.16.mxu0  ;;  %1886 = vmatpush.bf16.msra.mxu1 %v16166_v44  ;;  %v16170_v44 = vld [vmem:[#allocation49_spill] sm:$0xff] }
 0x2b4   :  { %1747 = vmatmul.bf16.vlgmr.msra.gmra.mxu2 %v12765_v26 }
 0x2b5   :  { %1935 = vmatpush.bf16.msra.mxu2 %v16165_v2  ;;  %v16169_v2 = vld [vmem:[#allocation50_spill] sm:$0xff] }
 0x2b7   :  { %v1321_v42 = vpop.f32.mrf.mxu3  ;;  %v1552_v59 = vpop.f32.mrf.mxu2  ;;  %1887 = vmatpush.bf16.msra.mxu1 %v16168_v57 }
 0x2b8   :  { %v1505_v10 = vpop.f32.mrf.mxu1  ;;  %v1454_v52 = vpop.f32.mrf.mxu0 }
 0x2b9   :  { %1936 = vmatpush.bf16.msra.mxu2 %v16167_v27  ;;  %v1504_v36 = vadd.f32 %v1503_v30, %v1454_v52  ;;  %v6459_v27 = vmax.f32 %v6457_v11, %v6458_v31  ;;  %v16177_v31 = vld [vmem:[#allocation56_spill] sm:$0xff]  ;;  %v16178_v11 = vld [vmem:[#allocation55_spill] sm:$0xff] }
 0x2ba   :  { %10699 = vmatmul.lmr.bf16.gmra.16.mxu1  ;;  %10411 = vllmr.16.mxu0 }
 0x2bb   :  { %v1553_v3 = vadd.f32 %v1552_v59, %v1504_v36  ;;  %1649 = vmatmul.bf16.vlgmr.msra.gmra.mxu0 %v12769_v48  ;;  %1888 = vmatpush.bf16.msra.mxu1 %v16172_v51  ;;  %v16173_v36 = vld [vmem:[#allocation54_spill] sm:$0xff] }
 0x2bc   :  { %1796 = vmatmul.bf16.vlgmr.msra.gmra.mxu3 %v12769_v48  ;;  %1837 = vmatpush.bf16.msra.mxu0 %v16169_v2  ;;  %v16175_v2 = vld [vmem:[#allocation58_spill] sm:$0xff] }
 0x2bd   :  { %v6604_v42 = vrot.slane %v1553_v3, 4  ;;  %1984 = vmatpush.bf16.msra.mxu3 %v16170_v44  ;;  %1937 = vmatpush.bf16.msra.mxu2 %v16171_v61  ;;  %v6460_v44 = vrot.slane %v6459_v27, 1  ;;  %v16180_v61 = vld [vmem:[#allocation65_spill] sm:$0xff]  ;;  %v16184_v51 = vld [vmem:[#allocation66_spill] sm:$0xff] }
 0x2bf   :  { %v1554_v10 = vpop.f32.mrf.mxu2  ;;  %v6605_v52 = vmax.f32 %v1553_v3, %v6604_v42  ;;  %v12870_v30 = vpop.f32.mrf.mxu3 }
 0x2c0   :  { %v1508_v57 = vpop.f32.mrf.mxu1  ;;  %v1456_v59 = vpop.f32.mrf.mxu0  ;;  %1838 = vmatpush.bf16.msra.mxu0 %v16173_v36  ;;  %v16176_v10 = vld [vmem:[#allocation61_spill] sm:$0xff] }
 0x2c1   :  { %v6606_v38 = vrot.slane %v6605_v52, 2  ;;  %1985 = vmatpush.bf16.msra.mxu3 %v16174_v50  ;;  %1938 = vmatpush.bf16.msra.mxu2 %v16175_v2  ;;  %v16179_v57 = vld [vmem:[#allocation62_spill] sm:$0xff]  ;;  %v6461_v59 = vmax.f32 %v6459_v27, %v6460_v44 }
 0x2c2   :  { %10700 = vmatmul.lmr.bf16.gmra.16.mxu1  ;;  %v16188_v44 = vld [vmem:[#allocation70_spill] sm:$0xff] }
 0x2c3   :  { %v6607_v46 = vmax.f32 %v6605_v52, %v6606_v38  ;;  %1889 = vmatpush.bf16.msra.mxu1 %v16176_v10  ;;  %v16181_v52 = vld [vmem:[#allocation60_spill] sm:$0xff] }
 0x2c4   :  { %1752 = vmatmul.bf16.gmra.mxu2 %v12773_v20  ;;  %1839 = vmatpush.bf16.msra.mxu0 %v16177_v31  ;;  %v16183_v31 = vld [vmem:[#allocation59_spill] sm:$0xff] }
 0x2c5   :  { %v6608_v3 = vrot.slane %v6607_v46, 1  ;;  %1986 = vmatpush.bf16.msra.mxu3 %v16178_v11  ;;  %1939 = vmatpush.bf16.msra.mxu2 %v16179_v57 }
 0x2c7   :  { %v1557_v42 = vpop.f32.mrf.mxu2  ;;  %v6609_v50 = vmax.f32 %v6607_v46, %v6608_v3  ;;  %v1603_v36 = vpop.f32.mrf.mxu3  ;;  %1890 = vmatpush.bf16.msra.mxu1 %v16180_v61  ;;  %v16186_v46 = vld [vmem:[#allocation64_spill] sm:$0xff]  ;;  %v16189_v3 = vld [vmem:[#allocation73_spill] sm:$0xff]  ;;  %v6477_v61 = vrot.slane %v12603_v54, 4 }
 0x2c8   :  { %v1510_v2 = vpop.f32.mrf.mxu1  ;;  %v1459_v38 = vpop.f32.mrf.mxu0  ;;  %1840 = vmatpush.bf16.msra.mxu0 %v16181_v52  ;;  %v16185_v42 = vld [vmem:[#allocation69_spill] sm:$0xff] }
 0x2c9   :  { %v12883_v10 = vsel %vm7561_vm0, %v6461_v59, %v6609_v50  ;;  %1987 = vmatpush.bf16.msra.mxu3 %v16183_v31  ;;  %1940 = vmatpush.bf16.msra.mxu2 %v16184_v51  ;;  %v16187_v2 = vld [vmem:[#allocation63_spill] sm:$0xff]  ;;  %v16190_v38 = vld [vmem:[#allocation68_spill] sm:$0xff]  ;;  %v16192_v31 = vld [vmem:[#allocation74_spill] sm:$0xff] }
 0x2ca   :  { %16182 = vst [vmem:[#allocation7_spill] sm:$0xff] %v12883_v10  ;;  %10701 = vmatmul.lmr.bf16.gmra.16.mxu1  ;;  %v16191_v51 = vld [vmem:[#allocation67_spill] sm:$0xff] }
 0x2cb   :  { %1654 = vmatmul.bf16.gmra.mxu0 %v12777_v15  ;;  %1891 = vmatpush.bf16.msra.mxu1 %v16185_v42 }
 0x2cc   :  { %1801 = vmatmul.bf16.gmra.mxu3 %v12777_v15  ;;  %1841 = vmatpush.bf16.msra.mxu0 %v16186_v46  ;;  %v16193_v46 = vld [vmem:[#allocation76_spill] sm:$0xff] }
 0x2cd   :  { %1988 = vmatpush.bf16.msra.mxu3 %v16187_v2  ;;  %1941 = vmatpush.bf16.msra.mxu2 %v16188_v44  ;;  %v16194_v2 = vld [vmem:[#allocation72_spill] sm:$0xff]  ;;  %v16195_v44 = vld [vmem:[#allocation71_spill] sm:$0xff] }
 0x2cf   :  { %v1559_v27 = vpop.f32.mrf.mxu2  ;;  %v1606_v50 = vpop.f32.mrf.mxu3  ;;  %1892 = vmatpush.bf16.msra.mxu1 %v16189_v3 }
 0x2d0   :  { %v1513_v36 = vpop.f32.mrf.mxu1  ;;  %v1461_v59 = vpop.f32.mrf.mxu0  ;;  %1842 = vmatpush.bf16.msra.mxu0 %v16190_v38  ;;  %v16197_v38 = vld [vmem:[#allocation75_spill] sm:$0xff] }
 0x2d1   :  { %1989 = vmatpush.bf16.msra.mxu3 %v16191_v51  ;;  %1942 = vmatpush.bf16.msra.mxu2 %v16192_v31  ;;  %v16196_v59 = vld [vmem:[#allocation77_spill] sm:$0xff] }
 0x2d2   :  { %10702 = vmatmul.lmr.bf16.gmra.16.mxu1 }
 0x2d3   :  { %1893 = vmatpush.bf16.msra.mxu1 %v16193_v46 }
 0x2d4   :  { %1757 = vmatmul.bf16.gmra.mxu2 %v12781_v49  ;;  %1843 = vmatpush.bf16.msra.mxu0 %v16194_v2 }
 0x2d5   :  { %1990 = vmatpush.bf16.msra.mxu3 %v16195_v44 }
 0x2d7   :  { %v1562_v27 = vpop.f32.mrf.mxu2  ;;  %v1608_v50 = vpop.f32.mrf.mxu3 }
 0x2d8   :  { %v1515_v36 = vpop.f32.mrf.mxu1  ;;  %v1464_v3 = vpop.f32.mrf.mxu0  ;;  %1844 = vmatpush.bf16.msra.mxu0 %v16196_v59  ;;  %v9497_v27 = vld [vmem:[%s15843_s0 + $0x308] sm:$0xff]  ;;  %v9528_v50 = vld [vmem:[%s15843_s0 + $0x400] sm:$0xff] }
 0x2d9   :  { %1991 = vmatpush.bf16.msra.mxu3 %v16197_v38  ;;  %v9496_v3 = vld [vmem:[%s15843_s0 + $0x300] sm:$0xff] }
 0x2da   :  { %10703 = vmatmul.lmr.bf16.gmra.16.mxu1 }
 0x2db   :  { %1659 = vmatmul.bf16.gmra.mxu0 %v12790_v47 }
 0x2dc   :  { %1806 = vmatmul.bf16.gmra.mxu3 %v12790_v47 }
 0x2df   :  { %v1564_v31 = vpop.f32.mrf.mxu2  ;;  %v1611_v51 = vpop.f32.mrf.mxu3 }
 0x2e0   :  { %v1518_v46 = vpop.f32.mrf.mxu1  ;;  %v1466_v42 = vpop.f32.mrf.mxu0  ;;  %v9529_v51 = vld [vmem:[%s15843_s0 + $0x408] sm:$0xff]  ;;  %v2082_v31 = vpack.c.bf16 %v9497_v27, %v9496_v3  ;;  %v9498_v3 = vld [vmem:[%s15843_s0 + $0x310] sm:$0xff] }
 0x2e1   :  { %v2098_v42 = vpack.c.bf16 %v9529_v51, %v9528_v50 }
 0x2e2   :  { %10704 = vmatmul.lmr.bf16.gmra.16.mxu1 }
 0x2e3   :  { %11145 = vxpose.binary.xlu0.c.b16.start [1/16] %v2082_v31, %v2098_v42, 128 }
 0x2e4   :  { %1762 = vmatmul.bf16.gmra.mxu2 %v12805_v33 }
 0x2e7   :  { %v1567_v46 = vpop.f32.mrf.mxu2  ;;  %v1613_v36 = vpop.f32.mrf.mxu3 }
 0x2e8   :  { %v1520_v38 = vpop.f32.mrf.mxu1  ;;  %v1469_v59 = vpop.f32.mrf.mxu0 }
 0x2e9   :  { %v9499_v38 = vld [vmem:[%s15843_s0 + $0x318] sm:$0xff]  ;;  %v9530_v59 = vld [vmem:[%s15843_s0 + $0x410] sm:$0xff] }
 0x2ea   :  { %10705 = vmatmul.lmr.bf16.gmra.16.mxu1 }
 0x2eb   :  { %1664 = vmatmul.bf16.gmra.mxu0 %v12818_v17 }
 0x2ec   :  { %1811 = vmatmul.bf16.gmra.mxu3 %v12818_v17 }
 0x2ef   :  { %v1569_v44 = vpop.f32.mrf.mxu2  ;;  %v1616_v2 = vpop.f32.mrf.mxu3 }
 0x2f0   :  { %v1523_v10 = vpop.f32.mrf.mxu1  ;;  %v1471_v52 = vpop.f32.mrf.mxu0 }
 0x2f1   :  { %v9531_v10 = vld [vmem:[%s15843_s0 + $0x418] sm:$0xff]  ;;  %v2083_v52 = vpack.c.bf16 %v9499_v38, %v9498_v3  ;;  %v9500_v3 = vld [vmem:[%s15843_s0 + $0x320] sm:$0xff]  ;;  %v9501_v38 = vld [vmem:[%s15843_s0 + $0x328] sm:$0xff] }
 0x2f2   :  { %10706 = vmatmul.lmr.bf16.gmra.16.mxu1  ;;  %v2099_v2 = vpack.c.bf16 %v9531_v10, %v9530_v59  ;;  %v9532_v59 = vld [vmem:[%s15843_s0 + $0x420] sm:$0xff]  ;;  %v9533_v10 = vld [vmem:[%s15843_s0 + $0x428] sm:$0xff] }
 0x2f4   :  { %1767 = vmatmul.bf16.gmra.mxu2 %v12829_v24 }
 0x2f5   :  { %11146 = vxpose.binary.xlu0.c.b16.cont [2/16] %v2083_v52, %v2099_v2, 128  ;;  %v2084_v52 = vpack.c.bf16 %v9501_v38, %v9500_v3  ;;  %v2100_v2 = vpack.c.bf16 %v9533_v10, %v9532_v59  ;;  %v9502_v3 = vld [vmem:[%s15843_s0 + $0x330] sm:$0xff]  ;;  %v9503_v38 = vld [vmem:[%s15843_s0 + $0x338] sm:$0xff] }
 0x2f6   :  { %v9534_v59 = vld [vmem:[%s15843_s0 + $0x430] sm:$0xff]  ;;  %v9535_v10 = vld [vmem:[%s15843_s0 + $0x438] sm:$0xff] }
 0x2f7   :  { %v1572_v44 = vpop.f32.mrf.mxu2  ;;  %v1618_v27 = vpop.f32.mrf.mxu3 }
 0x2f8   :  { %v1525_v50 = vpop.f32.mrf.mxu1  ;;  %v1474_v51 = vpop.f32.mrf.mxu0 }
 0x2fa   :  { %10707 = vmatmul.lmr.bf16.gmra.16.mxu1 }
 0x2fb   :  { %1669 = vmatmul.bf16.gmra.mxu0 %v12834_v62 }
 0x2fc   :  { %1816 = vmatmul.bf16.gmra.mxu3 %v12834_v62 }
 0x2ff   :  { %v1574_v31 = vpop.f32.mrf.mxu2  ;;  %v1621_v42 = vpop.f32.mrf.mxu3 }
 0x300   :  { %v1528_v46 = vpop.f32.mrf.mxu1  ;;  %v1476_v36 = vpop.f32.mrf.mxu0 }
 0x302   :  { %10708 = vmatmul.lmr.bf16.gmra.16.mxu1 }
 0x304   :  { %1772 = vmatmul.bf16.gmra.mxu2 %v12837_v37 }
 0x305   :  { %11147 = vxpose.binary.xlu0.c.b16.cont [3/16] %v2084_v52, %v2100_v2, 128  ;;  %v2085_v52 = vpack.c.bf16 %v9503_v38, %v9502_v3  ;;  %v2101_v2 = vpack.c.bf16 %v9535_v10, %v9534_v59  ;;  %v9504_v3 = vld [vmem:[%s15843_s0 + $0x340] sm:$0xff]  ;;  %v9505_v38 = vld [vmem:[%s15843_s0 + $0x348] sm:$0xff] }
 0x306   :  { %v9536_v59 = vld [vmem:[%s15843_s0 + $0x440] sm:$0xff]  ;;  %v9537_v10 = vld [vmem:[%s15843_s0 + $0x448] sm:$0xff] }
 0x307   :  { %v1577_v44 = vpop.f32.mrf.mxu2  ;;  %v1623_v27 = vpop.f32.mrf.mxu3 }
 0x308   :  { %v1530_v50 = vpop.f32.mrf.mxu1  ;;  %v1479_v51 = vpop.f32.mrf.mxu0 }
 0x30a   :  { %10709 = vmatmul.lmr.bf16.gmra.16.mxu1 }
 0x30b   :  { %1674 = vmatmul.bf16.gmra.mxu0 %v12840_v45 }
 0x30c   :  { %1821 = vmatmul.bf16.gmra.mxu3 %v12840_v45 }
 0x30f   :  { %v1579_v31 = vpop.f32.mrf.mxu2  ;;  %v1626_v42 = vpop.f32.mrf.mxu3 }
 0x310   :  { %v1533_v46 = vpop.f32.mrf.mxu1  ;;  %v1481_v36 = vpop.f32.mrf.mxu0 }
 0x312   :  { %10710 = vmatmul.lmr.bf16.gmra.16.mxu1 }
 0x314   :  { %1777 = vmatmul.bf16.gmra.mxu2 %v12843_v60 }
 0x315   :  { %11148 = vxpose.binary.xlu0.c.b16.cont [4/16] %v2085_v52, %v2101_v2, 128  ;;  %v2086_v52 = vpack.c.bf16 %v9505_v38, %v9504_v3  ;;  %v9506_v3 = vld [vmem:[%s15843_s0 + $0x350] sm:$0xff]  ;;  %v9507_v38 = vld [vmem:[%s15843_s0 + $0x358] sm:$0xff] }
 0x317   :  { %v1582_v44 = vpop.f32.mrf.mxu2  ;;  %v1628_v27 = vpop.f32.mrf.mxu3 }
 0x318   :  { %v1535_v50 = vpop.f32.mrf.mxu1  ;;  %v1484_v51 = vpop.f32.mrf.mxu0  ;;  %v2102_v44 = vpack.c.bf16 %v9537_v10, %v9536_v59  ;;  %v2087_v59 = vpack.c.bf16 %v9507_v38, %v9506_v3 }
 0x31a   :  { %10711 = vmatmul.lmr.bf16.gmra.16.mxu1 }
 0x31b   :  { %1679 = vmatmul.bf16.gmra.mxu0 %v12846_v9 }
 0x31c   :  { %1826 = vmatmul.bf16.gmra.mxu3 %v12846_v9 }
 0x31f   :  { %v1584_v31 = vpop.f32.mrf.mxu2  ;;  %v1631_v42 = vpop.f32.mrf.mxu3 }
 0x320   :  { %v1538_v46 = vpop.f32.mrf.mxu1  ;;  %v1486_v36 = vpop.f32.mrf.mxu0 }
 0x322   :  { %10712 = vmatmul.lmr.bf16.gmra.16.mxu1 }
 0x324   :  { %1782 = vmatmul.bf16.gmra.mxu2 %v12850_v19 }
 0x325   :  { %11149 = vxpose.binary.xlu0.c.b16.cont [5/16] %v2086_v52, %v2102_v44, 128 }
 0x327   :  { %v1587_v2 = vpop.f32.mrf.mxu2  ;;  %v1633_v27 = vpop.f32.mrf.mxu3 }
 0x328   :  { %v1540_v50 = vpop.f32.mrf.mxu1  ;;  %v1489_v51 = vpop.f32.mrf.mxu0  ;;  %v6478_v2 = vmax.f32 %v12603_v54, %v6477_v61 }
 0x32a   :  { %10713 = vmatmul.lmr.bf16.gmra.16.mxu1 }
 0x32b   :  { %1684 = vmatmul.bf16.gmra.mxu0 %v12853_v39 }
 0x32c   :  { %1831 = vmatmul.bf16.gmra.mxu3 %v12853_v39 }
 0x32f   :  { %v1589_v31 = vpop.f32.mrf.mxu2  ;;  %v1636_v42 = vpop.f32.mrf.mxu3 }
 0x330   :  { %v1699_v46 = vpop.f32.mrf.mxu1  ;;  %v1491_v36 = vpop.f32.mrf.mxu0  ;;  %v6479_v31 = vrot.slane %v6478_v2, 2 }
 0x332   :  { %1894 = vmatmul.bf16.vlgmr.msra.gmra.mxu1 %v12765_v26  ;;  %v9538_v26 = vld [vmem:[%s15843_s0 + $0x450] sm:$0xff]  ;;  %v6480_v61 = vmax.f32 %v6478_v2, %v6479_v31  ;;  %v9509_v2 = vld [vmem:[%s15843_s0 + $0x368] sm:$0xff] }
 0x333   :  { %2203 = vmatpush.bf16.msra.mxu1 %v11514_v63 }
 0x334   :  { %1943 = vmatmul.bf16.vlgmr.msra.gmra.mxu2 %v12769_v48  ;;  %v9539_v48 = vld [vmem:[%s15843_s0 + $0x458] sm:$0xff] }
 0x335   :  { %2252 = vmatpush.bf16.msra.mxu2 %v11525_v4  ;;  %v2103_v52 = vpack.c.bf16 %v9539_v48, %v9538_v26 }
 0x337   :  { %v1748_v10 = vpop.f32.mrf.mxu2  ;;  %v1638_v44 = vpop.f32.mrf.mxu3  ;;  %2204 = vmatpush.bf16.msra.mxu1 %v11537_v8 }
 0x338   :  { %v1701_v27 = vpop.f32.mrf.mxu1  ;;  %v1650_v50 = vpop.f32.mrf.mxu0  ;;  %11150 = vxpose.binary.xlu0.c.b16.cont [6/16] %v2087_v59, %v2103_v52, 128  ;;  %v6481_v59 = vrot.slane %v6480_v61, 1 }
 0x339   :  { %2253 = vmatpush.bf16.msra.mxu2 %v11549_v12  ;;  %v1651_v51 = vadd.f32 %v1650_v50, %v12870_v30 }
 0x33a   :  { %v6482_v31 = vmax.f32 %v6480_v61, %v6481_v59  ;;  %v9526_v59 = vld [vmem:[%s15843_s0 + $0x3f0] sm:$0xff] }
 0x33b   :  { %v1700_v42 = vadd.f32 %v1699_v46, %v1651_v51  ;;  %10412 = vmatmul.lmr.bf16.vlgmr.msra.gmra.16.mxu0  ;;  %2205 = vmatpush.bf16.msra.mxu1 %v11590_v28 }
 0x33c   :  { %11006 = vmatmul.lmr.bf16.vlgmr.msra.gmra.16.mxu3  ;;  %2154 = vmatpush.bf16.msra.mxu0 %v11553_v14 }
 0x33d   :  { %v6625_v36 = vrot.slane %v1700_v42, 4  ;;  %2301 = vmatpush.bf16.msra.mxu3 %v11551_v13  ;;  %2254 = vmatpush.bf16.msra.mxu2 %v11602_v32 }
 0x33f   :  { %v1750_v54 = vpop.f32.mrf.mxu2  ;;  %v6626_v3 = vmax.f32 %v1700_v42, %v6625_v36  ;;  %v1797_v38 = vpop.f32.mrf.mxu3  ;;  %2206 = vmatpush.bf16.msra.mxu1 %v11638_v43 }
 0x340   :  { %v1704_v26 = vpop.f32.mrf.mxu1  ;;  %v13006_v30 = vadd.f32 %v1797_v38, %v1748_v10  ;;  %v1652_v46 = vpop.f32.mrf.mxu0  ;;  %2155 = vmatpush.bf16.msra.mxu0 %v11592_v29  ;;  %v9508_v10 = vld [vmem:[%s15843_s0 + $0x360] sm:$0xff] }
 0x341   :  { %v6627_v48 = vrot.slane %v6626_v3, 2  ;;  %2302 = vmatpush.bf16.msra.mxu3 %v11575_v22  ;;  %2255 = vmatpush.bf16.msra.mxu2 %v11657_v53  ;;  %v2088_v27 = vpack.c.bf16 %v9509_v2, %v9508_v10  ;;  %v9510_v2 = vld [vmem:[%s15843_s0 + $0x370] sm:$0xff] }
 0x342   :  { %1899 = vmatmul.bf16.gmra.mxu1 %v12773_v20  ;;  %v9540_v20 = vld [vmem:[%s15843_s0 + $0x460] sm:$0xff] }
 0x343   :  { %v6628_v52 = vmax.f32 %v6626_v3, %v6627_v48  ;;  %10413 = vmatmul.lmr.bf16.gmra.16.mxu0  ;;  %2207 = vmatpush.bf16.msra.mxu1 %v11676_v58 }
 0x344   :  { %1948 = vmatmul.bf16.gmra.mxu2 %v12777_v15  ;;  %11007 = vmatmul.lmr.bf16.gmra.16.mxu3  ;;  %v9541_v15 = vld [vmem:[%s15843_s0 + $0x468] sm:$0xff] }
 0x345   :  { %2156 = vmatpush.bf16.msra.mxu0 %v11632_v41  ;;  %v6629_v44 = vrot.slane %v6628_v52, 1  ;;  %2303 = vmatpush.bf16.msra.mxu3 %v11630_v40  ;;  %v2104_v51 = vpack.c.bf16 %v9541_v15, %v9540_v20  ;;  %v9542_v20 = vld [vmem:[%s15843_s0 + $0x470] sm:$0xff] }
 0x346   :  { %2256 = vmatpush.bf16.msra.mxu2 %v11694_v0 }
 0x347   :  { %v1753_v50 = vpop.f32.mrf.mxu2  ;;  %v6630_v42 = vmax.f32 %v6628_v52, %v6629_v44  ;;  %v1799_v36 = vpop.f32.mrf.mxu3  ;;  %2208 = vmatpush.bf16.msra.mxu1 %v11713_v7  ;;  %v9527_v52 = vld [vmem:[%s15843_s0 + $0x3f8] sm:$0xff] }
 0x348   :  { %v1706_v54 = vpop.f32.mrf.mxu1  ;;  %v1655_v3 = vpop.f32.mrf.mxu0  ;;  %11151 = vxpose.binary.xlu0.c.b16.cont [7/16] %v2088_v27, %v2104_v51, 128  ;;  %v2097_v10 = vpack.c.bf16 %v9527_v52, %v9526_v59  ;;  %v9524_v50 = vld [vmem:[%s15843_s0 + $0x3e0] sm:$0xff]  ;;  %v9525_v51 = vld [vmem:[%s15843_s0 + $0x3e8] sm:$0xff] }
 0x349   :  { %2157 = vmatpush.bf16.msra.mxu0 %v11669_v56  ;;  %v13031_v38 = vsel %vm7561_vm0, %v6482_v31, %v6630_v42  ;;  %2304 = vmatpush.bf16.msra.mxu3 %v11667_v55  ;;  %v16198_v31 = vld [vmem:[#allocation4_spill] sm:$0xff]  ;;  %v2096_v54 = vpack.c.bf16 %v9525_v51, %v9524_v50 }
 0x34a   :  { %2257 = vmatpush.bf16.msra.mxu2 %v11731_v18 }
 0x34b   :  { %10414 = vmatmul.lmr.bf16.gmra.16.mxu0  ;;  %2209 = vmatpush.bf16.msra.mxu1 %v11746_v25 }
 0x34c   :  { %11008 = vmatmul.lmr.bf16.gmra.16.mxu3 }
 0x34d   :  { %2158 = vmatpush.bf16.msra.mxu0 %v11707_v6  ;;  %2305 = vmatpush.bf16.msra.mxu3 %v11705_v5 }
 0x34e   :  { %2258 = vmatpush.bf16.msra.mxu2 %v11767_v35 }
 0x34f   :  { %v1755_v61 = vpop.f32.mrf.mxu2  ;;  %v1802_v26 = vpop.f32.mrf.mxu3  ;;  %10714 = vmatpush.lsf.bf16.msrb.mxu1 %v2097_v10 }
 0x350   :  { %v1709_v46 = vpop.f32.mrf.mxu1  ;;  %v1657_v48 = vpop.f32.mrf.mxu0  ;;  %v16199_v61 = vld [vmem:[#allocation9_spill] sm:$0xff] }
 0x351   :  { %2159 = vmatpush.bf16.msra.mxu0 %v11743_v23  ;;  %2306 = vmatpush.bf16.msra.mxu3 %v11741_v21  ;;  %v9522_v26 = vld [vmem:[%s15843_s0 + $0x3d0] sm:$0xff]  ;;  %v9523_v46 = vld [vmem:[%s15843_s0 + $0x3d8] sm:$0xff]  ;;  %v16200_v48 = vld [vmem:[#allocation8_spill] sm:$0xff] }
 0x352   :  { %1904 = vmatmul.bf16.gmra.mxu1 %v12781_v49  ;;  %v9511_v49 = vld [vmem:[%s15843_s0 + $0x378] sm:$0xff]  ;;  %2259 = vmatpush.bf16.msra.mxu2 %v16121_v1  ;;  %v2095_v59 = vpack.c.bf16 %v9523_v46, %v9522_v26  ;;  %v9514_v26 = vld [vmem:[%s15843_s0 + $0x390] sm:$0xff] }
 0x353   :  { %10415 = vmatmul.lmr.bf16.gmra.16.mxu0  ;;  %v2089_v44 = vpack.c.bf16 %v9511_v49, %v9510_v2  ;;  %2210 = vmatpush.bf16.msra.mxu1 %v16198_v31  ;;  %v9521_v2 = vld [vmem:[%s15843_s0 + $0x3c8] sm:$0xff]  ;;  %v9515_v46 = vld [vmem:[%s15843_s0 + $0x398] sm:$0xff]  ;;  %v16251_v31 = vld [vmem:[#allocation61_spill] sm:$0xff] }
 0x354   :  { %1953 = vmatmul.bf16.gmra.mxu2 %v12790_v47  ;;  %11009 = vmatmul.lmr.bf16.gmra.16.mxu3  ;;  %v9543_v47 = vld [vmem:[%s15843_s0 + $0x478] sm:$0xff] }
 0x355   :  { %2160 = vmatpush.bf16.msra.mxu0 %v16124_v34  ;;  %v2105_v27 = vpack.c.bf16 %v9543_v47, %v9542_v20  ;;  %2307 = vmatpush.bf16.msra.mxu3 %v16123_v16 }
 0x356   :  { %10910 = vmatpush.lsf.bf16.msrb.mxu2 %v2097_v10 }
 0x357   :  { %v1758_v15 = vpop.f32.mrf.mxu2  ;;  %v1804_v42 = vpop.f32.mrf.mxu3  ;;  %10715 = vmatpush.lsf.bf16.msrb.mxu1 %v2096_v54 }
 0x358   :  { %v1711_v36 = vpop.f32.mrf.mxu1  ;;  %v1660_v3 = vpop.f32.mrf.mxu0  ;;  %11152 = vxpose.binary.xlu0.c.b16.end [8/16] %v2089_v44, %v2105_v27, 128  ;;  %v9518_v15 = vld [vmem:[%s15843_s0 + $0x3b0] sm:$0xff]  ;;  %v9519_v27 = vld [vmem:[%s15843_s0 + $0x3b8] sm:$0xff]  ;;  %v9517_v42 = vld [vmem:[%s15843_s0 + $0x3a8] sm:$0xff] }
 0x359   :  { %10428 = vmatpush.lsf.bf16.msrb.mxu0 %v2097_v10  ;;  %11022 = vmatpush.lsf.bf16.msrb.mxu3 %v2097_v10  ;;  %v9520_v10 = vld [vmem:[%s15843_s0 + $0x3c0] sm:$0xff]  ;;  %v2093_v50 = vpack.c.bf16 %v9519_v27, %v9518_v15 }
 0x35a   :  { %10911 = vmatpush.lsf.bf16.msrb.mxu2 %v2096_v54  ;;  %v2094_v44 = vpack.c.bf16 %v9521_v2, %v9520_v10  ;;  %v9512_v10 = vld [vmem:[%s15843_s0 + $0x380] sm:$0xff]  ;;  %v9513_v2 = vld [vmem:[%s15843_s0 + $0x388] sm:$0xff] }
 0x35b   :  { %10416 = vmatmul.lmr.bf16.gmra.16.mxu0  ;;  %10716 = vmatpush.lsf.bf16.msrb.mxu1 %v2095_v59 }
 0x35c   :  { %11010 = vmatmul.lmr.bf16.gmra.16.mxu3 }
 0x35d   :  { %2161 = vmatpush.bf16.msra.mxu0 %v16199_v61  ;;  %2308 = vmatpush.bf16.msra.mxu3 %v16200_v48 }
 0x35e   :  { %10912 = vmatpush.lsf.bf16.msrb.mxu2 %v2095_v59 }
 0x35f   :  { %v1760_v52 = vpop.f32.mrf.mxu2  ;;  %v1807_v49 = vpop.f32.mrf.mxu3  ;;  %10717 = vmatpush.lsf.bf16.msrb.mxu1 %v2094_v44 }
 0x360   :  { %v1714_v20 = vpop.f32.mrf.mxu1  ;;  %v1662_v47 = vpop.f32.mrf.mxu0 }
 0x361   :  { %11023 = vmatpush.lsf.bf16.msrb.mxu3 %v2096_v54  ;;  %10429 = vmatpush.lsf.bf16.msrb.mxu0 %v2096_v54 }
 0x362   :  { %1909 = vmatmul.bf16.gmra.mxu1 %v12805_v33  ;;  %v9516_v33 = vld [vmem:[%s15843_s0 + $0x3a0] sm:$0xff]  ;;  %10913 = vmatpush.lsf.bf16.msrb.mxu2 %v2094_v44 }
 0x363   :  { %10417 = vmatmul.lmr.bf16.gmra.16.mxu0  ;;  %10718 = vmatpush.lsf.bf16.msrb.mxu1 %v2093_v50 }
 0x364   :  { %1958 = vmatmul.bf16.gmra.mxu2 %v12818_v17  ;;  %11011 = vmatmul.lmr.bf16.gmra.16.mxu3  ;;  %v2092_v17 = vpack.c.bf16 %v9517_v42, %v9516_v33 }
 0x365   :  { %11024 = vmatpush.lsf.bf16.msrb.mxu3 %v2095_v59  ;;  %10430 = vmatpush.lsf.bf16.msrb.mxu0 %v2095_v59  ;;  %v2091_v59 = vpack.c.bf16 %v9515_v46, %v9514_v26 }
 0x366   :  { %10914 = vmatpush.lsf.bf16.msrb.mxu2 %v2093_v50 }
 0x367   :  { %v1763_v51 = vpop.f32.mrf.mxu2  ;;  %v1809_v36 = vpop.f32.mrf.mxu3  ;;  %10719 = vmatpush.lsf.bf16.msrb.mxu1 %v2092_v17 }
 0x368   :  { %v1716_v54 = vpop.f32.mrf.mxu1  ;;  %v1665_v3 = vpop.f32.mrf.mxu0 }
 0x369   :  { %10431 = vmatpush.lsf.bf16.msrb.mxu0 %v2094_v44  ;;  %11025 = vmatpush.lsf.bf16.msrb.mxu3 %v2094_v44  ;;  %v2090_v44 = vpack.c.bf16 %v9513_v2, %v9512_v10 }
 0x36a   :  { %10915 = vmatpush.lsf.bf16.msrb.mxu2 %v2092_v17 }
 0x36b   :  { %10418 = vmatmul.lmr.bf16.gmra.16.mxu0  ;;  %10720 = vmatpush.lsf.bf16.msrb.mxu1 %v2091_v59 }
 0x36c   :  { %11012 = vmatmul.lmr.bf16.gmra.16.mxu3 }
 0x36d   :  { %10432 = vmatpush.lsf.bf16.msrb.mxu0 %v2093_v50  ;;  %11026 = vmatpush.lsf.bf16.msrb.mxu3 %v2093_v50 }
 0x36e   :  { %10916 = vmatpush.lsf.bf16.msrb.mxu2 %v2091_v59 }
 0x36f   :  { %v1765_v52 = vpop.f32.mrf.mxu2  ;;  %v1812_v49 = vpop.f32.mrf.mxu3  ;;  %10721 = vmatpush.lsf.bf16.msrb.mxu1 %v2090_v44 }
 0x370   :  { %v1719_v20 = vpop.f32.mrf.mxu1  ;;  %v1667_v47 = vpop.f32.mrf.mxu0 }
 0x371   :  { %10433 = vmatpush.lsf.bf16.msrb.mxu0 %v2092_v17  ;;  %11027 = vmatpush.lsf.bf16.msrb.mxu3 %v2092_v17 }
 0x372   :  { %1914 = vmatmul.bf16.gmra.mxu1 %v12829_v24  ;;  %10917 = vmatpush.lsf.bf16.msrb.mxu2 %v2090_v44 }
 0x373   :  { %10419 = vmatmul.lmr.bf16.gmra.16.mxu0 }
 0x374   :  { %1963 = vmatmul.bf16.gmra.mxu2 %v12834_v62  ;;  %11013 = vmatmul.lmr.bf16.gmra.16.mxu3 }
 0x375   :  { %10434 = vmatpush.lsf.bf16.msrb.mxu0 %v2091_v59  ;;  %11028 = vmatpush.lsf.bf16.msrb.mxu3 %v2091_v59 }
 0x377   :  { %v1768_v15 = vpop.f32.mrf.mxu2  ;;  %v1814_v27 = vpop.f32.mrf.mxu3 }
 0x378   :  { %v1721_v50 = vpop.f32.mrf.mxu1  ;;  %v1670_v51 = vpop.f32.mrf.mxu0 }
 0x379   :  { %10435 = vmatpush.lsf.bf16.msrb.mxu0 %v2090_v44  ;;  %11029 = vmatpush.lsf.bf16.msrb.mxu3 %v2090_v44 }
 0x37b   :  { %10420 = vmatmul.lmr.bf16.gmra.16.mxu0 }
 0x37c   :  { %11014 = vmatmul.lmr.bf16.gmra.16.mxu3 }
 0x37f   :  { %v1770_v33 = vpop.f32.mrf.mxu2  ;;  %v1817_v42 = vpop.f32.mrf.mxu3 }
 0x380   :  { %v1724_v24 = vpop.f32.mrf.mxu1  ;;  %v1672_v36 = vpop.f32.mrf.mxu0  ;;  %v16201_v42 = vld [vmem:[#allocation78_spill] sm:$0xff] }
 0x381   :  { %10722 = vllmr.16.mxu1  ;;  %v16202_v24 = vld [vmem:[#allocation5_spill] sm:$0xff] }
 0x382   :  { %1919 = vmatmul.bf16.gmra.mxu1 %v12837_v37  ;;  %v1138_v36 = vadd.f32 %v16202_v24, %v16201_v42  ;;  %v16208_v24 = vld [vmem:[#allocation15_spill] sm:$0xff] }
 0x383   :  { %10918 = vllmr.16.mxu2  ;;  %10421 = vmatmul.lmr.bf16.gmra.16.mxu0 }
 0x384   :  { %1968 = vmatmul.bf16.gmra.mxu2 %v12840_v45  ;;  %11015 = vmatmul.lmr.bf16.gmra.16.mxu3 }
 0x387   :  { %v1773_v62 = vpop.f32.mrf.mxu2  ;;  %v1819_v54 = vpop.f32.mrf.mxu3 }
 0x388   :  { %v1726_v3 = vpop.f32.mrf.mxu1  ;;  %v1675_v17 = vpop.f32.mrf.mxu0 }
 0x38b   :  { %10422 = vmatmul.lmr.bf16.gmra.16.mxu0 }
 0x38c   :  { %11016 = vmatmul.lmr.bf16.gmra.16.mxu3 }
 0x38f   :  { %v1775_v26 = vpop.f32.mrf.mxu2  ;;  %v1822_v46 = vpop.f32.mrf.mxu3 }
 0x390   :  { %v1729_v59 = vpop.f32.mrf.mxu1  ;;  %v1677_v52 = vpop.f32.mrf.mxu0  ;;  %v6498_v26 = vrot.slane %v1138_v36, 4 }
 0x391   :  { %v16204_v59 = vld [vmem:[#allocation10_spill] sm:$0xff] }
 0x392   :  { %1924 = vmatmul.bf16.gmra.mxu1 %v12843_v60  ;;  %v6499_v46 = vmax.f32 %v1138_v36, %v6498_v26 }
 0x393   :  { %10423 = vmatmul.lmr.bf16.gmra.16.mxu0 }
 0x394   :  { %1973 = vmatmul.bf16.gmra.mxu2 %v12846_v9  ;;  %11017 = vmatmul.lmr.bf16.gmra.16.mxu3  ;;  %v13118_v37 = vpop.trf.xlu0 }
 0x397   :  { %v1778_v45 = vpop.f32.mrf.mxu2  ;;  %v1824_v10 = vpop.f32.mrf.mxu3 }
 0x398   :  { %v1731_v2 = vpop.f32.mrf.mxu1  ;;  %v1680_v49 = vpop.f32.mrf.mxu0 }
 0x399   :  { %v16205_v49 = vld [vmem:[#allocation6_spill] sm:$0xff] }
 0x39b   :  { %10424 = vmatmul.lmr.bf16.gmra.16.mxu0 }
 0x39c   :  { %11018 = vmatmul.lmr.bf16.gmra.16.mxu3  ;;  %v13120_v20 = vpop.trf.xlu0 }
 0x39f   :  { %v1780_v47 = vpop.f32.mrf.mxu2  ;;  %v1827_v44 = vpop.f32.mrf.mxu3 }
 0x3a0   :  { %v1734_v15 = vpop.f32.mrf.mxu1  ;;  %v1682_v27 = vpop.f32.mrf.mxu0  ;;  %v6519_v47 = vrot.slane %v16205_v49, 4 }
 0x3a1   :  { %v16206_v15 = vld [vmem:[#allocation13_spill] sm:$0xff]  ;;  %v6500_v27 = vrot.slane %v6499_v46, 2 }
 0x3a2   :  { %1929 = vmatmul.bf16.gmra.mxu1 %v12850_v19  ;;  %v6520_v42 = vmax.f32 %v16205_v49, %v6519_v47  ;;  %v16212_v49 = vld [vmem:[#allocation18_spill] sm:$0xff] }
 0x3a3   :  { %10425 = vmatmul.lmr.bf16.gmra.16.mxu0  ;;  %v6501_v36 = vmax.f32 %v6499_v46, %v6500_v27  ;;  %v16214_v46 = vld [vmem:[#allocation22_spill] sm:$0xff] }
 0x3a4   :  { %1978 = vmatmul.bf16.gmra.mxu2 %v12853_v39  ;;  %11019 = vmatmul.lmr.bf16.gmra.16.mxu3  ;;  %v13124_v9 = vpop.trf.xlu0  ;;  %v16203_v39 = vld [vmem:[#allocation11_spill] sm:$0xff] }
 0x3a5   :  { %v6502_v47 = vrot.slane %v6501_v36, 1 }
 0x3a7   :  { %v1783_v60 = vpop.f32.mrf.mxu2  ;;  %v1829_v50 = vpop.f32.mrf.mxu3 }
 0x3a8   :  { %v1736_v51 = vpop.f32.mrf.mxu1  ;;  %v1685_v33 = vpop.f32.mrf.mxu0  ;;  %v16207_v50 = vld [vmem:[#allocation12_spill] sm:$0xff] }
 0x3ab   :  { %10426 = vmatmul.lmr.bf16.gmra.16.mxu0 }
 0x3ac   :  { %11020 = vmatmul.lmr.bf16.gmra.16.mxu3  ;;  %v13128_v19 = vpop.trf.xlu0 }
 0x3af   :  { %v1785_v62 = vpop.f32.mrf.mxu2  ;;  %v1832_v54 = vpop.f32.mrf.mxu3 }
 0x3b0   :  { %v1895_v3 = vpop.f32.mrf.mxu1  ;;  %v1687_v17 = vpop.f32.mrf.mxu0  ;;  %v16209_v54 = vld [vmem:[#allocation14_spill] sm:$0xff] }
 0x3b1   :  { %v16211_v17 = vld [vmem:[#allocation19_spill] sm:$0xff] }
 0x3b2   :  { %10723 = vmatmul.lmr.bf16.vlgmr.msra.gmra.16.mxu1 }
 0x3b3   :  { %10427 = vmatmul.lmr.bf16.gmra.16.mxu0  ;;  %2399 = vmatpush.bf16.msra.mxu1 %v16204_v59  ;;  %v16248_v59 = vld [vmem:[#allocation50_spill] sm:$0xff] }
 0x3b4   :  { %2260 = vmatmul.bf16.vlgmr.msra.gmra.mxu2 %v13118_v37  ;;  %11021 = vmatmul.lmr.bf16.gmra.16.mxu3  ;;  %v13137_v51 = vpop.trf.xlu0 }
 0x3b5   :  { %2448 = vmatpush.bf16.msra.mxu2 %v16203_v39  ;;  %v16246_v39 = vld [vmem:[#allocation48_spill] sm:$0xff] }
 0x3b7   :  { %v1944_v52 = vpop.f32.mrf.mxu2  ;;  %v1834_v45 = vpop.f32.mrf.mxu3  ;;  %2400 = vmatpush.bf16.msra.mxu1 %v16207_v50 }
 0x3b8   :  { %v1945_v10 = vadd.f32 %v1944_v52, %v1895_v3  ;;  %v1897_v2 = vpop.f32.mrf.mxu1  ;;  %v1846_v44 = vpop.f32.mrf.mxu0 }
 0x3b9   :  { %2449 = vmatpush.bf16.msra.mxu2 %v16206_v15  ;;  %v1847_v60 = vadd.f32 %v1846_v44, %v13006_v30  ;;  %v16210_v30 = vld [vmem:[#allocation16_spill] sm:$0xff]  ;;  %v6521_v2 = vrot.slane %v6520_v42, 2 }
 0x3ba   :  { %10724 = vmatmul.lmr.bf16.gmra.16.mxu1  ;;  %10436 = vllmr.16.mxu0 }
 0x3bb   :  { %v6646_v33 = vrot.slane %v1847_v60, 4  ;;  %2162 = vmatmul.bf16.vlgmr.msra.gmra.mxu0 %v13120_v20  ;;  %11030 = vllmr.16.mxu3 }
 0x3bc   :  { %2309 = vmatmul.bf16.vlgmr.msra.gmra.mxu3 %v13120_v20  ;;  %2350 = vmatpush.bf16.msra.mxu0 %v16208_v24  ;;  %v16213_v24 = vld [vmem:[#allocation17_spill] sm:$0xff] }
 0x3bd   :  { %v6647_v62 = vmax.f32 %v1847_v60, %v6646_v33  ;;  %2497 = vmatpush.bf16.msra.mxu3 %v16209_v54  ;;  %2450 = vmatpush.bf16.msra.mxu2 %v16210_v30  ;;  %v16215_v33 = vld [vmem:[#allocation25_spill] sm:$0xff]  ;;  %v13151_v30 = vpop.trf.xlu0 }
 0x3be   :  { %2401 = vmatpush.bf16.msra.mxu1 %v16211_v17 }
 0x3bf   :  { %v1946_v3 = vpop.f32.mrf.mxu2  ;;  %v6648_v26 = vrot.slane %v6647_v62, 2  ;;  %v1993_v52 = vpop.f32.mrf.mxu3 }
 0x3c0   :  { %v1900_v45 = vpop.f32.mrf.mxu1  ;;  %v1994_v44 = vadd.f32 %v1993_v52, %v1945_v10  ;;  %v1848_v15 = vpop.f32.mrf.mxu0  ;;  %2351 = vmatpush.bf16.msra.mxu0 %v16212_v49  ;;  %v6522_v3 = vmax.f32 %v6520_v42, %v6521_v2  ;;  %v16216_v10 = vld [vmem:[#allocation21_spill] sm:$0xff] }
 0x3c1   :  { %v6649_v50 = vmax.f32 %v6647_v62, %v6648_v26  ;;  %2498 = vmatpush.bf16.msra.mxu3 %v16213_v24  ;;  %2451 = vmatpush.bf16.msra.mxu2 %v16214_v46  ;;  %v6503_v15 = vmax.f32 %v6501_v36, %v6502_v47  ;;  %v16217_v62 = vld [vmem:[#allocation20_spill] sm:$0xff]  ;;  %v16218_v26 = vld [vmem:[#allocation26_spill] sm:$0xff]  ;;  %v16222_v36 = vld [vmem:[#allocation23_spill] sm:$0xff] }
 0x3c2   :  { %v6667_v27 = vrot.slane %v1994_v44, 4  ;;  %10725 = vmatmul.lmr.bf16.gmra.16.mxu1  ;;  %v6523_v42 = vrot.slane %v6522_v3, 1 }
 0x3c3   :  { %v6650_v60 = vrot.slane %v6649_v50, 1  ;;  %2402 = vmatpush.bf16.msra.mxu1 %v16215_v33  ;;  %v16220_v33 = vld [vmem:[#allocation29_spill] sm:$0xff] }
 0x3c4   :  { %2265 = vmatmul.bf16.gmra.mxu2 %v13124_v9  ;;  %v6668_v45 = vmax.f32 %v1994_v44, %v6667_v27  ;;  %2352 = vmatpush.bf16.msra.mxu0 %v16216_v10  ;;  %v16221_v27 = vld [vmem:[#allocation24_spill] sm:$0xff] }
 0x3c5   :  { %v6651_v52 = vmax.f32 %v6649_v50, %v6650_v60  ;;  %2499 = vmatpush.bf16.msra.mxu3 %v16217_v62  ;;  %2452 = vmatpush.bf16.msra.mxu2 %v16218_v26  ;;  %v16223_v50 = vld [vmem:[#allocation30_spill] sm:$0xff]  ;;  %v6524_v60 = vmax.f32 %v6522_v3, %v6523_v42  ;;  %v16230_v42 = vld [vmem:[#allocation32_spill] sm:$0xff] }
 0x3c6   :  { %v6669_v46 = vrot.slane %v6668_v45, 2 }
 0x3c7   :  { %v1949_v24 = vpop.f32.mrf.mxu2  ;;  %v13157_v49 = vsel %vm7561_vm0, %v6503_v15, %v6651_v52  ;;  %v1995_v54 = vpop.f32.mrf.mxu3  ;;  %2403 = vmatpush.bf16.msra.mxu1 %v16220_v33 }
 0x3c8   :  { %16219 = vst [vmem:[#allocation38_spill] sm:$0xff] %v13157_v49  ;;  %v1902_v17 = vpop.f32.mrf.mxu1  ;;  %v6670_v2 = vmax.f32 %v6668_v45, %v6669_v46  ;;  %v1851_v44 = vpop.f32.mrf.mxu0  ;;  %2353 = vmatpush.bf16.msra.mxu0 %v16221_v27  ;;  %v16224_v24 = vld [vmem:[#allocation33_spill] sm:$0xff]  ;;  %v16226_v46 = vld [vmem:[#allocation27_spill] sm:$0xff]  ;;  %v16227_v45 = vld [vmem:[#allocation34_spill] sm:$0xff] }
 0x3c9   :  { %2500 = vmatpush.bf16.msra.mxu3 %v16222_v36  ;;  %2453 = vmatpush.bf16.msra.mxu2 %v16223_v50  ;;  %v16225_v17 = vld [vmem:[#allocation28_spill] sm:$0xff]  ;;  %v13172_v44 = vpop.trf.xlu0  ;;  %v16229_v27 = vld [vmem:[#allocation37_spill] sm:$0xff] }
 0x3ca   :  { %v6671_v47 = vrot.slane %v6670_v2, 1  ;;  %10726 = vmatmul.lmr.bf16.gmra.16.mxu1 }
 0x3cb   :  { %2167 = vmatmul.bf16.gmra.mxu0 %v13128_v19  ;;  %2404 = vmatpush.bf16.msra.mxu1 %v16224_v24 }
 0x3cc   :  { %v6672_v54 = vmax.f32 %v6670_v2, %v6671_v47  ;;  %2314 = vmatmul.bf16.gmra.mxu3 %v13128_v19  ;;  %2354 = vmatpush.bf16.msra.mxu0 %v16225_v17  ;;  %v16231_v2 = vld [vmem:[#allocation31_spill] sm:$0xff] }
 0x3cd   :  { %2501 = vmatpush.bf16.msra.mxu3 %v16226_v46  ;;  %2454 = vmatpush.bf16.msra.mxu2 %v16227_v45  ;;  %v16232_v47 = vld [vmem:[#allocation39_spill] sm:$0xff]  ;;  %v16233_v45 = vld [vmem:[#allocation42_spill] sm:$0xff] }
 0x3ce   :  { %v13170_v15 = vsel %vm7561_vm0, %v6524_v60, %v6672_v54  ;;  %v16234_v60 = vld [vmem:[#allocation36_spill] sm:$0xff]  ;;  %v16235_v54 = vld [vmem:[#allocation35_spill] sm:$0xff] }
 0x3cf   :  { %16228 = vst [vmem:[#allocation44_spill] sm:$0xff] %v13170_v15  ;;  %v1951_v52 = vpop.f32.mrf.mxu2  ;;  %v1998_v50 = vpop.f32.mrf.mxu3  ;;  %2405 = vmatpush.bf16.msra.mxu1 %v16229_v27 }
 0x3d0   :  { %v1905_v36 = vpop.f32.mrf.mxu1  ;;  %v1853_v3 = vpop.f32.mrf.mxu0  ;;  %2355 = vmatpush.bf16.msra.mxu0 %v16230_v42  ;;  %v16236_v42 = vld [vmem:[#allocation41_spill] sm:$0xff] }
 0x3d1   :  { %2502 = vmatpush.bf16.msra.mxu3 %v16231_v2  ;;  %2455 = vmatpush.bf16.msra.mxu2 %v16232_v47  ;;  %v13182_v3 = vpop.trf.xlu0  ;;  %v16237_v2 = vld [vmem:[#allocation40_spill] sm:$0xff] }
 0x3d2   :  { %10727 = vmatmul.lmr.bf16.gmra.16.mxu1 }
 0x3d3   :  { %2406 = vmatpush.bf16.msra.mxu1 %v16233_v45 }
 0x3d4   :  { %2270 = vmatmul.bf16.gmra.mxu2 %v13137_v51  ;;  %2356 = vmatpush.bf16.msra.mxu0 %v16234_v60 }
 0x3d5   :  { %2503 = vmatpush.bf16.msra.mxu3 %v16235_v54 }
 0x3d7   :  { %v1954_v50 = vpop.f32.mrf.mxu2  ;;  %v2000_v36 = vpop.f32.mrf.mxu3 }
 0x3d8   :  { %v1907_v52 = vpop.f32.mrf.mxu1  ;;  %v1856_v27 = vpop.f32.mrf.mxu0  ;;  %2357 = vmatpush.bf16.msra.mxu0 %v16236_v42 }
 0x3d9   :  { %2504 = vmatpush.bf16.msra.mxu3 %v16237_v2  ;;  %v13188_v50 = vpop.trf.xlu0 }
 0x3da   :  { %10728 = vmatmul.lmr.bf16.gmra.16.mxu1 }
 0x3db   :  { %2172 = vmatmul.bf16.gmra.mxu0 %v13151_v30 }
 0x3dc   :  { %2319 = vmatmul.bf16.gmra.mxu3 %v13151_v30 }
 0x3df   :  { %v1956_v45 = vpop.f32.mrf.mxu2  ;;  %v2003_v47 = vpop.f32.mrf.mxu3 }
 0x3e0   :  { %v1910_v60 = vpop.f32.mrf.mxu1  ;;  %v1858_v15 = vpop.f32.mrf.mxu0 }
 0x3e1   :  { %v13193_v2 = vpop.trf.xlu0 }
 0x3e2   :  { %10729 = vmatmul.lmr.bf16.gmra.16.mxu1 }
 0x3e4   :  { %2275 = vmatmul.bf16.gmra.mxu2 %v13172_v44 }
 0x3e7   :  { %v1959_v27 = vpop.f32.mrf.mxu2  ;;  %v2005_v36 = vpop.f32.mrf.mxu3 }
 0x3e8   :  { %v1912_v52 = vpop.f32.mrf.mxu1  ;;  %v1861_v42 = vpop.f32.mrf.mxu0 }
 0x3e9   :  { %v13196_v46 = vpop.trf.xlu0 }
 0x3ea   :  { %10730 = vmatmul.lmr.bf16.gmra.16.mxu1  ;;  %16238 = vst [vmem:[#allocation43_spill] sm:$0xff] %v13196_v46 }
 0x3eb   :  { %2177 = vmatmul.bf16.gmra.mxu0 %v13182_v3 }
 0x3ec   :  { %2324 = vmatmul.bf16.gmra.mxu3 %v13182_v3 }
 0x3ef   :  { %v1961_v45 = vpop.f32.mrf.mxu2  ;;  %v2008_v47 = vpop.f32.mrf.mxu3 }
 0x3f0   :  { %v1915_v60 = vpop.f32.mrf.mxu1  ;;  %v1863_v15 = vpop.f32.mrf.mxu0 }
 0x3f1   :  { %v13200_v60 = vpop.trf.xlu0 }
 0x3f2   :  { %10731 = vmatmul.lmr.bf16.gmra.16.mxu1 }
 0x3f4   :  { %2280 = vmatmul.bf16.gmra.mxu2 %v13188_v50 }
 0x3f7   :  { %v1964_v54 = vpop.f32.mrf.mxu2  ;;  %v2010_v27 = vpop.f32.mrf.mxu3 }
 0x3f8   :  { %v1917_v36 = vpop.f32.mrf.mxu1  ;;  %v1866_v42 = vpop.f32.mrf.mxu0 }
 0x3f9   :  { %v13203_v36 = vpop.trf.xlu0 }
 0x3fa   :  { %10732 = vmatmul.lmr.bf16.gmra.16.mxu1  ;;  %16239 = vst [vmem:[#allocation52_spill] sm:$0xff] %v13203_v36 }
 0x3fb   :  { %2182 = vmatmul.bf16.gmra.mxu0 %v13193_v2 }
 0x3fc   :  { %2329 = vmatmul.bf16.gmra.mxu3 %v13193_v2 }
 0x3ff   :  { %v1966_v52 = vpop.f32.mrf.mxu2  ;;  %v2013_v17 = vpop.f32.mrf.mxu3 }
 0x400   :  { %v1920_v45 = vpop.f32.mrf.mxu1  ;;  %v1868_v47 = vpop.f32.mrf.mxu0 }
 0x401   :  { %v13208_v47 = vpop.trf.xlu0 }
 0x402   :  { %10733 = vmatmul.lmr.bf16.gmra.16.mxu1  ;;  %16240 = vst [vmem:[#allocation78_spill] sm:$0xff] %v13208_v47 }
 0x404   :  { %2285 = vmatmul.bf16.gmra.mxu2 %v13196_v46 }
 0x407   :  { %v1969_v54 = vpop.f32.mrf.mxu2  ;;  %v2015_v15 = vpop.f32.mrf.mxu3 }
 0x408   :  { %v1922_v24 = vpop.f32.mrf.mxu1  ;;  %v1871_v27 = vpop.f32.mrf.mxu0 }
 0x409   :  { %v13212_v26 = vpop.trf.xlu0 }
 0x40a   :  { %10734 = vmatmul.lmr.bf16.gmra.16.mxu1  ;;  %16241 = vst [vmem:[#allocation5_spill] sm:$0xff] %v13212_v26 }
 0x40b   :  { %2187 = vmatmul.bf16.gmra.mxu0 %v13200_v60 }
 0x40c   :  { %2334 = vmatmul.bf16.gmra.mxu3 %v13200_v60 }
 0x40f   :  { %v1971_v42 = vpop.f32.mrf.mxu2  ;;  %v2018_v17 = vpop.f32.mrf.mxu3 }
 0x410   :  { %v1925_v52 = vpop.f32.mrf.mxu1  ;;  %v1873_v45 = vpop.f32.mrf.mxu0 }
 0x412   :  { %10735 = vmatmul.lmr.bf16.gmra.16.mxu1 }
 0x414   :  { %2290 = vmatmul.bf16.gmra.mxu2 %v13203_v36 }
 0x417   :  { %v1974_v54 = vpop.f32.mrf.mxu2  ;;  %v2020_v15 = vpop.f32.mrf.mxu3 }
 0x418   :  { %v1927_v24 = vpop.f32.mrf.mxu1  ;;  %v1876_v27 = vpop.f32.mrf.mxu0 }
 0x419   :  { %v13215_v24 = vpop.trf.xlu0 }
 0x41a   :  { %10736 = vmatmul.lmr.bf16.gmra.16.mxu1  ;;  %16242 = vst [vmem:[#allocation6_spill] sm:$0xff] %v13215_v24 }
 0x41b   :  { %2192 = vmatmul.bf16.gmra.mxu0 %v13208_v47 }
 0x41c   :  { %2339 = vmatmul.bf16.gmra.mxu3 %v13208_v47 }
 0x41f   :  { %v1976_v49 = vpop.f32.mrf.mxu2  ;;  %v2023_v42 = vpop.f32.mrf.mxu3 }
 0x420   :  { %v1930_v17 = vpop.f32.mrf.mxu1  ;;  %v1878_v52 = vpop.f32.mrf.mxu0 }
 0x421   :  { %v16243_v17 = vld [vmem:[#allocation45_spill] sm:$0xff] }
 0x422   :  { %10737 = vmatmul.lmr.bf16.gmra.16.mxu1 }
 0x424   :  { %2295 = vmatmul.bf16.gmra.mxu2 %v13212_v26 }
 0x427   :  { %v1979_v45 = vpop.f32.mrf.mxu2  ;;  %v2025_v62 = vpop.f32.mrf.mxu3 }
 0x428   :  { %v1932_v54 = vpop.f32.mrf.mxu1  ;;  %v1881_v15 = vpop.f32.mrf.mxu0  ;;  %v16244_v62 = vld [vmem:[#allocation46_spill] sm:$0xff] }
 0x429   :  { %v16245_v15 = vld [vmem:[#allocation47_spill] sm:$0xff] }
 0x42a   :  { %10738 = vmatmul.lmr.bf16.gmra.16.mxu1 }
 0x42b   :  { %2197 = vmatmul.bf16.gmra.mxu0 %v13215_v24 }
 0x42c   :  { %2344 = vmatmul.bf16.gmra.mxu3 %v13215_v24 }
 0x42f   :  { %v1981_v49 = vpop.f32.mrf.mxu2  ;;  %v2028_v27 = vpop.f32.mrf.mxu3 }
 0x430   :  { %v2212_v33 = vpop.f32.mrf.mxu1  ;;  %v1883_v42 = vpop.f32.mrf.mxu0 }
 0x431   :  { %v16247_v42 = vld [vmem:[#allocation57_spill] sm:$0xff] }
 0x432   :  { %2407 = vmatmul.bf16.vlgmr.msra.gmra.mxu1 %v13118_v37 }
 0x433   :  { %2595 = vmatpush.bf16.msra.mxu1 %v16243_v17  ;;  %v16249_v17 = vld [vmem:[#allocation49_spill] sm:$0xff] }
 0x434   :  { %2456 = vmatmul.bf16.vlgmr.msra.gmra.mxu2 %v13120_v20 }
 0x435   :  { %2644 = vmatpush.bf16.msra.mxu2 %v16244_v62  ;;  %v16250_v62 = vld [vmem:[#allocation51_spill] sm:$0xff] }
 0x437   :  { %v2261_v52 = vpop.f32.mrf.mxu2  ;;  %v2030_v45 = vpop.f32.mrf.mxu3  ;;  %2596 = vmatpush.bf16.msra.mxu1 %v16245_v15 }
 0x438   :  { %v2214_v54 = vpop.f32.mrf.mxu1  ;;  %v2163_v10 = vpop.f32.mrf.mxu0 }
 0x439   :  { %2645 = vmatpush.bf16.msra.mxu2 %v16246_v39  ;;  %v2213_v49 = vadd.f32 %v2212_v33, %v2163_v10  ;;  %v16252_v10 = vld [vmem:[#allocation54_spill] sm:$0xff] }
 0x43b   :  { %v2262_v27 = vadd.f32 %v2261_v52, %v2213_v49  ;;  %10437 = vmatmul.lmr.bf16.vlgmr.msra.gmra.16.mxu0  ;;  %2597 = vmatpush.bf16.msra.mxu1 %v16247_v42  ;;  %v16253_v49 = vld [vmem:[#allocation53_spill] sm:$0xff]  ;;  %v16254_v42 = vld [vmem:[#allocation58_spill] sm:$0xff] }
 0x43c   :  { %11031 = vmatmul.lmr.bf16.vlgmr.msra.gmra.16.mxu3  ;;  %2546 = vmatpush.bf16.msra.mxu0 %v16248_v59  ;;  %v9562_v59 = vld [vmem:[%s15843_s0 + $0x510] sm:$0xff] }
 0x43d   :  { %v6752_v48 = vrot.slane %v2262_v27, 4  ;;  %2693 = vmatpush.bf16.msra.mxu3 %v16249_v17  ;;  %2646 = vmatpush.bf16.msra.mxu2 %v16250_v62  ;;  %v16261_v62 = vld [vmem:[#allocation66_spill] sm:$0xff] }
 0x43f   :  { %v2263_v45 = vpop.f32.mrf.mxu2  ;;  %v6753_v54 = vmax.f32 %v2262_v27, %v6752_v48  ;;  %v13229_v61 = vpop.f32.mrf.mxu3  ;;  %2598 = vmatpush.bf16.msra.mxu1 %v16251_v31  ;;  %v16255_v48 = vld [vmem:[#allocation56_spill] sm:$0xff] }
 0x440   :  { %v2217_v15 = vpop.f32.mrf.mxu1  ;;  %v2165_v33 = vpop.f32.mrf.mxu0  ;;  %2547 = vmatpush.bf16.msra.mxu0 %v16252_v10  ;;  %v16256_v45 = vld [vmem:[#allocation65_spill] sm:$0xff] }
 0x441   :  { %v6754_v52 = vrot.slane %v6753_v54, 2  ;;  %2694 = vmatpush.bf16.msra.mxu3 %v16253_v49  ;;  %2647 = vmatpush.bf16.msra.mxu2 %v16254_v42 }
 0x442   :  { %2412 = vmatmul.bf16.gmra.mxu1 %v13124_v9 }
 0x443   :  { %v6755_v17 = vmax.f32 %v6753_v54, %v6754_v52  ;;  %10438 = vmatmul.lmr.bf16.gmra.16.mxu0  ;;  %2599 = vmatpush.bf16.msra.mxu1 %v16256_v45  ;;  %v16257_v54 = vld [vmem:[#allocation60_spill] sm:$0xff]  ;;  %v16258_v52 = vld [vmem:[#allocation7_spill] sm:$0xff] }
 0x444   :  { %2461 = vmatmul.bf16.gmra.mxu2 %v13128_v19  ;;  %11032 = vmatmul.lmr.bf16.gmra.16.mxu3  ;;  %v9560_v45 = vld [vmem:[%s15843_s0 + $0x500] sm:$0xff] }
 0x445   :  { %2548 = vmatpush.bf16.msra.mxu0 %v16255_v48  ;;  %v6756_v15 = vrot.slane %v6755_v17, 1  ;;  %2695 = vmatpush.bf16.msra.mxu3 %v16178_v11  ;;  %v16260_v48 = vld [vmem:[#allocation59_spill] sm:$0xff]  ;;  %v16262_v11 = vld [vmem:[#allocation69_spill] sm:$0xff] }
 0x446   :  { %2648 = vmatpush.bf16.msra.mxu2 %v16179_v57 }
 0x447   :  { %v2266_v27 = vpop.f32.mrf.mxu2  ;;  %v6757_v33 = vmax.f32 %v6755_v17, %v6756_v15  ;;  %v2312_v31 = vpop.f32.mrf.mxu3  ;;  %2600 = vmatpush.bf16.msra.mxu1 %v16262_v11  ;;  %v16264_v17 = vld [vmem:[#allocation63_spill] sm:$0xff] }
 0x448   :  { %v2219_v42 = vpop.f32.mrf.mxu1  ;;  %v2168_v49 = vpop.f32.mrf.mxu0  ;;  %v16263_v27 = vld [vmem:[#allocation64_spill] sm:$0xff]  ;;  %v16265_v31 = vld [vmem:[#allocation70_spill] sm:$0xff] }
 0x449   :  { %2549 = vmatpush.bf16.msra.mxu0 %v16257_v54  ;;  %v13244_v10 = vsel %vm7566_vm1, %v16258_v52, %v6757_v33  ;;  %2696 = vmatpush.bf16.msra.mxu3 %v16260_v48  ;;  %v16266_v49 = vld [vmem:[#allocation73_spill] sm:$0xff]  ;;  %v16268_v48 = vld [vmem:[#allocation67_spill] sm:$0xff] }
 0x44a   :  { %16259 = vst [vmem:[#allocation7_spill] sm:$0xff] %v13244_v10  ;;  %2649 = vmatpush.bf16.msra.mxu2 %v16261_v62  ;;  %v16267_v10 = vld [vmem:[#allocation68_spill] sm:$0xff]  ;;  %v16269_v62 = vld [vmem:[#allocation74_spill] sm:$0xff] }
 0x44b   :  { %10439 = vmatmul.lmr.bf16.gmra.16.mxu0  ;;  %2601 = vmatpush.bf16.msra.mxu1 %v16266_v49  ;;  %v16272_v49 = vld [vmem:[#allocation76_spill] sm:$0xff] }
 0x44c   :  { %11033 = vmatmul.lmr.bf16.gmra.16.mxu3 }
 0x44d   :  { %2550 = vmatpush.bf16.msra.mxu0 %v16263_v27  ;;  %2697 = vmatpush.bf16.msra.mxu3 %v16264_v17  ;;  %v16270_v17 = vld [vmem:[#allocation72_spill] sm:$0xff] }
 0x44e   :  { %2650 = vmatpush.bf16.msra.mxu2 %v16265_v31  ;;  %v16273_v31 = vld [vmem:[#allocation77_spill] sm:$0xff] }
 0x44f   :  { %v2268_v42 = vpop.f32.mrf.mxu2  ;;  %v2315_v15 = vpop.f32.mrf.mxu3  ;;  %2602 = vmatpush.bf16.msra.mxu1 %v16272_v49 }
 0x450   :  { %v2222_v33 = vpop.f32.mrf.mxu1  ;;  %v2170_v52 = vpop.f32.mrf.mxu0  ;;  %v16271_v42 = vld [vmem:[#allocation71_spill] sm:$0xff] }
 0x451   :  { %2551 = vmatpush.bf16.msra.mxu0 %v16267_v10  ;;  %2698 = vmatpush.bf16.msra.mxu3 %v16268_v48  ;;  %v16274_v48 = vld [vmem:[#allocation75_spill] sm:$0xff] }
 0x452   :  { %2651 = vmatpush.bf16.msra.mxu2 %v16269_v62  ;;  %2417 = vmatmul.bf16.gmra.mxu1 %v13137_v51 }
 0x453   :  { %10440 = vmatmul.lmr.bf16.gmra.16.mxu0 }
 0x454   :  { %2466 = vmatmul.bf16.gmra.mxu2 %v13151_v30  ;;  %11034 = vmatmul.lmr.bf16.gmra.16.mxu3 }
 0x455   :  { %2552 = vmatpush.bf16.msra.mxu0 %v16270_v17  ;;  %2699 = vmatpush.bf16.msra.mxu3 %v16271_v42 }
 0x457   :  { %v2271_v15 = vpop.f32.mrf.mxu2  ;;  %v2317_v33 = vpop.f32.mrf.mxu3 }
 0x458   :  { %v2224_v52 = vpop.f32.mrf.mxu1  ;;  %v2173_v10 = vpop.f32.mrf.mxu0  ;;  %v9545_v15 = vld [vmem:[%s15843_s0 + $0x488] sm:$0xff] }
 0x459   :  { %2553 = vmatpush.bf16.msra.mxu0 %v16273_v31  ;;  %2700 = vmatpush.bf16.msra.mxu3 %v16274_v48  ;;  %v9544_v10 = vld [vmem:[%s15843_s0 + $0x480] sm:$0xff] }
 0x45b   :  { %10441 = vmatmul.lmr.bf16.gmra.16.mxu0 }
 0x45c   :  { %11035 = vmatmul.lmr.bf16.gmra.16.mxu3 }
 0x45f   :  { %v2273_v62 = vpop.f32.mrf.mxu2  ;;  %v2320_v27 = vpop.f32.mrf.mxu3 }
 0x460   :  { %v2227_v11 = vpop.f32.mrf.mxu1  ;;  %v2175_v54 = vpop.f32.mrf.mxu0  ;;  %v9576_v62 = vld [vmem:[%s15843_s0 + $0x580] sm:$0xff] }
 0x461   :  { %v9577_v11 = vld [vmem:[%s15843_s0 + $0x588] sm:$0xff]  ;;  %v13277_v54 = vpack.c.bf16 %v9545_v15, %v9544_v10 }
 0x462   :  { %2422 = vmatmul.bf16.gmra.mxu1 %v13172_v44  ;;  %v13279_v33 = vpack.c.bf16 %v9577_v11, %v9576_v62  ;;  %v9561_v10 = vld [vmem:[%s15843_s0 + $0x508] sm:$0xff] }
 0x463   :  { %10442 = vmatmul.lmr.bf16.gmra.16.mxu0  ;;  %v2799_v62 = vpack.c.bf16 %v9561_v10, %v9560_v45  ;;  %v9579_v45 = vld [vmem:[%s15843_s0 + $0x598] sm:$0xff] }
 0x464   :  { %2471 = vmatmul.bf16.gmra.mxu2 %v13182_v3  ;;  %11036 = vmatmul.lmr.bf16.gmra.16.mxu3 }
 0x465   :  { %11169 = vxpose.binary.xlu1.c.b16.start [1/16] %v13277_v54, %v13279_v33, 128 }
 0x466   :  { %2831 = vxpose.xlu2.c.b16.start [1/8] %v2799_v62, 128 }
 0x467   :  { %v2276_v27 = vpop.f32.mrf.mxu2  ;;  %v2322_v52 = vpop.f32.mrf.mxu3 }
 0x468   :  { %v2229_v48 = vpop.f32.mrf.mxu1  ;;  %v2178_v31 = vpop.f32.mrf.mxu0 }
 0x469   :  { %v9546_v48 = vld [vmem:[%s15843_s0 + $0x490] sm:$0xff] }
 0x46a   :  { %v9578_v31 = vld [vmem:[%s15843_s0 + $0x590] sm:$0xff] }
 0x46b   :  { %10443 = vmatmul.lmr.bf16.gmra.16.mxu0  ;;  %v13305_v11 = vpack.c.bf16 %v9579_v45, %v9578_v31  ;;  %v9549_v45 = vld [vmem:[%s15843_s0 + $0x4a8] sm:$0xff] }
 0x46c   :  { %11037 = vmatmul.lmr.bf16.gmra.16.mxu3 }
 0x46f   :  { %v2278_v42 = vpop.f32.mrf.mxu2  ;;  %v2325_v17 = vpop.f32.mrf.mxu3 }
 0x470   :  { %v2232_v49 = vpop.f32.mrf.mxu1  ;;  %v2180_v15 = vpop.f32.mrf.mxu0  ;;  %v9547_v17 = vld [vmem:[%s15843_s0 + $0x498] sm:$0xff] }
 0x471   :  { %v13303_v49 = vpack.c.bf16 %v9547_v17, %v9546_v48  ;;  %v9563_v48 = vld [vmem:[%s15843_s0 + $0x518] sm:$0xff] }
 0x472   :  { %2427 = vmatmul.bf16.gmra.mxu1 %v13188_v50  ;;  %v2800_v31 = vpack.c.bf16 %v9563_v48, %v9562_v59  ;;  %v9581_v59 = vld [vmem:[%s15843_s0 + $0x5a8] sm:$0xff] }
 0x473   :  { %10444 = vmatmul.lmr.bf16.gmra.16.mxu0 }
 0x474   :  { %2476 = vmatmul.bf16.gmra.mxu2 %v13193_v2  ;;  %11038 = vmatmul.lmr.bf16.gmra.16.mxu3 }
 0x475   :  { %11170 = vxpose.binary.xlu1.c.b16.cont [2/16] %v13303_v49, %v13305_v11, 128 }
 0x476   :  { %2832 = vxpose.xlu2.c.b16.cont [2/8] %v2800_v31, 128 }
 0x477   :  { %v2281_v42 = vpop.f32.mrf.mxu2  ;;  %v2327_v27 = vpop.f32.mrf.mxu3 }
 0x478   :  { %v2234_v52 = vpop.f32.mrf.mxu1  ;;  %v2183_v10 = vpop.f32.mrf.mxu0  ;;  %v9580_v42 = vld [vmem:[%s15843_s0 + $0x5a0] sm:$0xff] }
 0x479   :  { %v13331_v10 = vpack.c.bf16 %v9581_v59, %v9580_v42  ;;  %v9551_v59 = vld [vmem:[%s15843_s0 + $0x4b8] sm:$0xff] }
 0x47b   :  { %10445 = vmatmul.lmr.bf16.gmra.16.mxu0 }
 0x47c   :  { %11039 = vmatmul.lmr.bf16.gmra.16.mxu3 }
 0x47f   :  { %v2283_v15 = vpop.f32.mrf.mxu2  ;;  %v2330_v62 = vpop.f32.mrf.mxu3 }
 0x480   :  { %v2237_v57 = vpop.f32.mrf.mxu1  ;;  %v2185_v17 = vpop.f32.mrf.mxu0 }
 0x481   :  { %v9548_v57 = vld [vmem:[%s15843_s0 + $0x4a0] sm:$0xff] }
 0x482   :  { %2432 = vmatmul.bf16.gmra.mxu1 %v13196_v46  ;;  %v13329_v27 = vpack.c.bf16 %v9549_v45, %v9548_v57  ;;  %v9564_v46 = vld [vmem:[%s15843_s0 + $0x520] sm:$0xff]  ;;  %v9565_v57 = vld [vmem:[%s15843_s0 + $0x528] sm:$0xff] }
 0x483   :  { %10446 = vmatmul.lmr.bf16.gmra.16.mxu0  ;;  %v2801_v42 = vpack.c.bf16 %v9565_v57, %v9564_v46  ;;  %v9583_v46 = vld [vmem:[%s15843_s0 + $0x5b8] sm:$0xff] }
 0x484   :  { %2481 = vmatmul.bf16.gmra.mxu2 %v13200_v60  ;;  %11040 = vmatmul.lmr.bf16.gmra.16.mxu3 }
 0x485   :  { %11171 = vxpose.binary.xlu1.c.b16.cont [3/16] %v13329_v27, %v13331_v10, 128 }
 0x486   :  { %2833 = vxpose.xlu2.c.b16.cont [3/8] %v2801_v42, 128 }
 0x487   :  { %v2286_v52 = vpop.f32.mrf.mxu2  ;;  %v2332_v15 = vpop.f32.mrf.mxu3 }
 0x488   :  { %v2239_v62 = vpop.f32.mrf.mxu1  ;;  %v2188_v48 = vpop.f32.mrf.mxu0  ;;  %v9582_v52 = vld [vmem:[%s15843_s0 + $0x5b0] sm:$0xff] }
 0x489   :  { %v13357_v48 = vpack.c.bf16 %v9583_v46, %v9582_v52  ;;  %v9553_v46 = vld [vmem:[%s15843_s0 + $0x4c8] sm:$0xff] }
 0x48b   :  { %10447 = vmatmul.lmr.bf16.gmra.16.mxu0 }
 0x48c   :  { %11041 = vmatmul.lmr.bf16.gmra.16.mxu3 }
 0x48f   :  { %v2288_v17 = vpop.f32.mrf.mxu2  ;;  %v2335_v31 = vpop.f32.mrf.mxu3 }
 0x490   :  { %v2242_v39 = vpop.f32.mrf.mxu1  ;;  %v2190_v45 = vpop.f32.mrf.mxu0 }
 0x491   :  { %v9550_v39 = vld [vmem:[%s15843_s0 + $0x4b0] sm:$0xff] }
 0x492   :  { %2437 = vmatmul.bf16.gmra.mxu1 %v13203_v36  ;;  %v13355_v15 = vpack.c.bf16 %v9551_v59, %v9550_v39  ;;  %v9567_v39 = vld [vmem:[%s15843_s0 + $0x538] sm:$0xff] }
 0x493   :  { %10448 = vmatmul.lmr.bf16.gmra.16.mxu0 }
 0x494   :  { %2486 = vmatmul.bf16.gmra.mxu2 %v13208_v47  ;;  %11042 = vmatmul.lmr.bf16.gmra.16.mxu3  ;;  %v9566_v47 = vld [vmem:[%s15843_s0 + $0x530] sm:$0xff] }
 0x495   :  { %11172 = vxpose.binary.xlu1.c.b16.cont [4/16] %v13355_v15, %v13357_v48, 128  ;;  %v2802_v52 = vpack.c.bf16 %v9567_v39, %v9566_v47  ;;  %v9585_v47 = vld [vmem:[%s15843_s0 + $0x5c8] sm:$0xff] }
 0x497   :  { %v2291_v62 = vpop.f32.mrf.mxu2  ;;  %v2337_v17 = vpop.f32.mrf.mxu3  ;;  %2834 = vxpose.xlu2.c.b16.cont [4/8] %v2802_v52, 128 }
 0x498   :  { %v2244_v31 = vpop.f32.mrf.mxu1  ;;  %v2193_v57 = vpop.f32.mrf.mxu0  ;;  %v9584_v62 = vld [vmem:[%s15843_s0 + $0x5c0] sm:$0xff] }
 0x499   :  { %v13383_v57 = vpack.c.bf16 %v9585_v47, %v9584_v62  ;;  %v9554_v47 = vld [vmem:[%s15843_s0 + $0x4d0] sm:$0xff] }
 0x49b   :  { %10449 = vmatmul.lmr.bf16.gmra.16.mxu0 }
 0x49c   :  { %11043 = vmatmul.lmr.bf16.gmra.16.mxu3 }
 0x49f   :  { %v2293_v45 = vpop.f32.mrf.mxu2  ;;  %v2340_v42 = vpop.f32.mrf.mxu3 }
 0x4a0   :  { %v2247_v36 = vpop.f32.mrf.mxu1  ;;  %v2195_v59 = vpop.f32.mrf.mxu0 }
 0x4a1   :  { %v9552_v36 = vld [vmem:[%s15843_s0 + $0x4c0] sm:$0xff] }
 0x4a2   :  { %2442 = vmatmul.bf16.gmra.mxu1 %v13212_v26  ;;  %v13381_v17 = vpack.c.bf16 %v9553_v46, %v9552_v36  ;;  %v9569_v36 = vld [vmem:[%s15843_s0 + $0x548] sm:$0xff] }
 0x4a3   :  { %10450 = vmatmul.lmr.bf16.gmra.16.mxu0 }
 0x4a4   :  { %2491 = vmatmul.bf16.gmra.mxu2 %v13215_v24  ;;  %11044 = vmatmul.lmr.bf16.gmra.16.mxu3  ;;  %v9568_v24 = vld [vmem:[%s15843_s0 + $0x540] sm:$0xff] }
 0x4a5   :  { %11173 = vxpose.binary.xlu1.c.b16.cont [5/16] %v13381_v17, %v13383_v57, 128  ;;  %v2803_v62 = vpack.c.bf16 %v9569_v36, %v9568_v24 }
 0x4a7   :  { %v2296_v31 = vpop.f32.mrf.mxu2  ;;  %v2342_v45 = vpop.f32.mrf.mxu3  ;;  %2835 = vxpose.xlu2.c.b16.cont [5/8] %v2803_v62, 128 }
 0x4a8   :  { %v2249_v42 = vpop.f32.mrf.mxu1  ;;  %v2198_v39 = vpop.f32.mrf.mxu0  ;;  %v9555_v31 = vld [vmem:[%s15843_s0 + $0x4d8] sm:$0xff]  ;;  %v9586_v45 = vld [vmem:[%s15843_s0 + $0x5d0] sm:$0xff] }
 0x4a9   :  { %v13408_v42 = vpack.c.bf16 %v9555_v31, %v9554_v47 }
 0x4ab   :  { %10451 = vmatmul.lmr.bf16.gmra.16.mxu0 }
 0x4ac   :  { %11045 = vmatmul.lmr.bf16.gmra.16.mxu3 }
 0x4af   :  { %v2298_v59 = vpop.f32.mrf.mxu2  ;;  %v2345_v52 = vpop.f32.mrf.mxu3 }
 0x4b0   :  { %v2408_v26 = vpop.f32.mrf.mxu1  ;;  %v2200_v46 = vpop.f32.mrf.mxu0 }
 0x4b2   :  { %2603 = vmatmul.bf16.vlgmr.msra.gmra.mxu1 %v13120_v20  ;;  %v9587_v20 = vld [vmem:[%s15843_s0 + $0x5d8] sm:$0xff] }
 0x4b3   :  { %10452 = vmatmul.lmr.bf16.gmra.16.mxu0  ;;  %2912 = vmatpush.bf16.msra.mxu1 %v11514_v63  ;;  %v13410_v39 = vpack.c.bf16 %v9587_v20, %v9586_v45 }
 0x4b4   :  { %10919 = vmatmul.lmr.bf16.vlgmr.msra.gmra.16.mxu2  ;;  %11046 = vmatmul.lmr.bf16.gmra.16.mxu3 }
 0x4b5   :  { %2961 = vmatpush.bf16.msra.mxu2 %v11525_v4 }
 0x4b6   :  { %11174 = vxpose.binary.xlu1.c.b16.cont [6/16] %v13408_v42, %v13410_v39, 128 }
 0x4b7   :  { %v2457_v24 = vpop.f32.mrf.mxu2  ;;  %v2347_v59 = vpop.f32.mrf.mxu3  ;;  %2913 = vmatpush.bf16.msra.mxu1 %v11537_v8 }
 0x4b8   :  { %v2410_v52 = vpop.f32.mrf.mxu1  ;;  %v2359_v36 = vpop.f32.mrf.mxu0 }
 0x4b9   :  { %2962 = vmatpush.bf16.msra.mxu2 %v11549_v12  ;;  %v2360_v46 = vadd.f32 %v2359_v36, %v13229_v61 }
 0x4bb   :  { %v2409_v62 = vadd.f32 %v2408_v26, %v2360_v46  ;;  %2554 = vmatmul.bf16.vlgmr.msra.gmra.mxu0 %v13118_v37  ;;  %2914 = vmatpush.bf16.msra.mxu1 %v11590_v28  ;;  %v9570_v26 = vld [vmem:[%s15843_s0 + $0x550] sm:$0xff] }
 0x4bc   :  { %10920 = vmatmul.lmr.bf16.gmra.16.mxu2  ;;  %2701 = vmatmul.bf16.vlgmr.msra.gmra.mxu3 %v13118_v37  ;;  %v9571_v37 = vld [vmem:[%s15843_s0 + $0x558] sm:$0xff] }
 0x4bd   :  { %2863 = vmatpush.bf16.msra.mxu0 %v11553_v14  ;;  %v6773_v47 = vrot.slane %v2409_v62, 4  ;;  %3010 = vmatpush.bf16.msra.mxu3 %v11551_v13  ;;  %v2804_v36 = vpack.c.bf16 %v9571_v37, %v9570_v26 }
 0x4be   :  { %2963 = vmatpush.bf16.msra.mxu2 %v11602_v32 }
 0x4bf   :  { %v2459_v31 = vpop.f32.mrf.mxu2  ;;  %v6774_v61 = vmax.f32 %v2409_v62, %v6773_v47  ;;  %v2506_v45 = vpop.f32.mrf.mxu3  ;;  %2836 = vxpose.xlu2.c.b16.cont [6/8] %v2804_v36, 128  ;;  %v9556_v47 = vld [vmem:[%s15843_s0 + $0x4e0] sm:$0xff]  ;;  %2915 = vmatpush.bf16.msra.mxu1 %v11638_v43 }
 0x4c0   :  { %v2413_v20 = vpop.f32.mrf.mxu1  ;;  %v13429_v59 = vadd.f32 %v2506_v45, %v2457_v24  ;;  %v2361_v52 = vpop.f32.mrf.mxu0  ;;  %v9557_v24 = vld [vmem:[%s15843_s0 + $0x4e8] sm:$0xff]  ;;  %v9588_v31 = vld [vmem:[%s15843_s0 + $0x5e0] sm:$0xff] }
 0x4c1   :  { %2864 = vmatpush.bf16.msra.mxu0 %v11592_v29  ;;  %v6775_v46 = vrot.slane %v6774_v61, 2  ;;  %3011 = vmatpush.bf16.msra.mxu3 %v11575_v22  ;;  %v2797_v20 = vpack.c.bf16 %v9557_v24, %v9556_v47  ;;  %v9572_v24 = vld [vmem:[%s15843_s0 + $0x560] sm:$0xff] }
 0x4c2   :  { %2964 = vmatpush.bf16.msra.mxu2 %v11657_v53  ;;  %2608 = vmatmul.bf16.gmra.mxu1 %v13128_v19  ;;  %v9589_v19 = vld [vmem:[%s15843_s0 + $0x5e8] sm:$0xff] }
 0x4c3   :  { %v6776_v62 = vmax.f32 %v6774_v61, %v6775_v46  ;;  %v13451_v26 = vpack.c.bf16 %v9589_v19, %v9588_v31  ;;  %2916 = vmatpush.bf16.msra.mxu1 %v11676_v58  ;;  %v9573_v31 = vld [vmem:[%s15843_s0 + $0x568] sm:$0xff] }
 0x4c4   :  { %10921 = vmatmul.lmr.bf16.gmra.16.mxu2  ;;  %v2805_v19 = vpack.c.bf16 %v9573_v31, %v9572_v24  ;;  %v16276_v31 = vld [vmem:[#allocation9_spill] sm:$0xff] }
 0x4c5   :  { %2865 = vmatpush.bf16.msra.mxu0 %v11632_v41  ;;  %v6777_v61 = vrot.slane %v6776_v62, 1  ;;  %3012 = vmatpush.bf16.msra.mxu3 %v11630_v40 }
 0x4c6   :  { %2965 = vmatpush.bf16.msra.mxu2 %v11694_v0 }
 0x4c7   :  { %v2462_v45 = vpop.f32.mrf.mxu2  ;;  %v6778_v37 = vmax.f32 %v6776_v62, %v6777_v61  ;;  %v2508_v52 = vpop.f32.mrf.mxu3  ;;  %11175 = vxpose.binary.xlu1.c.b16.cont [7/16] %v2797_v20, %v13451_v26, 128  ;;  %v9558_v61 = vld [vmem:[%s15843_s0 + $0x4f0] sm:$0xff] }
 0x4c8   :  { %v2415_v36 = vpop.f32.mrf.mxu1  ;;  %v2364_v46 = vpop.f32.mrf.mxu0  ;;  %2917 = vmatpush.bf16.msra.mxu1 %v11713_v7  ;;  %v9559_v45 = vld [vmem:[%s15843_s0 + $0x4f8] sm:$0xff] }
 0x4c9   :  { %2866 = vmatpush.bf16.msra.mxu0 %v11669_v56  ;;  %v13457_v41 = vsel %vm7566_vm1, %v13031_v38, %v6778_v37  ;;  %3013 = vmatpush.bf16.msra.mxu3 %v11667_v55  ;;  %v9590_v37 = vld [vmem:[%s15843_s0 + $0x5f0] sm:$0xff]  ;;  %v9591_v52 = vld [vmem:[%s15843_s0 + $0x5f8] sm:$0xff]  ;;  %v2798_v36 = vpack.c.bf16 %v9559_v45, %v9558_v61  ;;  %v16275_v46 = vld [vmem:[#allocation4_spill] sm:$0xff] }
 0x4ca   :  { %2966 = vmatpush.bf16.msra.mxu2 %v11731_v18 }
 0x4cb   :  { %2559 = vmatmul.bf16.gmra.mxu0 %v13124_v9 }
 0x4cc   :  { %10922 = vmatmul.lmr.bf16.gmra.16.mxu2  ;;  %2706 = vmatmul.bf16.gmra.mxu3 %v13124_v9 }
 0x4cd   :  { %2867 = vmatpush.bf16.msra.mxu0 %v11707_v6  ;;  %3014 = vmatpush.bf16.msra.mxu3 %v11705_v5 }
 0x4ce   :  { %2967 = vmatpush.bf16.msra.mxu2 %v11767_v35  ;;  %2918 = vmatpush.bf16.msra.mxu1 %v11746_v25 }
 0x4cf   :  { %v2464_v62 = vpop.f32.mrf.mxu2  ;;  %v2511_v38 = vpop.f32.mrf.mxu3  ;;  %2837 = vxpose.xlu2.c.b16.cont [7/8] %v2805_v19, 128 }
 0x4d0   :  { %v2418_v47 = vpop.f32.mrf.mxu1  ;;  %v2366_v9 = vpop.f32.mrf.mxu0 }
 0x4d1   :  { %2868 = vmatpush.bf16.msra.mxu0 %v11743_v23  ;;  %3015 = vmatpush.bf16.msra.mxu3 %v11741_v21  ;;  %v16277_v9 = vld [vmem:[#allocation8_spill] sm:$0xff] }
 0x4d2   :  { %2613 = vmatmul.bf16.gmra.mxu1 %v13151_v30  ;;  %2968 = vmatpush.bf16.msra.mxu2 %v16121_v1  ;;  %v2814_v30 = vpack.c.bf16 %v9591_v52, %v9590_v37  ;;  %v9574_v37 = vld [vmem:[%s15843_s0 + $0x570] sm:$0xff]  ;;  %v9575_v52 = vld [vmem:[%s15843_s0 + $0x578] sm:$0xff] }
 0x4d3   :  { %2919 = vmatpush.bf16.msra.mxu1 %v16275_v46 }
 0x4d4   :  { %10923 = vmatmul.lmr.bf16.gmra.16.mxu2 }
 0x4d5   :  { %2869 = vmatpush.bf16.msra.mxu0 %v16124_v34  ;;  %3016 = vmatpush.bf16.msra.mxu3 %v16123_v16 }
 0x4d7   :  { %v2467_v62 = vpop.f32.mrf.mxu2  ;;  %v2513_v38 = vpop.f32.mrf.mxu3  ;;  %10739 = vmatpush.lsf.bf16.msrb.mxu1 %v2814_v30 }
 0x4d8   :  { %v2420_v47 = vpop.f32.mrf.mxu1  ;;  %v2369_v24 = vpop.f32.mrf.mxu0  ;;  %11176 = vxpose.binary.xlu1.c.b16.end [8/16] %v2798_v36, %v2814_v30, 128  ;;  %v2806_v62 = vpack.c.bf16 %v9575_v52, %v9574_v37 }
 0x4d9   :  { %10453 = vmatpush.lsf.bf16.msrb.mxu0 %v2798_v36  ;;  %3017 = vmatpush.bf16.msra.mxu3 %v16277_v9  ;;  %v16335_v9 = vld [vmem:[#allocation58_spill] sm:$0xff] }
 0x4db   :  { %2564 = vmatmul.bf16.gmra.mxu0 %v13137_v51  ;;  %10740 = vmatpush.lsf.bf16.msrb.mxu1 %v13451_v26 }
 0x4dc   :  { %10924 = vmatmul.lmr.bf16.gmra.16.mxu2  ;;  %2711 = vmatmul.bf16.gmra.mxu3 %v13137_v51 }
 0x4dd   :  { %2870 = vmatpush.bf16.msra.mxu0 %v16276_v31  ;;  %v16345_v31 = vld [vmem:[#allocation66_spill] sm:$0xff] }
 0x4df   :  { %v2469_v19 = vpop.f32.mrf.mxu2  ;;  %v2516_v61 = vpop.f32.mrf.mxu3  ;;  %10741 = vmatpush.lsf.bf16.msrb.mxu1 %v13410_v39  ;;  %2838 = vxpose.xlu2.c.b16.end [8/8] %v2806_v62, 128 }
 0x4e0   :  { %v2423_v45 = vpop.f32.mrf.mxu1  ;;  %v2371_v36 = vpop.f32.mrf.mxu0 }
 0x4e1   :  { %10454 = vmatpush.lsf.bf16.msrb.mxu0 %v2797_v20 }
 0x4e2   :  { %2618 = vmatmul.bf16.gmra.mxu1 %v13182_v3 }
 0x4e3   :  { %10742 = vmatpush.lsf.bf16.msrb.mxu1 %v13383_v57 }
 0x4e4   :  { %10925 = vmatmul.lmr.bf16.gmra.16.mxu2 }
 0x4e5   :  { %10455 = vmatpush.lsf.bf16.msrb.mxu0 %v13408_v42 }
 0x4e7   :  { %v2472_v51 = vpop.f32.mrf.mxu2  ;;  %v2518_v20 = vpop.f32.mrf.mxu3  ;;  %10743 = vmatpush.lsf.bf16.msrb.mxu1 %v13357_v48 }
 0x4e8   :  { %v2425_v38 = vpop.f32.mrf.mxu1  ;;  %v2374_v47 = vpop.f32.mrf.mxu0 }
 0x4e9   :  { %10456 = vmatpush.lsf.bf16.msrb.mxu0 %v13381_v17  ;;  %v16280_v47 = vld [vmem:[#allocation52_spill] sm:$0xff] }
 0x4eb   :  { %2569 = vmatmul.bf16.gmra.mxu0 %v13172_v44  ;;  %10744 = vmatpush.lsf.bf16.msrb.mxu1 %v13331_v10 }
 0x4ec   :  { %10926 = vmatmul.lmr.bf16.gmra.16.mxu2  ;;  %2716 = vmatmul.bf16.gmra.mxu3 %v13172_v44 }
 0x4ed   :  { %10457 = vmatpush.lsf.bf16.msrb.mxu0 %v13355_v15 }
 0x4ef   :  { %v2474_v3 = vpop.f32.mrf.mxu2  ;;  %v2521_v17 = vpop.f32.mrf.mxu3  ;;  %10745 = vmatpush.lsf.bf16.msrb.mxu1 %v13305_v11 }
 0x4f0   :  { %v2428_v42 = vpop.f32.mrf.mxu1  ;;  %v2376_v24 = vpop.f32.mrf.mxu0 }
 0x4f1   :  { %10458 = vmatpush.lsf.bf16.msrb.mxu0 %v13329_v27  ;;  %v16281_v24 = vld [vmem:[#allocation6_spill] sm:$0xff] }
 0x4f2   :  { %2623 = vmatmul.bf16.gmra.mxu1 %v13193_v2 }
 0x4f3   :  { %10746 = vmatpush.lsf.bf16.msrb.mxu1 %v13279_v33 }
 0x4f4   :  { %10927 = vmatmul.lmr.bf16.gmra.16.mxu2 }
 0x4f5   :  { %10459 = vmatpush.lsf.bf16.msrb.mxu0 %v13303_v49 }
 0x4f7   :  { %v2477_v44 = vpop.f32.mrf.mxu2  ;;  %v2523_v27 = vpop.f32.mrf.mxu3 }
 0x4f8   :  { %v2430_v15 = vpop.f32.mrf.mxu1  ;;  %v2379_v19 = vpop.f32.mrf.mxu0 }
 0x4f9   :  { %10460 = vmatpush.lsf.bf16.msrb.mxu0 %v13277_v54 }
 0x4fb   :  { %10461 = vllmr.16.mxu0 }
 0x4fc   :  { %2574 = vmatmul.bf16.gmra.mxu0 %v13188_v50  ;;  %10928 = vmatmul.lmr.bf16.gmra.16.mxu2 }
 0x4fd   :  { %10478 = vmatpush.lsf.bf16.msrb.mxu0 %v2814_v30  ;;  %2721 = vmatmul.bf16.gmra.mxu3 %v13188_v50  ;;  %v16278_v50 = vld [vmem:[#allocation43_spill] sm:$0xff] }
 0x4ff   :  { %v2479_v2 = vpop.f32.mrf.mxu2  ;;  %v2526_v49 = vpop.f32.mrf.mxu3 }
 0x500   :  { %v2433_v61 = vpop.f32.mrf.mxu1  ;;  %v2381_v54 = vpop.f32.mrf.mxu0  ;;  %v16282_v2 = vld [vmem:[#allocation5_spill] sm:$0xff] }
 0x501   :  { %10747 = vllmr.16.mxu1  ;;  %10479 = vmatpush.lsf.bf16.msrb.mxu0 %v13451_v26 }
 0x502   :  { %2628 = vmatmul.bf16.gmra.mxu1 %v13200_v60 }
 0x504   :  { %10929 = vmatmul.lmr.bf16.gmra.16.mxu2 }
 0x505   :  { %10480 = vmatpush.lsf.bf16.msrb.mxu0 %v13410_v39 }
 0x507   :  { %v2482_v45 = vpop.f32.mrf.mxu2  ;;  %v2528_v30 = vpop.f32.mrf.mxu3 }
 0x508   :  { %v2435_v37 = vpop.f32.mrf.mxu1  ;;  %v2384_v52 = vpop.f32.mrf.mxu0 }
 0x509   :  { %10481 = vmatpush.lsf.bf16.msrb.mxu0 %v13383_v57  ;;  %v16279_v57 = vld [vmem:[#allocation78_spill] sm:$0xff] }
 0x50a   :  { %v16283_v52 = vld [vmem:[#allocation10_spill] sm:$0xff] }
 0x50c   :  { %2579 = vmatmul.bf16.gmra.mxu0 %v16278_v50  ;;  %10930 = vmatmul.lmr.bf16.gmra.16.mxu2 }
 0x50d   :  { %10482 = vmatpush.lsf.bf16.msrb.mxu0 %v13357_v48  ;;  %2726 = vmatmul.bf16.gmra.mxu3 %v16278_v50  ;;  %v16284_v50 = vld [vmem:[#allocation11_spill] sm:$0xff] }
 0x50f   :  { %v2484_v26 = vpop.f32.mrf.mxu2  ;;  %v2531_v39 = vpop.f32.mrf.mxu3 }
 0x510   :  { %v2438_v36 = vpop.f32.mrf.mxu1  ;;  %v2386_v60 = vpop.f32.mrf.mxu0 }
 0x511   :  { %10483 = vmatpush.lsf.bf16.msrb.mxu0 %v13331_v10  ;;  %v13545_v61 = vpop.trf.xlu2 }
 0x512   :  { %2633 = vmatmul.bf16.gmra.mxu1 %v16279_v57  ;;  %v16285_v57 = vld [vmem:[#allocation12_spill] sm:$0xff] }
 0x514   :  { %10931 = vmatmul.lmr.bf16.gmra.16.mxu2  ;;  %v13534_v48 = vpop.trf.xlu1 }
 0x515   :  { %10484 = vmatpush.lsf.bf16.msrb.mxu0 %v13305_v11 }
 0x517   :  { %v2487_v62 = vpop.f32.mrf.mxu2  ;;  %v2533_v51 = vpop.f32.mrf.mxu3 }
 0x518   :  { %v2440_v20 = vpop.f32.mrf.mxu1  ;;  %v2389_v38 = vpop.f32.mrf.mxu0  ;;  %v16286_v51 = vld [vmem:[#allocation13_spill] sm:$0xff] }
 0x519   :  { %10485 = vmatpush.lsf.bf16.msrb.mxu0 %v13279_v33 }
 0x51c   :  { %2584 = vmatmul.bf16.gmra.mxu0 %v16280_v47  ;;  %10932 = vmatmul.lmr.bf16.gmra.16.mxu2  ;;  %v13538_v3 = vpop.trf.xlu1 }
 0x51d   :  { %2731 = vmatmul.bf16.gmra.mxu3 %v16280_v47 }
 0x51f   :  { %v2489_v10 = vpop.f32.mrf.mxu2  ;;  %v2536_v11 = vpop.f32.mrf.mxu3 }
 0x520   :  { %v2443_v17 = vpop.f32.mrf.mxu1  ;;  %v2391_v42 = vpop.f32.mrf.mxu0  ;;  %v16288_v10 = vld [vmem:[#allocation19_spill] sm:$0xff] }
 0x521   :  { %v16289_v11 = vld [vmem:[#allocation15_spill] sm:$0xff]  ;;  %v16290_v42 = vld [vmem:[#allocation14_spill] sm:$0xff] }
 0x522   :  { %2638 = vmatmul.bf16.gmra.mxu1 %v16281_v24  ;;  %v16291_v24 = vld [vmem:[#allocation16_spill] sm:$0xff] }
 0x524   :  { %10933 = vmatmul.lmr.bf16.gmra.16.mxu2  ;;  %v13541_v44 = vpop.trf.xlu1 }
 0x527   :  { %v2492_v33 = vpop.f32.mrf.mxu2  ;;  %v2538_v27 = vpop.f32.mrf.mxu3 }
 0x528   :  { %v2445_v15 = vpop.f32.mrf.mxu1  ;;  %v2394_v19 = vpop.f32.mrf.mxu0 }
 0x529   :  { %v13563_v27 = vpop.trf.xlu2 }
 0x52c   :  { %2589 = vmatmul.bf16.gmra.mxu0 %v16282_v2  ;;  %10934 = vmatmul.lmr.bf16.gmra.16.mxu2  ;;  %v13547_v37 = vpop.trf.xlu1 }
 0x52d   :  { %2736 = vmatmul.bf16.gmra.mxu3 %v16282_v2  ;;  %v16292_v2 = vld [vmem:[#allocation25_spill] sm:$0xff] }
 0x52f   :  { %v2494_v49 = vpop.f32.mrf.mxu2  ;;  %v2541_v54 = vpop.f32.mrf.mxu3 }
 0x530   :  { %v2604_v45 = vpop.f32.mrf.mxu1  ;;  %v2396_v30 = vpop.f32.mrf.mxu0 }
 0x532   :  { %2920 = vmatmul.bf16.vlgmr.msra.gmra.mxu1 %v13545_v61 }
 0x533   :  { %3108 = vmatpush.bf16.msra.mxu1 %v16283_v52 }
 0x534   :  { %2969 = vmatmul.bf16.vlgmr.msra.gmra.mxu2 %v13534_v48  ;;  %v13556_v38 = vpop.trf.xlu1 }
 0x535   :  { %3157 = vmatpush.bf16.msra.mxu2 %v16284_v50  ;;  %16287 = vst [vmem:[#allocation4_spill] sm:$0xff] %v13556_v38 }
 0x537   :  { %v2653_v26 = vpop.f32.mrf.mxu2  ;;  %v2543_v39 = vpop.f32.mrf.mxu3  ;;  %3109 = vmatpush.bf16.msra.mxu1 %v16285_v57 }
 0x538   :  { %v2654_v36 = vadd.f32 %v2653_v26, %v2604_v45  ;;  %v2606_v60 = vpop.f32.mrf.mxu1  ;;  %v2555_v62 = vpop.f32.mrf.mxu0  ;;  %v16293_v45 = vld [vmem:[#allocation18_spill] sm:$0xff]  ;;  %v16294_v26 = vld [vmem:[#allocation17_spill] sm:$0xff] }
 0x539   :  { %3158 = vmatpush.bf16.msra.mxu2 %v16286_v51  ;;  %v2556_v20 = vadd.f32 %v2555_v62, %v13429_v59  ;;  %v16295_v39 = vld [vmem:[#allocation22_spill] sm:$0xff] }
 0x53b   :  { %v6794_v47 = vrot.slane %v2556_v20, 4  ;;  %3110 = vmatpush.bf16.msra.mxu1 %v16288_v10  ;;  %v16302_v10 = vld [vmem:[#allocation24_spill] sm:$0xff] }
 0x53c   :  { %10462 = vmatmul.lmr.bf16.vlgmr.msra.gmra.16.mxu0 }
 0x53d   :  { %3018 = vmatmul.bf16.vlgmr.msra.gmra.mxu3 %v13538_v3  ;;  %3059 = vmatpush.bf16.msra.mxu0 %v16289_v11  ;;  %v6795_v17 = vmax.f32 %v2556_v20, %v6794_v47  ;;  %v13571_v47 = vpop.trf.xlu1 }
 0x53e   :  { %3206 = vmatpush.bf16.msra.mxu3 %v16290_v42  ;;  %3159 = vmatpush.bf16.msra.mxu2 %v16291_v24 }
 0x53f   :  { %v2655_v33 = vpop.f32.mrf.mxu2  ;;  %v6796_v15 = vrot.slane %v6795_v17, 2  ;;  %v2702_v59 = vpop.f32.mrf.mxu3  ;;  %3111 = vmatpush.bf16.msra.mxu1 %v16292_v2  ;;  %v16300_v2 = vld [vmem:[#allocation38_spill] sm:$0xff] }
 0x540   :  { %v2609_v19 = vpop.f32.mrf.mxu1  ;;  %v2703_v49 = vadd.f32 %v2702_v59, %v2654_v36  ;;  %v2557_v54 = vpop.f32.mrf.mxu0  ;;  %v16296_v33 = vld [vmem:[#allocation21_spill] sm:$0xff] }
 0x541   :  { %3060 = vmatpush.bf16.msra.mxu0 %v16293_v45  ;;  %v6797_v30 = vmax.f32 %v6795_v17, %v6796_v15  ;;  %v16297_v36 = vld [vmem:[#allocation29_spill] sm:$0xff]  ;;  %v16298_v17 = vld [vmem:[#allocation20_spill] sm:$0xff]  ;;  %v16299_v15 = vld [vmem:[#allocation26_spill] sm:$0xff] }
 0x542   :  { %3207 = vmatpush.bf16.msra.mxu3 %v16294_v26  ;;  %3160 = vmatpush.bf16.msra.mxu2 %v16295_v39  ;;  %v6815_v60 = vrot.slane %v2703_v49, 4 }
 0x543   :  { %2925 = vmatmul.bf16.gmra.mxu1 %v13563_v27  ;;  %v6798_v62 = vrot.slane %v6797_v30, 1 }
 0x544   :  { %10463 = vmatmul.lmr.bf16.gmra.16.mxu0  ;;  %2974 = vmatmul.bf16.gmra.mxu2 %v13541_v44  ;;  %v6816_v20 = vmax.f32 %v2703_v49, %v6815_v60 }
 0x545   :  { %3061 = vmatpush.bf16.msra.mxu0 %v16296_v33  ;;  %3112 = vmatpush.bf16.msra.mxu1 %v16297_v36  ;;  %v6799_v59 = vmax.f32 %v6797_v30, %v6798_v62  ;;  %v16303_v33 = vld [vmem:[#allocation33_spill] sm:$0xff]  ;;  %v16304_v36 = vld [vmem:[#allocation23_spill] sm:$0xff]  ;;  %v16305_v30 = vld [vmem:[#allocation30_spill] sm:$0xff] }
 0x546   :  { %3208 = vmatpush.bf16.msra.mxu3 %v16298_v17  ;;  %3161 = vmatpush.bf16.msra.mxu2 %v16299_v15  ;;  %v6817_v19 = vrot.slane %v6816_v20, 2 }
 0x547   :  { %v2658_v54 = vpop.f32.mrf.mxu2  ;;  %v13579_v39 = vsel %vm7566_vm1, %v16300_v2, %v6799_v59  ;;  %v2704_v26 = vpop.f32.mrf.mxu3 }
 0x548   :  { %16301 = vst [vmem:[#allocation43_spill] sm:$0xff] %v13579_v39  ;;  %v2611_v45 = vpop.f32.mrf.mxu1  ;;  %v6818_v49 = vmax.f32 %v6816_v20, %v6817_v19  ;;  %v2560_v60 = vpop.f32.mrf.mxu0  ;;  %v16306_v54 = vld [vmem:[#allocation28_spill] sm:$0xff]  ;;  %v16308_v26 = vld [vmem:[#allocation34_spill] sm:$0xff] }
 0x549   :  { %3062 = vmatpush.bf16.msra.mxu0 %v16302_v10  ;;  %3113 = vmatpush.bf16.msra.mxu1 %v16303_v33  ;;  %v13587_v2 = vpop.trf.xlu2  ;;  %v16307_v45 = vld [vmem:[#allocation27_spill] sm:$0xff]  ;;  %v16309_v20 = vld [vmem:[#allocation44_spill] sm:$0xff]  ;;  %v13595_v60 = vpop.trf.xlu1  ;;  %v16312_v33 = vld [vmem:[#allocation37_spill] sm:$0xff] }
 0x54a   :  { %3209 = vmatpush.bf16.msra.mxu3 %v16304_v36  ;;  %3162 = vmatpush.bf16.msra.mxu2 %v16305_v30  ;;  %v6819_v62 = vrot.slane %v6818_v49, 1  ;;  %16311 = vst [vmem:[#allocation52_spill] sm:$0xff] %v13595_v60  ;;  %v16313_v36 = vld [vmem:[#allocation32_spill] sm:$0xff]  ;;  %v16315_v10 = vld [vmem:[#allocation39_spill] sm:$0xff] }
 0x54c   :  { %10464 = vmatmul.lmr.bf16.gmra.16.mxu0  ;;  %v6820_v15 = vmax.f32 %v6818_v49, %v6819_v62 }
 0x54d   :  { %3023 = vmatmul.bf16.gmra.mxu3 %v13547_v37  ;;  %3063 = vmatpush.bf16.msra.mxu0 %v16306_v54  ;;  %v16314_v54 = vld [vmem:[#allocation31_spill] sm:$0xff] }
 0x54e   :  { %3210 = vmatpush.bf16.msra.mxu3 %v16307_v45  ;;  %3163 = vmatpush.bf16.msra.mxu2 %v16308_v26  ;;  %v13593_v59 = vsel %vm7566_vm1, %v16309_v20, %v6820_v15  ;;  %v16316_v15 = vld [vmem:[#allocation36_spill] sm:$0xff]  ;;  %v16317_v20 = vld [vmem:[#allocation42_spill] sm:$0xff] }
 0x54f   :  { %16310 = vst [vmem:[#allocation78_spill] sm:$0xff] %v13593_v59  ;;  %v2660_v19 = vpop.f32.mrf.mxu2  ;;  %3114 = vmatpush.bf16.msra.mxu1 %v16312_v33  ;;  %v2707_v49 = vpop.f32.mrf.mxu3 }
 0x550   :  { %v2614_v62 = vpop.f32.mrf.mxu1  ;;  %v2562_v30 = vpop.f32.mrf.mxu0  ;;  %v16318_v19 = vld [vmem:[#allocation35_spill] sm:$0xff] }
 0x551   :  { %3064 = vmatpush.bf16.msra.mxu0 %v16313_v36  ;;  %v13606_v36 = vpop.trf.xlu1  ;;  %v13611_v26 = vpop.trf.xlu2 }
 0x552   :  { %3211 = vmatpush.bf16.msra.mxu3 %v16314_v54  ;;  %3164 = vmatpush.bf16.msra.mxu2 %v16315_v10  ;;  %v16319_v54 = vld [vmem:[#allocation41_spill] sm:$0xff]  ;;  %v16320_v10 = vld [vmem:[#allocation40_spill] sm:$0xff] }
 0x553   :  { %2930 = vmatmul.bf16.gmra.mxu1 %v13587_v2 }
 0x554   :  { %10465 = vmatmul.lmr.bf16.gmra.16.mxu0  ;;  %2979 = vmatmul.bf16.gmra.mxu2 %v13556_v38  ;;  %v16334_v38 = vld [vmem:[#allocation53_spill] sm:$0xff] }
 0x555   :  { %3065 = vmatpush.bf16.msra.mxu0 %v16316_v15  ;;  %3115 = vmatpush.bf16.msra.mxu1 %v16317_v20 }
 0x556   :  { %3212 = vmatpush.bf16.msra.mxu3 %v16318_v19 }
 0x557   :  { %v2663_v49 = vpop.f32.mrf.mxu2  ;;  %v2709_v62 = vpop.f32.mrf.mxu3 }
 0x558   :  { %v2616_v30 = vpop.f32.mrf.mxu1  ;;  %v2565_v33 = vpop.f32.mrf.mxu0 }
 0x559   :  { %3066 = vmatpush.bf16.msra.mxu0 %v16319_v54  ;;  %v13614_v49 = vpop.trf.xlu1 }
 0x55a   :  { %3213 = vmatpush.bf16.msra.mxu3 %v16320_v10  ;;  %16321 = vst [vmem:[#allocation6_spill] sm:$0xff] %v13614_v49 }
 0x55c   :  { %10466 = vmatmul.lmr.bf16.gmra.16.mxu0 }
 0x55d   :  { %3028 = vmatmul.bf16.gmra.mxu3 %v13571_v47 }
 0x55f   :  { %v2665_v59 = vpop.f32.mrf.mxu2  ;;  %v2712_v15 = vpop.f32.mrf.mxu3 }
 0x560   :  { %v2619_v20 = vpop.f32.mrf.mxu1  ;;  %v2567_v45 = vpop.f32.mrf.mxu0 }
 0x561   :  { %v13618_v59 = vpop.trf.xlu1  ;;  %v13620_v15 = vpop.trf.xlu2 }
 0x563   :  { %2935 = vmatmul.bf16.gmra.mxu1 %v13611_v26 }
 0x564   :  { %10467 = vmatmul.lmr.bf16.gmra.16.mxu0  ;;  %2984 = vmatmul.bf16.gmra.mxu2 %v13595_v60  ;;  %v16332_v60 = vld [vmem:[#allocation57_spill] sm:$0xff] }
 0x567   :  { %v2668_v33 = vpop.f32.mrf.mxu2  ;;  %v2714_v62 = vpop.f32.mrf.mxu3 }
 0x568   :  { %v2621_v30 = vpop.f32.mrf.mxu1  ;;  %v2570_v10 = vpop.f32.mrf.mxu0 }
 0x569   :  { %v13624_v62 = vpop.trf.xlu1  ;;  %v13627_v17 = vpop.trf.xlu2 }
 0x56a   :  { %16322 = vst [vmem:[#allocation5_spill] sm:$0xff] %v13624_v62 }
 0x56c   :  { %10468 = vmatmul.lmr.bf16.gmra.16.mxu0 }
 0x56d   :  { %3033 = vmatmul.bf16.gmra.mxu3 %v13606_v36 }
 0x56f   :  { %v2670_v54 = vpop.f32.mrf.mxu2  ;;  %v2717_v45 = vpop.f32.mrf.mxu3 }
 0x570   :  { %v2624_v20 = vpop.f32.mrf.mxu1  ;;  %v2572_v19 = vpop.f32.mrf.mxu0 }
 0x571   :  { %v13629_v24 = vpop.trf.xlu1 }
 0x573   :  { %2940 = vmatmul.bf16.gmra.mxu1 %v13620_v15 }
 0x574   :  { %10469 = vmatmul.lmr.bf16.gmra.16.mxu0  ;;  %2989 = vmatmul.bf16.gmra.mxu2 %v13614_v49  ;;  %v16328_v49 = vld [vmem:[#allocation47_spill] sm:$0xff] }
 0x577   :  { %v2673_v33 = vpop.f32.mrf.mxu2  ;;  %v2719_v10 = vpop.f32.mrf.mxu3 }
 0x578   :  { %v2626_v30 = vpop.f32.mrf.mxu1 }
 0x579   :  { %v2575_v39 = vpop.f32.mrf.mxu0  ;;  %v13633_v42 = vpop.trf.xlu1 }
 0x57a   :  { %16323 = vst [vmem:[#allocation38_spill] sm:$0xff] %v13633_v42 }
 0x57c   :  { %10470 = vmatmul.lmr.bf16.gmra.16.mxu0 }
 0x57d   :  { %3038 = vmatmul.bf16.gmra.mxu3 %v13618_v59 }
 0x57f   :  { %v2675_v54 = vpop.f32.mrf.mxu2 }
 0x580   :  { %v2722_v45 = vpop.f32.mrf.mxu3  ;;  %v2629_v20 = vpop.f32.mrf.mxu1 }
 0x581   :  { %v2577_v19 = vpop.f32.mrf.mxu0  ;;  %v13636_v45 = vpop.trf.xlu2 }
 0x583   :  { %2945 = vmatmul.bf16.gmra.mxu1 %v13627_v17 }
 0x584   :  { %10471 = vmatmul.lmr.bf16.gmra.16.mxu0  ;;  %2994 = vmatmul.bf16.gmra.mxu2 %v13624_v62 }
 0x587   :  { %v2678_v33 = vpop.f32.mrf.mxu2 }
 0x588   :  { %v2724_v10 = vpop.f32.mrf.mxu3  ;;  %v2631_v30 = vpop.f32.mrf.mxu1 }
 0x589   :  { %v2580_v39 = vpop.f32.mrf.mxu0  ;;  %v13640_v33 = vpop.trf.xlu1 }
 0x58c   :  { %10472 = vmatmul.lmr.bf16.gmra.16.mxu0 }
 0x58d   :  { %3043 = vmatmul.bf16.gmra.mxu3 %v13629_v24 }
 0x58f   :  { %v2680_v54 = vpop.f32.mrf.mxu2 }
 0x590   :  { %v2727_v20 = vpop.f32.mrf.mxu3  ;;  %v2634_v19 = vpop.f32.mrf.mxu1 }
 0x591   :  { %v2582_v11 = vpop.f32.mrf.mxu0  ;;  %v13643_v54 = vpop.trf.xlu2 }
 0x592   :  { %v13645_v20 = vpop.trf.xlu1 }
 0x593   :  { %2950 = vmatmul.bf16.gmra.mxu1 %v13636_v45  ;;  %16324 = vst [vmem:[#allocation44_spill] sm:$0xff] %v13645_v20 }
 0x594   :  { %10473 = vmatmul.lmr.bf16.gmra.16.mxu0  ;;  %2999 = vmatmul.bf16.gmra.mxu2 %v13633_v42 }
 0x597   :  { %v2683_v10 = vpop.f32.mrf.mxu2 }
 0x598   :  { %v2729_v30 = vpop.f32.mrf.mxu3  ;;  %v2636_v39 = vpop.f32.mrf.mxu1 }
 0x599   :  { %v2585_v57 = vpop.f32.mrf.mxu0 }
 0x59a   :  { %v13649_v50 = vpop.trf.xlu1 }
 0x59c   :  { %10474 = vmatmul.lmr.bf16.gmra.16.mxu0 }
 0x59d   :  { %3048 = vmatmul.bf16.gmra.mxu3 %v13640_v33 }
 0x59f   :  { %v2685_v51 = vpop.f32.mrf.mxu2 }
 0x5a0   :  { %v2732_v11 = vpop.f32.mrf.mxu3  ;;  %v2639_v19 = vpop.f32.mrf.mxu1 }
 0x5a1   :  { %v2587_v52 = vpop.f32.mrf.mxu0  ;;  %v16326_v19 = vld [vmem:[#allocation45_spill] sm:$0xff] }
 0x5a2   :  { %v16325_v52 = vld [vmem:[#allocation46_spill] sm:$0xff] }
 0x5a3   :  { %2955 = vmatmul.bf16.gmra.mxu1 %v13643_v54 }
 0x5a4   :  { %10475 = vmatmul.lmr.bf16.gmra.16.mxu0  ;;  %3004 = vmatmul.bf16.gmra.mxu2 %v13645_v20  ;;  %v16327_v20 = vld [vmem:[#allocation48_spill] sm:$0xff] }
 0x5a7   :  { %v2688_v10 = vpop.f32.mrf.mxu2 }
 0x5a8   :  { %v2734_v30 = vpop.f32.mrf.mxu3  ;;  %v2641_v39 = vpop.f32.mrf.mxu1 }
 0x5a9   :  { %v2590_v57 = vpop.f32.mrf.mxu0 }
 0x5ac   :  { %10476 = vmatmul.lmr.bf16.gmra.16.mxu0 }
 0x5ad   :  { %3053 = vmatmul.bf16.gmra.mxu3 %v13649_v50 }
 0x5af   :  { %v2690_v51 = vpop.f32.mrf.mxu2 }
 0x5b0   :  { %v2737_v42 = vpop.f32.mrf.mxu3  ;;  %v2921_v62 = vpop.f32.mrf.mxu1 }
 0x5b1   :  { %v2592_v11 = vpop.f32.mrf.mxu0 }
 0x5b2   :  { %v16329_v11 = vld [vmem:[#allocation50_spill] sm:$0xff] }
 0x5b3   :  { %10748 = vmatmul.lmr.bf16.vlgmr.msra.gmra.16.mxu1 }
 0x5b4   :  { %10477 = vmatmul.lmr.bf16.gmra.16.mxu0  ;;  %3165 = vmatmul.bf16.vlgmr.msra.gmra.mxu2 %v13538_v3 }
 0x5b5   :  { %3353 = vmatpush.bf16.msra.mxu2 %v16325_v52  ;;  %3304 = vmatpush.bf16.msra.mxu1 %v16326_v19  ;;  %v16330_v19 = vld [vmem:[#allocation49_spill] sm:$0xff] }
 0x5b7   :  { %v2970_v10 = vpop.f32.mrf.mxu2 }
 0x5b8   :  { %v2739_v30 = vpop.f32.mrf.mxu3  ;;  %v2923_v39 = vpop.f32.mrf.mxu1 }
 0x5b9   :  { %v2872_v57 = vpop.f32.mrf.mxu0  ;;  %3354 = vmatpush.bf16.msra.mxu2 %v16327_v20  ;;  %3305 = vmatpush.bf16.msra.mxu1 %v16328_v49  ;;  %v16331_v30 = vld [vmem:[#allocation51_spill] sm:$0xff] }
 0x5ba   :  { %v2922_v51 = vadd.f32 %v2921_v62, %v2872_v57 }
 0x5bb   :  { %10749 = vmatmul.lmr.bf16.gmra.16.mxu1  ;;  %10486 = vllmr.16.mxu0 }
 0x5bc   :  { %v2971_v42 = vadd.f32 %v2970_v10, %v2922_v51  ;;  %3067 = vmatmul.bf16.vlgmr.msra.gmra.mxu0 %v13545_v61  ;;  %v16333_v10 = vld [vmem:[#allocation54_spill] sm:$0xff] }
 0x5bd   :  { %3214 = vmatmul.bf16.vlgmr.msra.gmra.mxu3 %v13545_v61  ;;  %3255 = vmatpush.bf16.msra.mxu0 %v16329_v11 }
 0x5be   :  { %v6900_v52 = vrot.slane %v2971_v42, 4  ;;  %3402 = vmatpush.bf16.msra.mxu3 %v16330_v19  ;;  %3355 = vmatpush.bf16.msra.mxu2 %v16331_v30  ;;  %v16336_v30 = vld [vmem:[#allocation61_spill] sm:$0xff] }
 0x5bf   :  { %v2972_v39 = vpop.f32.mrf.mxu2  ;;  %3306 = vmatpush.bf16.msra.mxu1 %v16332_v60  ;;  %v16340_v60 = vld [vmem:[#allocation65_spill] sm:$0xff] }
 0x5c0   :  { %v6901_v20 = vmax.f32 %v2971_v42, %v6900_v52  ;;  %v13663_v49 = vpop.f32.mrf.mxu3  ;;  %v2926_v62 = vpop.f32.mrf.mxu1  ;;  %v16337_v39 = vld [vmem:[#allocation56_spill] sm:$0xff]  ;;  %v16338_v42 = vld [vmem:[#allocation55_spill] sm:$0xff] }
 0x5c1   :  { %v2874_v57 = vpop.f32.mrf.mxu0  ;;  %3256 = vmatpush.bf16.msra.mxu0 %v16333_v10  ;;  %v16339_v62 = vld [vmem:[#allocation62_spill] sm:$0xff] }
 0x5c2   :  { %v6902_v51 = vrot.slane %v6901_v20, 2  ;;  %3403 = vmatpush.bf16.msra.mxu3 %v16334_v38  ;;  %3356 = vmatpush.bf16.msra.mxu2 %v16335_v9 }
 0x5c3   :  { %10750 = vmatmul.lmr.bf16.gmra.16.mxu1 }
 0x5c4   :  { %v6903_v11 = vmax.f32 %v6901_v20, %v6902_v51  ;;  %3170 = vmatmul.bf16.gmra.mxu2 %v13547_v37  ;;  %3307 = vmatpush.bf16.msra.mxu1 %v16336_v30  ;;  %v16341_v20 = vld [vmem:[#allocation60_spill] sm:$0xff]  ;;  %v16342_v51 = vld [vmem:[#allocation7_spill] sm:$0xff] }
 0x5c5   :  { %3257 = vmatpush.bf16.msra.mxu0 %v16337_v39  ;;  %v16344_v39 = vld [vmem:[#allocation59_spill] sm:$0xff] }
 0x5c6   :  { %v6904_v52 = vrot.slane %v6903_v11, 1  ;;  %3404 = vmatpush.bf16.msra.mxu3 %v16338_v42  ;;  %3357 = vmatpush.bf16.msra.mxu2 %v16339_v62 }
 0x5c7   :  { %v2975_v57 = vpop.f32.mrf.mxu2 }
 0x5c8   :  { %v6905_v10 = vmax.f32 %v6903_v11, %v6904_v52  ;;  %v3021_v19 = vpop.f32.mrf.mxu3  ;;  %v2928_v38 = vpop.f32.mrf.mxu1  ;;  %3308 = vmatpush.bf16.msra.mxu1 %v16340_v60  ;;  %v16346_v57 = vld [vmem:[#allocation69_spill] sm:$0xff] }
 0x5c9   :  { %v2877_v9 = vpop.f32.mrf.mxu0  ;;  %3258 = vmatpush.bf16.msra.mxu0 %v16341_v20  ;;  %v16347_v38 = vld [vmem:[#allocation64_spill] sm:$0xff]  ;;  %v16349_v19 = vld [vmem:[#allocation70_spill] sm:$0xff] }
 0x5ca   :  { %v13677_v30 = vsel %vm7571_vm2, %v16342_v51, %v6905_v10  ;;  %3405 = vmatpush.bf16.msra.mxu3 %v16344_v39  ;;  %3358 = vmatpush.bf16.msra.mxu2 %v16345_v31  ;;  %v16348_v9 = vld [vmem:[#allocation63_spill] sm:$0xff]  ;;  %v16350_v51 = vld [vmem:[#allocation73_spill] sm:$0xff]  ;;  %v16351_v31 = vld [vmem:[#allocation68_spill] sm:$0xff] }
 0x5cb   :  { %16343 = vst [vmem:[#allocation7_spill] sm:$0xff] %v13677_v30  ;;  %10751 = vmatmul.lmr.bf16.gmra.16.mxu1  ;;  %v16352_v30 = vld [vmem:[#allocation67_spill] sm:$0xff]  ;;  %v16353_v20 = vld [vmem:[#allocation74_spill] sm:$0xff] }
 0x5cc   :  { %3072 = vmatmul.bf16.gmra.mxu0 %v13563_v27  ;;  %3309 = vmatpush.bf16.msra.mxu1 %v16346_v57 }
 0x5cd   :  { %3219 = vmatmul.bf16.gmra.mxu3 %v13563_v27  ;;  %3259 = vmatpush.bf16.msra.mxu0 %v16347_v38  ;;  %v16354_v38 = vld [vmem:[#allocation76_spill] sm:$0xff] }
 0x5ce   :  { %3406 = vmatpush.bf16.msra.mxu3 %v16348_v9  ;;  %3359 = vmatpush.bf16.msra.mxu2 %v16349_v19  ;;  %v16355_v9 = vld [vmem:[#allocation72_spill] sm:$0xff]  ;;  %v16356_v19 = vld [vmem:[#allocation71_spill] sm:$0xff] }
 0x5cf   :  { %v2977_v11 = vpop.f32.mrf.mxu2 }
 0x5d0   :  { %v3024_v10 = vpop.f32.mrf.mxu3  ;;  %v2931_v52 = vpop.f32.mrf.mxu1  ;;  %3310 = vmatpush.bf16.msra.mxu1 %v16350_v51 }
 0x5d1   :  { %v2879_v39 = vpop.f32.mrf.mxu0  ;;  %3260 = vmatpush.bf16.msra.mxu0 %v16351_v31  ;;  %v16358_v31 = vld [vmem:[#allocation75_spill] sm:$0xff] }
 0x5d2   :  { %3407 = vmatpush.bf16.msra.mxu3 %v16352_v30  ;;  %3360 = vmatpush.bf16.msra.mxu2 %v16353_v20  ;;  %v16357_v39 = vld [vmem:[#allocation77_spill] sm:$0xff] }
 0x5d3   :  { %10752 = vmatmul.lmr.bf16.gmra.16.mxu1 }
 0x5d4   :  { %3175 = vmatmul.bf16.gmra.mxu2 %v13571_v47  ;;  %3311 = vmatpush.bf16.msra.mxu1 %v16354_v38 }
 0x5d5   :  { %3261 = vmatpush.bf16.msra.mxu0 %v16355_v9 }
 0x5d6   :  { %3408 = vmatpush.bf16.msra.mxu3 %v16356_v19 }
 0x5d7   :  { %v2980_v11 = vpop.f32.mrf.mxu2 }
 0x5d8   :  { %v3026_v10 = vpop.f32.mrf.mxu3  ;;  %v2933_v52 = vpop.f32.mrf.mxu1  ;;  %v9593_v11 = vld [vmem:[%s15843_s0 + $0x608] sm:$0xff] }
 0x5d9   :  { %v2882_v51 = vpop.f32.mrf.mxu0  ;;  %3262 = vmatpush.bf16.msra.mxu0 %v16357_v39  ;;  %v9624_v10 = vld [vmem:[%s15843_s0 + $0x700] sm:$0xff] }
 0x5da   :  { %3409 = vmatpush.bf16.msra.mxu3 %v16358_v31  ;;  %v9592_v51 = vld [vmem:[%s15843_s0 + $0x600] sm:$0xff] }
 0x5db   :  { %10753 = vmatmul.lmr.bf16.gmra.16.mxu1 }
 0x5dc   :  { %3077 = vmatmul.bf16.gmra.mxu0 %v13587_v2 }
 0x5dd   :  { %3224 = vmatmul.bf16.gmra.mxu3 %v13587_v2 }
 0x5df   :  { %v2982_v20 = vpop.f32.mrf.mxu2 }
 0x5e0   :  { %v3029_v30 = vpop.f32.mrf.mxu3  ;;  %v2936_v38 = vpop.f32.mrf.mxu1  ;;  %v3500_v20 = vpack.c.bf16 %v9593_v11, %v9592_v51  ;;  %v9594_v51 = vld [vmem:[%s15843_s0 + $0x610] sm:$0xff] }
 0x5e1   :  { %v2884_v57 = vpop.f32.mrf.mxu0  ;;  %v9625_v30 = vld [vmem:[%s15843_s0 + $0x708] sm:$0xff] }
 0x5e2   :  { %v3516_v57 = vpack.c.bf16 %v9625_v30, %v9624_v10 }
 0x5e3   :  { %10754 = vmatmul.lmr.bf16.gmra.16.mxu1 }
 0x5e4   :  { %3180 = vmatmul.bf16.gmra.mxu2 %v13606_v36 }
 0x5e5   :  { %11193 = vxpose.binary.xlu0.c.b16.start [1/16] %v3500_v20, %v3516_v57, 128 }
 0x5e7   :  { %v2985_v38 = vpop.f32.mrf.mxu2 }
 0x5e8   :  { %v3031_v52 = vpop.f32.mrf.mxu3  ;;  %v2938_v31 = vpop.f32.mrf.mxu1 }
 0x5e9   :  { %v2887_v39 = vpop.f32.mrf.mxu0  ;;  %v9595_v31 = vld [vmem:[%s15843_s0 + $0x618] sm:$0xff] }
 0x5ea   :  { %v9626_v39 = vld [vmem:[%s15843_s0 + $0x710] sm:$0xff] }
 0x5eb   :  { %10755 = vmatmul.lmr.bf16.gmra.16.mxu1 }
 0x5ec   :  { %3082 = vmatmul.bf16.gmra.mxu0 %v13611_v26 }
 0x5ed   :  { %3229 = vmatmul.bf16.gmra.mxu3 %v13611_v26 }
 0x5ef   :  { %v2987_v19 = vpop.f32.mrf.mxu2 }
 0x5f0   :  { %v3034_v9 = vpop.f32.mrf.mxu3  ;;  %v2941_v60 = vpop.f32.mrf.mxu1 }
 0x5f1   :  { %v2889_v62 = vpop.f32.mrf.mxu0  ;;  %v9627_v60 = vld [vmem:[%s15843_s0 + $0x718] sm:$0xff] }
 0x5f2   :  { %v3501_v62 = vpack.c.bf16 %v9595_v31, %v9594_v51  ;;  %v3517_v9 = vpack.c.bf16 %v9627_v60, %v9626_v39  ;;  %v9596_v51 = vld [vmem:[%s15843_s0 + $0x620] sm:$0xff]  ;;  %v9597_v31 = vld [vmem:[%s15843_s0 + $0x628] sm:$0xff] }
 0x5f3   :  { %10756 = vmatmul.lmr.bf16.gmra.16.mxu1  ;;  %v9628_v39 = vld [vmem:[%s15843_s0 + $0x720] sm:$0xff]  ;;  %v9629_v60 = vld [vmem:[%s15843_s0 + $0x728] sm:$0xff] }
 0x5f4   :  { %3185 = vmatmul.bf16.gmra.mxu2 %v13618_v59 }
 0x5f5   :  { %11194 = vxpose.binary.xlu0.c.b16.cont [2/16] %v3501_v62, %v3517_v9, 128  ;;  %v3502_v62 = vpack.c.bf16 %v9597_v31, %v9596_v51  ;;  %v3518_v9 = vpack.c.bf16 %v9629_v60, %v9628_v39  ;;  %v9598_v51 = vld [vmem:[%s15843_s0 + $0x630] sm:$0xff]  ;;  %v9599_v31 = vld [vmem:[%s15843_s0 + $0x638] sm:$0xff] }
 0x5f6   :  { %v9630_v39 = vld [vmem:[%s15843_s0 + $0x730] sm:$0xff]  ;;  %v9631_v60 = vld [vmem:[%s15843_s0 + $0x738] sm:$0xff] }
 0x5f7   :  { %v2990_v19 = vpop.f32.mrf.mxu2 }
 0x5f8   :  { %v3036_v11 = vpop.f32.mrf.mxu3  ;;  %v2943_v10 = vpop.f32.mrf.mxu1 }
 0x5f9   :  { %v2892_v30 = vpop.f32.mrf.mxu0 }
 0x5fb   :  { %10757 = vmatmul.lmr.bf16.gmra.16.mxu1 }
 0x5fc   :  { %3087 = vmatmul.bf16.gmra.mxu0 %v13620_v15 }
 0x5fd   :  { %3234 = vmatmul.bf16.gmra.mxu3 %v13620_v15 }
 0x5ff   :  { %v2992_v20 = vpop.f32.mrf.mxu2 }
 0x600   :  { %v3039_v57 = vpop.f32.mrf.mxu3  ;;  %v2946_v38 = vpop.f32.mrf.mxu1 }
 0x601   :  { %v2894_v52 = vpop.f32.mrf.mxu0 }
 0x603   :  { %10758 = vmatmul.lmr.bf16.gmra.16.mxu1 }
 0x604   :  { %3190 = vmatmul.bf16.gmra.mxu2 %v13629_v24 }
 0x605   :  { %11195 = vxpose.binary.xlu0.c.b16.cont [3/16] %v3502_v62, %v3518_v9, 128  ;;  %v3503_v62 = vpack.c.bf16 %v9599_v31, %v9598_v51  ;;  %v3519_v9 = vpack.c.bf16 %v9631_v60, %v9630_v39  ;;  %v9600_v51 = vld [vmem:[%s15843_s0 + $0x640] sm:$0xff]  ;;  %v9601_v31 = vld [vmem:[%s15843_s0 + $0x648] sm:$0xff] }
 0x606   :  { %v9632_v39 = vld [vmem:[%s15843_s0 + $0x740] sm:$0xff]  ;;  %v9633_v60 = vld [vmem:[%s15843_s0 + $0x748] sm:$0xff] }
 0x607   :  { %v2995_v19 = vpop.f32.mrf.mxu2 }
 0x608   :  { %v3041_v11 = vpop.f32.mrf.mxu3  ;;  %v2948_v10 = vpop.f32.mrf.mxu1 }
 0x609   :  { %v2897_v30 = vpop.f32.mrf.mxu0 }
 0x60b   :  { %10759 = vmatmul.lmr.bf16.gmra.16.mxu1 }
 0x60c   :  { %3092 = vmatmul.bf16.gmra.mxu0 %v13627_v17 }
 0x60d   :  { %3239 = vmatmul.bf16.gmra.mxu3 %v13627_v17 }
 0x60f   :  { %v2997_v20 = vpop.f32.mrf.mxu2 }
 0x610   :  { %v3044_v57 = vpop.f32.mrf.mxu3  ;;  %v2951_v38 = vpop.f32.mrf.mxu1 }
 0x611   :  { %v2899_v52 = vpop.f32.mrf.mxu0 }
 0x613   :  { %10760 = vmatmul.lmr.bf16.gmra.16.mxu1 }
 0x614   :  { %3195 = vmatmul.bf16.gmra.mxu2 %v13640_v33 }
 0x615   :  { %11196 = vxpose.binary.xlu0.c.b16.cont [4/16] %v3503_v62, %v3519_v9, 128  ;;  %v3504_v62 = vpack.c.bf16 %v9601_v31, %v9600_v51  ;;  %v9602_v51 = vld [vmem:[%s15843_s0 + $0x650] sm:$0xff]  ;;  %v9603_v31 = vld [vmem:[%s15843_s0 + $0x658] sm:$0xff] }
 0x617   :  { %v3000_v19 = vpop.f32.mrf.mxu2 }
 0x618   :  { %v3046_v11 = vpop.f32.mrf.mxu3  ;;  %v2953_v10 = vpop.f32.mrf.mxu1  ;;  %v3520_v19 = vpack.c.bf16 %v9633_v60, %v9632_v39  ;;  %v9634_v39 = vld [vmem:[%s15843_s0 + $0x750] sm:$0xff] }
 0x619   :  { %v2902_v30 = vpop.f32.mrf.mxu0 }
 0x61b   :  { %10761 = vmatmul.lmr.bf16.gmra.16.mxu1 }
 0x61c   :  { %3097 = vmatmul.bf16.gmra.mxu0 %v13636_v45 }
 0x61d   :  { %3244 = vmatmul.bf16.gmra.mxu3 %v13636_v45 }
 0x61f   :  { %v3002_v20 = vpop.f32.mrf.mxu2 }
 0x620   :  { %v3049_v57 = vpop.f32.mrf.mxu3  ;;  %v2956_v38 = vpop.f32.mrf.mxu1 }
 0x621   :  { %v2904_v52 = vpop.f32.mrf.mxu0 }
 0x623   :  { %10762 = vmatmul.lmr.bf16.gmra.16.mxu1 }
 0x624   :  { %3200 = vmatmul.bf16.gmra.mxu2 %v13649_v50 }
 0x625   :  { %11197 = vxpose.binary.xlu0.c.b16.cont [5/16] %v3504_v62, %v3520_v19, 128 }
 0x627   :  { %v3005_v9 = vpop.f32.mrf.mxu2 }
 0x628   :  { %v3051_v11 = vpop.f32.mrf.mxu3  ;;  %v2958_v10 = vpop.f32.mrf.mxu1 }
 0x629   :  { %v2907_v30 = vpop.f32.mrf.mxu0 }
 0x62b   :  { %10763 = vmatmul.lmr.bf16.gmra.16.mxu1 }
 0x62c   :  { %3102 = vmatmul.bf16.gmra.mxu0 %v13643_v54 }
 0x62d   :  { %3249 = vmatmul.bf16.gmra.mxu3 %v13643_v54 }
 0x62f   :  { %v3007_v20 = vpop.f32.mrf.mxu2 }
 0x630   :  { %v3054_v57 = vpop.f32.mrf.mxu3  ;;  %v3117_v38 = vpop.f32.mrf.mxu1 }
 0x631   :  { %v2909_v52 = vpop.f32.mrf.mxu0 }
 0x633   :  { %3312 = vmatmul.bf16.vlgmr.msra.gmra.mxu1 %v13538_v3  ;;  %v9635_v3 = vld [vmem:[%s15843_s0 + $0x758] sm:$0xff] }
 0x634   :  { %3361 = vmatmul.bf16.vlgmr.msra.gmra.mxu2 %v13545_v61  ;;  %3621 = vmatpush.bf16.msra.mxu1 %v11514_v63  ;;  %v3505_v61 = vpack.c.bf16 %v9603_v31, %v9602_v51  ;;  %v3521_v60 = vpack.c.bf16 %v9635_v3, %v9634_v39  ;;  %v9604_v3 = vld [vmem:[%s15843_s0 + $0x660] sm:$0xff] }
 0x635   :  { %3670 = vmatpush.bf16.msra.mxu2 %v11525_v4 }
 0x636   :  { %11198 = vxpose.binary.xlu0.c.b16.cont [6/16] %v3505_v61, %v3521_v60, 128  ;;  %v9605_v61 = vld [vmem:[%s15843_s0 + $0x668] sm:$0xff]  ;;  %v9636_v60 = vld [vmem:[%s15843_s0 + $0x760] sm:$0xff] }
 0x637   :  { %v3166_v62 = vpop.f32.mrf.mxu2 }
 0x638   :  { %v3056_v9 = vpop.f32.mrf.mxu3  ;;  %v3119_v19 = vpop.f32.mrf.mxu1  ;;  %3622 = vmatpush.bf16.msra.mxu1 %v11537_v8 }
 0x639   :  { %v3068_v11 = vpop.f32.mrf.mxu0  ;;  %3671 = vmatpush.bf16.msra.mxu2 %v11549_v12  ;;  %v3506_v9 = vpack.c.bf16 %v9605_v61, %v9604_v3  ;;  %v9606_v3 = vld [vmem:[%s15843_s0 + $0x670] sm:$0xff] }
 0x63a   :  { %v3069_v10 = vadd.f32 %v3068_v11, %v13663_v49  ;;  %v9638_v61 = vld [vmem:[%s15843_s0 + $0x770] sm:$0xff] }
 0x63c   :  { %v3118_v30 = vadd.f32 %v3117_v38, %v3069_v10  ;;  %10487 = vmatmul.lmr.bf16.vlgmr.msra.gmra.16.mxu0  ;;  %3623 = vmatpush.bf16.msra.mxu1 %v11590_v28 }
 0x63d   :  { %3410 = vmatmul.bf16.vlgmr.msra.gmra.mxu3 %v13534_v48  ;;  %3572 = vmatpush.bf16.msra.mxu0 %v11553_v14 }
 0x63e   :  { %v6921_v20 = vrot.slane %v3118_v30, 4  ;;  %3719 = vmatpush.bf16.msra.mxu3 %v11551_v13  ;;  %3672 = vmatpush.bf16.msra.mxu2 %v11602_v32 }
 0x63f   :  { %v3168_v57 = vpop.f32.mrf.mxu2 }
 0x640   :  { %v6922_v52 = vmax.f32 %v3118_v30, %v6921_v20  ;;  %v3215_v51 = vpop.f32.mrf.mxu3  ;;  %v3122_v31 = vpop.f32.mrf.mxu1  ;;  %3624 = vmatpush.bf16.msra.mxu1 %v11638_v43 }
 0x641   :  { %v13799_v49 = vadd.f32 %v3215_v51, %v3166_v62  ;;  %v3070_v38 = vpop.f32.mrf.mxu0  ;;  %3573 = vmatpush.bf16.msra.mxu0 %v11592_v29  ;;  %v16359_v62 = vld [vmem:[#allocation3_spill] sm:$0xff] }
 0x642   :  { %v6923_v39 = vrot.slane %v6922_v52, 2  ;;  %3720 = vmatpush.bf16.msra.mxu3 %v11575_v22  ;;  %3673 = vmatpush.bf16.msra.mxu2 %v11657_v53 }
 0x643   :  { %3317 = vmatmul.bf16.gmra.mxu1 %v13547_v37  ;;  %v9637_v37 = vld [vmem:[%s15843_s0 + $0x768] sm:$0xff] }
 0x644   :  { %v6924_v48 = vmax.f32 %v6922_v52, %v6923_v39  ;;  %10488 = vmatmul.lmr.bf16.gmra.16.mxu0  ;;  %3366 = vmatmul.bf16.gmra.mxu2 %v13563_v27  ;;  %v3522_v19 = vpack.c.bf16 %v9637_v37, %v9636_v60  ;;  %v9623_v39 = vld [vmem:[%s15843_s0 + $0x6f8] sm:$0xff] }
 0x645   :  { %3574 = vmatpush.bf16.msra.mxu0 %v16359_v62  ;;  %3625 = vmatpush.bf16.msra.mxu1 %v11676_v58  ;;  %v9639_v60 = vld [vmem:[%s15843_s0 + $0x778] sm:$0xff] }
 0x646   :  { %v6925_v27 = vrot.slane %v6924_v48, 1  ;;  %3721 = vmatpush.bf16.msra.mxu3 %v11630_v40  ;;  %3674 = vmatpush.bf16.msra.mxu2 %v11694_v0  ;;  %v3523_v37 = vpack.c.bf16 %v9639_v60, %v9638_v61 }
 0x647   :  { %v3171_v11 = vpop.f32.mrf.mxu2  ;;  %11199 = vxpose.binary.xlu0.c.b16.cont [7/16] %v3506_v9, %v3522_v19, 128  ;;  %v9620_v9 = vld [vmem:[%s15843_s0 + $0x6e0] sm:$0xff]  ;;  %v9621_v19 = vld [vmem:[%s15843_s0 + $0x6e8] sm:$0xff] }
 0x648   :  { %v6926_v10 = vmax.f32 %v6924_v48, %v6925_v27  ;;  %v3217_v30 = vpop.f32.mrf.mxu3  ;;  %v3124_v20 = vpop.f32.mrf.mxu1 }
 0x649   :  { %v3073_v57 = vpop.f32.mrf.mxu0  ;;  %3575 = vmatpush.bf16.msra.mxu0 %v11669_v56  ;;  %3626 = vmatpush.bf16.msra.mxu1 %v11713_v7  ;;  %v3514_v30 = vpack.c.bf16 %v9621_v19, %v9620_v9 }
 0x64a   :  { %v13826_v52 = vsel %vm7571_vm2, %v13457_v41, %v6926_v10  ;;  %3722 = vmatpush.bf16.msra.mxu3 %v11667_v55  ;;  %3675 = vmatpush.bf16.msra.mxu2 %v11731_v18  ;;  %v16360_v57 = vld [vmem:[#allocation9_spill] sm:$0xff] }
 0x64c   :  { %10489 = vmatmul.lmr.bf16.gmra.16.mxu0 }
 0x64d   :  { %3415 = vmatmul.bf16.gmra.mxu3 %v13541_v44  ;;  %3576 = vmatpush.bf16.msra.mxu0 %v11707_v6  ;;  %v9622_v44 = vld [vmem:[%s15843_s0 + $0x6f0] sm:$0xff] }
 0x64e   :  { %3627 = vmatpush.bf16.msra.mxu1 %v11746_v25  ;;  %3723 = vmatpush.bf16.msra.mxu3 %v11705_v5  ;;  %v3515_v48 = vpack.c.bf16 %v9623_v39, %v9622_v44  ;;  %v16362_v44 = vld [vmem:[#allocation4_spill] sm:$0xff] }
 0x64f   :  { %v3173_v51 = vpop.f32.mrf.mxu2  ;;  %3676 = vmatpush.bf16.msra.mxu2 %v11767_v35 }
 0x650   :  { %v3220_v31 = vpop.f32.mrf.mxu3  ;;  %v3127_v41 = vpop.f32.mrf.mxu1  ;;  %v9618_v51 = vld [vmem:[%s15843_s0 + $0x6d0] sm:$0xff] }
 0x651   :  { %v3075_v38 = vpop.f32.mrf.mxu0  ;;  %3577 = vmatpush.bf16.msra.mxu0 %v11743_v23  ;;  %v9619_v31 = vld [vmem:[%s15843_s0 + $0x6d8] sm:$0xff]  ;;  %v16361_v41 = vld [vmem:[#allocation8_spill] sm:$0xff] }
 0x652   :  { %3628 = vmatpush.bf16.msra.mxu1 %v16275_v46  ;;  %3724 = vmatpush.bf16.msra.mxu3 %v11741_v21  ;;  %v3513_v38 = vpack.c.bf16 %v9619_v31, %v9618_v51  ;;  %v9611_v31 = vld [vmem:[%s15843_s0 + $0x698] sm:$0xff] }
 0x653   :  { %3322 = vmatmul.bf16.gmra.mxu1 %v13571_v47  ;;  %v9607_v47 = vld [vmem:[%s15843_s0 + $0x678] sm:$0xff]  ;;  %3677 = vmatpush.bf16.msra.mxu2 %v16121_v1 }
 0x654   :  { %10490 = vmatmul.lmr.bf16.gmra.16.mxu0  ;;  %3371 = vmatmul.bf16.gmra.mxu2 %v13587_v2  ;;  %v3507_v2 = vpack.c.bf16 %v9607_v47, %v9606_v3  ;;  %v9617_v3 = vld [vmem:[%s15843_s0 + $0x6c8] sm:$0xff] }
 0x655   :  { %3578 = vmatpush.bf16.msra.mxu0 %v16124_v34 }
 0x656   :  { %10764 = vmatpush.lsf.bf16.msrb.mxu1 %v3515_v48  ;;  %3725 = vmatpush.bf16.msra.mxu3 %v16123_v16 }
 0x657   :  { %v3176_v27 = vpop.f32.mrf.mxu2  ;;  %10935 = vmatpush.lsf.bf16.msrb.mxu2 %v3515_v48 }
 0x658   :  { %v3222_v11 = vpop.f32.mrf.mxu3  ;;  %v3129_v10 = vpop.f32.mrf.mxu1  ;;  %11200 = vxpose.binary.xlu0.c.b16.end [8/16] %v3507_v2, %v3523_v37, 128  ;;  %v9614_v37 = vld [vmem:[%s15843_s0 + $0x6b0] sm:$0xff]  ;;  %v9615_v27 = vld [vmem:[%s15843_s0 + $0x6b8] sm:$0xff] }
 0x659   :  { %10503 = vmatpush.lsf.bf16.msrb.mxu0 %v3515_v48  ;;  %v3078_v20 = vpop.f32.mrf.mxu0  ;;  %v3511_v9 = vpack.c.bf16 %v9615_v27, %v9614_v37  ;;  %v9613_v11 = vld [vmem:[%s15843_s0 + $0x6a8] sm:$0xff] }
 0x65a   :  { %11047 = vmatpush.lsf.bf16.msrb.mxu3 %v3515_v48  ;;  %10765 = vmatpush.lsf.bf16.msrb.mxu1 %v3514_v30  ;;  %v9616_v48 = vld [vmem:[%s15843_s0 + $0x6c0] sm:$0xff] }
 0x65b   :  { %10936 = vmatpush.lsf.bf16.msrb.mxu2 %v3514_v30  ;;  %v3512_v2 = vpack.c.bf16 %v9617_v3, %v9616_v48  ;;  %v9608_v48 = vld [vmem:[%s15843_s0 + $0x680] sm:$0xff]  ;;  %v9609_v3 = vld [vmem:[%s15843_s0 + $0x688] sm:$0xff] }
 0x65c   :  { %10491 = vmatmul.lmr.bf16.gmra.16.mxu0 }
 0x65d   :  { %3579 = vmatpush.bf16.msra.mxu0 %v16360_v57  ;;  %3420 = vmatmul.bf16.gmra.mxu3 %v16362_v44  ;;  %v16418_v57 = vld [vmem:[#allocation61_spill] sm:$0xff] }
 0x65e   :  { %3726 = vmatpush.bf16.msra.mxu3 %v16361_v41  ;;  %10766 = vmatpush.lsf.bf16.msrb.mxu1 %v3513_v38 }
 0x65f   :  { %v3178_v39 = vpop.f32.mrf.mxu2  ;;  %10937 = vmatpush.lsf.bf16.msrb.mxu2 %v3513_v38 }
 0x660   :  { %v3225_v47 = vpop.f32.mrf.mxu3  ;;  %v3132_v61 = vpop.f32.mrf.mxu1 }
 0x661   :  { %10504 = vmatpush.lsf.bf16.msrb.mxu0 %v3514_v30  ;;  %v3080_v60 = vpop.f32.mrf.mxu0 }
 0x662   :  { %11048 = vmatpush.lsf.bf16.msrb.mxu3 %v3514_v30  ;;  %10767 = vmatpush.lsf.bf16.msrb.mxu1 %v3512_v2 }
 0x663   :  { %3327 = vmatmul.bf16.gmra.mxu1 %v13606_v36  ;;  %10938 = vmatpush.lsf.bf16.msrb.mxu2 %v3512_v2  ;;  %v9612_v36 = vld [vmem:[%s15843_s0 + $0x6a0] sm:$0xff] }
 0x664   :  { %10492 = vmatmul.lmr.bf16.gmra.16.mxu0  ;;  %3376 = vmatmul.bf16.gmra.mxu2 %v13611_v26  ;;  %v3510_v51 = vpack.c.bf16 %v9613_v11, %v9612_v36  ;;  %v9610_v26 = vld [vmem:[%s15843_s0 + $0x690] sm:$0xff]  ;;  %v16364_v36 = vld [vmem:[#allocation6_spill] sm:$0xff] }
 0x665   :  { %10505 = vmatpush.lsf.bf16.msrb.mxu0 %v3513_v38  ;;  %v3509_v44 = vpack.c.bf16 %v9611_v31, %v9610_v26  ;;  %v16365_v31 = vld [vmem:[#allocation5_spill] sm:$0xff] }
 0x666   :  { %11049 = vmatpush.lsf.bf16.msrb.mxu3 %v3513_v38  ;;  %10768 = vmatpush.lsf.bf16.msrb.mxu1 %v3511_v9  ;;  %v16363_v38 = vld [vmem:[#allocation52_spill] sm:$0xff] }
 0x667   :  { %v3181_v19 = vpop.f32.mrf.mxu2  ;;  %10939 = vmatpush.lsf.bf16.msrb.mxu2 %v3511_v9 }
 0x668   :  { %v3227_v10 = vpop.f32.mrf.mxu3  ;;  %v3134_v30 = vpop.f32.mrf.mxu1 }
 0x669   :  { %10506 = vmatpush.lsf.bf16.msrb.mxu0 %v3512_v2  ;;  %v3083_v20 = vpop.f32.mrf.mxu0 }
 0x66a   :  { %11050 = vmatpush.lsf.bf16.msrb.mxu3 %v3512_v2  ;;  %10769 = vmatpush.lsf.bf16.msrb.mxu1 %v3510_v51  ;;  %v3508_v2 = vpack.c.bf16 %v9609_v3, %v9608_v48 }
 0x66b   :  { %10940 = vmatpush.lsf.bf16.msrb.mxu2 %v3510_v51 }
 0x66c   :  { %10493 = vmatmul.lmr.bf16.gmra.16.mxu0 }
 0x66d   :  { %10507 = vmatpush.lsf.bf16.msrb.mxu0 %v3511_v9  ;;  %3425 = vmatmul.bf16.gmra.mxu3 %v16363_v38 }
 0x66e   :  { %11051 = vmatpush.lsf.bf16.msrb.mxu3 %v3511_v9  ;;  %10770 = vmatpush.lsf.bf16.msrb.mxu1 %v3509_v44 }
 0x66f   :  { %v3183_v39 = vpop.f32.mrf.mxu2  ;;  %10941 = vmatpush.lsf.bf16.msrb.mxu2 %v3509_v44 }
 0x670   :  { %v3230_v47 = vpop.f32.mrf.mxu3  ;;  %v3137_v61 = vpop.f32.mrf.mxu1 }
 0x671   :  { %10508 = vmatpush.lsf.bf16.msrb.mxu0 %v3510_v51  ;;  %v3085_v60 = vpop.f32.mrf.mxu0 }
 0x672   :  { %11052 = vmatpush.lsf.bf16.msrb.mxu3 %v3510_v51  ;;  %10771 = vmatpush.lsf.bf16.msrb.mxu1 %v3508_v2  ;;  %v16366_v60 = vld [vmem:[#allocation38_spill] sm:$0xff] }
 0x673   :  { %3332 = vmatmul.bf16.gmra.mxu1 %v13618_v59  ;;  %10942 = vmatpush.lsf.bf16.msrb.mxu2 %v3508_v2 }
 0x674   :  { %10494 = vmatmul.lmr.bf16.gmra.16.mxu0  ;;  %3381 = vmatmul.bf16.gmra.mxu2 %v13620_v15 }
 0x675   :  { %10509 = vmatpush.lsf.bf16.msrb.mxu0 %v3509_v44 }
 0x676   :  { %11053 = vmatpush.lsf.bf16.msrb.mxu3 %v3509_v44 }
 0x677   :  { %v3186_v37 = vpop.f32.mrf.mxu2 }
 0x678   :  { %v3232_v27 = vpop.f32.mrf.mxu3  ;;  %v3139_v9 = vpop.f32.mrf.mxu1 }
 0x679   :  { %10510 = vmatpush.lsf.bf16.msrb.mxu0 %v3508_v2  ;;  %v3088_v19 = vpop.f32.mrf.mxu0 }
 0x67a   :  { %11054 = vmatpush.lsf.bf16.msrb.mxu3 %v3508_v2 }
 0x67c   :  { %11055 = vllmr.16.mxu3  ;;  %10495 = vmatmul.lmr.bf16.gmra.16.mxu0 }
 0x67d   :  { %3430 = vmatmul.bf16.gmra.mxu3 %v16364_v36 }
 0x67f   :  { %v3188_v11 = vpop.f32.mrf.mxu2 }
 0x680   :  { %v3235_v59 = vpop.f32.mrf.mxu3  ;;  %v3142_v10 = vpop.f32.mrf.mxu1 }
 0x681   :  { %v3090_v30 = vpop.f32.mrf.mxu0  ;;  %v16367_v10 = vld [vmem:[#allocation44_spill] sm:$0xff] }
 0x682   :  { %10772 = vllmr.16.mxu1 }
 0x683   :  { %10943 = vllmr.16.mxu2  ;;  %3337 = vmatmul.bf16.gmra.mxu1 %v13629_v24 }
 0x684   :  { %10496 = vmatmul.lmr.bf16.gmra.16.mxu0  ;;  %3386 = vmatmul.bf16.gmra.mxu2 %v13627_v17 }
 0x687   :  { %v3191_v15 = vpop.f32.mrf.mxu2 }
 0x688   :  { %v3237_v20 = vpop.f32.mrf.mxu3  ;;  %v3144_v51 = vpop.f32.mrf.mxu1 }
 0x689   :  { %v3093_v26 = vpop.f32.mrf.mxu0 }
 0x68c   :  { %10497 = vmatmul.lmr.bf16.gmra.16.mxu0 }
 0x68d   :  { %3435 = vmatmul.bf16.gmra.mxu3 %v16365_v31 }
 0x68f   :  { %v3193_v38 = vpop.f32.mrf.mxu2 }
 0x690   :  { %v3240_v44 = vpop.f32.mrf.mxu3  ;;  %v3147_v39 = vpop.f32.mrf.mxu1 }
 0x691   :  { %v3095_v48 = vpop.f32.mrf.mxu0 }
 0x693   :  { %3342 = vmatmul.bf16.gmra.mxu1 %v13640_v33 }
 0x694   :  { %10498 = vmatmul.lmr.bf16.gmra.16.mxu0  ;;  %3391 = vmatmul.bf16.gmra.mxu2 %v13636_v45  ;;  %v13917_v24 = vpop.trf.xlu0 }
 0x697   :  { %v3196_v3 = vpop.f32.mrf.mxu2 }
 0x698   :  { %v3242_v17 = vpop.f32.mrf.mxu3  ;;  %v3149_v47 = vpop.f32.mrf.mxu1  ;;  %v16370_v3 = vld [vmem:[#allocation13_spill] sm:$0xff] }
 0x699   :  { %v3098_v61 = vpop.f32.mrf.mxu0  ;;  %v16371_v17 = vld [vmem:[#allocation12_spill] sm:$0xff] }
 0x69c   :  { %10499 = vmatmul.lmr.bf16.gmra.16.mxu0  ;;  %v13920_v2 = vpop.trf.xlu0 }
 0x69d   :  { %3440 = vmatmul.bf16.gmra.mxu3 %v16366_v60 }
 0x69f   :  { %v3198_v37 = vpop.f32.mrf.mxu2 }
 0x6a0   :  { %v3245_v27 = vpop.f32.mrf.mxu3  ;;  %v3152_v9 = vpop.f32.mrf.mxu1  ;;  %v16372_v37 = vld [vmem:[#allocation15_spill] sm:$0xff] }
 0x6a1   :  { %v3100_v19 = vpop.f32.mrf.mxu0  ;;  %v16373_v9 = vld [vmem:[#allocation14_spill] sm:$0xff] }
 0x6a2   :  { %v16374_v19 = vld [vmem:[#allocation16_spill] sm:$0xff] }
 0x6a3   :  { %3347 = vmatmul.bf16.gmra.mxu1 %v13649_v50  ;;  %v16368_v50 = vld [vmem:[#allocation11_spill] sm:$0xff] }
 0x6a4   :  { %10500 = vmatmul.lmr.bf16.gmra.16.mxu0  ;;  %3396 = vmatmul.bf16.gmra.mxu2 %v13643_v54  ;;  %v13924_v33 = vpop.trf.xlu0  ;;  %v16369_v54 = vld [vmem:[#allocation10_spill] sm:$0xff] }
 0x6a7   :  { %v3201_v45 = vpop.f32.mrf.mxu2 }
 0x6a8   :  { %v3247_v36 = vpop.f32.mrf.mxu3  ;;  %v3154_v11 = vpop.f32.mrf.mxu1 }
 0x6a9   :  { %v3103_v59 = vpop.f32.mrf.mxu0  ;;  %v16375_v36 = vld [vmem:[#allocation19_spill] sm:$0xff] }
 0x6ac   :  { %10501 = vmatmul.lmr.bf16.gmra.16.mxu0  ;;  %v13927_v26 = vpop.trf.xlu0 }
 0x6ad   :  { %3445 = vmatmul.bf16.gmra.mxu3 %v16367_v10 }
 0x6af   :  { %v3203_v30 = vpop.f32.mrf.mxu2 }
 0x6b0   :  { %v3250_v15 = vpop.f32.mrf.mxu3  ;;  %v3313_v20 = vpop.f32.mrf.mxu1 }
 0x6b1   :  { %v3105_v51 = vpop.f32.mrf.mxu0  ;;  %v16376_v15 = vld [vmem:[#allocation18_spill] sm:$0xff] }
 0x6b2   :  { %v16377_v51 = vld [vmem:[#allocation17_spill] sm:$0xff] }
 0x6b3   :  { %10773 = vmatmul.lmr.bf16.vlgmr.msra.gmra.16.mxu1 }
 0x6b4   :  { %10502 = vmatmul.lmr.bf16.gmra.16.mxu0  ;;  %3678 = vmatmul.bf16.vlgmr.msra.gmra.mxu2 %v13917_v24  ;;  %v13935_v61 = vpop.trf.xlu0 }
 0x6b5   :  { %3866 = vmatpush.bf16.msra.mxu2 %v16368_v50  ;;  %3817 = vmatpush.bf16.msra.mxu1 %v16369_v54  ;;  %v16415_v50 = vld [vmem:[#allocation50_spill] sm:$0xff] }
 0x6b7   :  { %v3362_v31 = vpop.f32.mrf.mxu2 }
 0x6b8   :  { %v3252_v38 = vpop.f32.mrf.mxu3  ;;  %v3363_v44 = vadd.f32 %v3362_v31, %v3313_v20  ;;  %v3315_v39 = vpop.f32.mrf.mxu1  ;;  %v16378_v31 = vld [vmem:[#allocation22_spill] sm:$0xff] }
 0x6b9   :  { %v3264_v48 = vpop.f32.mrf.mxu0  ;;  %3867 = vmatpush.bf16.msra.mxu2 %v16370_v3  ;;  %3818 = vmatpush.bf16.msra.mxu1 %v16371_v17  ;;  %v16413_v17 = vld [vmem:[#allocation48_spill] sm:$0xff] }
 0x6ba   :  { %v3265_v47 = vadd.f32 %v3264_v48, %v13799_v49  ;;  %v16379_v48 = vld [vmem:[#allocation25_spill] sm:$0xff] }
 0x6bb   :  { %10774 = vmatmul.lmr.bf16.gmra.16.mxu1  ;;  %10511 = vllmr.16.mxu0 }
 0x6bc   :  { %v6942_v60 = vrot.slane %v3265_v47, 4  ;;  %3580 = vmatmul.bf16.vlgmr.msra.gmra.mxu0 %v13920_v2 }
 0x6bd   :  { %3727 = vmatmul.bf16.vlgmr.msra.gmra.mxu3 %v13920_v2  ;;  %3768 = vmatpush.bf16.msra.mxu0 %v16372_v37 }
 0x6be   :  { %v6943_v27 = vmax.f32 %v3265_v47, %v6942_v60  ;;  %3915 = vmatpush.bf16.msra.mxu3 %v16373_v9  ;;  %3868 = vmatpush.bf16.msra.mxu2 %v16374_v19  ;;  %v13948_v60 = vpop.trf.xlu0  ;;  %v16385_v19 = vld [vmem:[#allocation29_spill] sm:$0xff] }
 0x6bf   :  { %v3364_v45 = vpop.f32.mrf.mxu2  ;;  %3819 = vmatpush.bf16.msra.mxu1 %v16375_v36 }
 0x6c0   :  { %v6944_v49 = vrot.slane %v6943_v27, 2  ;;  %v3411_v11 = vpop.f32.mrf.mxu3  ;;  %v3318_v59 = vpop.f32.mrf.mxu1  ;;  %v16380_v45 = vld [vmem:[#allocation21_spill] sm:$0xff] }
 0x6c1   :  { %v3412_v10 = vadd.f32 %v3411_v11, %v3363_v44  ;;  %v3266_v30 = vpop.f32.mrf.mxu0  ;;  %3769 = vmatpush.bf16.msra.mxu0 %v16376_v15  ;;  %v16381_v11 = vld [vmem:[#allocation20_spill] sm:$0xff] }
 0x6c2   :  { %v6945_v20 = vmax.f32 %v6943_v27, %v6944_v49  ;;  %3916 = vmatpush.bf16.msra.mxu3 %v16377_v51  ;;  %3869 = vmatpush.bf16.msra.mxu2 %v16378_v31  ;;  %v16382_v27 = vld [vmem:[#allocation26_spill] sm:$0xff]  ;;  %v16383_v30 = vld [vmem:[#allocation43_spill] sm:$0xff] }
 0x6c3   :  { %v6963_v38 = vrot.slane %v3412_v10, 4  ;;  %10775 = vmatmul.lmr.bf16.gmra.16.mxu1 }
 0x6c4   :  { %v6946_v39 = vrot.slane %v6945_v20, 1  ;;  %3683 = vmatmul.bf16.gmra.mxu2 %v13924_v33  ;;  %3820 = vmatpush.bf16.msra.mxu1 %v16379_v48  ;;  %v16386_v48 = vld [vmem:[#allocation24_spill] sm:$0xff] }
 0x6c5   :  { %v6964_v47 = vmax.f32 %v3412_v10, %v6963_v38  ;;  %3770 = vmatpush.bf16.msra.mxu0 %v16380_v45  ;;  %v16387_v45 = vld [vmem:[#allocation23_spill] sm:$0xff] }
 0x6c6   :  { %v6947_v44 = vmax.f32 %v6945_v20, %v6946_v39  ;;  %3917 = vmatpush.bf16.msra.mxu3 %v16381_v11  ;;  %3870 = vmatpush.bf16.msra.mxu2 %v16382_v27  ;;  %v16388_v20 = vld [vmem:[#allocation30_spill] sm:$0xff] }
 0x6c7   :  { %v6965_v49 = vrot.slane %v6964_v47, 2  ;;  %v3367_v59 = vpop.f32.mrf.mxu2 }
 0x6c8   :  { %v13955_v31 = vsel %vm7571_vm2, %v16383_v30, %v6947_v44  ;;  %v3413_v51 = vpop.f32.mrf.mxu3  ;;  %v3320_v15 = vpop.f32.mrf.mxu1  ;;  %3821 = vmatpush.bf16.msra.mxu1 %v16385_v19  ;;  %v16389_v59 = vld [vmem:[#allocation33_spill] sm:$0xff] }
 0x6c9   :  { %16384 = vst [vmem:[#allocation4_spill] sm:$0xff] %v13955_v31  ;;  %v6966_v10 = vmax.f32 %v6964_v47, %v6965_v49  ;;  %v3269_v38 = vpop.f32.mrf.mxu0  ;;  %3771 = vmatpush.bf16.msra.mxu0 %v16386_v48  ;;  %v16390_v15 = vld [vmem:[#allocation28_spill] sm:$0xff]  ;;  %v16391_v51 = vld [vmem:[#allocation27_spill] sm:$0xff]  ;;  %v16392_v47 = vld [vmem:[#allocation34_spill] sm:$0xff] }
 0x6ca   :  { %3918 = vmatpush.bf16.msra.mxu3 %v16387_v45  ;;  %3871 = vmatpush.bf16.msra.mxu2 %v16388_v20  ;;  %v16393_v49 = vld [vmem:[#allocation78_spill] sm:$0xff]  ;;  %v13971_v20 = vpop.trf.xlu0  ;;  %v16395_v31 = vld [vmem:[#allocation37_spill] sm:$0xff] }
 0x6cb   :  { %v6967_v39 = vrot.slane %v6966_v10, 1  ;;  %10776 = vmatmul.lmr.bf16.gmra.16.mxu1 }
 0x6cc   :  { %3585 = vmatmul.bf16.gmra.mxu0 %v13927_v26  ;;  %3822 = vmatpush.bf16.msra.mxu1 %v16389_v59  ;;  %v16397_v59 = vld [vmem:[#allocation31_spill] sm:$0xff] }
 0x6cd   :  { %v6968_v44 = vmax.f32 %v6966_v10, %v6967_v39  ;;  %3732 = vmatmul.bf16.gmra.mxu3 %v13927_v26  ;;  %3772 = vmatpush.bf16.msra.mxu0 %v16390_v15  ;;  %v16396_v39 = vld [vmem:[#allocation32_spill] sm:$0xff]  ;;  %v16398_v15 = vld [vmem:[#allocation39_spill] sm:$0xff] }
 0x6ce   :  { %3919 = vmatpush.bf16.msra.mxu3 %v16391_v51  ;;  %3872 = vmatpush.bf16.msra.mxu2 %v16392_v47  ;;  %v16399_v47 = vld [vmem:[#allocation42_spill] sm:$0xff] }
 0x6cf   :  { %v13969_v30 = vsel %vm7571_vm2, %v16393_v49, %v6968_v44  ;;  %v3369_v38 = vpop.f32.mrf.mxu2  ;;  %v16400_v44 = vld [vmem:[#allocation36_spill] sm:$0xff]  ;;  %v16401_v49 = vld [vmem:[#allocation35_spill] sm:$0xff] }
 0x6d0   :  { %16394 = vst [vmem:[#allocation52_spill] sm:$0xff] %v13969_v30  ;;  %v3416_v45 = vpop.f32.mrf.mxu3  ;;  %v3323_v48 = vpop.f32.mrf.mxu1  ;;  %3823 = vmatpush.bf16.msra.mxu1 %v16395_v31 }
 0x6d1   :  { %v3271_v10 = vpop.f32.mrf.mxu0  ;;  %3773 = vmatpush.bf16.msra.mxu0 %v16396_v39  ;;  %v16402_v39 = vld [vmem:[#allocation41_spill] sm:$0xff] }
 0x6d2   :  { %3920 = vmatpush.bf16.msra.mxu3 %v16397_v59  ;;  %3873 = vmatpush.bf16.msra.mxu2 %v16398_v15  ;;  %v13981_v10 = vpop.trf.xlu0  ;;  %v16403_v59 = vld [vmem:[#allocation40_spill] sm:$0xff] }
 0x6d3   :  { %10777 = vmatmul.lmr.bf16.gmra.16.mxu1 }
 0x6d4   :  { %3688 = vmatmul.bf16.gmra.mxu2 %v13935_v61  ;;  %3824 = vmatpush.bf16.msra.mxu1 %v16399_v47 }
 0x6d5   :  { %3774 = vmatpush.bf16.msra.mxu0 %v16400_v44 }
 0x6d6   :  { %3921 = vmatpush.bf16.msra.mxu3 %v16401_v49 }
 0x6d7   :  { %v3372_v45 = vpop.f32.mrf.mxu2 }
 0x6d8   :  { %v3418_v48 = vpop.f32.mrf.mxu3  ;;  %v3325_v38 = vpop.f32.mrf.mxu1 }
 0x6d9   :  { %v3274_v31 = vpop.f32.mrf.mxu0  ;;  %3775 = vmatpush.bf16.msra.mxu0 %v16402_v39 }
 0x6da   :  { %3922 = vmatpush.bf16.msra.mxu3 %v16403_v59  ;;  %v13987_v45 = vpop.trf.xlu0 }
 0x6db   :  { %10778 = vmatmul.lmr.bf16.gmra.16.mxu1 }
 0x6dc   :  { %3590 = vmatmul.bf16.gmra.mxu0 %v13948_v60 }
 0x6dd   :  { %3737 = vmatmul.bf16.gmra.mxu3 %v13948_v60 }
 0x6df   :  { %v3374_v47 = vpop.f32.mrf.mxu2 }
 0x6e0   :  { %v3421_v15 = vpop.f32.mrf.mxu3  ;;  %v3328_v44 = vpop.f32.mrf.mxu1 }
 0x6e1   :  { %v3276_v30 = vpop.f32.mrf.mxu0 }
 0x6e2   :  { %v13992_v59 = vpop.trf.xlu0 }
 0x6e3   :  { %10779 = vmatmul.lmr.bf16.gmra.16.mxu1 }
 0x6e4   :  { %3693 = vmatmul.bf16.gmra.mxu2 %v13971_v20 }
 0x6e7   :  { %v3377_v31 = vpop.f32.mrf.mxu2 }
 0x6e8   :  { %v3423_v48 = vpop.f32.mrf.mxu3  ;;  %v3330_v38 = vpop.f32.mrf.mxu1 }
 0x6e9   :  { %v3279_v39 = vpop.f32.mrf.mxu0 }
 0x6ea   :  { %v13995_v51 = vpop.trf.xlu0 }
 0x6eb   :  { %10780 = vmatmul.lmr.bf16.gmra.16.mxu1  ;;  %16404 = vst [vmem:[#allocation6_spill] sm:$0xff] %v13995_v51 }
 0x6ec   :  { %3595 = vmatmul.bf16.gmra.mxu0 %v13981_v10 }
 0x6ed   :  { %3742 = vmatmul.bf16.gmra.mxu3 %v13981_v10 }
 0x6ef   :  { %v3379_v47 = vpop.f32.mrf.mxu2 }
 0x6f0   :  { %v3426_v15 = vpop.f32.mrf.mxu3  ;;  %v3333_v44 = vpop.f32.mrf.mxu1 }
 0x6f1   :  { %v3281_v30 = vpop.f32.mrf.mxu0 }
 0x6f2   :  { %v13999_v44 = vpop.trf.xlu0 }
 0x6f3   :  { %10781 = vmatmul.lmr.bf16.gmra.16.mxu1  ;;  %16405 = vst [vmem:[#allocation5_spill] sm:$0xff] %v13999_v44 }
 0x6f4   :  { %3698 = vmatmul.bf16.gmra.mxu2 %v13987_v45 }
 0x6f7   :  { %v3382_v49 = vpop.f32.mrf.mxu2 }
 0x6f8   :  { %v3428_v31 = vpop.f32.mrf.mxu3  ;;  %v3335_v48 = vpop.f32.mrf.mxu1 }
 0x6f9   :  { %v3284_v39 = vpop.f32.mrf.mxu0 }
 0x6fa   :  { %v14002_v48 = vpop.trf.xlu0 }
 0x6fb   :  { %10782 = vmatmul.lmr.bf16.gmra.16.mxu1  ;;  %16406 = vst [vmem:[#allocation38_spill] sm:$0xff] %v14002_v48 }
 0x6fc   :  { %3600 = vmatmul.bf16.gmra.mxu0 %v13992_v59 }
 0x6fd   :  { %3747 = vmatmul.bf16.gmra.mxu3 %v13992_v59 }
 0x6ff   :  { %v3384_v38 = vpop.f32.mrf.mxu2 }
 0x700   :  { %v3431_v27 = vpop.f32.mrf.mxu3  ;;  %v3338_v47 = vpop.f32.mrf.mxu1 }
 0x701   :  { %v3286_v15 = vpop.f32.mrf.mxu0 }
 0x702   :  { %v14007_v15 = vpop.trf.xlu0 }
 0x703   :  { %10783 = vmatmul.lmr.bf16.gmra.16.mxu1  ;;  %16407 = vst [vmem:[#allocation44_spill] sm:$0xff] %v14007_v15 }
 0x704   :  { %3703 = vmatmul.bf16.gmra.mxu2 %v13995_v51 }
 0x707   :  { %v3387_v49 = vpop.f32.mrf.mxu2 }
 0x708   :  { %v3433_v30 = vpop.f32.mrf.mxu3  ;;  %v3340_v11 = vpop.f32.mrf.mxu1 }
 0x709   :  { %v3289_v31 = vpop.f32.mrf.mxu0 }
 0x70a   :  { %v14011_v9 = vpop.trf.xlu0 }
 0x70b   :  { %10784 = vmatmul.lmr.bf16.gmra.16.mxu1  ;;  %16408 = vst [vmem:[#allocation43_spill] sm:$0xff] %v14011_v9 }
 0x70c   :  { %3605 = vmatmul.bf16.gmra.mxu0 %v13999_v44 }
 0x70d   :  { %3752 = vmatmul.bf16.gmra.mxu3 %v13999_v44 }
 0x70f   :  { %v3389_v39 = vpop.f32.mrf.mxu2 }
 0x710   :  { %v3436_v27 = vpop.f32.mrf.mxu3  ;;  %v3343_v38 = vpop.f32.mrf.mxu1 }
 0x711   :  { %v3291_v47 = vpop.f32.mrf.mxu0 }
 0x713   :  { %10785 = vmatmul.lmr.bf16.gmra.16.mxu1 }
 0x714   :  { %3708 = vmatmul.bf16.gmra.mxu2 %v14002_v48 }
 0x717   :  { %v3392_v49 = vpop.f32.mrf.mxu2 }
 0x718   :  { %v3438_v30 = vpop.f32.mrf.mxu3  ;;  %v3345_v11 = vpop.f32.mrf.mxu1 }
 0x719   :  { %v3294_v31 = vpop.f32.mrf.mxu0  ;;  %v14014_v11 = vpop.trf.xlu0 }
 0x71a   :  { %16409 = vst [vmem:[#allocation78_spill] sm:$0xff] %v14014_v11 }
 0x71b   :  { %10786 = vmatmul.lmr.bf16.gmra.16.mxu1 }
 0x71c   :  { %3610 = vmatmul.bf16.gmra.mxu0 %v14007_v15 }
 0x71d   :  { %3757 = vmatmul.bf16.gmra.mxu3 %v14007_v15 }
 0x71f   :  { %v3394_v19 = vpop.f32.mrf.mxu2 }
 0x720   :  { %v3441_v39 = vpop.f32.mrf.mxu3  ;;  %v3348_v27 = vpop.f32.mrf.mxu1 }
 0x721   :  { %v3296_v38 = vpop.f32.mrf.mxu0  ;;  %v16410_v27 = vld [vmem:[#allocation45_spill] sm:$0xff] }
 0x723   :  { %10787 = vmatmul.lmr.bf16.gmra.16.mxu1 }
 0x724   :  { %3713 = vmatmul.bf16.gmra.mxu2 %v14011_v9 }
 0x727   :  { %v3397_v47 = vpop.f32.mrf.mxu2 }
 0x728   :  { %v3443_v37 = vpop.f32.mrf.mxu3  ;;  %v3350_v49 = vpop.f32.mrf.mxu1 }
 0x729   :  { %v3299_v30 = vpop.f32.mrf.mxu0  ;;  %v16411_v37 = vld [vmem:[#allocation46_spill] sm:$0xff] }
 0x72a   :  { %v16412_v30 = vld [vmem:[#allocation47_spill] sm:$0xff] }
 0x72b   :  { %10788 = vmatmul.lmr.bf16.gmra.16.mxu1 }
 0x72c   :  { %3615 = vmatmul.bf16.gmra.mxu0 %v14014_v11 }
 0x72d   :  { %3762 = vmatmul.bf16.gmra.mxu3 %v14014_v11 }
 0x72f   :  { %v3399_v19 = vpop.f32.mrf.mxu2 }
 0x730   :  { %v3446_v31 = vpop.f32.mrf.mxu3  ;;  %v3630_v36 = vpop.f32.mrf.mxu1 }
 0x731   :  { %v3301_v39 = vpop.f32.mrf.mxu0 }
 0x732   :  { %v16414_v39 = vld [vmem:[#allocation57_spill] sm:$0xff] }
 0x733   :  { %3825 = vmatmul.bf16.vlgmr.msra.gmra.mxu1 %v13917_v24 }
 0x734   :  { %3874 = vmatmul.bf16.vlgmr.msra.gmra.mxu2 %v13920_v2  ;;  %4013 = vmatpush.bf16.msra.mxu1 %v16410_v27  ;;  %v16416_v27 = vld [vmem:[#allocation49_spill] sm:$0xff] }
 0x735   :  { %4062 = vmatpush.bf16.msra.mxu2 %v16411_v37  ;;  %v16417_v37 = vld [vmem:[#allocation51_spill] sm:$0xff] }
 0x737   :  { %v3679_v38 = vpop.f32.mrf.mxu2 }
 0x738   :  { %v3448_v47 = vpop.f32.mrf.mxu3  ;;  %v3632_v49 = vpop.f32.mrf.mxu1  ;;  %4014 = vmatpush.bf16.msra.mxu1 %v16412_v30 }
 0x739   :  { %v3581_v3 = vpop.f32.mrf.mxu0  ;;  %4063 = vmatpush.bf16.msra.mxu2 %v16413_v17  ;;  %v9658_v17 = vld [vmem:[%s15843_s0 + $0x810] sm:$0xff] }
 0x73a   :  { %v3631_v19 = vadd.f32 %v3630_v36, %v3581_v3  ;;  %v16419_v36 = vld [vmem:[#allocation54_spill] sm:$0xff] }
 0x73c   :  { %v3680_v31 = vadd.f32 %v3679_v38, %v3631_v19  ;;  %10512 = vmatmul.lmr.bf16.vlgmr.msra.gmra.16.mxu0  ;;  %4015 = vmatpush.bf16.msra.mxu1 %v16414_v39  ;;  %v16420_v19 = vld [vmem:[#allocation53_spill] sm:$0xff]  ;;  %v16421_v39 = vld [vmem:[#allocation58_spill] sm:$0xff] }
 0x73d   :  { %11056 = vmatmul.lmr.bf16.vlgmr.msra.gmra.16.mxu3  ;;  %3964 = vmatpush.bf16.msra.mxu0 %v16415_v50  ;;  %v16429_v50 = vld [vmem:[#allocation66_spill] sm:$0xff] }
 0x73e   :  { %v7048_v54 = vrot.slane %v3680_v31, 4  ;;  %4111 = vmatpush.bf16.msra.mxu3 %v16416_v27  ;;  %4064 = vmatpush.bf16.msra.mxu2 %v16417_v37 }
 0x73f   :  { %v3681_v47 = vpop.f32.mrf.mxu2 }
 0x740   :  { %v7049_v49 = vmax.f32 %v3680_v31, %v7048_v54  ;;  %v14028_v41 = vpop.f32.mrf.mxu3  ;;  %v3635_v30 = vpop.f32.mrf.mxu1  ;;  %4016 = vmatpush.bf16.msra.mxu1 %v16418_v57  ;;  %v16422_v54 = vld [vmem:[#allocation56_spill] sm:$0xff]  ;;  %v16423_v31 = vld [vmem:[#allocation62_spill] sm:$0xff] }
 0x741   :  { %v3583_v3 = vpop.f32.mrf.mxu0  ;;  %3965 = vmatpush.bf16.msra.mxu0 %v16419_v36 }
 0x742   :  { %v7050_v38 = vrot.slane %v7049_v49, 2  ;;  %4112 = vmatpush.bf16.msra.mxu3 %v16420_v19  ;;  %4065 = vmatpush.bf16.msra.mxu2 %v16421_v39  ;;  %v16424_v3 = vld [vmem:[#allocation65_spill] sm:$0xff] }
 0x743   :  { %3830 = vmatmul.bf16.gmra.mxu1 %v13924_v33 }
 0x744   :  { %v7051_v27 = vmax.f32 %v7049_v49, %v7050_v38  ;;  %10513 = vmatmul.lmr.bf16.gmra.16.mxu0  ;;  %3879 = vmatmul.bf16.gmra.mxu2 %v13927_v26  ;;  %v16425_v49 = vld [vmem:[#allocation60_spill] sm:$0xff]  ;;  %v16426_v38 = vld [vmem:[#allocation7_spill] sm:$0xff] }
 0x745   :  { %11057 = vmatmul.lmr.bf16.gmra.16.mxu3  ;;  %3966 = vmatpush.bf16.msra.mxu0 %v16422_v54  ;;  %v16428_v54 = vld [vmem:[#allocation59_spill] sm:$0xff] }
 0x746   :  { %v7052_v30 = vrot.slane %v7051_v27, 1  ;;  %4113 = vmatpush.bf16.msra.mxu3 %v16338_v42  ;;  %4066 = vmatpush.bf16.msra.mxu2 %v16423_v31  ;;  %v16430_v42 = vld [vmem:[#allocation69_spill] sm:$0xff] }
 0x747   :  { %v3684_v47 = vpop.f32.mrf.mxu2  ;;  %4017 = vmatpush.bf16.msra.mxu1 %v16424_v3  ;;  %v9656_v3 = vld [vmem:[%s15843_s0 + $0x800] sm:$0xff] }
 0x748   :  { %v7053_v57 = vmax.f32 %v7051_v27, %v7052_v30  ;;  %v3730_v39 = vpop.f32.mrf.mxu3  ;;  %v3637_v19 = vpop.f32.mrf.mxu1  ;;  %v16431_v47 = vld [vmem:[#allocation64_spill] sm:$0xff]  ;;  %v16432_v27 = vld [vmem:[#allocation63_spill] sm:$0xff] }
 0x749   :  { %v3586_v36 = vpop.f32.mrf.mxu0  ;;  %3967 = vmatpush.bf16.msra.mxu0 %v16425_v49  ;;  %v16433_v39 = vld [vmem:[#allocation70_spill] sm:$0xff]  ;;  %v16434_v19 = vld [vmem:[#allocation73_spill] sm:$0xff] }
 0x74a   :  { %v14043_v37 = vsel %vm7576_vm3, %v16426_v38, %v7053_v57  ;;  %4114 = vmatpush.bf16.msra.mxu3 %v16428_v54  ;;  %4067 = vmatpush.bf16.msra.mxu2 %v16429_v50  ;;  %v16436_v54 = vld [vmem:[#allocation67_spill] sm:$0xff]  ;;  %v16437_v50 = vld [vmem:[#allocation74_spill] sm:$0xff] }
 0x74b   :  { %16427 = vst [vmem:[#allocation7_spill] sm:$0xff] %v14043_v37  ;;  %4018 = vmatpush.bf16.msra.mxu1 %v16430_v42  ;;  %v16435_v37 = vld [vmem:[#allocation68_spill] sm:$0xff] }
 0x74c   :  { %10514 = vmatmul.lmr.bf16.gmra.16.mxu0 }
 0x74d   :  { %11058 = vmatmul.lmr.bf16.gmra.16.mxu3  ;;  %3968 = vmatpush.bf16.msra.mxu0 %v16431_v47 }
 0x74e   :  { %4115 = vmatpush.bf16.msra.mxu3 %v16432_v27  ;;  %4068 = vmatpush.bf16.msra.mxu2 %v16433_v39  ;;  %v16438_v27 = vld [vmem:[#allocation72_spill] sm:$0xff]  ;;  %v16441_v39 = vld [vmem:[#allocation77_spill] sm:$0xff] }
 0x74f   :  { %v3686_v36 = vpop.f32.mrf.mxu2  ;;  %4019 = vmatpush.bf16.msra.mxu1 %v16434_v19  ;;  %v16440_v19 = vld [vmem:[#allocation76_spill] sm:$0xff] }
 0x750   :  { %v3733_v30 = vpop.f32.mrf.mxu3  ;;  %v3640_v57 = vpop.f32.mrf.mxu1  ;;  %v16439_v36 = vld [vmem:[#allocation71_spill] sm:$0xff] }
 0x751   :  { %v3588_v38 = vpop.f32.mrf.mxu0  ;;  %3969 = vmatpush.bf16.msra.mxu0 %v16435_v37 }
 0x752   :  { %4116 = vmatpush.bf16.msra.mxu3 %v16436_v54  ;;  %4069 = vmatpush.bf16.msra.mxu2 %v16437_v50  ;;  %v16442_v54 = vld [vmem:[#allocation75_spill] sm:$0xff] }
 0x753   :  { %3835 = vmatmul.bf16.gmra.mxu1 %v13935_v61 }
 0x754   :  { %10515 = vmatmul.lmr.bf16.gmra.16.mxu0  ;;  %3884 = vmatmul.bf16.gmra.mxu2 %v13948_v60 }
 0x755   :  { %11059 = vmatmul.lmr.bf16.gmra.16.mxu3  ;;  %3970 = vmatpush.bf16.msra.mxu0 %v16438_v27 }
 0x756   :  { %4117 = vmatpush.bf16.msra.mxu3 %v16439_v36  ;;  %4020 = vmatpush.bf16.msra.mxu1 %v16440_v19 }
 0x757   :  { %v3689_v30 = vpop.f32.mrf.mxu2 }
 0x758   :  { %v3735_v57 = vpop.f32.mrf.mxu3  ;;  %v3642_v38 = vpop.f32.mrf.mxu1  ;;  %v9641_v30 = vld [vmem:[%s15843_s0 + $0x788] sm:$0xff] }
 0x759   :  { %v3591_v37 = vpop.f32.mrf.mxu0  ;;  %3971 = vmatpush.bf16.msra.mxu0 %v16441_v39 }
 0x75a   :  { %4118 = vmatpush.bf16.msra.mxu3 %v16442_v54  ;;  %v9640_v37 = vld [vmem:[%s15843_s0 + $0x780] sm:$0xff] }
 0x75c   :  { %10516 = vmatmul.lmr.bf16.gmra.16.mxu0 }
 0x75d   :  { %11060 = vmatmul.lmr.bf16.gmra.16.mxu3 }
 0x75f   :  { %v3691_v50 = vpop.f32.mrf.mxu2 }
 0x760   :  { %v3738_v47 = vpop.f32.mrf.mxu3  ;;  %v3645_v42 = vpop.f32.mrf.mxu1  ;;  %v9672_v50 = vld [vmem:[%s15843_s0 + $0x880] sm:$0xff] }
 0x761   :  { %v3593_v49 = vpop.f32.mrf.mxu0  ;;  %v9673_v42 = vld [vmem:[%s15843_s0 + $0x888] sm:$0xff] }
 0x762   :  { %v14076_v49 = vpack.c.bf16 %v9641_v30, %v9640_v37  ;;  %v14078_v57 = vpack.c.bf16 %v9673_v42, %v9672_v50  ;;  %v9657_v37 = vld [vmem:[%s15843_s0 + $0x808] sm:$0xff] }
 0x763   :  { %3840 = vmatmul.bf16.gmra.mxu1 %v13971_v20  ;;  %v4217_v50 = vpack.c.bf16 %v9657_v37, %v9656_v3  ;;  %v9675_v3 = vld [vmem:[%s15843_s0 + $0x898] sm:$0xff] }
 0x764   :  { %10517 = vmatmul.lmr.bf16.gmra.16.mxu0  ;;  %3889 = vmatmul.bf16.gmra.mxu2 %v13981_v10 }
 0x765   :  { %11061 = vmatmul.lmr.bf16.gmra.16.mxu3  ;;  %4249 = vxpose.xlu2.c.b16.start [1/8] %v4217_v50, 128 }
 0x766   :  { %11217 = vxpose.binary.xlu1.c.b16.start [1/16] %v14076_v49, %v14078_v57, 128 }
 0x767   :  { %v3694_v47 = vpop.f32.mrf.mxu2 }
 0x768   :  { %v3740_v38 = vpop.f32.mrf.mxu3  ;;  %v3647_v54 = vpop.f32.mrf.mxu1 }
 0x769   :  { %v3596_v39 = vpop.f32.mrf.mxu0  ;;  %v9642_v54 = vld [vmem:[%s15843_s0 + $0x790] sm:$0xff] }
 0x76a   :  { %v9674_v39 = vld [vmem:[%s15843_s0 + $0x890] sm:$0xff] }
 0x76b   :  { %v14104_v42 = vpack.c.bf16 %v9675_v3, %v9674_v39  ;;  %v9645_v3 = vld [vmem:[%s15843_s0 + $0x7a8] sm:$0xff] }
 0x76c   :  { %10518 = vmatmul.lmr.bf16.gmra.16.mxu0 }
 0x76d   :  { %11062 = vmatmul.lmr.bf16.gmra.16.mxu3 }
 0x76f   :  { %v3696_v36 = vpop.f32.mrf.mxu2 }
 0x770   :  { %v3743_v27 = vpop.f32.mrf.mxu3  ;;  %v3650_v19 = vpop.f32.mrf.mxu1 }
 0x771   :  { %v3598_v30 = vpop.f32.mrf.mxu0  ;;  %v9643_v27 = vld [vmem:[%s15843_s0 + $0x798] sm:$0xff] }
 0x772   :  { %v14102_v19 = vpack.c.bf16 %v9643_v27, %v9642_v54  ;;  %v9659_v54 = vld [vmem:[%s15843_s0 + $0x818] sm:$0xff] }
 0x773   :  { %3845 = vmatmul.bf16.gmra.mxu1 %v13987_v45  ;;  %v4218_v39 = vpack.c.bf16 %v9659_v54, %v9658_v17  ;;  %v9677_v17 = vld [vmem:[%s15843_s0 + $0x8a8] sm:$0xff] }
 0x774   :  { %10519 = vmatmul.lmr.bf16.gmra.16.mxu0  ;;  %3894 = vmatmul.bf16.gmra.mxu2 %v13992_v59 }
 0x775   :  { %11063 = vmatmul.lmr.bf16.gmra.16.mxu3  ;;  %4250 = vxpose.xlu2.c.b16.cont [2/8] %v4218_v39, 128 }
 0x776   :  { %11218 = vxpose.binary.xlu1.c.b16.cont [2/16] %v14102_v19, %v14104_v42, 128 }
 0x777   :  { %v3699_v36 = vpop.f32.mrf.mxu2 }
 0x778   :  { %v3745_v47 = vpop.f32.mrf.mxu3  ;;  %v3652_v38 = vpop.f32.mrf.mxu1  ;;  %v9676_v36 = vld [vmem:[%s15843_s0 + $0x8a0] sm:$0xff] }
 0x779   :  { %v3601_v37 = vpop.f32.mrf.mxu0 }
 0x77a   :  { %v14130_v37 = vpack.c.bf16 %v9677_v17, %v9676_v36  ;;  %v9647_v17 = vld [vmem:[%s15843_s0 + $0x7b8] sm:$0xff] }
 0x77c   :  { %10520 = vmatmul.lmr.bf16.gmra.16.mxu0 }
 0x77d   :  { %11064 = vmatmul.lmr.bf16.gmra.16.mxu3 }
 0x77f   :  { %v3701_v30 = vpop.f32.mrf.mxu2 }
 0x780   :  { %v3748_v50 = vpop.f32.mrf.mxu3  ;;  %v3655_v31 = vpop.f32.mrf.mxu1 }
 0x781   :  { %v3603_v27 = vpop.f32.mrf.mxu0  ;;  %v9644_v31 = vld [vmem:[%s15843_s0 + $0x7a0] sm:$0xff] }
 0x782   :  { %v14128_v47 = vpack.c.bf16 %v9645_v3, %v9644_v31  ;;  %v9661_v31 = vld [vmem:[%s15843_s0 + $0x828] sm:$0xff] }
 0x783   :  { %3850 = vmatmul.bf16.gmra.mxu1 %v13995_v51 }
 0x784   :  { %10521 = vmatmul.lmr.bf16.gmra.16.mxu0  ;;  %3899 = vmatmul.bf16.gmra.mxu2 %v13999_v44  ;;  %v9660_v44 = vld [vmem:[%s15843_s0 + $0x820] sm:$0xff] }
 0x785   :  { %11065 = vmatmul.lmr.bf16.gmra.16.mxu3  ;;  %v4219_v36 = vpack.c.bf16 %v9661_v31, %v9660_v44  ;;  %v9679_v44 = vld [vmem:[%s15843_s0 + $0x8b8] sm:$0xff] }
 0x786   :  { %11219 = vxpose.binary.xlu1.c.b16.cont [3/16] %v14128_v47, %v14130_v37, 128 }
 0x787   :  { %v3704_v38 = vpop.f32.mrf.mxu2  ;;  %4251 = vxpose.xlu2.c.b16.cont [3/8] %v4219_v36, 128 }
 0x788   :  { %v3750_v30 = vpop.f32.mrf.mxu3  ;;  %v3657_v50 = vpop.f32.mrf.mxu1  ;;  %v9678_v38 = vld [vmem:[%s15843_s0 + $0x8b0] sm:$0xff] }
 0x789   :  { %v3606_v54 = vpop.f32.mrf.mxu0 }
 0x78a   :  { %v14156_v54 = vpack.c.bf16 %v9679_v44, %v9678_v38  ;;  %v9649_v44 = vld [vmem:[%s15843_s0 + $0x7c8] sm:$0xff] }
 0x78c   :  { %10522 = vmatmul.lmr.bf16.gmra.16.mxu0 }
 0x78d   :  { %11066 = vmatmul.lmr.bf16.gmra.16.mxu3 }
 0x78f   :  { %v3706_v27 = vpop.f32.mrf.mxu2 }
 0x790   :  { %v3753_v39 = vpop.f32.mrf.mxu3  ;;  %v3660_v51 = vpop.f32.mrf.mxu1 }
 0x791   :  { %v3608_v3 = vpop.f32.mrf.mxu0  ;;  %v9646_v51 = vld [vmem:[%s15843_s0 + $0x7b0] sm:$0xff] }
 0x792   :  { %v14154_v30 = vpack.c.bf16 %v9647_v17, %v9646_v51  ;;  %v9663_v51 = vld [vmem:[%s15843_s0 + $0x838] sm:$0xff] }
 0x793   :  { %3855 = vmatmul.bf16.gmra.mxu1 %v14002_v48 }
 0x794   :  { %10523 = vmatmul.lmr.bf16.gmra.16.mxu0  ;;  %3904 = vmatmul.bf16.gmra.mxu2 %v14007_v15  ;;  %v9662_v15 = vld [vmem:[%s15843_s0 + $0x830] sm:$0xff] }
 0x795   :  { %11067 = vmatmul.lmr.bf16.gmra.16.mxu3  ;;  %v4220_v38 = vpack.c.bf16 %v9663_v51, %v9662_v15  ;;  %v9681_v15 = vld [vmem:[%s15843_s0 + $0x8c8] sm:$0xff] }
 0x796   :  { %11220 = vxpose.binary.xlu1.c.b16.cont [4/16] %v14154_v30, %v14156_v54, 128 }
 0x797   :  { %v3709_v50 = vpop.f32.mrf.mxu2  ;;  %4252 = vxpose.xlu2.c.b16.cont [4/8] %v4220_v38, 128 }
 0x798   :  { %v3755_v27 = vpop.f32.mrf.mxu3  ;;  %v3662_v39 = vpop.f32.mrf.mxu1  ;;  %v9680_v50 = vld [vmem:[%s15843_s0 + $0x8c0] sm:$0xff] }
 0x799   :  { %v3611_v31 = vpop.f32.mrf.mxu0 }
 0x79a   :  { %v14182_v31 = vpack.c.bf16 %v9681_v15, %v9680_v50  ;;  %v9650_v15 = vld [vmem:[%s15843_s0 + $0x7d0] sm:$0xff] }
 0x79c   :  { %10524 = vmatmul.lmr.bf16.gmra.16.mxu0 }
 0x79d   :  { %11068 = vmatmul.lmr.bf16.gmra.16.mxu3 }
 0x79f   :  { %v3711_v3 = vpop.f32.mrf.mxu2 }
 0x7a0   :  { %v3758_v36 = vpop.f32.mrf.mxu3  ;;  %v3665_v48 = vpop.f32.mrf.mxu1 }
 0x7a1   :  { %v3613_v17 = vpop.f32.mrf.mxu0  ;;  %v9648_v48 = vld [vmem:[%s15843_s0 + $0x7c0] sm:$0xff] }
 0x7a2   :  { %v14180_v27 = vpack.c.bf16 %v9649_v44, %v9648_v48  ;;  %v9665_v48 = vld [vmem:[%s15843_s0 + $0x848] sm:$0xff] }
 0x7a3   :  { %3860 = vmatmul.bf16.gmra.mxu1 %v14011_v9 }
 0x7a4   :  { %10525 = vmatmul.lmr.bf16.gmra.16.mxu0  ;;  %3909 = vmatmul.bf16.gmra.mxu2 %v14014_v11  ;;  %v9664_v11 = vld [vmem:[%s15843_s0 + $0x840] sm:$0xff] }
 0x7a5   :  { %11069 = vmatmul.lmr.bf16.gmra.16.mxu3  ;;  %v4221_v50 = vpack.c.bf16 %v9665_v48, %v9664_v11 }
 0x7a6   :  { %11221 = vxpose.binary.xlu1.c.b16.cont [5/16] %v14180_v27, %v14182_v31, 128 }
 0x7a7   :  { %v3714_v39 = vpop.f32.mrf.mxu2  ;;  %4253 = vxpose.xlu2.c.b16.cont [5/8] %v4221_v50, 128 }
 0x7a8   :  { %v3760_v3 = vpop.f32.mrf.mxu3  ;;  %v3667_v36 = vpop.f32.mrf.mxu1  ;;  %v9651_v39 = vld [vmem:[%s15843_s0 + $0x7d8] sm:$0xff] }
 0x7a9   :  { %v3616_v51 = vpop.f32.mrf.mxu0  ;;  %v9682_v3 = vld [vmem:[%s15843_s0 + $0x8d0] sm:$0xff]  ;;  %v14207_v36 = vpack.c.bf16 %v9651_v39, %v9650_v15 }
 0x7ac   :  { %10526 = vmatmul.lmr.bf16.gmra.16.mxu0 }
 0x7ad   :  { %11070 = vmatmul.lmr.bf16.gmra.16.mxu3 }
 0x7af   :  { %v3716_v17 = vpop.f32.mrf.mxu2 }
 0x7b0   :  { %v3763_v38 = vpop.f32.mrf.mxu3  ;;  %v3826_v9 = vpop.f32.mrf.mxu1 }
 0x7b1   :  { %v3618_v44 = vpop.f32.mrf.mxu0 }
 0x7b3   :  { %4021 = vmatmul.bf16.vlgmr.msra.gmra.mxu1 %v13920_v2  ;;  %v9683_v2 = vld [vmem:[%s15843_s0 + $0x8d8] sm:$0xff] }
 0x7b4   :  { %10527 = vmatmul.lmr.bf16.gmra.16.mxu0  ;;  %10944 = vmatmul.lmr.bf16.vlgmr.msra.gmra.16.mxu2  ;;  %v14209_v51 = vpack.c.bf16 %v9683_v2, %v9682_v3 }
 0x7b5   :  { %11071 = vmatmul.lmr.bf16.gmra.16.mxu3  ;;  %4379 = vmatpush.bf16.msra.mxu2 %v11525_v4 }
 0x7b6   :  { %4330 = vmatpush.bf16.msra.mxu1 %v11514_v63 }
 0x7b7   :  { %v3875_v11 = vpop.f32.mrf.mxu2  ;;  %11222 = vxpose.binary.xlu1.c.b16.cont [6/16] %v14207_v36, %v14209_v51, 128 }
 0x7b8   :  { %v3765_v17 = vpop.f32.mrf.mxu3  ;;  %v3828_v38 = vpop.f32.mrf.mxu1 }
 0x7b9   :  { %v3777_v48 = vpop.f32.mrf.mxu0  ;;  %4380 = vmatpush.bf16.msra.mxu2 %v11549_v12 }
 0x7ba   :  { %v3778_v44 = vadd.f32 %v3777_v48, %v14028_v41  ;;  %4331 = vmatpush.bf16.msra.mxu1 %v11537_v8 }
 0x7bc   :  { %v3827_v50 = vadd.f32 %v3826_v9, %v3778_v44  ;;  %3972 = vmatmul.bf16.vlgmr.msra.gmra.mxu0 %v13917_v24  ;;  %10945 = vmatmul.lmr.bf16.gmra.16.mxu2  ;;  %v9666_v9 = vld [vmem:[%s15843_s0 + $0x850] sm:$0xff] }
 0x7bd   :  { %4119 = vmatmul.bf16.vlgmr.msra.gmra.mxu3 %v13917_v24  ;;  %4281 = vmatpush.bf16.msra.mxu0 %v11553_v14  ;;  %v9667_v24 = vld [vmem:[%s15843_s0 + $0x858] sm:$0xff] }
 0x7be   :  { %v7069_v15 = vrot.slane %v3827_v50, 4  ;;  %4428 = vmatpush.bf16.msra.mxu3 %v11551_v13  ;;  %4381 = vmatpush.bf16.msra.mxu2 %v11602_v32  ;;  %v4222_v48 = vpack.c.bf16 %v9667_v24, %v9666_v9 }
 0x7bf   :  { %v3877_v39 = vpop.f32.mrf.mxu2  ;;  %4332 = vmatpush.bf16.msra.mxu1 %v11590_v28 }
 0x7c0   :  { %v7070_v41 = vmax.f32 %v3827_v50, %v7069_v15  ;;  %v3924_v3 = vpop.f32.mrf.mxu3  ;;  %v3831_v2 = vpop.f32.mrf.mxu1  ;;  %4254 = vxpose.xlu2.c.b16.cont [6/8] %v4222_v48, 128  ;;  %v9652_v15 = vld [vmem:[%s15843_s0 + $0x7e0] sm:$0xff] }
 0x7c1   :  { %v14228_v17 = vadd.f32 %v3924_v3, %v3875_v11  ;;  %v3779_v38 = vpop.f32.mrf.mxu0  ;;  %4282 = vmatpush.bf16.msra.mxu0 %v11592_v29  ;;  %v9653_v11 = vld [vmem:[%s15843_s0 + $0x7e8] sm:$0xff]  ;;  %v9684_v39 = vld [vmem:[%s15843_s0 + $0x8e0] sm:$0xff] }
 0x7c2   :  { %v7071_v44 = vrot.slane %v7070_v41, 2  ;;  %4429 = vmatpush.bf16.msra.mxu3 %v11575_v22  ;;  %4382 = vmatpush.bf16.msra.mxu2 %v11657_v53  ;;  %v4215_v2 = vpack.c.bf16 %v9653_v11, %v9652_v15  ;;  %v9668_v11 = vld [vmem:[%s15843_s0 + $0x860] sm:$0xff] }
 0x7c3   :  { %4026 = vmatmul.bf16.gmra.mxu1 %v13927_v26  ;;  %v9685_v26 = vld [vmem:[%s15843_s0 + $0x8e8] sm:$0xff] }
 0x7c4   :  { %v7072_v50 = vmax.f32 %v7070_v41, %v7071_v44  ;;  %10946 = vmatmul.lmr.bf16.gmra.16.mxu2  ;;  %4333 = vmatpush.bf16.msra.mxu1 %v11638_v43  ;;  %v14250_v9 = vpack.c.bf16 %v9685_v26, %v9684_v39  ;;  %v9669_v39 = vld [vmem:[%s15843_s0 + $0x868] sm:$0xff] }
 0x7c5   :  { %4283 = vmatpush.bf16.msra.mxu0 %v16359_v62  ;;  %v4223_v26 = vpack.c.bf16 %v9669_v39, %v9668_v11  ;;  %v16443_v11 = vld [vmem:[#allocation9_spill] sm:$0xff]  ;;  %v16444_v39 = vld [vmem:[#allocation8_spill] sm:$0xff] }
 0x7c6   :  { %v7073_v41 = vrot.slane %v7072_v50, 1  ;;  %4430 = vmatpush.bf16.msra.mxu3 %v11630_v40  ;;  %4383 = vmatpush.bf16.msra.mxu2 %v11694_v0 }
 0x7c7   :  { %v3880_v3 = vpop.f32.mrf.mxu2  ;;  %11223 = vxpose.binary.xlu1.c.b16.cont [7/16] %v4215_v2, %v14250_v9, 128 }
 0x7c8   :  { %v7074_v24 = vmax.f32 %v7072_v50, %v7073_v41  ;;  %v3926_v38 = vpop.f32.mrf.mxu3  ;;  %v3833_v48 = vpop.f32.mrf.mxu1  ;;  %4334 = vmatpush.bf16.msra.mxu1 %v11676_v58  ;;  %v9654_v41 = vld [vmem:[%s15843_s0 + $0x7f0] sm:$0xff]  ;;  %v9655_v3 = vld [vmem:[%s15843_s0 + $0x7f8] sm:$0xff] }
 0x7c9   :  { %v3782_v44 = vpop.f32.mrf.mxu0  ;;  %4284 = vmatpush.bf16.msra.mxu0 %v11669_v56  ;;  %v9687_v38 = vld [vmem:[%s15843_s0 + $0x8f8] sm:$0xff]  ;;  %v4216_v48 = vpack.c.bf16 %v9655_v3, %v9654_v41  ;;  %v9670_v3 = vld [vmem:[%s15843_s0 + $0x870] sm:$0xff] }
 0x7ca   :  { %v14256_v62 = vsel %vm7576_vm3, %v13826_v52, %v7074_v24  ;;  %4431 = vmatpush.bf16.msra.mxu3 %v11667_v55  ;;  %4384 = vmatpush.bf16.msra.mxu2 %v11731_v18  ;;  %v9686_v24 = vld [vmem:[%s15843_s0 + $0x8f0] sm:$0xff] }
 0x7cc   :  { %3977 = vmatmul.bf16.gmra.mxu0 %v13924_v33  ;;  %10947 = vmatmul.lmr.bf16.gmra.16.mxu2 }
 0x7cd   :  { %4124 = vmatmul.bf16.gmra.mxu3 %v13924_v33  ;;  %4285 = vmatpush.bf16.msra.mxu0 %v11707_v6 }
 0x7ce   :  { %4432 = vmatpush.bf16.msra.mxu3 %v11705_v5  ;;  %4335 = vmatpush.bf16.msra.mxu1 %v11713_v7 }
 0x7cf   :  { %v3882_v50 = vpop.f32.mrf.mxu2  ;;  %4385 = vmatpush.bf16.msra.mxu2 %v11767_v35 }
 0x7d0   :  { %v3929_v52 = vpop.f32.mrf.mxu3  ;;  %v3836_v15 = vpop.f32.mrf.mxu1  ;;  %4255 = vxpose.xlu2.c.b16.cont [7/8] %v4223_v26, 128 }
 0x7d1   :  { %v3784_v33 = vpop.f32.mrf.mxu0  ;;  %4286 = vmatpush.bf16.msra.mxu0 %v11743_v23 }
 0x7d2   :  { %4433 = vmatpush.bf16.msra.mxu3 %v11741_v21  ;;  %4336 = vmatpush.bf16.msra.mxu1 %v11746_v25 }
 0x7d3   :  { %4031 = vmatmul.bf16.gmra.mxu1 %v13948_v60  ;;  %4386 = vmatpush.bf16.msra.mxu2 %v16121_v1  ;;  %v4232_v60 = vpack.c.bf16 %v9687_v38, %v9686_v24  ;;  %v9671_v24 = vld [vmem:[%s15843_s0 + $0x878] sm:$0xff] }
 0x7d4   :  { %10948 = vmatmul.lmr.bf16.gmra.16.mxu2 }
 0x7d5   :  { %4287 = vmatpush.bf16.msra.mxu0 %v16124_v34 }
 0x7d6   :  { %4434 = vmatpush.bf16.msra.mxu3 %v16123_v16  ;;  %4337 = vmatpush.bf16.msra.mxu1 %v16275_v46 }
 0x7d7   :  { %v3885_v44 = vpop.f32.mrf.mxu2  ;;  %11224 = vxpose.binary.xlu1.c.b16.end [8/16] %v4216_v48, %v4232_v60, 128 }
 0x7d8   :  { %v3931_v50 = vpop.f32.mrf.mxu3  ;;  %v3838_v52 = vpop.f32.mrf.mxu1 }
 0x7d9   :  { %10528 = vmatpush.lsf.bf16.msrb.mxu0 %v4216_v48  ;;  %v3787_v15 = vpop.f32.mrf.mxu0  ;;  %v4224_v48 = vpack.c.bf16 %v9671_v24, %v9670_v3 }
 0x7da   :  { %10789 = vmatpush.lsf.bf16.msrb.mxu1 %v4232_v60  ;;  %4435 = vmatpush.bf16.msra.mxu3 %v16444_v39  ;;  %v16503_v39 = vld [vmem:[#allocation58_spill] sm:$0xff] }
 0x7dc   :  { %3982 = vmatmul.bf16.gmra.mxu0 %v13935_v61  ;;  %10949 = vmatmul.lmr.bf16.gmra.16.mxu2 }
 0x7dd   :  { %4288 = vmatpush.bf16.msra.mxu0 %v16443_v11  ;;  %4129 = vmatmul.bf16.gmra.mxu3 %v13935_v61  ;;  %v16513_v11 = vld [vmem:[#allocation66_spill] sm:$0xff] }
 0x7de   :  { %10790 = vmatpush.lsf.bf16.msrb.mxu1 %v14250_v9 }
 0x7df   :  { %v3887_v33 = vpop.f32.mrf.mxu2 }
 0x7e0   :  { %v3934_v26 = vpop.f32.mrf.mxu3  ;;  %v3841_v41 = vpop.f32.mrf.mxu1  ;;  %4256 = vxpose.xlu2.c.b16.end [8/8] %v4224_v48, 128 }
 0x7e1   :  { %10529 = vmatpush.lsf.bf16.msrb.mxu0 %v4215_v2  ;;  %v3789_v38 = vpop.f32.mrf.mxu0  ;;  %v16445_v26 = vld [vmem:[#allocation5_spill] sm:$0xff] }
 0x7e2   :  { %10791 = vmatpush.lsf.bf16.msrb.mxu1 %v14209_v51 }
 0x7e3   :  { %4036 = vmatmul.bf16.gmra.mxu1 %v13981_v10 }
 0x7e4   :  { %10950 = vmatmul.lmr.bf16.gmra.16.mxu2 }
 0x7e5   :  { %10530 = vmatpush.lsf.bf16.msrb.mxu0 %v14207_v36 }
 0x7e6   :  { %10792 = vmatpush.lsf.bf16.msrb.mxu1 %v14182_v31 }
 0x7e7   :  { %v3890_v61 = vpop.f32.mrf.mxu2 }
 0x7e8   :  { %v3936_v2 = vpop.f32.mrf.mxu3  ;;  %v3843_v44 = vpop.f32.mrf.mxu1 }
 0x7e9   :  { %10531 = vmatpush.lsf.bf16.msrb.mxu0 %v14180_v27  ;;  %v3792_v50 = vpop.f32.mrf.mxu0 }
 0x7ea   :  { %10793 = vmatpush.lsf.bf16.msrb.mxu1 %v14156_v54 }
 0x7ec   :  { %3987 = vmatmul.bf16.gmra.mxu0 %v13971_v20  ;;  %10951 = vmatmul.lmr.bf16.gmra.16.mxu2 }
 0x7ed   :  { %10532 = vmatpush.lsf.bf16.msrb.mxu0 %v14154_v30  ;;  %4134 = vmatmul.bf16.gmra.mxu3 %v13971_v20 }
 0x7ee   :  { %10794 = vmatpush.lsf.bf16.msrb.mxu1 %v14130_v37 }
 0x7ef   :  { %v3892_v10 = vpop.f32.mrf.mxu2 }
 0x7f0   :  { %v3939_v27 = vpop.f32.mrf.mxu3  ;;  %v3846_v36 = vpop.f32.mrf.mxu1  ;;  %v16448_v10 = vld [vmem:[#allocation38_spill] sm:$0xff] }
 0x7f1   :  { %10533 = vmatpush.lsf.bf16.msrb.mxu0 %v14128_v47  ;;  %v3794_v52 = vpop.f32.mrf.mxu0 }
 0x7f2   :  { %10795 = vmatpush.lsf.bf16.msrb.mxu1 %v14104_v42 }
 0x7f3   :  { %4041 = vmatmul.bf16.gmra.mxu1 %v13992_v59 }
 0x7f4   :  { %10952 = vmatmul.lmr.bf16.gmra.16.mxu2 }
 0x7f5   :  { %10534 = vmatpush.lsf.bf16.msrb.mxu0 %v14102_v19 }
 0x7f6   :  { %10796 = vmatpush.lsf.bf16.msrb.mxu1 %v14078_v57 }
 0x7f7   :  { %v3895_v20 = vpop.f32.mrf.mxu2 }
 0x7f8   :  { %v3941_v47 = vpop.f32.mrf.mxu3  ;;  %v3848_v30 = vpop.f32.mrf.mxu1  ;;  %v16449_v20 = vld [vmem:[#allocation78_spill] sm:$0xff] }
 0x7f9   :  { %10535 = vmatpush.lsf.bf16.msrb.mxu0 %v14076_v49  ;;  %v3797_v15 = vpop.f32.mrf.mxu0 }
 0x7fb   :  { %10536 = vllmr.16.mxu0 }
 0x7fc   :  { %3992 = vmatmul.bf16.gmra.mxu0 %v13987_v45  ;;  %10953 = vmatmul.lmr.bf16.gmra.16.mxu2 }
 0x7fd   :  { %10553 = vmatpush.lsf.bf16.msrb.mxu0 %v4232_v60  ;;  %4139 = vmatmul.bf16.gmra.mxu3 %v13987_v45  ;;  %v16446_v45 = vld [vmem:[#allocation6_spill] sm:$0xff] }
 0x7ff   :  { %v3897_v59 = vpop.f32.mrf.mxu2 }
 0x800   :  { %v3944_v19 = vpop.f32.mrf.mxu3  ;;  %v3851_v33 = vpop.f32.mrf.mxu1 }
 0x801   :  { %10554 = vmatpush.lsf.bf16.msrb.mxu0 %v14250_v9  ;;  %v3799_v49 = vpop.f32.mrf.mxu0  ;;  %v16450_v19 = vld [vmem:[#allocation43_spill] sm:$0xff] }
 0x802   :  { %10797 = vllmr.16.mxu1 }
 0x803   :  { %4046 = vmatmul.bf16.gmra.mxu1 %v16445_v26 }
 0x804   :  { %10954 = vmatmul.lmr.bf16.gmra.16.mxu2 }
 0x805   :  { %10555 = vmatpush.lsf.bf16.msrb.mxu0 %v14209_v51 }
 0x807   :  { %v3900_v41 = vpop.f32.mrf.mxu2 }
 0x808   :  { %v3946_v60 = vpop.f32.mrf.mxu3  ;;  %v3853_v3 = vpop.f32.mrf.mxu1 }
 0x809   :  { %10556 = vmatpush.lsf.bf16.msrb.mxu0 %v14182_v31  ;;  %v3802_v24 = vpop.f32.mrf.mxu0  ;;  %v16447_v31 = vld [vmem:[#allocation44_spill] sm:$0xff] }
 0x80a   :  { %v16451_v24 = vld [vmem:[#allocation10_spill] sm:$0xff] }
 0x80c   :  { %3997 = vmatmul.bf16.gmra.mxu0 %v16446_v45  ;;  %10955 = vmatmul.lmr.bf16.gmra.16.mxu2 }
 0x80d   :  { %10557 = vmatpush.lsf.bf16.msrb.mxu0 %v14156_v54  ;;  %4144 = vmatmul.bf16.gmra.mxu3 %v16446_v45  ;;  %v16452_v45 = vld [vmem:[#allocation11_spill] sm:$0xff] }
 0x80f   :  { %v3902_v9 = vpop.f32.mrf.mxu2 }
 0x810   :  { %v3949_v51 = vpop.f32.mrf.mxu3  ;;  %v3856_v38 = vpop.f32.mrf.mxu1 }
 0x811   :  { %10558 = vmatpush.lsf.bf16.msrb.mxu0 %v14130_v37  ;;  %v3804_v48 = vpop.f32.mrf.mxu0  ;;  %v14344_v49 = vpop.trf.xlu2 }
 0x813   :  { %4051 = vmatmul.bf16.gmra.mxu1 %v16447_v31  ;;  %v14333_v54 = vpop.trf.xlu1  ;;  %v16453_v31 = vld [vmem:[#allocation12_spill] sm:$0xff] }
 0x814   :  { %10956 = vmatmul.lmr.bf16.gmra.16.mxu2 }
 0x815   :  { %10559 = vmatpush.lsf.bf16.msrb.mxu0 %v14104_v42 }
 0x817   :  { %v3905_v61 = vpop.f32.mrf.mxu2 }
 0x818   :  { %v3951_v2 = vpop.f32.mrf.mxu3  ;;  %v3858_v44 = vpop.f32.mrf.mxu1 }
 0x819   :  { %10560 = vmatpush.lsf.bf16.msrb.mxu0 %v14078_v57  ;;  %v3807_v50 = vpop.f32.mrf.mxu0  ;;  %v16454_v2 = vld [vmem:[#allocation13_spill] sm:$0xff] }
 0x81b   :  { %v14337_v27 = vpop.trf.xlu1 }
 0x81c   :  { %4002 = vmatmul.bf16.gmra.mxu0 %v16448_v10  ;;  %10957 = vmatmul.lmr.bf16.gmra.16.mxu2 }
 0x81d   :  { %4149 = vmatmul.bf16.gmra.mxu3 %v16448_v10 }
 0x81f   :  { %v3907_v37 = vpop.f32.mrf.mxu2 }
 0x820   :  { %v3954_v42 = vpop.f32.mrf.mxu3  ;;  %v3861_v36 = vpop.f32.mrf.mxu1  ;;  %v16456_v37 = vld [vmem:[#allocation19_spill] sm:$0xff] }
 0x821   :  { %v3809_v52 = vpop.f32.mrf.mxu0  ;;  %v16457_v42 = vld [vmem:[#allocation15_spill] sm:$0xff] }
 0x822   :  { %v16458_v52 = vld [vmem:[#allocation14_spill] sm:$0xff] }
 0x823   :  { %4056 = vmatmul.bf16.gmra.mxu1 %v16449_v20  ;;  %v14340_v47 = vpop.trf.xlu1  ;;  %v16459_v20 = vld [vmem:[#allocation16_spill] sm:$0xff] }
 0x824   :  { %10958 = vmatmul.lmr.bf16.gmra.16.mxu2 }
 0x827   :  { %v3910_v57 = vpop.f32.mrf.mxu2 }
 0x828   :  { %v3956_v30 = vpop.f32.mrf.mxu3  ;;  %v3863_v15 = vpop.f32.mrf.mxu1 }
 0x829   :  { %v3812_v59 = vpop.f32.mrf.mxu0  ;;  %v14362_v30 = vpop.trf.xlu2 }
 0x82b   :  { %v14346_v3 = vpop.trf.xlu1 }
 0x82c   :  { %4007 = vmatmul.bf16.gmra.mxu0 %v16450_v19  ;;  %10959 = vmatmul.lmr.bf16.gmra.16.mxu2 }
 0x82d   :  { %4154 = vmatmul.bf16.gmra.mxu3 %v16450_v19  ;;  %v16460_v19 = vld [vmem:[#allocation25_spill] sm:$0xff] }
 0x82f   :  { %v3912_v33 = vpop.f32.mrf.mxu2 }
 0x830   :  { %v3959_v26 = vpop.f32.mrf.mxu3  ;;  %v4022_v41 = vpop.f32.mrf.mxu1 }
 0x831   :  { %v3814_v60 = vpop.f32.mrf.mxu0 }
 0x833   :  { %4338 = vmatmul.bf16.vlgmr.msra.gmra.mxu1 %v14344_v49  ;;  %v14355_v50 = vpop.trf.xlu1 }
 0x834   :  { %4387 = vmatmul.bf16.vlgmr.msra.gmra.mxu2 %v14333_v54  ;;  %4526 = vmatpush.bf16.msra.mxu1 %v16451_v24  ;;  %16455 = vst [vmem:[#allocation5_spill] sm:$0xff] %v14355_v50 }
 0x835   :  { %4575 = vmatpush.bf16.msra.mxu2 %v16452_v45 }
 0x837   :  { %v4071_v9 = vpop.f32.mrf.mxu2 }
 0x838   :  { %v3961_v51 = vpop.f32.mrf.mxu3  ;;  %v4072_v38 = vadd.f32 %v4071_v9, %v4022_v41  ;;  %v4024_v48 = vpop.f32.mrf.mxu1  ;;  %4527 = vmatpush.bf16.msra.mxu1 %v16453_v31  ;;  %v16461_v41 = vld [vmem:[#allocation18_spill] sm:$0xff]  ;;  %v16462_v9 = vld [vmem:[#allocation17_spill] sm:$0xff] }
 0x839   :  { %v3973_v61 = vpop.f32.mrf.mxu0  ;;  %4576 = vmatpush.bf16.msra.mxu2 %v16454_v2  ;;  %v16463_v51 = vld [vmem:[#allocation22_spill] sm:$0xff] }
 0x83a   :  { %v3974_v44 = vadd.f32 %v3973_v61, %v14228_v17 }
 0x83c   :  { %v7090_v10 = vrot.slane %v3974_v44, 4  ;;  %10537 = vmatmul.lmr.bf16.vlgmr.msra.gmra.16.mxu0  ;;  %4528 = vmatpush.bf16.msra.mxu1 %v16456_v37  ;;  %v16470_v37 = vld [vmem:[#allocation24_spill] sm:$0xff] }
 0x83d   :  { %4436 = vmatmul.bf16.vlgmr.msra.gmra.mxu3 %v14337_v27  ;;  %4477 = vmatpush.bf16.msra.mxu0 %v16457_v42 }
 0x83e   :  { %v7091_v36 = vmax.f32 %v3974_v44, %v7090_v10  ;;  %4624 = vmatpush.bf16.msra.mxu3 %v16458_v52  ;;  %4577 = vmatpush.bf16.msra.mxu2 %v16459_v20  ;;  %v14370_v10 = vpop.trf.xlu1 }
 0x83f   :  { %v4073_v57 = vpop.f32.mrf.mxu2 }
 0x840   :  { %v7092_v15 = vrot.slane %v7091_v36, 2  ;;  %v4120_v17 = vpop.f32.mrf.mxu3  ;;  %v4027_v59 = vpop.f32.mrf.mxu1  ;;  %4529 = vmatpush.bf16.msra.mxu1 %v16460_v19  ;;  %v16464_v57 = vld [vmem:[#allocation21_spill] sm:$0xff]  ;;  %v16468_v19 = vld [vmem:[#allocation4_spill] sm:$0xff] }
 0x841   :  { %v4121_v33 = vadd.f32 %v4120_v17, %v4072_v38  ;;  %v3975_v26 = vpop.f32.mrf.mxu0  ;;  %4478 = vmatpush.bf16.msra.mxu0 %v16461_v41  ;;  %v16465_v38 = vld [vmem:[#allocation29_spill] sm:$0xff] }
 0x842   :  { %v7093_v60 = vmax.f32 %v7091_v36, %v7092_v15  ;;  %4625 = vmatpush.bf16.msra.mxu3 %v16462_v9  ;;  %4578 = vmatpush.bf16.msra.mxu2 %v16463_v51  ;;  %v16466_v36 = vld [vmem:[#allocation20_spill] sm:$0xff]  ;;  %v16467_v15 = vld [vmem:[#allocation26_spill] sm:$0xff] }
 0x843   :  { %v7111_v48 = vrot.slane %v4121_v33, 4  ;;  %4343 = vmatmul.bf16.gmra.mxu1 %v14362_v30 }
 0x844   :  { %v7094_v61 = vrot.slane %v7093_v60, 1  ;;  %10538 = vmatmul.lmr.bf16.gmra.16.mxu0  ;;  %4392 = vmatmul.bf16.gmra.mxu2 %v14340_v47 }
 0x845   :  { %v7112_v44 = vmax.f32 %v4121_v33, %v7111_v48  ;;  %4479 = vmatpush.bf16.msra.mxu0 %v16464_v57  ;;  %4530 = vmatpush.bf16.msra.mxu1 %v16465_v38  ;;  %v16471_v57 = vld [vmem:[#allocation33_spill] sm:$0xff]  ;;  %v16472_v38 = vld [vmem:[#allocation23_spill] sm:$0xff] }
 0x846   :  { %v7095_v17 = vmax.f32 %v7093_v60, %v7094_v61  ;;  %4626 = vmatpush.bf16.msra.mxu3 %v16466_v36  ;;  %4579 = vmatpush.bf16.msra.mxu2 %v16467_v15  ;;  %v16473_v60 = vld [vmem:[#allocation30_spill] sm:$0xff] }
 0x847   :  { %v7113_v59 = vrot.slane %v7112_v44, 2  ;;  %v4076_v26 = vpop.f32.mrf.mxu2 }
 0x848   :  { %v14378_v51 = vsel %vm7576_vm3, %v16468_v19, %v7095_v17  ;;  %v4122_v9 = vpop.f32.mrf.mxu3  ;;  %v4029_v41 = vpop.f32.mrf.mxu1  ;;  %v16474_v26 = vld [vmem:[#allocation28_spill] sm:$0xff] }
 0x849   :  { %16469 = vst [vmem:[#allocation6_spill] sm:$0xff] %v14378_v51  ;;  %v7114_v33 = vmax.f32 %v7112_v44, %v7113_v59  ;;  %v3978_v48 = vpop.f32.mrf.mxu0  ;;  %4480 = vmatpush.bf16.msra.mxu0 %v16470_v37  ;;  %4531 = vmatpush.bf16.msra.mxu1 %v16471_v57  ;;  %v14386_v19 = vpop.trf.xlu2  ;;  %v16475_v41 = vld [vmem:[#allocation27_spill] sm:$0xff]  ;;  %v16476_v9 = vld [vmem:[#allocation34_spill] sm:$0xff]  ;;  %v16477_v44 = vld [vmem:[#allocation52_spill] sm:$0xff] }
 0x84a   :  { %4627 = vmatpush.bf16.msra.mxu3 %v16472_v38  ;;  %4580 = vmatpush.bf16.msra.mxu2 %v16473_v60  ;;  %v14394_v48 = vpop.trf.xlu1  ;;  %v16480_v57 = vld [vmem:[#allocation37_spill] sm:$0xff]  ;;  %v16481_v38 = vld [vmem:[#allocation32_spill] sm:$0xff]  ;;  %v16483_v37 = vld [vmem:[#allocation39_spill] sm:$0xff] }
 0x84b   :  { %v7115_v61 = vrot.slane %v7114_v33, 1  ;;  %16479 = vst [vmem:[#allocation38_spill] sm:$0xff] %v14394_v48 }
 0x84c   :  { %10539 = vmatmul.lmr.bf16.gmra.16.mxu0 }
 0x84d   :  { %v7116_v15 = vmax.f32 %v7114_v33, %v7115_v61  ;;  %4441 = vmatmul.bf16.gmra.mxu3 %v14346_v3  ;;  %4481 = vmatpush.bf16.msra.mxu0 %v16474_v26  ;;  %v16482_v26 = vld [vmem:[#allocation31_spill] sm:$0xff] }
 0x84e   :  { %4628 = vmatpush.bf16.msra.mxu3 %v16475_v41  ;;  %4581 = vmatpush.bf16.msra.mxu2 %v16476_v9 }
 0x84f   :  { %v14392_v17 = vsel %vm7576_vm3, %v16477_v44, %v7116_v15  ;;  %v4078_v59 = vpop.f32.mrf.mxu2  ;;  %4532 = vmatpush.bf16.msra.mxu1 %v16480_v57  ;;  %v16484_v15 = vld [vmem:[#allocation36_spill] sm:$0xff]  ;;  %v16485_v44 = vld [vmem:[#allocation42_spill] sm:$0xff] }
 0x850   :  { %16478 = vst [vmem:[#allocation44_spill] sm:$0xff] %v14392_v17  ;;  %v4125_v33 = vpop.f32.mrf.mxu3  ;;  %v4032_v61 = vpop.f32.mrf.mxu1  ;;  %v16486_v59 = vld [vmem:[#allocation35_spill] sm:$0xff] }
 0x851   :  { %v3980_v60 = vpop.f32.mrf.mxu0  ;;  %4482 = vmatpush.bf16.msra.mxu0 %v16481_v38  ;;  %v14410_v9 = vpop.trf.xlu2 }
 0x852   :  { %4629 = vmatpush.bf16.msra.mxu3 %v16482_v26  ;;  %4582 = vmatpush.bf16.msra.mxu2 %v16483_v37  ;;  %v14405_v38 = vpop.trf.xlu1  ;;  %v16487_v26 = vld [vmem:[#allocation41_spill] sm:$0xff]  ;;  %v16488_v37 = vld [vmem:[#allocation40_spill] sm:$0xff] }
 0x853   :  { %4348 = vmatmul.bf16.gmra.mxu1 %v14386_v19 }
 0x854   :  { %10540 = vmatmul.lmr.bf16.gmra.16.mxu0  ;;  %4397 = vmatmul.bf16.gmra.mxu2 %v14355_v50  ;;  %v16502_v50 = vld [vmem:[#allocation53_spill] sm:$0xff] }
 0x855   :  { %4483 = vmatpush.bf16.msra.mxu0 %v16484_v15  ;;  %4533 = vmatpush.bf16.msra.mxu1 %v16485_v44 }
 0x856   :  { %4630 = vmatpush.bf16.msra.mxu3 %v16486_v59 }
 0x857   :  { %v4081_v33 = vpop.f32.mrf.mxu2 }
 0x858   :  { %v4127_v61 = vpop.f32.mrf.mxu3  ;;  %v4034_v60 = vpop.f32.mrf.mxu1 }
 0x859   :  { %v3983_v57 = vpop.f32.mrf.mxu0  ;;  %4484 = vmatpush.bf16.msra.mxu0 %v16487_v26 }
 0x85a   :  { %4631 = vmatpush.bf16.msra.mxu3 %v16488_v37  ;;  %v14413_v33 = vpop.trf.xlu1 }
 0x85b   :  { %16489 = vst [vmem:[#allocation78_spill] sm:$0xff] %v14413_v33 }
 0x85c   :  { %10541 = vmatmul.lmr.bf16.gmra.16.mxu0 }
 0x85d   :  { %4446 = vmatmul.bf16.gmra.mxu3 %v14370_v10 }
 0x85f   :  { %v4083_v17 = vpop.f32.mrf.mxu2 }
 0x860   :  { %v4130_v15 = vpop.f32.mrf.mxu3  ;;  %v4037_v44 = vpop.f32.mrf.mxu1 }
 0x861   :  { %v3985_v41 = vpop.f32.mrf.mxu0  ;;  %v14419_v15 = vpop.trf.xlu2 }
 0x862   :  { %v14417_v17 = vpop.trf.xlu1 }
 0x863   :  { %4353 = vmatmul.bf16.gmra.mxu1 %v14410_v9 }
 0x864   :  { %10542 = vmatmul.lmr.bf16.gmra.16.mxu0  ;;  %4402 = vmatmul.bf16.gmra.mxu2 %v14394_v48  ;;  %v16500_v48 = vld [vmem:[#allocation57_spill] sm:$0xff] }
 0x867   :  { %v4086_v57 = vpop.f32.mrf.mxu2 }
 0x868   :  { %v4132_v61 = vpop.f32.mrf.mxu3  ;;  %v4039_v60 = vpop.f32.mrf.mxu1 }
 0x869   :  { %v3988_v37 = vpop.f32.mrf.mxu0  ;;  %v14426_v36 = vpop.trf.xlu2 }
 0x86a   :  { %v14423_v61 = vpop.trf.xlu1 }
 0x86b   :  { %16490 = vst [vmem:[#allocation43_spill] sm:$0xff] %v14423_v61 }
 0x86c   :  { %10543 = vmatmul.lmr.bf16.gmra.16.mxu0 }
 0x86d   :  { %4451 = vmatmul.bf16.gmra.mxu3 %v14405_v38 }
 0x86f   :  { %v4088_v26 = vpop.f32.mrf.mxu2 }
 0x870   :  { %v4135_v41 = vpop.f32.mrf.mxu3  ;;  %v4042_v44 = vpop.f32.mrf.mxu1 }
 0x871   :  { %v3990_v59 = vpop.f32.mrf.mxu0 }
 0x872   :  { %v14428_v20 = vpop.trf.xlu1 }
 0x873   :  { %4358 = vmatmul.bf16.gmra.mxu1 %v14419_v15 }
 0x874   :  { %10544 = vmatmul.lmr.bf16.gmra.16.mxu0  ;;  %4407 = vmatmul.bf16.gmra.mxu2 %v14413_v33  ;;  %v16496_v33 = vld [vmem:[#allocation47_spill] sm:$0xff] }
 0x877   :  { %v4091_v57 = vpop.f32.mrf.mxu2 }
 0x878   :  { %v4137_v37 = vpop.f32.mrf.mxu3  ;;  %v4044_v60 = vpop.f32.mrf.mxu1 }
 0x879   :  { %v3993_v51 = vpop.f32.mrf.mxu0 }
 0x87a   :  { %v14432_v52 = vpop.trf.xlu1 }
 0x87b   :  { %16491 = vst [vmem:[#allocation4_spill] sm:$0xff] %v14432_v52 }
 0x87c   :  { %10545 = vmatmul.lmr.bf16.gmra.16.mxu0 }
 0x87d   :  { %4456 = vmatmul.bf16.gmra.mxu3 %v14417_v17 }
 0x87f   :  { %v4093_v26 = vpop.f32.mrf.mxu2 }
 0x880   :  { %v4140_v41 = vpop.f32.mrf.mxu3  ;;  %v4047_v44 = vpop.f32.mrf.mxu1 }
 0x881   :  { %v3995_v59 = vpop.f32.mrf.mxu0  ;;  %v14435_v41 = vpop.trf.xlu2 }
 0x883   :  { %4363 = vmatmul.bf16.gmra.mxu1 %v14426_v36 }
 0x884   :  { %10546 = vmatmul.lmr.bf16.gmra.16.mxu0  ;;  %4412 = vmatmul.bf16.gmra.mxu2 %v14423_v61 }
 0x887   :  { %v4096_v57 = vpop.f32.mrf.mxu2 }
 0x888   :  { %v4142_v37 = vpop.f32.mrf.mxu3  ;;  %v4049_v60 = vpop.f32.mrf.mxu1 }
 0x889   :  { %v3998_v51 = vpop.f32.mrf.mxu0  ;;  %v14439_v57 = vpop.trf.xlu1 }
 0x88c   :  { %10547 = vmatmul.lmr.bf16.gmra.16.mxu0 }
 0x88d   :  { %4461 = vmatmul.bf16.gmra.mxu3 %v14428_v20 }
 0x88f   :  { %v4098_v26 = vpop.f32.mrf.mxu2 }
 0x890   :  { %v4145_v44 = vpop.f32.mrf.mxu3  ;;  %v4052_v59 = vpop.f32.mrf.mxu1 }
 0x891   :  { %v4000_v42 = vpop.f32.mrf.mxu0  ;;  %v14442_v26 = vpop.trf.xlu2 }
 0x892   :  { %v14444_v44 = vpop.trf.xlu1 }
 0x893   :  { %4368 = vmatmul.bf16.gmra.mxu1 %v14435_v41  ;;  %16492 = vst [vmem:[#allocation52_spill] sm:$0xff] %v14444_v44 }
 0x894   :  { %10548 = vmatmul.lmr.bf16.gmra.16.mxu0  ;;  %4417 = vmatmul.bf16.gmra.mxu2 %v14432_v52 }
 0x897   :  { %v4101_v37 = vpop.f32.mrf.mxu2 }
 0x898   :  { %v4147_v60 = vpop.f32.mrf.mxu3  ;;  %v4054_v51 = vpop.f32.mrf.mxu1 }
 0x899   :  { %v4003_v31 = vpop.f32.mrf.mxu0 }
 0x89a   :  { %v14448_v45 = vpop.trf.xlu1 }
 0x89c   :  { %10549 = vmatmul.lmr.bf16.gmra.16.mxu0 }
 0x89d   :  { %4466 = vmatmul.bf16.gmra.mxu3 %v14439_v57 }
 0x89f   :  { %v4103_v2 = vpop.f32.mrf.mxu2 }
 0x8a0   :  { %v4150_v42 = vpop.f32.mrf.mxu3  ;;  %v4057_v59 = vpop.f32.mrf.mxu1 }
 0x8a1   :  { %v4005_v24 = vpop.f32.mrf.mxu0  ;;  %v16494_v59 = vld [vmem:[#allocation45_spill] sm:$0xff] }
 0x8a2   :  { %v16493_v24 = vld [vmem:[#allocation46_spill] sm:$0xff] }
 0x8a3   :  { %4373 = vmatmul.bf16.gmra.mxu1 %v14442_v26 }
 0x8a4   :  { %10550 = vmatmul.lmr.bf16.gmra.16.mxu0  ;;  %4422 = vmatmul.bf16.gmra.mxu2 %v14444_v44  ;;  %v16495_v44 = vld [vmem:[#allocation48_spill] sm:$0xff] }
 0x8a7   :  { %v4106_v37 = vpop.f32.mrf.mxu2 }
 0x8a8   :  { %v4152_v60 = vpop.f32.mrf.mxu3  ;;  %v4059_v51 = vpop.f32.mrf.mxu1 }
 0x8a9   :  { %v4008_v31 = vpop.f32.mrf.mxu0 }
 0x8ac   :  { %10551 = vmatmul.lmr.bf16.gmra.16.mxu0 }
 0x8ad   :  { %4471 = vmatmul.bf16.gmra.mxu3 %v14448_v45 }
 0x8af   :  { %v4108_v2 = vpop.f32.mrf.mxu2 }
 0x8b0   :  { %v4155_v52 = vpop.f32.mrf.mxu3  ;;  %v4339_v61 = vpop.f32.mrf.mxu1 }
 0x8b1   :  { %v4010_v42 = vpop.f32.mrf.mxu0 }
 0x8b2   :  { %v16497_v42 = vld [vmem:[#allocation50_spill] sm:$0xff] }
 0x8b3   :  { %10798 = vmatmul.lmr.bf16.vlgmr.msra.gmra.16.mxu1 }
 0x8b4   :  { %10552 = vmatmul.lmr.bf16.gmra.16.mxu0  ;;  %4583 = vmatmul.bf16.vlgmr.msra.gmra.mxu2 %v14337_v27 }
 0x8b5   :  { %4771 = vmatpush.bf16.msra.mxu2 %v16493_v24  ;;  %4722 = vmatpush.bf16.msra.mxu1 %v16494_v59  ;;  %v16498_v59 = vld [vmem:[#allocation49_spill] sm:$0xff] }
 0x8b7   :  { %v4388_v37 = vpop.f32.mrf.mxu2 }
 0x8b8   :  { %v4157_v60 = vpop.f32.mrf.mxu3  ;;  %v4341_v51 = vpop.f32.mrf.mxu1 }
 0x8b9   :  { %v4290_v31 = vpop.f32.mrf.mxu0  ;;  %4772 = vmatpush.bf16.msra.mxu2 %v16495_v44  ;;  %4723 = vmatpush.bf16.msra.mxu1 %v16496_v33  ;;  %v16499_v60 = vld [vmem:[#allocation51_spill] sm:$0xff] }
 0x8ba   :  { %v4340_v2 = vadd.f32 %v4339_v61, %v4290_v31 }
 0x8bb   :  { %10799 = vmatmul.lmr.bf16.gmra.16.mxu1  ;;  %10561 = vllmr.16.mxu0 }
 0x8bc   :  { %v4389_v52 = vadd.f32 %v4388_v37, %v4340_v2  ;;  %4485 = vmatmul.bf16.vlgmr.msra.gmra.mxu0 %v14344_v49  ;;  %v16501_v37 = vld [vmem:[#allocation54_spill] sm:$0xff] }
 0x8bd   :  { %4632 = vmatmul.bf16.vlgmr.msra.gmra.mxu3 %v14344_v49  ;;  %4673 = vmatpush.bf16.msra.mxu0 %v16497_v42 }
 0x8be   :  { %v7196_v24 = vrot.slane %v4389_v52, 4  ;;  %4820 = vmatpush.bf16.msra.mxu3 %v16498_v59  ;;  %4773 = vmatpush.bf16.msra.mxu2 %v16499_v60  ;;  %v16504_v60 = vld [vmem:[#allocation61_spill] sm:$0xff] }
 0x8bf   :  { %v4390_v51 = vpop.f32.mrf.mxu2  ;;  %4724 = vmatpush.bf16.msra.mxu1 %v16500_v48  ;;  %v16508_v48 = vld [vmem:[#allocation65_spill] sm:$0xff] }
 0x8c0   :  { %v7197_v44 = vmax.f32 %v4389_v52, %v7196_v24  ;;  %v14462_v33 = vpop.f32.mrf.mxu3  ;;  %v4344_v61 = vpop.f32.mrf.mxu1  ;;  %v16505_v51 = vld [vmem:[#allocation56_spill] sm:$0xff]  ;;  %v16506_v52 = vld [vmem:[#allocation55_spill] sm:$0xff] }
 0x8c1   :  { %v4292_v31 = vpop.f32.mrf.mxu0  ;;  %4674 = vmatpush.bf16.msra.mxu0 %v16501_v37  ;;  %v16507_v61 = vld [vmem:[#allocation62_spill] sm:$0xff] }
 0x8c2   :  { %v7198_v2 = vrot.slane %v7197_v44, 2  ;;  %4821 = vmatpush.bf16.msra.mxu3 %v16502_v50  ;;  %4774 = vmatpush.bf16.msra.mxu2 %v16503_v39 }
 0x8c3   :  { %10800 = vmatmul.lmr.bf16.gmra.16.mxu1 }
 0x8c4   :  { %v7199_v42 = vmax.f32 %v7197_v44, %v7198_v2  ;;  %4588 = vmatmul.bf16.gmra.mxu2 %v14346_v3  ;;  %4725 = vmatpush.bf16.msra.mxu1 %v16504_v60  ;;  %v16509_v44 = vld [vmem:[#allocation60_spill] sm:$0xff]  ;;  %v16510_v2 = vld [vmem:[#allocation7_spill] sm:$0xff] }
 0x8c5   :  { %4675 = vmatpush.bf16.msra.mxu0 %v16505_v51  ;;  %v16512_v51 = vld [vmem:[#allocation59_spill] sm:$0xff] }
 0x8c6   :  { %v7200_v24 = vrot.slane %v7199_v42, 1  ;;  %4822 = vmatpush.bf16.msra.mxu3 %v16506_v52  ;;  %4775 = vmatpush.bf16.msra.mxu2 %v16507_v61 }
 0x8c7   :  { %v4393_v31 = vpop.f32.mrf.mxu2 }
 0x8c8   :  { %v7201_v37 = vmax.f32 %v7199_v42, %v7200_v24  ;;  %v4439_v59 = vpop.f32.mrf.mxu3  ;;  %v4346_v50 = vpop.f32.mrf.mxu1  ;;  %4726 = vmatpush.bf16.msra.mxu1 %v16508_v48  ;;  %v16514_v31 = vld [vmem:[#allocation69_spill] sm:$0xff] }
 0x8c9   :  { %v4295_v39 = vpop.f32.mrf.mxu0  ;;  %4676 = vmatpush.bf16.msra.mxu0 %v16509_v44  ;;  %v16515_v50 = vld [vmem:[#allocation64_spill] sm:$0xff]  ;;  %v16517_v59 = vld [vmem:[#allocation70_spill] sm:$0xff] }
 0x8ca   :  { %v14476_v60 = vsel %vm7581_vm4, %v16510_v2, %v7201_v37  ;;  %4823 = vmatpush.bf16.msra.mxu3 %v16512_v51  ;;  %4776 = vmatpush.bf16.msra.mxu2 %v16513_v11  ;;  %v16516_v39 = vld [vmem:[#allocation63_spill] sm:$0xff]  ;;  %v16518_v2 = vld [vmem:[#allocation73_spill] sm:$0xff]  ;;  %v16519_v11 = vld [vmem:[#allocation68_spill] sm:$0xff] }
 0x8cb   :  { %16511 = vst [vmem:[#allocation7_spill] sm:$0xff] %v14476_v60  ;;  %10801 = vmatmul.lmr.bf16.gmra.16.mxu1  ;;  %v16520_v60 = vld [vmem:[#allocation67_spill] sm:$0xff]  ;;  %v16521_v44 = vld [vmem:[#allocation74_spill] sm:$0xff] }
 0x8cc   :  { %4490 = vmatmul.bf16.gmra.mxu0 %v14362_v30  ;;  %4727 = vmatpush.bf16.msra.mxu1 %v16514_v31 }
 0x8cd   :  { %4637 = vmatmul.bf16.gmra.mxu3 %v14362_v30  ;;  %4677 = vmatpush.bf16.msra.mxu0 %v16515_v50  ;;  %v16522_v50 = vld [vmem:[#allocation76_spill] sm:$0xff] }
 0x8ce   :  { %4824 = vmatpush.bf16.msra.mxu3 %v16516_v39  ;;  %4777 = vmatpush.bf16.msra.mxu2 %v16517_v59  ;;  %v16523_v39 = vld [vmem:[#allocation72_spill] sm:$0xff]  ;;  %v16524_v59 = vld [vmem:[#allocation71_spill] sm:$0xff] }
 0x8cf   :  { %v4395_v42 = vpop.f32.mrf.mxu2 }
 0x8d0   :  { %v4442_v37 = vpop.f32.mrf.mxu3  ;;  %v4349_v24 = vpop.f32.mrf.mxu1  ;;  %4728 = vmatpush.bf16.msra.mxu1 %v16518_v2 }
 0x8d1   :  { %v4297_v51 = vpop.f32.mrf.mxu0  ;;  %4678 = vmatpush.bf16.msra.mxu0 %v16519_v11  ;;  %v16526_v11 = vld [vmem:[#allocation75_spill] sm:$0xff] }
 0x8d2   :  { %4825 = vmatpush.bf16.msra.mxu3 %v16520_v60  ;;  %4778 = vmatpush.bf16.msra.mxu2 %v16521_v44  ;;  %v16525_v51 = vld [vmem:[#allocation77_spill] sm:$0xff] }
 0x8d3   :  { %10802 = vmatmul.lmr.bf16.gmra.16.mxu1 }
 0x8d4   :  { %4593 = vmatmul.bf16.gmra.mxu2 %v14370_v10  ;;  %4729 = vmatpush.bf16.msra.mxu1 %v16522_v50 }
 0x8d5   :  { %4679 = vmatpush.bf16.msra.mxu0 %v16523_v39 }
 0x8d6   :  { %4826 = vmatpush.bf16.msra.mxu3 %v16524_v59 }
 0x8d7   :  { %v4398_v42 = vpop.f32.mrf.mxu2 }
 0x8d8   :  { %v4444_v37 = vpop.f32.mrf.mxu3  ;;  %v4351_v24 = vpop.f32.mrf.mxu1  ;;  %v9689_v42 = vld [vmem:[%s15843_s0 + $0x908] sm:$0xff] }
 0x8d9   :  { %v4300_v2 = vpop.f32.mrf.mxu0  ;;  %4680 = vmatpush.bf16.msra.mxu0 %v16525_v51  ;;  %v9720_v37 = vld [vmem:[%s15843_s0 + $0xa00] sm:$0xff] }
 0x8da   :  { %4827 = vmatpush.bf16.msra.mxu3 %v16526_v11  ;;  %v9688_v2 = vld [vmem:[%s15843_s0 + $0x900] sm:$0xff] }
 0x8db   :  { %10803 = vmatmul.lmr.bf16.gmra.16.mxu1 }
 0x8dc   :  { %4495 = vmatmul.bf16.gmra.mxu0 %v14386_v19 }
 0x8dd   :  { %4642 = vmatmul.bf16.gmra.mxu3 %v14386_v19 }
 0x8df   :  { %v4400_v44 = vpop.f32.mrf.mxu2 }
 0x8e0   :  { %v4447_v60 = vpop.f32.mrf.mxu3  ;;  %v4354_v50 = vpop.f32.mrf.mxu1  ;;  %v4918_v44 = vpack.c.bf16 %v9689_v42, %v9688_v2  ;;  %v9690_v2 = vld [vmem:[%s15843_s0 + $0x910] sm:$0xff] }
 0x8e1   :  { %v4302_v31 = vpop.f32.mrf.mxu0  ;;  %v9721_v60 = vld [vmem:[%s15843_s0 + $0xa08] sm:$0xff] }
 0x8e2   :  { %v4934_v31 = vpack.c.bf16 %v9721_v60, %v9720_v37 }
 0x8e3   :  { %10804 = vmatmul.lmr.bf16.gmra.16.mxu1 }
 0x8e4   :  { %4598 = vmatmul.bf16.gmra.mxu2 %v14405_v38 }
 0x8e5   :  { %11241 = vxpose.binary.xlu0.c.b16.start [1/16] %v4918_v44, %v4934_v31, 128 }
 0x8e7   :  { %v4403_v50 = vpop.f32.mrf.mxu2 }
 0x8e8   :  { %v4449_v24 = vpop.f32.mrf.mxu3  ;;  %v4356_v11 = vpop.f32.mrf.mxu1 }
 0x8e9   :  { %v4305_v51 = vpop.f32.mrf.mxu0  ;;  %v9691_v11 = vld [vmem:[%s15843_s0 + $0x918] sm:$0xff] }
 0x8ea   :  { %v9722_v51 = vld [vmem:[%s15843_s0 + $0xa10] sm:$0xff] }
 0x8eb   :  { %10805 = vmatmul.lmr.bf16.gmra.16.mxu1 }
 0x8ec   :  { %4500 = vmatmul.bf16.gmra.mxu0 %v14410_v9 }
 0x8ed   :  { %4647 = vmatmul.bf16.gmra.mxu3 %v14410_v9 }
 0x8ef   :  { %v4405_v59 = vpop.f32.mrf.mxu2 }
 0x8f0   :  { %v4452_v39 = vpop.f32.mrf.mxu3  ;;  %v4359_v48 = vpop.f32.mrf.mxu1 }
 0x8f1   :  { %v4307_v61 = vpop.f32.mrf.mxu0  ;;  %v9723_v48 = vld [vmem:[%s15843_s0 + $0xa18] sm:$0xff] }
 0x8f2   :  { %v4919_v61 = vpack.c.bf16 %v9691_v11, %v9690_v2  ;;  %v4935_v39 = vpack.c.bf16 %v9723_v48, %v9722_v51  ;;  %v9692_v2 = vld [vmem:[%s15843_s0 + $0x920] sm:$0xff]  ;;  %v9693_v11 = vld [vmem:[%s15843_s0 + $0x928] sm:$0xff] }
 0x8f3   :  { %10806 = vmatmul.lmr.bf16.gmra.16.mxu1  ;;  %v9724_v51 = vld [vmem:[%s15843_s0 + $0xa20] sm:$0xff]  ;;  %v9725_v48 = vld [vmem:[%s15843_s0 + $0xa28] sm:$0xff] }
 0x8f4   :  { %4603 = vmatmul.bf16.gmra.mxu2 %v14417_v17 }
 0x8f5   :  { %11242 = vxpose.binary.xlu0.c.b16.cont [2/16] %v4919_v61, %v4935_v39, 128  ;;  %v4920_v61 = vpack.c.bf16 %v9693_v11, %v9692_v2  ;;  %v4936_v39 = vpack.c.bf16 %v9725_v48, %v9724_v51  ;;  %v9694_v2 = vld [vmem:[%s15843_s0 + $0x930] sm:$0xff]  ;;  %v9695_v11 = vld [vmem:[%s15843_s0 + $0x938] sm:$0xff] }
 0x8f6   :  { %v9726_v51 = vld [vmem:[%s15843_s0 + $0xa30] sm:$0xff]  ;;  %v9727_v48 = vld [vmem:[%s15843_s0 + $0xa38] sm:$0xff] }
 0x8f7   :  { %v4408_v59 = vpop.f32.mrf.mxu2 }
 0x8f8   :  { %v4454_v42 = vpop.f32.mrf.mxu3  ;;  %v4361_v37 = vpop.f32.mrf.mxu1 }
 0x8f9   :  { %v4310_v60 = vpop.f32.mrf.mxu0 }
 0x8fb   :  { %10807 = vmatmul.lmr.bf16.gmra.16.mxu1 }
 0x8fc   :  { %4505 = vmatmul.bf16.gmra.mxu0 %v14419_v15 }
 0x8fd   :  { %4652 = vmatmul.bf16.gmra.mxu3 %v14419_v15 }
 0x8ff   :  { %v4410_v44 = vpop.f32.mrf.mxu2 }
 0x900   :  { %v4457_v31 = vpop.f32.mrf.mxu3  ;;  %v4364_v50 = vpop.f32.mrf.mxu1 }
 0x901   :  { %v4312_v24 = vpop.f32.mrf.mxu0 }
 0x903   :  { %10808 = vmatmul.lmr.bf16.gmra.16.mxu1 }
 0x904   :  { %4608 = vmatmul.bf16.gmra.mxu2 %v14428_v20 }
 0x905   :  { %11243 = vxpose.binary.xlu0.c.b16.cont [3/16] %v4920_v61, %v4936_v39, 128  ;;  %v4921_v61 = vpack.c.bf16 %v9695_v11, %v9694_v2  ;;  %v4937_v39 = vpack.c.bf16 %v9727_v48, %v9726_v51  ;;  %v9696_v2 = vld [vmem:[%s15843_s0 + $0x940] sm:$0xff]  ;;  %v9697_v11 = vld [vmem:[%s15843_s0 + $0x948] sm:$0xff] }
 0x906   :  { %v9728_v51 = vld [vmem:[%s15843_s0 + $0xa40] sm:$0xff]  ;;  %v9729_v48 = vld [vmem:[%s15843_s0 + $0xa48] sm:$0xff] }
 0x907   :  { %v4413_v59 = vpop.f32.mrf.mxu2 }
 0x908   :  { %v4459_v42 = vpop.f32.mrf.mxu3  ;;  %v4366_v37 = vpop.f32.mrf.mxu1 }
 0x909   :  { %v4315_v60 = vpop.f32.mrf.mxu0 }
 0x90b   :  { %10809 = vmatmul.lmr.bf16.gmra.16.mxu1 }
 0x90c   :  { %4510 = vmatmul.bf16.gmra.mxu0 %v14426_v36 }
 0x90d   :  { %4657 = vmatmul.bf16.gmra.mxu3 %v14426_v36 }
 0x90f   :  { %v4415_v44 = vpop.f32.mrf.mxu2 }
 0x910   :  { %v4462_v31 = vpop.f32.mrf.mxu3  ;;  %v4369_v50 = vpop.f32.mrf.mxu1 }
 0x911   :  { %v4317_v24 = vpop.f32.mrf.mxu0 }
 0x913   :  { %10810 = vmatmul.lmr.bf16.gmra.16.mxu1 }
 0x914   :  { %4613 = vmatmul.bf16.gmra.mxu2 %v14439_v57 }
 0x915   :  { %11244 = vxpose.binary.xlu0.c.b16.cont [4/16] %v4921_v61, %v4937_v39, 128  ;;  %v4922_v61 = vpack.c.bf16 %v9697_v11, %v9696_v2  ;;  %v9698_v2 = vld [vmem:[%s15843_s0 + $0x950] sm:$0xff]  ;;  %v9699_v11 = vld [vmem:[%s15843_s0 + $0x958] sm:$0xff] }
 0x917   :  { %v4418_v59 = vpop.f32.mrf.mxu2 }
 0x918   :  { %v4464_v42 = vpop.f32.mrf.mxu3  ;;  %v4371_v37 = vpop.f32.mrf.mxu1  ;;  %v4938_v59 = vpack.c.bf16 %v9729_v48, %v9728_v51  ;;  %v9730_v51 = vld [vmem:[%s15843_s0 + $0xa50] sm:$0xff] }
 0x919   :  { %v4320_v60 = vpop.f32.mrf.mxu0 }
 0x91b   :  { %10811 = vmatmul.lmr.bf16.gmra.16.mxu1 }
 0x91c   :  { %4515 = vmatmul.bf16.gmra.mxu0 %v14435_v41 }
 0x91d   :  { %4662 = vmatmul.bf16.gmra.mxu3 %v14435_v41 }
 0x91f   :  { %v4420_v44 = vpop.f32.mrf.mxu2 }
 0x920   :  { %v4467_v31 = vpop.f32.mrf.mxu3  ;;  %v4374_v50 = vpop.f32.mrf.mxu1 }
 0x921   :  { %v4322_v24 = vpop.f32.mrf.mxu0 }
 0x923   :  { %10812 = vmatmul.lmr.bf16.gmra.16.mxu1 }
 0x924   :  { %4618 = vmatmul.bf16.gmra.mxu2 %v14448_v45 }
 0x925   :  { %11245 = vxpose.binary.xlu0.c.b16.cont [5/16] %v4922_v61, %v4938_v59, 128 }
 0x927   :  { %v4423_v39 = vpop.f32.mrf.mxu2 }
 0x928   :  { %v4469_v42 = vpop.f32.mrf.mxu3  ;;  %v4376_v37 = vpop.f32.mrf.mxu1 }
 0x929   :  { %v4325_v60 = vpop.f32.mrf.mxu0 }
 0x92b   :  { %10813 = vmatmul.lmr.bf16.gmra.16.mxu1 }
 0x92c   :  { %4520 = vmatmul.bf16.gmra.mxu0 %v14442_v26 }
 0x92d   :  { %4667 = vmatmul.bf16.gmra.mxu3 %v14442_v26 }
 0x92f   :  { %v4425_v44 = vpop.f32.mrf.mxu2 }
 0x930   :  { %v4472_v31 = vpop.f32.mrf.mxu3  ;;  %v4535_v50 = vpop.f32.mrf.mxu1 }
 0x931   :  { %v4327_v24 = vpop.f32.mrf.mxu0 }
 0x933   :  { %4730 = vmatmul.bf16.vlgmr.msra.gmra.mxu1 %v14337_v27  ;;  %v9731_v27 = vld [vmem:[%s15843_s0 + $0xa58] sm:$0xff] }
 0x934   :  { %4779 = vmatmul.bf16.vlgmr.msra.gmra.mxu2 %v14344_v49  ;;  %5039 = vmatpush.bf16.msra.mxu1 %v11514_v63  ;;  %v4923_v49 = vpack.c.bf16 %v9699_v11, %v9698_v2  ;;  %v4939_v48 = vpack.c.bf16 %v9731_v27, %v9730_v51  ;;  %v9700_v27 = vld [vmem:[%s15843_s0 + $0x960] sm:$0xff] }
 0x935   :  { %5088 = vmatpush.bf16.msra.mxu2 %v11525_v4 }
 0x936   :  { %11246 = vxpose.binary.xlu0.c.b16.cont [6/16] %v4923_v49, %v4939_v48, 128  ;;  %v9701_v49 = vld [vmem:[%s15843_s0 + $0x968] sm:$0xff]  ;;  %v9732_v48 = vld [vmem:[%s15843_s0 + $0xa60] sm:$0xff] }
 0x937   :  { %v4584_v61 = vpop.f32.mrf.mxu2 }
 0x938   :  { %v4474_v39 = vpop.f32.mrf.mxu3  ;;  %v4537_v59 = vpop.f32.mrf.mxu1  ;;  %5040 = vmatpush.bf16.msra.mxu1 %v11537_v8 }
 0x939   :  { %v4486_v42 = vpop.f32.mrf.mxu0  ;;  %5089 = vmatpush.bf16.msra.mxu2 %v11549_v12  ;;  %v4924_v39 = vpack.c.bf16 %v9701_v49, %v9700_v27  ;;  %v9702_v27 = vld [vmem:[%s15843_s0 + $0x970] sm:$0xff] }
 0x93a   :  { %v4487_v37 = vadd.f32 %v4486_v42, %v14462_v33  ;;  %v9734_v49 = vld [vmem:[%s15843_s0 + $0xa70] sm:$0xff] }
 0x93c   :  { %v4536_v60 = vadd.f32 %v4535_v50, %v4487_v37  ;;  %10562 = vmatmul.lmr.bf16.vlgmr.msra.gmra.16.mxu0  ;;  %5041 = vmatpush.bf16.msra.mxu1 %v11590_v28 }
 0x93d   :  { %4828 = vmatmul.bf16.vlgmr.msra.gmra.mxu3 %v14333_v54  ;;  %4990 = vmatpush.bf16.msra.mxu0 %v11553_v14 }
 0x93e   :  { %v7217_v44 = vrot.slane %v4536_v60, 4  ;;  %5137 = vmatpush.bf16.msra.mxu3 %v11551_v13  ;;  %5090 = vmatpush.bf16.msra.mxu2 %v11602_v32 }
 0x93f   :  { %v4586_v31 = vpop.f32.mrf.mxu2 }
 0x940   :  { %v7218_v24 = vmax.f32 %v4536_v60, %v7217_v44  ;;  %v4633_v2 = vpop.f32.mrf.mxu3  ;;  %v4540_v11 = vpop.f32.mrf.mxu1  ;;  %5042 = vmatpush.bf16.msra.mxu1 %v11638_v43 }
 0x941   :  { %v14598_v33 = vadd.f32 %v4633_v2, %v4584_v61  ;;  %v4488_v50 = vpop.f32.mrf.mxu0  ;;  %4991 = vmatpush.bf16.msra.mxu0 %v11592_v29  ;;  %v16527_v61 = vld [vmem:[#allocation3_spill] sm:$0xff] }
 0x942   :  { %v7219_v51 = vrot.slane %v7218_v24, 2  ;;  %5138 = vmatpush.bf16.msra.mxu3 %v11575_v22  ;;  %5091 = vmatpush.bf16.msra.mxu2 %v11657_v53 }
 0x943   :  { %4735 = vmatmul.bf16.gmra.mxu1 %v14346_v3  ;;  %v9733_v3 = vld [vmem:[%s15843_s0 + $0xa68] sm:$0xff] }
 0x944   :  { %v7220_v54 = vmax.f32 %v7218_v24, %v7219_v51  ;;  %10563 = vmatmul.lmr.bf16.gmra.16.mxu0  ;;  %4784 = vmatmul.bf16.gmra.mxu2 %v14362_v30  ;;  %v4940_v59 = vpack.c.bf16 %v9733_v3, %v9732_v48  ;;  %v9719_v51 = vld [vmem:[%s15843_s0 + $0x9f8] sm:$0xff] }
 0x945   :  { %4992 = vmatpush.bf16.msra.mxu0 %v16527_v61  ;;  %5043 = vmatpush.bf16.msra.mxu1 %v11676_v58  ;;  %v9735_v48 = vld [vmem:[%s15843_s0 + $0xa78] sm:$0xff] }
 0x946   :  { %v7221_v30 = vrot.slane %v7220_v54, 1  ;;  %5139 = vmatpush.bf16.msra.mxu3 %v11630_v40  ;;  %5092 = vmatpush.bf16.msra.mxu2 %v11694_v0  ;;  %v4941_v3 = vpack.c.bf16 %v9735_v48, %v9734_v49 }
 0x947   :  { %v4589_v42 = vpop.f32.mrf.mxu2  ;;  %11247 = vxpose.binary.xlu0.c.b16.cont [7/16] %v4924_v39, %v4940_v59, 128  ;;  %v9716_v39 = vld [vmem:[%s15843_s0 + $0x9e0] sm:$0xff]  ;;  %v9717_v59 = vld [vmem:[%s15843_s0 + $0x9e8] sm:$0xff] }
 0x948   :  { %v7222_v37 = vmax.f32 %v7220_v54, %v7221_v30  ;;  %v4635_v60 = vpop.f32.mrf.mxu3  ;;  %v4542_v44 = vpop.f32.mrf.mxu1 }
 0x949   :  { %v4491_v31 = vpop.f32.mrf.mxu0  ;;  %4993 = vmatpush.bf16.msra.mxu0 %v11669_v56  ;;  %5044 = vmatpush.bf16.msra.mxu1 %v11713_v7  ;;  %v4932_v60 = vpack.c.bf16 %v9717_v59, %v9716_v39 }
 0x94a   :  { %v14625_v24 = vsel %vm7581_vm4, %v14256_v62, %v7222_v37  ;;  %5140 = vmatpush.bf16.msra.mxu3 %v11667_v55  ;;  %5093 = vmatpush.bf16.msra.mxu2 %v11731_v18  ;;  %v16528_v31 = vld [vmem:[#allocation9_spill] sm:$0xff] }
 0x94c   :  { %10564 = vmatmul.lmr.bf16.gmra.16.mxu0 }
 0x94d   :  { %4833 = vmatmul.bf16.gmra.mxu3 %v14340_v47  ;;  %4994 = vmatpush.bf16.msra.mxu0 %v11707_v6  ;;  %v9718_v47 = vld [vmem:[%s15843_s0 + $0x9f0] sm:$0xff] }
 0x94e   :  { %5045 = vmatpush.bf16.msra.mxu1 %v11746_v25  ;;  %5141 = vmatpush.bf16.msra.mxu3 %v11705_v5  ;;  %v4933_v54 = vpack.c.bf16 %v9719_v51, %v9718_v47  ;;  %v16530_v47 = vld [vmem:[#allocation5_spill] sm:$0xff] }
 0x94f   :  { %v4591_v2 = vpop.f32.mrf.mxu2  ;;  %5094 = vmatpush.bf16.msra.mxu2 %v11767_v35 }
 0x950   :  { %v4638_v11 = vpop.f32.mrf.mxu3  ;;  %v4545_v62 = vpop.f32.mrf.mxu1  ;;  %v9714_v2 = vld [vmem:[%s15843_s0 + $0x9d0] sm:$0xff] }
 0x951   :  { %v4493_v50 = vpop.f32.mrf.mxu0  ;;  %4995 = vmatpush.bf16.msra.mxu0 %v11743_v23  ;;  %v9715_v11 = vld [vmem:[%s15843_s0 + $0x9d8] sm:$0xff]  ;;  %v16529_v62 = vld [vmem:[#allocation8_spill] sm:$0xff] }
 0x952   :  { %5046 = vmatpush.bf16.msra.mxu1 %v16275_v46  ;;  %5142 = vmatpush.bf16.msra.mxu3 %v11741_v21  ;;  %v4931_v50 = vpack.c.bf16 %v9715_v11, %v9714_v2  ;;  %v9707_v11 = vld [vmem:[%s15843_s0 + $0x998] sm:$0xff] }
 0x953   :  { %4740 = vmatmul.bf16.gmra.mxu1 %v14370_v10  ;;  %v9703_v10 = vld [vmem:[%s15843_s0 + $0x978] sm:$0xff]  ;;  %5095 = vmatpush.bf16.msra.mxu2 %v16121_v1 }
 0x954   :  { %10565 = vmatmul.lmr.bf16.gmra.16.mxu0  ;;  %4789 = vmatmul.bf16.gmra.mxu2 %v14386_v19  ;;  %v4925_v19 = vpack.c.bf16 %v9703_v10, %v9702_v27  ;;  %v9713_v27 = vld [vmem:[%s15843_s0 + $0x9c8] sm:$0xff] }
 0x955   :  { %4996 = vmatpush.bf16.msra.mxu0 %v16124_v34 }
 0x956   :  { %10814 = vmatpush.lsf.bf16.msrb.mxu1 %v4933_v54  ;;  %5143 = vmatpush.bf16.msra.mxu3 %v16123_v16 }
 0x957   :  { %v4594_v30 = vpop.f32.mrf.mxu2  ;;  %10960 = vmatpush.lsf.bf16.msrb.mxu2 %v4933_v54 }
 0x958   :  { %v4640_v42 = vpop.f32.mrf.mxu3  ;;  %v4547_v37 = vpop.f32.mrf.mxu1  ;;  %11248 = vxpose.binary.xlu0.c.b16.end [8/16] %v4925_v19, %v4941_v3, 128  ;;  %v9710_v3 = vld [vmem:[%s15843_s0 + $0x9b0] sm:$0xff]  ;;  %v9711_v30 = vld [vmem:[%s15843_s0 + $0x9b8] sm:$0xff] }
 0x959   :  { %10578 = vmatpush.lsf.bf16.msrb.mxu0 %v4933_v54  ;;  %v4496_v44 = vpop.f32.mrf.mxu0  ;;  %v4929_v39 = vpack.c.bf16 %v9711_v30, %v9710_v3  ;;  %v9709_v42 = vld [vmem:[%s15843_s0 + $0x9a8] sm:$0xff] }
 0x95a   :  { %11072 = vmatpush.lsf.bf16.msrb.mxu3 %v4933_v54  ;;  %10815 = vmatpush.lsf.bf16.msrb.mxu1 %v4932_v60  ;;  %v9712_v54 = vld [vmem:[%s15843_s0 + $0x9c0] sm:$0xff] }
 0x95b   :  { %10961 = vmatpush.lsf.bf16.msrb.mxu2 %v4932_v60  ;;  %v4930_v19 = vpack.c.bf16 %v9713_v27, %v9712_v54  ;;  %v9704_v54 = vld [vmem:[%s15843_s0 + $0x980] sm:$0xff]  ;;  %v9705_v27 = vld [vmem:[%s15843_s0 + $0x988] sm:$0xff] }
 0x95c   :  { %10566 = vmatmul.lmr.bf16.gmra.16.mxu0 }
 0x95d   :  { %4997 = vmatpush.bf16.msra.mxu0 %v16528_v31  ;;  %4838 = vmatmul.bf16.gmra.mxu3 %v16530_v47  ;;  %v16586_v31 = vld [vmem:[#allocation61_spill] sm:$0xff] }
 0x95e   :  { %5144 = vmatpush.bf16.msra.mxu3 %v16529_v62  ;;  %10816 = vmatpush.lsf.bf16.msrb.mxu1 %v4931_v50 }
 0x95f   :  { %v4596_v51 = vpop.f32.mrf.mxu2  ;;  %10962 = vmatpush.lsf.bf16.msrb.mxu2 %v4931_v50 }
 0x960   :  { %v4643_v10 = vpop.f32.mrf.mxu3  ;;  %v4550_v49 = vpop.f32.mrf.mxu1 }
 0x961   :  { %10579 = vmatpush.lsf.bf16.msrb.mxu0 %v4932_v60  ;;  %v4498_v48 = vpop.f32.mrf.mxu0 }
 0x962   :  { %11073 = vmatpush.lsf.bf16.msrb.mxu3 %v4932_v60  ;;  %10817 = vmatpush.lsf.bf16.msrb.mxu1 %v4930_v19 }
 0x963   :  { %4745 = vmatmul.bf16.gmra.mxu1 %v14405_v38  ;;  %10963 = vmatpush.lsf.bf16.msrb.mxu2 %v4930_v19  ;;  %v9708_v38 = vld [vmem:[%s15843_s0 + $0x9a0] sm:$0xff] }
 0x964   :  { %10567 = vmatmul.lmr.bf16.gmra.16.mxu0  ;;  %4794 = vmatmul.bf16.gmra.mxu2 %v14410_v9  ;;  %v4928_v2 = vpack.c.bf16 %v9709_v42, %v9708_v38  ;;  %v9706_v9 = vld [vmem:[%s15843_s0 + $0x990] sm:$0xff]  ;;  %v16532_v38 = vld [vmem:[#allocation78_spill] sm:$0xff] }
 0x965   :  { %10580 = vmatpush.lsf.bf16.msrb.mxu0 %v4931_v50  ;;  %v4927_v47 = vpack.c.bf16 %v9707_v11, %v9706_v9  ;;  %v16533_v11 = vld [vmem:[#allocation43_spill] sm:$0xff] }
 0x966   :  { %11074 = vmatpush.lsf.bf16.msrb.mxu3 %v4931_v50  ;;  %10818 = vmatpush.lsf.bf16.msrb.mxu1 %v4929_v39  ;;  %v16531_v50 = vld [vmem:[#allocation38_spill] sm:$0xff] }
 0x967   :  { %v4599_v59 = vpop.f32.mrf.mxu2  ;;  %10964 = vmatpush.lsf.bf16.msrb.mxu2 %v4929_v39 }
 0x968   :  { %v4645_v37 = vpop.f32.mrf.mxu3  ;;  %v4552_v60 = vpop.f32.mrf.mxu1 }
 0x969   :  { %10581 = vmatpush.lsf.bf16.msrb.mxu0 %v4930_v19  ;;  %v4501_v44 = vpop.f32.mrf.mxu0 }
 0x96a   :  { %11075 = vmatpush.lsf.bf16.msrb.mxu3 %v4930_v19  ;;  %10819 = vmatpush.lsf.bf16.msrb.mxu1 %v4928_v2  ;;  %v4926_v19 = vpack.c.bf16 %v9705_v27, %v9704_v54 }
 0x96b   :  { %10965 = vmatpush.lsf.bf16.msrb.mxu2 %v4928_v2 }
 0x96c   :  { %10568 = vmatmul.lmr.bf16.gmra.16.mxu0 }
 0x96d   :  { %10582 = vmatpush.lsf.bf16.msrb.mxu0 %v4929_v39  ;;  %4843 = vmatmul.bf16.gmra.mxu3 %v16531_v50 }
 0x96e   :  { %11076 = vmatpush.lsf.bf16.msrb.mxu3 %v4929_v39  ;;  %10820 = vmatpush.lsf.bf16.msrb.mxu1 %v4927_v47 }
 0x96f   :  { %v4601_v51 = vpop.f32.mrf.mxu2  ;;  %10966 = vmatpush.lsf.bf16.msrb.mxu2 %v4927_v47 }
 0x970   :  { %v4648_v10 = vpop.f32.mrf.mxu3  ;;  %v4555_v49 = vpop.f32.mrf.mxu1 }
 0x971   :  { %10583 = vmatpush.lsf.bf16.msrb.mxu0 %v4928_v2  ;;  %v4503_v48 = vpop.f32.mrf.mxu0 }
 0x972   :  { %11077 = vmatpush.lsf.bf16.msrb.mxu3 %v4928_v2  ;;  %10821 = vmatpush.lsf.bf16.msrb.mxu1 %v4926_v19  ;;  %v16534_v48 = vld [vmem:[#allocation4_spill] sm:$0xff] }
 0x973   :  { %4750 = vmatmul.bf16.gmra.mxu1 %v14417_v17  ;;  %10967 = vmatpush.lsf.bf16.msrb.mxu2 %v4926_v19 }
 0x974   :  { %10569 = vmatmul.lmr.bf16.gmra.16.mxu0  ;;  %4799 = vmatmul.bf16.gmra.mxu2 %v14419_v15 }
 0x975   :  { %10584 = vmatpush.lsf.bf16.msrb.mxu0 %v4927_v47 }
 0x976   :  { %11078 = vmatpush.lsf.bf16.msrb.mxu3 %v4927_v47 }
 0x977   :  { %v4604_v3 = vpop.f32.mrf.mxu2 }
 0x978   :  { %v4650_v30 = vpop.f32.mrf.mxu3  ;;  %v4557_v39 = vpop.f32.mrf.mxu1 }
 0x979   :  { %10585 = vmatpush.lsf.bf16.msrb.mxu0 %v4926_v19  ;;  %v4506_v59 = vpop.f32.mrf.mxu0 }
 0x97a   :  { %11079 = vmatpush.lsf.bf16.msrb.mxu3 %v4926_v19 }
 0x97c   :  { %11080 = vllmr.16.mxu3  ;;  %10570 = vmatmul.lmr.bf16.gmra.16.mxu0 }
 0x97d   :  { %4848 = vmatmul.bf16.gmra.mxu3 %v16532_v38 }
 0x97f   :  { %v4606_v42 = vpop.f32.mrf.mxu2 }
 0x980   :  { %v4653_v17 = vpop.f32.mrf.mxu3  ;;  %v4560_v37 = vpop.f32.mrf.mxu1 }
 0x981   :  { %v4508_v60 = vpop.f32.mrf.mxu0  ;;  %v16535_v37 = vld [vmem:[#allocation52_spill] sm:$0xff] }
 0x982   :  { %10822 = vllmr.16.mxu1 }
 0x983   :  { %10968 = vllmr.16.mxu2  ;;  %4755 = vmatmul.bf16.gmra.mxu1 %v14428_v20 }
 0x984   :  { %10571 = vmatmul.lmr.bf16.gmra.16.mxu0  ;;  %4804 = vmatmul.bf16.gmra.mxu2 %v14426_v36 }
 0x987   :  { %v4609_v15 = vpop.f32.mrf.mxu2 }
 0x988   :  { %v4655_v44 = vpop.f32.mrf.mxu3  ;;  %v4562_v2 = vpop.f32.mrf.mxu1 }
 0x989   :  { %v4511_v9 = vpop.f32.mrf.mxu0 }
 0x98c   :  { %10572 = vmatmul.lmr.bf16.gmra.16.mxu0 }
 0x98d   :  { %4853 = vmatmul.bf16.gmra.mxu3 %v16533_v11 }
 0x98f   :  { %v4611_v50 = vpop.f32.mrf.mxu2 }
 0x990   :  { %v4658_v47 = vpop.f32.mrf.mxu3  ;;  %v4565_v51 = vpop.f32.mrf.mxu1 }
 0x991   :  { %v4513_v54 = vpop.f32.mrf.mxu0 }
 0x993   :  { %4760 = vmatmul.bf16.gmra.mxu1 %v14439_v57 }
 0x994   :  { %10573 = vmatmul.lmr.bf16.gmra.16.mxu0  ;;  %4809 = vmatmul.bf16.gmra.mxu2 %v14435_v41  ;;  %v14716_v20 = vpop.trf.xlu0 }
 0x997   :  { %v4614_v27 = vpop.f32.mrf.mxu2 }
 0x998   :  { %v4660_v36 = vpop.f32.mrf.mxu3  ;;  %v4567_v10 = vpop.f32.mrf.mxu1  ;;  %v16538_v27 = vld [vmem:[#allocation13_spill] sm:$0xff] }
 0x999   :  { %v4516_v49 = vpop.f32.mrf.mxu0  ;;  %v16539_v36 = vld [vmem:[#allocation12_spill] sm:$0xff] }
 0x99c   :  { %10574 = vmatmul.lmr.bf16.gmra.16.mxu0  ;;  %v14719_v19 = vpop.trf.xlu0 }
 0x99d   :  { %4858 = vmatmul.bf16.gmra.mxu3 %v16534_v48 }
 0x99f   :  { %v4616_v3 = vpop.f32.mrf.mxu2 }
 0x9a0   :  { %v4663_v30 = vpop.f32.mrf.mxu3  ;;  %v4570_v39 = vpop.f32.mrf.mxu1  ;;  %v16540_v3 = vld [vmem:[#allocation15_spill] sm:$0xff] }
 0x9a1   :  { %v4518_v59 = vpop.f32.mrf.mxu0  ;;  %v16541_v39 = vld [vmem:[#allocation14_spill] sm:$0xff] }
 0x9a2   :  { %v16542_v59 = vld [vmem:[#allocation16_spill] sm:$0xff] }
 0x9a3   :  { %4765 = vmatmul.bf16.gmra.mxu1 %v14448_v45  ;;  %v16536_v45 = vld [vmem:[#allocation11_spill] sm:$0xff] }
 0x9a4   :  { %10575 = vmatmul.lmr.bf16.gmra.16.mxu0  ;;  %4814 = vmatmul.bf16.gmra.mxu2 %v14442_v26  ;;  %v14723_v57 = vpop.trf.xlu0  ;;  %v16537_v26 = vld [vmem:[#allocation10_spill] sm:$0xff] }
 0x9a7   :  { %v4619_v41 = vpop.f32.mrf.mxu2 }
 0x9a8   :  { %v4665_v38 = vpop.f32.mrf.mxu3  ;;  %v4572_v42 = vpop.f32.mrf.mxu1 }
 0x9a9   :  { %v4521_v17 = vpop.f32.mrf.mxu0  ;;  %v16543_v38 = vld [vmem:[#allocation19_spill] sm:$0xff] }
 0x9ac   :  { %10576 = vmatmul.lmr.bf16.gmra.16.mxu0  ;;  %v14726_v9 = vpop.trf.xlu0 }
 0x9ad   :  { %4863 = vmatmul.bf16.gmra.mxu3 %v16535_v37 }
 0x9af   :  { %v4621_v60 = vpop.f32.mrf.mxu2 }
 0x9b0   :  { %v4668_v15 = vpop.f32.mrf.mxu3  ;;  %v4731_v44 = vpop.f32.mrf.mxu1 }
 0x9b1   :  { %v4523_v2 = vpop.f32.mrf.mxu0  ;;  %v16544_v15 = vld [vmem:[#allocation18_spill] sm:$0xff] }
 0x9b2   :  { %v16545_v2 = vld [vmem:[#allocation17_spill] sm:$0xff] }
 0x9b3   :  { %10823 = vmatmul.lmr.bf16.vlgmr.msra.gmra.16.mxu1 }
 0x9b4   :  { %10577 = vmatmul.lmr.bf16.gmra.16.mxu0  ;;  %5096 = vmatmul.bf16.vlgmr.msra.gmra.mxu2 %v14716_v20  ;;  %v14734_v49 = vpop.trf.xlu0 }
 0x9b5   :  { %5284 = vmatpush.bf16.msra.mxu2 %v16536_v45  ;;  %5235 = vmatpush.bf16.msra.mxu1 %v16537_v26  ;;  %v16583_v45 = vld [vmem:[#allocation50_spill] sm:$0xff] }
 0x9b7   :  { %v4780_v11 = vpop.f32.mrf.mxu2 }
 0x9b8   :  { %v4670_v50 = vpop.f32.mrf.mxu3  ;;  %v4781_v47 = vadd.f32 %v4780_v11, %v4731_v44  ;;  %v4733_v51 = vpop.f32.mrf.mxu1  ;;  %v16546_v11 = vld [vmem:[#allocation22_spill] sm:$0xff] }
 0x9b9   :  { %v4682_v54 = vpop.f32.mrf.mxu0  ;;  %5285 = vmatpush.bf16.msra.mxu2 %v16538_v27  ;;  %5236 = vmatpush.bf16.msra.mxu1 %v16539_v36  ;;  %v16581_v36 = vld [vmem:[#allocation48_spill] sm:$0xff] }
 0x9ba   :  { %v4683_v10 = vadd.f32 %v4682_v54, %v14598_v33  ;;  %v16547_v54 = vld [vmem:[#allocation25_spill] sm:$0xff] }
 0x9bb   :  { %10824 = vmatmul.lmr.bf16.gmra.16.mxu1  ;;  %10586 = vllmr.16.mxu0 }
 0x9bc   :  { %v7238_v48 = vrot.slane %v4683_v10, 4  ;;  %4998 = vmatmul.bf16.vlgmr.msra.gmra.mxu0 %v14719_v19 }
 0x9bd   :  { %5145 = vmatmul.bf16.vlgmr.msra.gmra.mxu3 %v14719_v19  ;;  %5186 = vmatpush.bf16.msra.mxu0 %v16540_v3 }
 0x9be   :  { %v7239_v30 = vmax.f32 %v4683_v10, %v7238_v48  ;;  %5333 = vmatpush.bf16.msra.mxu3 %v16541_v39  ;;  %5286 = vmatpush.bf16.msra.mxu2 %v16542_v59  ;;  %v14747_v48 = vpop.trf.xlu0  ;;  %v16553_v59 = vld [vmem:[#allocation29_spill] sm:$0xff] }
 0x9bf   :  { %v4782_v41 = vpop.f32.mrf.mxu2  ;;  %5237 = vmatpush.bf16.msra.mxu1 %v16543_v38 }
 0x9c0   :  { %v7240_v33 = vrot.slane %v7239_v30, 2  ;;  %v4829_v42 = vpop.f32.mrf.mxu3  ;;  %v4736_v17 = vpop.f32.mrf.mxu1  ;;  %v16548_v41 = vld [vmem:[#allocation21_spill] sm:$0xff] }
 0x9c1   :  { %v4830_v37 = vadd.f32 %v4829_v42, %v4781_v47  ;;  %v4684_v60 = vpop.f32.mrf.mxu0  ;;  %5187 = vmatpush.bf16.msra.mxu0 %v16544_v15  ;;  %v16549_v42 = vld [vmem:[#allocation20_spill] sm:$0xff] }
 0x9c2   :  { %v7241_v44 = vmax.f32 %v7239_v30, %v7240_v33  ;;  %5334 = vmatpush.bf16.msra.mxu3 %v16545_v2  ;;  %5287 = vmatpush.bf16.msra.mxu2 %v16546_v11  ;;  %v16550_v30 = vld [vmem:[#allocation26_spill] sm:$0xff] }
 0x9c3   :  { %v7259_v50 = vrot.slane %v4830_v37, 4  ;;  %10825 = vmatmul.lmr.bf16.gmra.16.mxu1  ;;  %v16551_v60 = vld [vmem:[#allocation6_spill] sm:$0xff] }
 0x9c4   :  { %v7242_v51 = vrot.slane %v7241_v44, 1  ;;  %5101 = vmatmul.bf16.gmra.mxu2 %v14723_v57  ;;  %5238 = vmatpush.bf16.msra.mxu1 %v16547_v54  ;;  %v16554_v54 = vld [vmem:[#allocation24_spill] sm:$0xff] }
 0x9c5   :  { %v7260_v10 = vmax.f32 %v4830_v37, %v7259_v50  ;;  %5188 = vmatpush.bf16.msra.mxu0 %v16548_v41  ;;  %v16555_v41 = vld [vmem:[#allocation23_spill] sm:$0xff] }
 0x9c6   :  { %v7243_v47 = vmax.f32 %v7241_v44, %v7242_v51  ;;  %5335 = vmatpush.bf16.msra.mxu3 %v16549_v42  ;;  %5288 = vmatpush.bf16.msra.mxu2 %v16550_v30  ;;  %v16556_v44 = vld [vmem:[#allocation30_spill] sm:$0xff] }
 0x9c7   :  { %v7261_v33 = vrot.slane %v7260_v10, 2  ;;  %v4785_v17 = vpop.f32.mrf.mxu2 }
 0x9c8   :  { %v14754_v11 = vsel %vm7581_vm4, %v16551_v60, %v7243_v47  ;;  %v4831_v2 = vpop.f32.mrf.mxu3  ;;  %v4738_v15 = vpop.f32.mrf.mxu1  ;;  %5239 = vmatpush.bf16.msra.mxu1 %v16553_v59  ;;  %v16557_v17 = vld [vmem:[#allocation33_spill] sm:$0xff] }
 0x9c9   :  { %16552 = vst [vmem:[#allocation3_spill] sm:$0xff] %v14754_v11  ;;  %v7262_v37 = vmax.f32 %v7260_v10, %v7261_v33  ;;  %v4687_v50 = vpop.f32.mrf.mxu0  ;;  %5189 = vmatpush.bf16.msra.mxu0 %v16554_v54  ;;  %v16558_v15 = vld [vmem:[#allocation28_spill] sm:$0xff]  ;;  %v16559_v2 = vld [vmem:[#allocation27_spill] sm:$0xff]  ;;  %v16560_v10 = vld [vmem:[#allocation34_spill] sm:$0xff] }
 0x9ca   :  { %5336 = vmatpush.bf16.msra.mxu3 %v16555_v41  ;;  %5289 = vmatpush.bf16.msra.mxu2 %v16556_v44  ;;  %v16561_v33 = vld [vmem:[#allocation44_spill] sm:$0xff]  ;;  %v14770_v44 = vpop.trf.xlu0  ;;  %v16563_v11 = vld [vmem:[#allocation37_spill] sm:$0xff] }
 0x9cb   :  { %v7263_v51 = vrot.slane %v7262_v37, 1  ;;  %10826 = vmatmul.lmr.bf16.gmra.16.mxu1 }
 0x9cc   :  { %5003 = vmatmul.bf16.gmra.mxu0 %v14726_v9  ;;  %5240 = vmatpush.bf16.msra.mxu1 %v16557_v17  ;;  %v16565_v17 = vld [vmem:[#allocation31_spill] sm:$0xff] }
 0x9cd   :  { %v7264_v47 = vmax.f32 %v7262_v37, %v7263_v51  ;;  %5150 = vmatmul.bf16.gmra.mxu3 %v14726_v9  ;;  %5190 = vmatpush.bf16.msra.mxu0 %v16558_v15  ;;  %v16564_v51 = vld [vmem:[#allocation32_spill] sm:$0xff]  ;;  %v16566_v15 = vld [vmem:[#allocation39_spill] sm:$0xff] }
 0x9ce   :  { %5337 = vmatpush.bf16.msra.mxu3 %v16559_v2  ;;  %5290 = vmatpush.bf16.msra.mxu2 %v16560_v10  ;;  %v16567_v10 = vld [vmem:[#allocation42_spill] sm:$0xff] }
 0x9cf   :  { %v14768_v60 = vsel %vm7581_vm4, %v16561_v33, %v7264_v47  ;;  %v4787_v50 = vpop.f32.mrf.mxu2  ;;  %v16568_v47 = vld [vmem:[#allocation36_spill] sm:$0xff]  ;;  %v16569_v33 = vld [vmem:[#allocation35_spill] sm:$0xff] }
 0x9d0   :  { %16562 = vst [vmem:[#allocation5_spill] sm:$0xff] %v14768_v60  ;;  %v4834_v41 = vpop.f32.mrf.mxu3  ;;  %v4741_v54 = vpop.f32.mrf.mxu1  ;;  %5241 = vmatpush.bf16.msra.mxu1 %v16563_v11 }
 0x9d1   :  { %v4689_v37 = vpop.f32.mrf.mxu0  ;;  %5191 = vmatpush.bf16.msra.mxu0 %v16564_v51  ;;  %v16570_v51 = vld [vmem:[#allocation41_spill] sm:$0xff] }
 0x9d2   :  { %5338 = vmatpush.bf16.msra.mxu3 %v16565_v17  ;;  %5291 = vmatpush.bf16.msra.mxu2 %v16566_v15  ;;  %v14780_v37 = vpop.trf.xlu0  ;;  %v16571_v17 = vld [vmem:[#allocation40_spill] sm:$0xff] }
 0x9d3   :  { %10827 = vmatmul.lmr.bf16.gmra.16.mxu1 }
 0x9d4   :  { %5106 = vmatmul.bf16.gmra.mxu2 %v14734_v49  ;;  %5242 = vmatpush.bf16.msra.mxu1 %v16567_v10 }
 0x9d5   :  { %5192 = vmatpush.bf16.msra.mxu0 %v16568_v47 }
 0x9d6   :  { %5339 = vmatpush.bf16.msra.mxu3 %v16569_v33 }
 0x9d7   :  { %v4790_v41 = vpop.f32.mrf.mxu2 }
 0x9d8   :  { %v4836_v54 = vpop.f32.mrf.mxu3  ;;  %v4743_v50 = vpop.f32.mrf.mxu1 }
 0x9d9   :  { %v4692_v11 = vpop.f32.mrf.mxu0  ;;  %5193 = vmatpush.bf16.msra.mxu0 %v16570_v51 }
 0x9da   :  { %5340 = vmatpush.bf16.msra.mxu3 %v16571_v17  ;;  %v14786_v41 = vpop.trf.xlu0 }
 0x9db   :  { %10828 = vmatmul.lmr.bf16.gmra.16.mxu1 }
 0x9dc   :  { %5008 = vmatmul.bf16.gmra.mxu0 %v14747_v48 }
 0x9dd   :  { %5155 = vmatmul.bf16.gmra.mxu3 %v14747_v48 }
 0x9df   :  { %v4792_v10 = vpop.f32.mrf.mxu2 }
 0x9e0   :  { %v4839_v15 = vpop.f32.mrf.mxu3  ;;  %v4746_v47 = vpop.f32.mrf.mxu1 }
 0x9e1   :  { %v4694_v60 = vpop.f32.mrf.mxu0 }
 0x9e2   :  { %v14791_v17 = vpop.trf.xlu0 }
 0x9e3   :  { %10829 = vmatmul.lmr.bf16.gmra.16.mxu1 }
 0x9e4   :  { %5111 = vmatmul.bf16.gmra.mxu2 %v14770_v44 }
 0x9e7   :  { %v4795_v11 = vpop.f32.mrf.mxu2 }
 0x9e8   :  { %v4841_v54 = vpop.f32.mrf.mxu3  ;;  %v4748_v50 = vpop.f32.mrf.mxu1 }
 0x9e9   :  { %v4697_v51 = vpop.f32.mrf.mxu0 }
 0x9ea   :  { %v14794_v2 = vpop.trf.xlu0 }
 0x9eb   :  { %10830 = vmatmul.lmr.bf16.gmra.16.mxu1  ;;  %16572 = vst [vmem:[#allocation38_spill] sm:$0xff] %v14794_v2 }
 0x9ec   :  { %5013 = vmatmul.bf16.gmra.mxu0 %v14780_v37 }
 0x9ed   :  { %5160 = vmatmul.bf16.gmra.mxu3 %v14780_v37 }
 0x9ef   :  { %v4797_v10 = vpop.f32.mrf.mxu2 }
 0x9f0   :  { %v4844_v15 = vpop.f32.mrf.mxu3  ;;  %v4751_v47 = vpop.f32.mrf.mxu1 }
 0x9f1   :  { %v4699_v60 = vpop.f32.mrf.mxu0 }
 0x9f2   :  { %v14798_v47 = vpop.trf.xlu0 }
 0x9f3   :  { %10831 = vmatmul.lmr.bf16.gmra.16.mxu1  ;;  %16573 = vst [vmem:[#allocation78_spill] sm:$0xff] %v14798_v47 }
 0x9f4   :  { %5116 = vmatmul.bf16.gmra.mxu2 %v14786_v41 }
 0x9f7   :  { %v4800_v33 = vpop.f32.mrf.mxu2 }
 0x9f8   :  { %v4846_v11 = vpop.f32.mrf.mxu3  ;;  %v4753_v54 = vpop.f32.mrf.mxu1 }
 0x9f9   :  { %v4702_v51 = vpop.f32.mrf.mxu0 }
 0x9fa   :  { %v14801_v54 = vpop.trf.xlu0 }
 0x9fb   :  { %10832 = vmatmul.lmr.bf16.gmra.16.mxu1  ;;  %16574 = vst [vmem:[#allocation43_spill] sm:$0xff] %v14801_v54 }
 0x9fc   :  { %5018 = vmatmul.bf16.gmra.mxu0 %v14791_v17 }
 0x9fd   :  { %5165 = vmatmul.bf16.gmra.mxu3 %v14791_v17 }
 0x9ff   :  { %v4802_v50 = vpop.f32.mrf.mxu2 }
 0xa00   :  { %v4849_v30 = vpop.f32.mrf.mxu3  ;;  %v4756_v10 = vpop.f32.mrf.mxu1 }
 0xa01   :  { %v4704_v15 = vpop.f32.mrf.mxu0 }
 0xa02   :  { %v14806_v15 = vpop.trf.xlu0 }
 0xa03   :  { %10833 = vmatmul.lmr.bf16.gmra.16.mxu1  ;;  %16575 = vst [vmem:[#allocation4_spill] sm:$0xff] %v14806_v15 }
 0xa04   :  { %5121 = vmatmul.bf16.gmra.mxu2 %v14794_v2 }
 0xa07   :  { %v4805_v33 = vpop.f32.mrf.mxu2 }
 0xa08   :  { %v4851_v60 = vpop.f32.mrf.mxu3  ;;  %v4758_v42 = vpop.f32.mrf.mxu1 }
 0xa09   :  { %v4707_v11 = vpop.f32.mrf.mxu0 }
 0xa0a   :  { %v14810_v39 = vpop.trf.xlu0 }
 0xa0b   :  { %10834 = vmatmul.lmr.bf16.gmra.16.mxu1  ;;  %16576 = vst [vmem:[#allocation52_spill] sm:$0xff] %v14810_v39 }
 0xa0c   :  { %5023 = vmatmul.bf16.gmra.mxu0 %v14798_v47 }
 0xa0d   :  { %5170 = vmatmul.bf16.gmra.mxu3 %v14798_v47 }
 0xa0f   :  { %v4807_v51 = vpop.f32.mrf.mxu2 }
 0xa10   :  { %v4854_v30 = vpop.f32.mrf.mxu3  ;;  %v4761_v50 = vpop.f32.mrf.mxu1 }
 0xa11   :  { %v4709_v10 = vpop.f32.mrf.mxu0 }
 0xa13   :  { %10835 = vmatmul.lmr.bf16.gmra.16.mxu1 }
 0xa14   :  { %5126 = vmatmul.bf16.gmra.mxu2 %v14801_v54 }
 0xa17   :  { %v4810_v33 = vpop.f32.mrf.mxu2 }
 0xa18   :  { %v4856_v60 = vpop.f32.mrf.mxu3  ;;  %v4763_v42 = vpop.f32.mrf.mxu1 }
 0xa19   :  { %v4712_v11 = vpop.f32.mrf.mxu0  ;;  %v14813_v42 = vpop.trf.xlu0 }
 0xa1a   :  { %16577 = vst [vmem:[#allocation6_spill] sm:$0xff] %v14813_v42 }
 0xa1b   :  { %10836 = vmatmul.lmr.bf16.gmra.16.mxu1 }
 0xa1c   :  { %5028 = vmatmul.bf16.gmra.mxu0 %v14806_v15 }
 0xa1d   :  { %5175 = vmatmul.bf16.gmra.mxu3 %v14806_v15 }
 0xa1f   :  { %v4812_v59 = vpop.f32.mrf.mxu2 }
 0xa20   :  { %v4859_v51 = vpop.f32.mrf.mxu3  ;;  %v4766_v30 = vpop.f32.mrf.mxu1 }
 0xa21   :  { %v4714_v50 = vpop.f32.mrf.mxu0  ;;  %v16578_v30 = vld [vmem:[#allocation45_spill] sm:$0xff] }
 0xa23   :  { %10837 = vmatmul.lmr.bf16.gmra.16.mxu1 }
 0xa24   :  { %5131 = vmatmul.bf16.gmra.mxu2 %v14810_v39 }
 0xa27   :  { %v4815_v10 = vpop.f32.mrf.mxu2 }
 0xa28   :  { %v4861_v3 = vpop.f32.mrf.mxu3  ;;  %v4768_v33 = vpop.f32.mrf.mxu1 }
 0xa29   :  { %v4717_v60 = vpop.f32.mrf.mxu0  ;;  %v16579_v3 = vld [vmem:[#allocation46_spill] sm:$0xff] }
 0xa2a   :  { %v16580_v60 = vld [vmem:[#allocation47_spill] sm:$0xff] }
 0xa2b   :  { %10838 = vmatmul.lmr.bf16.gmra.16.mxu1 }
 0xa2c   :  { %5033 = vmatmul.bf16.gmra.mxu0 %v14813_v42 }
 0xa2d   :  { %5180 = vmatmul.bf16.gmra.mxu3 %v14813_v42 }
 0xa2f   :  { %v4817_v59 = vpop.f32.mrf.mxu2 }
 0xa30   :  { %v4864_v11 = vpop.f32.mrf.mxu3  ;;  %v5048_v38 = vpop.f32.mrf.mxu1 }
 0xa31   :  { %v4719_v51 = vpop.f32.mrf.mxu0 }
 0xa32   :  { %v16582_v51 = vld [vmem:[#allocation57_spill] sm:$0xff] }
 0xa33   :  { %5243 = vmatmul.bf16.vlgmr.msra.gmra.mxu1 %v14716_v20 }
 0xa34   :  { %5292 = vmatmul.bf16.vlgmr.msra.gmra.mxu2 %v14719_v19  ;;  %5431 = vmatpush.bf16.msra.mxu1 %v16578_v30  ;;  %v16584_v30 = vld [vmem:[#allocation49_spill] sm:$0xff] }
 0xa35   :  { %5480 = vmatpush.bf16.msra.mxu2 %v16579_v3  ;;  %v16585_v3 = vld [vmem:[#allocation51_spill] sm:$0xff] }
 0xa37   :  { %v5097_v50 = vpop.f32.mrf.mxu2 }
 0xa38   :  { %v4866_v10 = vpop.f32.mrf.mxu3  ;;  %v5050_v33 = vpop.f32.mrf.mxu1  ;;  %5432 = vmatpush.bf16.msra.mxu1 %v16580_v60 }
 0xa39   :  { %v4999_v27 = vpop.f32.mrf.mxu0  ;;  %5481 = vmatpush.bf16.msra.mxu2 %v16581_v36  ;;  %v9754_v36 = vld [vmem:[%s15843_s0 + $0xb10] sm:$0xff] }
 0xa3a   :  { %v5049_v59 = vadd.f32 %v5048_v38, %v4999_v27  ;;  %v16587_v38 = vld [vmem:[#allocation54_spill] sm:$0xff] }
 0xa3c   :  { %v5098_v11 = vadd.f32 %v5097_v50, %v5049_v59  ;;  %10587 = vmatmul.lmr.bf16.vlgmr.msra.gmra.16.mxu0  ;;  %5433 = vmatpush.bf16.msra.mxu1 %v16582_v51  ;;  %v16588_v59 = vld [vmem:[#allocation53_spill] sm:$0xff]  ;;  %v16589_v51 = vld [vmem:[#allocation58_spill] sm:$0xff] }
 0xa3d   :  { %11081 = vmatmul.lmr.bf16.vlgmr.msra.gmra.16.mxu3  ;;  %5382 = vmatpush.bf16.msra.mxu0 %v16583_v45  ;;  %v16597_v45 = vld [vmem:[#allocation66_spill] sm:$0xff] }
 0xa3e   :  { %v7344_v26 = vrot.slane %v5098_v11, 4  ;;  %5529 = vmatpush.bf16.msra.mxu3 %v16584_v30  ;;  %5482 = vmatpush.bf16.msra.mxu2 %v16585_v3 }
 0xa3f   :  { %v5099_v10 = vpop.f32.mrf.mxu2 }
 0xa40   :  { %v7345_v33 = vmax.f32 %v5098_v11, %v7344_v26  ;;  %v14827_v62 = vpop.f32.mrf.mxu3  ;;  %v5053_v60 = vpop.f32.mrf.mxu1  ;;  %5434 = vmatpush.bf16.msra.mxu1 %v16586_v31  ;;  %v16590_v26 = vld [vmem:[#allocation56_spill] sm:$0xff]  ;;  %v16591_v11 = vld [vmem:[#allocation62_spill] sm:$0xff] }
 0xa41   :  { %v5001_v27 = vpop.f32.mrf.mxu0  ;;  %5383 = vmatpush.bf16.msra.mxu0 %v16587_v38 }
 0xa42   :  { %v7346_v50 = vrot.slane %v7345_v33, 2  ;;  %5530 = vmatpush.bf16.msra.mxu3 %v16588_v59  ;;  %5483 = vmatpush.bf16.msra.mxu2 %v16589_v51  ;;  %v16592_v27 = vld [vmem:[#allocation65_spill] sm:$0xff] }
 0xa43   :  { %5248 = vmatmul.bf16.gmra.mxu1 %v14723_v57 }
 0xa44   :  { %v7347_v30 = vmax.f32 %v7345_v33, %v7346_v50  ;;  %10588 = vmatmul.lmr.bf16.gmra.16.mxu0  ;;  %5297 = vmatmul.bf16.gmra.mxu2 %v14726_v9  ;;  %v16593_v33 = vld [vmem:[#allocation60_spill] sm:$0xff]  ;;  %v16594_v50 = vld [vmem:[#allocation7_spill] sm:$0xff] }
 0xa45   :  { %11082 = vmatmul.lmr.bf16.gmra.16.mxu3  ;;  %5384 = vmatpush.bf16.msra.mxu0 %v16590_v26  ;;  %v16596_v26 = vld [vmem:[#allocation59_spill] sm:$0xff] }
 0xa46   :  { %v7348_v60 = vrot.slane %v7347_v30, 1  ;;  %5531 = vmatpush.bf16.msra.mxu3 %v16506_v52  ;;  %5484 = vmatpush.bf16.msra.mxu2 %v16591_v11  ;;  %v16598_v52 = vld [vmem:[#allocation69_spill] sm:$0xff] }
 0xa47   :  { %v5102_v10 = vpop.f32.mrf.mxu2  ;;  %5435 = vmatpush.bf16.msra.mxu1 %v16592_v27  ;;  %v9752_v27 = vld [vmem:[%s15843_s0 + $0xb00] sm:$0xff] }
 0xa48   :  { %v7349_v31 = vmax.f32 %v7347_v30, %v7348_v60  ;;  %v5148_v51 = vpop.f32.mrf.mxu3  ;;  %v5055_v59 = vpop.f32.mrf.mxu1  ;;  %v16599_v10 = vld [vmem:[#allocation64_spill] sm:$0xff]  ;;  %v16600_v30 = vld [vmem:[#allocation63_spill] sm:$0xff] }
 0xa49   :  { %v5004_v38 = vpop.f32.mrf.mxu0  ;;  %5385 = vmatpush.bf16.msra.mxu0 %v16593_v33  ;;  %v16601_v51 = vld [vmem:[#allocation70_spill] sm:$0xff]  ;;  %v16602_v59 = vld [vmem:[#allocation73_spill] sm:$0xff] }
 0xa4a   :  { %v14842_v3 = vsel %vm7586_vm5, %v16594_v50, %v7349_v31  ;;  %5532 = vmatpush.bf16.msra.mxu3 %v16596_v26  ;;  %5485 = vmatpush.bf16.msra.mxu2 %v16597_v45  ;;  %v16604_v26 = vld [vmem:[#allocation67_spill] sm:$0xff]  ;;  %v16605_v45 = vld [vmem:[#allocation74_spill] sm:$0xff] }
 0xa4b   :  { %16595 = vst [vmem:[#allocation44_spill] sm:$0xff] %v14842_v3  ;;  %5436 = vmatpush.bf16.msra.mxu1 %v16598_v52  ;;  %v16603_v3 = vld [vmem:[#allocation68_spill] sm:$0xff] }
 0xa4c   :  { %10589 = vmatmul.lmr.bf16.gmra.16.mxu0 }
 0xa4d   :  { %11083 = vmatmul.lmr.bf16.gmra.16.mxu3  ;;  %5386 = vmatpush.bf16.msra.mxu0 %v16599_v10 }
 0xa4e   :  { %5533 = vmatpush.bf16.msra.mxu3 %v16600_v30  ;;  %5486 = vmatpush.bf16.msra.mxu2 %v16601_v51  ;;  %v16606_v30 = vld [vmem:[#allocation72_spill] sm:$0xff]  ;;  %v16609_v51 = vld [vmem:[#allocation77_spill] sm:$0xff] }
 0xa4f   :  { %v5104_v38 = vpop.f32.mrf.mxu2  ;;  %5437 = vmatpush.bf16.msra.mxu1 %v16602_v59  ;;  %v16608_v59 = vld [vmem:[#allocation76_spill] sm:$0xff] }
 0xa50   :  { %v5151_v60 = vpop.f32.mrf.mxu3  ;;  %v5058_v31 = vpop.f32.mrf.mxu1  ;;  %v16607_v38 = vld [vmem:[#allocation71_spill] sm:$0xff] }
 0xa51   :  { %v5006_v50 = vpop.f32.mrf.mxu0  ;;  %5387 = vmatpush.bf16.msra.mxu0 %v16603_v3 }
 0xa52   :  { %5534 = vmatpush.bf16.msra.mxu3 %v16604_v26  ;;  %5487 = vmatpush.bf16.msra.mxu2 %v16605_v45  ;;  %v16610_v26 = vld [vmem:[#allocation75_spill] sm:$0xff] }
 0xa53   :  { %5253 = vmatmul.bf16.gmra.mxu1 %v14734_v49 }
 0xa54   :  { %10590 = vmatmul.lmr.bf16.gmra.16.mxu0  ;;  %5302 = vmatmul.bf16.gmra.mxu2 %v14747_v48 }
 0xa55   :  { %11084 = vmatmul.lmr.bf16.gmra.16.mxu3  ;;  %5388 = vmatpush.bf16.msra.mxu0 %v16606_v30 }
 0xa56   :  { %5535 = vmatpush.bf16.msra.mxu3 %v16607_v38  ;;  %5438 = vmatpush.bf16.msra.mxu1 %v16608_v59 }
 0xa57   :  { %v5107_v60 = vpop.f32.mrf.mxu2 }
 0xa58   :  { %v5153_v31 = vpop.f32.mrf.mxu3  ;;  %v5060_v50 = vpop.f32.mrf.mxu1  ;;  %v9737_v60 = vld [vmem:[%s15843_s0 + $0xa88] sm:$0xff] }
 0xa59   :  { %v5009_v3 = vpop.f32.mrf.mxu0  ;;  %5389 = vmatpush.bf16.msra.mxu0 %v16609_v51 }
 0xa5a   :  { %5536 = vmatpush.bf16.msra.mxu3 %v16610_v26  ;;  %v9736_v3 = vld [vmem:[%s15843_s0 + $0xa80] sm:$0xff] }
 0xa5c   :  { %10591 = vmatmul.lmr.bf16.gmra.16.mxu0 }
 0xa5d   :  { %11085 = vmatmul.lmr.bf16.gmra.16.mxu3 }
 0xa5f   :  { %v5109_v45 = vpop.f32.mrf.mxu2 }
 0xa60   :  { %v5156_v10 = vpop.f32.mrf.mxu3  ;;  %v5063_v52 = vpop.f32.mrf.mxu1  ;;  %v9768_v45 = vld [vmem:[%s15843_s0 + $0xb80] sm:$0xff] }
 0xa61   :  { %v5011_v33 = vpop.f32.mrf.mxu0  ;;  %v9769_v52 = vld [vmem:[%s15843_s0 + $0xb88] sm:$0xff] }
 0xa62   :  { %v14875_v33 = vpack.c.bf16 %v9737_v60, %v9736_v3  ;;  %v14877_v31 = vpack.c.bf16 %v9769_v52, %v9768_v45  ;;  %v9753_v3 = vld [vmem:[%s15843_s0 + $0xb08] sm:$0xff] }
 0xa63   :  { %5258 = vmatmul.bf16.gmra.mxu1 %v14770_v44  ;;  %v5635_v45 = vpack.c.bf16 %v9753_v3, %v9752_v27  ;;  %v9771_v27 = vld [vmem:[%s15843_s0 + $0xb98] sm:$0xff] }
 0xa64   :  { %10592 = vmatmul.lmr.bf16.gmra.16.mxu0  ;;  %5307 = vmatmul.bf16.gmra.mxu2 %v14780_v37 }
 0xa65   :  { %11086 = vmatmul.lmr.bf16.gmra.16.mxu3  ;;  %5667 = vxpose.xlu2.c.b16.start [1/8] %v5635_v45, 128 }
 0xa66   :  { %11265 = vxpose.binary.xlu1.c.b16.start [1/16] %v14875_v33, %v14877_v31, 128 }
 0xa67   :  { %v5112_v10 = vpop.f32.mrf.mxu2 }
 0xa68   :  { %v5158_v50 = vpop.f32.mrf.mxu3  ;;  %v5065_v26 = vpop.f32.mrf.mxu1 }
 0xa69   :  { %v5014_v51 = vpop.f32.mrf.mxu0  ;;  %v9738_v26 = vld [vmem:[%s15843_s0 + $0xa90] sm:$0xff] }
 0xa6a   :  { %v9770_v51 = vld [vmem:[%s15843_s0 + $0xb90] sm:$0xff] }
 0xa6b   :  { %v14903_v52 = vpack.c.bf16 %v9771_v27, %v9770_v51  ;;  %v9741_v27 = vld [vmem:[%s15843_s0 + $0xaa8] sm:$0xff] }
 0xa6c   :  { %10593 = vmatmul.lmr.bf16.gmra.16.mxu0 }
 0xa6d   :  { %11087 = vmatmul.lmr.bf16.gmra.16.mxu3 }
 0xa6f   :  { %v5114_v38 = vpop.f32.mrf.mxu2 }
 0xa70   :  { %v5161_v30 = vpop.f32.mrf.mxu3  ;;  %v5068_v59 = vpop.f32.mrf.mxu1 }
 0xa71   :  { %v5016_v60 = vpop.f32.mrf.mxu0  ;;  %v9739_v30 = vld [vmem:[%s15843_s0 + $0xa98] sm:$0xff] }
 0xa72   :  { %v14901_v59 = vpack.c.bf16 %v9739_v30, %v9738_v26  ;;  %v9755_v26 = vld [vmem:[%s15843_s0 + $0xb18] sm:$0xff] }
 0xa73   :  { %5263 = vmatmul.bf16.gmra.mxu1 %v14786_v41  ;;  %v5636_v51 = vpack.c.bf16 %v9755_v26, %v9754_v36  ;;  %v9773_v36 = vld [vmem:[%s15843_s0 + $0xba8] sm:$0xff] }
 0xa74   :  { %10594 = vmatmul.lmr.bf16.gmra.16.mxu0  ;;  %5312 = vmatmul.bf16.gmra.mxu2 %v14791_v17 }
 0xa75   :  { %11088 = vmatmul.lmr.bf16.gmra.16.mxu3  ;;  %5668 = vxpose.xlu2.c.b16.cont [2/8] %v5636_v51, 128 }
 0xa76   :  { %11266 = vxpose.binary.xlu1.c.b16.cont [2/16] %v14901_v59, %v14903_v52, 128 }
 0xa77   :  { %v5117_v38 = vpop.f32.mrf.mxu2 }
 0xa78   :  { %v5163_v10 = vpop.f32.mrf.mxu3  ;;  %v5070_v50 = vpop.f32.mrf.mxu1  ;;  %v9772_v38 = vld [vmem:[%s15843_s0 + $0xba0] sm:$0xff] }
 0xa79   :  { %v5019_v3 = vpop.f32.mrf.mxu0 }
 0xa7a   :  { %v14929_v3 = vpack.c.bf16 %v9773_v36, %v9772_v38  ;;  %v9743_v36 = vld [vmem:[%s15843_s0 + $0xab8] sm:$0xff] }
 0xa7c   :  { %10595 = vmatmul.lmr.bf16.gmra.16.mxu0 }
 0xa7d   :  { %11089 = vmatmul.lmr.bf16.gmra.16.mxu3 }
 0xa7f   :  { %v5119_v60 = vpop.f32.mrf.mxu2 }
 0xa80   :  { %v5166_v45 = vpop.f32.mrf.mxu3  ;;  %v5073_v11 = vpop.f32.mrf.mxu1 }
 0xa81   :  { %v5021_v30 = vpop.f32.mrf.mxu0  ;;  %v9740_v11 = vld [vmem:[%s15843_s0 + $0xaa0] sm:$0xff] }
 0xa82   :  { %v14927_v10 = vpack.c.bf16 %v9741_v27, %v9740_v11  ;;  %v9757_v11 = vld [vmem:[%s15843_s0 + $0xb28] sm:$0xff] }
 0xa83   :  { %5268 = vmatmul.bf16.gmra.mxu1 %v14794_v2 }
 0xa84   :  { %10596 = vmatmul.lmr.bf16.gmra.16.mxu0  ;;  %5317 = vmatmul.bf16.gmra.mxu2 %v14798_v47  ;;  %v9756_v47 = vld [vmem:[%s15843_s0 + $0xb20] sm:$0xff] }
 0xa85   :  { %11090 = vmatmul.lmr.bf16.gmra.16.mxu3  ;;  %v5637_v38 = vpack.c.bf16 %v9757_v11, %v9756_v47  ;;  %v9775_v47 = vld [vmem:[%s15843_s0 + $0xbb8] sm:$0xff] }
 0xa86   :  { %11267 = vxpose.binary.xlu1.c.b16.cont [3/16] %v14927_v10, %v14929_v3, 128 }
 0xa87   :  { %v5122_v50 = vpop.f32.mrf.mxu2  ;;  %5669 = vxpose.xlu2.c.b16.cont [3/8] %v5637_v38, 128 }
 0xa88   :  { %v5168_v60 = vpop.f32.mrf.mxu3  ;;  %v5075_v45 = vpop.f32.mrf.mxu1  ;;  %v9774_v50 = vld [vmem:[%s15843_s0 + $0xbb0] sm:$0xff] }
 0xa89   :  { %v5024_v26 = vpop.f32.mrf.mxu0 }
 0xa8a   :  { %v14955_v26 = vpack.c.bf16 %v9775_v47, %v9774_v50  ;;  %v9745_v47 = vld [vmem:[%s15843_s0 + $0xac8] sm:$0xff] }
 0xa8c   :  { %10597 = vmatmul.lmr.bf16.gmra.16.mxu0 }
 0xa8d   :  { %11091 = vmatmul.lmr.bf16.gmra.16.mxu3 }
 0xa8f   :  { %v5124_v30 = vpop.f32.mrf.mxu2 }
 0xa90   :  { %v5171_v51 = vpop.f32.mrf.mxu3  ;;  %v5078_v2 = vpop.f32.mrf.mxu1 }
 0xa91   :  { %v5026_v27 = vpop.f32.mrf.mxu0  ;;  %v9742_v2 = vld [vmem:[%s15843_s0 + $0xab0] sm:$0xff] }
 0xa92   :  { %v14953_v60 = vpack.c.bf16 %v9743_v36, %v9742_v2  ;;  %v9759_v2 = vld [vmem:[%s15843_s0 + $0xb38] sm:$0xff] }
 0xa93   :  { %5273 = vmatmul.bf16.gmra.mxu1 %v14801_v54 }
 0xa94   :  { %10598 = vmatmul.lmr.bf16.gmra.16.mxu0  ;;  %5322 = vmatmul.bf16.gmra.mxu2 %v14806_v15  ;;  %v9758_v15 = vld [vmem:[%s15843_s0 + $0xb30] sm:$0xff] }
 0xa95   :  { %11092 = vmatmul.lmr.bf16.gmra.16.mxu3  ;;  %v5638_v50 = vpack.c.bf16 %v9759_v2, %v9758_v15  ;;  %v9777_v15 = vld [vmem:[%s15843_s0 + $0xbc8] sm:$0xff] }
 0xa96   :  { %11268 = vxpose.binary.xlu1.c.b16.cont [4/16] %v14953_v60, %v14955_v26, 128 }
 0xa97   :  { %v5127_v45 = vpop.f32.mrf.mxu2  ;;  %5670 = vxpose.xlu2.c.b16.cont [4/8] %v5638_v50, 128 }
 0xa98   :  { %v5173_v30 = vpop.f32.mrf.mxu3  ;;  %v5080_v51 = vpop.f32.mrf.mxu1  ;;  %v9776_v45 = vld [vmem:[%s15843_s0 + $0xbc0] sm:$0xff] }
 0xa99   :  { %v5029_v11 = vpop.f32.mrf.mxu0 }
 0xa9a   :  { %v14981_v11 = vpack.c.bf16 %v9777_v15, %v9776_v45  ;;  %v9746_v15 = vld [vmem:[%s15843_s0 + $0xad0] sm:$0xff] }
 0xa9c   :  { %10599 = vmatmul.lmr.bf16.gmra.16.mxu0 }
 0xa9d   :  { %11093 = vmatmul.lmr.bf16.gmra.16.mxu3 }
 0xa9f   :  { %v5129_v27 = vpop.f32.mrf.mxu2 }
 0xaa0   :  { %v5176_v38 = vpop.f32.mrf.mxu3  ;;  %v5083_v54 = vpop.f32.mrf.mxu1 }
 0xaa1   :  { %v5031_v36 = vpop.f32.mrf.mxu0  ;;  %v9744_v54 = vld [vmem:[%s15843_s0 + $0xac0] sm:$0xff] }
 0xaa2   :  { %v14979_v30 = vpack.c.bf16 %v9745_v47, %v9744_v54  ;;  %v9761_v54 = vld [vmem:[%s15843_s0 + $0xb48] sm:$0xff] }
 0xaa3   :  { %5278 = vmatmul.bf16.gmra.mxu1 %v14810_v39 }
 0xaa4   :  { %10600 = vmatmul.lmr.bf16.gmra.16.mxu0  ;;  %5327 = vmatmul.bf16.gmra.mxu2 %v14813_v42  ;;  %v9760_v42 = vld [vmem:[%s15843_s0 + $0xb40] sm:$0xff] }
 0xaa5   :  { %11094 = vmatmul.lmr.bf16.gmra.16.mxu3  ;;  %v5639_v45 = vpack.c.bf16 %v9761_v54, %v9760_v42 }
 0xaa6   :  { %11269 = vxpose.binary.xlu1.c.b16.cont [5/16] %v14979_v30, %v14981_v11, 128 }
 0xaa7   :  { %v5132_v51 = vpop.f32.mrf.mxu2  ;;  %5671 = vxpose.xlu2.c.b16.cont [5/8] %v5639_v45, 128 }
 0xaa8   :  { %v5178_v27 = vpop.f32.mrf.mxu3  ;;  %v5085_v38 = vpop.f32.mrf.mxu1  ;;  %v9747_v51 = vld [vmem:[%s15843_s0 + $0xad8] sm:$0xff] }
 0xaa9   :  { %v5034_v2 = vpop.f32.mrf.mxu0  ;;  %v9778_v27 = vld [vmem:[%s15843_s0 + $0xbd0] sm:$0xff]  ;;  %v15006_v38 = vpack.c.bf16 %v9747_v51, %v9746_v15  ;;  %v9748_v51 = vld [vmem:[%s15843_s0 + $0xae0] sm:$0xff] }
 0xaac   :  { %10601 = vmatmul.lmr.bf16.gmra.16.mxu0 }
 0xaad   :  { %11095 = vmatmul.lmr.bf16.gmra.16.mxu3 }
 0xaaf   :  { %v5134_v36 = vpop.f32.mrf.mxu2 }
 0xab0   :  { %v5181_v50 = vpop.f32.mrf.mxu3  ;;  %v5244_v39 = vpop.f32.mrf.mxu1 }
 0xab1   :  { %v5036_v47 = vpop.f32.mrf.mxu0 }
 0xab3   :  { %5439 = vmatmul.bf16.vlgmr.msra.gmra.mxu1 %v14719_v19  ;;  %v9779_v19 = vld [vmem:[%s15843_s0 + $0xbd8] sm:$0xff] }
 0xab4   :  { %10602 = vmatmul.lmr.bf16.gmra.16.mxu0  ;;  %10969 = vmatmul.lmr.bf16.vlgmr.msra.gmra.16.mxu2  ;;  %v15008_v2 = vpack.c.bf16 %v9779_v19, %v9778_v27  ;;  %v9749_v27 = vld [vmem:[%s15843_s0 + $0xae8] sm:$0xff] }
 0xab5   :  { %11096 = vmatmul.lmr.bf16.gmra.16.mxu3  ;;  %5797 = vmatpush.bf16.msra.mxu2 %v11525_v4  ;;  %v5633_v19 = vpack.c.bf16 %v9749_v27, %v9748_v51 }
 0xab6   :  { %5748 = vmatpush.bf16.msra.mxu1 %v11514_v63 }
 0xab7   :  { %v5293_v42 = vpop.f32.mrf.mxu2  ;;  %11270 = vxpose.binary.xlu1.c.b16.cont [6/16] %v15006_v38, %v15008_v2, 128 }
 0xab8   :  { %v5183_v36 = vpop.f32.mrf.mxu3  ;;  %v5246_v50 = vpop.f32.mrf.mxu1 }
 0xab9   :  { %v5195_v54 = vpop.f32.mrf.mxu0  ;;  %5798 = vmatpush.bf16.msra.mxu2 %v11549_v12 }
 0xaba   :  { %v5196_v47 = vadd.f32 %v5195_v54, %v14827_v62  ;;  %5749 = vmatpush.bf16.msra.mxu1 %v11537_v8 }
 0xabc   :  { %v5245_v4 = vadd.f32 %v5244_v39, %v5196_v47  ;;  %5390 = vmatmul.bf16.vlgmr.msra.gmra.mxu0 %v14716_v20  ;;  %10970 = vmatmul.lmr.bf16.gmra.16.mxu2  ;;  %v9762_v39 = vld [vmem:[%s15843_s0 + $0xb50] sm:$0xff] }
 0xabd   :  { %5537 = vmatmul.bf16.vlgmr.msra.gmra.mxu3 %v14716_v20  ;;  %5699 = vmatpush.bf16.msra.mxu0 %v11553_v14  ;;  %v9763_v20 = vld [vmem:[%s15843_s0 + $0xb58] sm:$0xff] }
 0xabe   :  { %v7365_v63 = vrot.slane %v5245_v4, 4  ;;  %5846 = vmatpush.bf16.msra.mxu3 %v11551_v13  ;;  %5799 = vmatpush.bf16.msra.mxu2 %v11602_v32  ;;  %v5640_v13 = vpack.c.bf16 %v9763_v20, %v9762_v39 }
 0xabf   :  { %v5295_v12 = vpop.f32.mrf.mxu2  ;;  %5750 = vmatpush.bf16.msra.mxu1 %v11590_v28 }
 0xac0   :  { %v7366_v8 = vmax.f32 %v5245_v4, %v7365_v63  ;;  %v5342_v62 = vpop.f32.mrf.mxu3  ;;  %v5249_v45 = vpop.f32.mrf.mxu1  ;;  %5672 = vxpose.xlu2.c.b16.cont [6/8] %v5640_v13, 128  ;;  %v16611_v4 = vld [vmem:[#allocation9_spill] sm:$0xff]  ;;  %v16612_v63 = vld [vmem:[#allocation8_spill] sm:$0xff]  ;;  %v9767_v12 = vld [vmem:[%s15843_s0 + $0xb78] sm:$0xff] }
 0xac1   :  { %v15027_v14 = vadd.f32 %v5342_v62, %v5293_v42  ;;  %v5197_v15 = vpop.f32.mrf.mxu0  ;;  %5700 = vmatpush.bf16.msra.mxu0 %v11592_v29  ;;  %v9780_v29 = vld [vmem:[%s15843_s0 + $0xbe0] sm:$0xff] }
 0xac2   :  { %v7367_v32 = vrot.slane %v7366_v8, 2  ;;  %5847 = vmatpush.bf16.msra.mxu3 %v11575_v22  ;;  %5800 = vmatpush.bf16.msra.mxu2 %v11657_v53  ;;  %v9781_v22 = vld [vmem:[%s15843_s0 + $0xbe8] sm:$0xff] }
 0xac3   :  { %5444 = vmatmul.bf16.gmra.mxu1 %v14726_v9  ;;  %v15049_v42 = vpack.c.bf16 %v9781_v22, %v9780_v29 }
 0xac4   :  { %v7368_v28 = vmax.f32 %v7366_v8, %v7367_v32  ;;  %10971 = vmatmul.lmr.bf16.gmra.16.mxu2  ;;  %5751 = vmatpush.bf16.msra.mxu1 %v11638_v43 }
 0xac5   :  { %5701 = vmatpush.bf16.msra.mxu0 %v16527_v61 }
 0xac6   :  { %v7369_v53 = vrot.slane %v7368_v28, 1  ;;  %5848 = vmatpush.bf16.msra.mxu3 %v11630_v40  ;;  %5801 = vmatpush.bf16.msra.mxu2 %v11694_v0  ;;  %v9765_v0 = vld [vmem:[%s15843_s0 + $0xb68] sm:$0xff] }
 0xac7   :  { %v5298_v9 = vpop.f32.mrf.mxu2  ;;  %11271 = vxpose.binary.xlu1.c.b16.cont [7/16] %v5633_v19, %v15049_v42, 128 }
 0xac8   :  { %v7370_v36 = vmax.f32 %v7368_v28, %v7369_v53  ;;  %v5344_v50 = vpop.f32.mrf.mxu3  ;;  %v5251_v54 = vpop.f32.mrf.mxu1  ;;  %5752 = vmatpush.bf16.msra.mxu1 %v11676_v58  ;;  %v9764_v58 = vld [vmem:[%s15843_s0 + $0xb60] sm:$0xff]  ;;  %v16613_v28 = vld [vmem:[#allocation78_spill] sm:$0xff] }
 0xac9   :  { %v5200_v43 = vpop.f32.mrf.mxu0  ;;  %5702 = vmatpush.bf16.msra.mxu0 %v11669_v56 }
 0xaca   :  { %v15055_v61 = vsel %vm7586_vm5, %v14625_v24, %v7370_v36  ;;  %5849 = vmatpush.bf16.msra.mxu3 %v11667_v55  ;;  %5802 = vmatpush.bf16.msra.mxu2 %v11731_v18  ;;  %v5641_v24 = vpack.c.bf16 %v9765_v0, %v9764_v58  ;;  %v16616_v43 = vld [vmem:[#allocation43_spill] sm:$0xff]  ;;  %v16617_v58 = vld [vmem:[#allocation6_spill] sm:$0xff] }
 0xacc   :  { %5395 = vmatmul.bf16.gmra.mxu0 %v14723_v57  ;;  %10972 = vmatmul.lmr.bf16.gmra.16.mxu2 }
 0xacd   :  { %5542 = vmatmul.bf16.gmra.mxu3 %v14723_v57  ;;  %5703 = vmatpush.bf16.msra.mxu0 %v11707_v6  ;;  %v9751_v6 = vld [vmem:[%s15843_s0 + $0xaf8] sm:$0xff] }
 0xace   :  { %5850 = vmatpush.bf16.msra.mxu3 %v11705_v5  ;;  %5753 = vmatpush.bf16.msra.mxu1 %v11713_v7  ;;  %v9750_v5 = vld [vmem:[%s15843_s0 + $0xaf0] sm:$0xff] }
 0xacf   :  { %v5300_v40 = vpop.f32.mrf.mxu2  ;;  %5803 = vmatpush.bf16.msra.mxu2 %v11767_v35  ;;  %v9782_v7 = vld [vmem:[%s15843_s0 + $0xbf0] sm:$0xff] }
 0xad0   :  { %v5347_v56 = vpop.f32.mrf.mxu3  ;;  %v5254_v55 = vpop.f32.mrf.mxu1  ;;  %5673 = vxpose.xlu2.c.b16.cont [7/8] %v5641_v24, 128 }
 0xad1   :  { %v5202_v18 = vpop.f32.mrf.mxu0  ;;  %5704 = vmatpush.bf16.msra.mxu0 %v11743_v23  ;;  %v5634_v23 = vpack.c.bf16 %v9751_v6, %v9750_v5  ;;  %v16618_v6 = vld [vmem:[#allocation52_spill] sm:$0xff] }
 0xad2   :  { %5851 = vmatpush.bf16.msra.mxu3 %v11741_v21  ;;  %5754 = vmatpush.bf16.msra.mxu1 %v11746_v25  ;;  %v9783_v21 = vld [vmem:[%s15843_s0 + $0xbf8] sm:$0xff] }
 0xad3   :  { %5449 = vmatmul.bf16.gmra.mxu1 %v14747_v48  ;;  %5804 = vmatpush.bf16.msra.mxu2 %v16121_v1  ;;  %v5650_v25 = vpack.c.bf16 %v9783_v21, %v9782_v7 }
 0xad4   :  { %10973 = vmatmul.lmr.bf16.gmra.16.mxu2 }
 0xad5   :  { %5705 = vmatpush.bf16.msra.mxu0 %v16124_v34 }
 0xad6   :  { %5852 = vmatpush.bf16.msra.mxu3 %v16123_v16  ;;  %5755 = vmatpush.bf16.msra.mxu1 %v16275_v46  ;;  %v9766_v46 = vld [vmem:[%s15843_s0 + $0xb70] sm:$0xff] }
 0xad7   :  { %v5303_v35 = vpop.f32.mrf.mxu2  ;;  %11272 = vxpose.binary.xlu1.c.b16.end [8/16] %v5634_v23, %v5650_v25, 128  ;;  %v5642_v62 = vpack.c.bf16 %v9767_v12, %v9766_v46  ;;  %v16622_v12 = vld [vmem:[#allocation13_spill] sm:$0xff] }
 0xad8   :  { %v5349_v57 = vpop.f32.mrf.mxu3  ;;  %v5256_v48 = vpop.f32.mrf.mxu1 }
 0xad9   :  { %10603 = vmatpush.lsf.bf16.msrb.mxu0 %v5634_v23  ;;  %v5205_v47 = vpop.f32.mrf.mxu0  ;;  %v16619_v48 = vld [vmem:[#allocation10_spill] sm:$0xff] }
 0xada   :  { %10839 = vmatpush.lsf.bf16.msrb.mxu1 %v5650_v25  ;;  %5853 = vmatpush.bf16.msra.mxu3 %v16612_v63  ;;  %v16620_v47 = vld [vmem:[#allocation11_spill] sm:$0xff] }
 0xadc   :  { %5400 = vmatmul.bf16.gmra.mxu0 %v14734_v49  ;;  %10974 = vmatmul.lmr.bf16.gmra.16.mxu2 }
 0xadd   :  { %5706 = vmatpush.bf16.msra.mxu0 %v16611_v4  ;;  %5547 = vmatmul.bf16.gmra.mxu3 %v14734_v49 }
 0xade   :  { %10840 = vmatpush.lsf.bf16.msrb.mxu1 %v15049_v42 }
 0xadf   :  { %v5305_v1 = vpop.f32.mrf.mxu2 }
 0xae0   :  { %v5352_v16 = vpop.f32.mrf.mxu3  ;;  %v5259_v34 = vpop.f32.mrf.mxu1  ;;  %5674 = vxpose.xlu2.c.b16.end [8/8] %v5642_v62, 128 }
 0xae1   :  { %10604 = vmatpush.lsf.bf16.msrb.mxu0 %v5633_v19  ;;  %v5207_v8 = vpop.f32.mrf.mxu0  ;;  %v16621_v34 = vld [vmem:[#allocation12_spill] sm:$0xff] }
 0xae2   :  { %10841 = vmatpush.lsf.bf16.msrb.mxu1 %v15008_v2 }
 0xae3   :  { %5454 = vmatmul.bf16.gmra.mxu1 %v14780_v37 }
 0xae4   :  { %10975 = vmatmul.lmr.bf16.gmra.16.mxu2 }
 0xae5   :  { %10605 = vmatpush.lsf.bf16.msrb.mxu0 %v15006_v38 }
 0xae6   :  { %10842 = vmatpush.lsf.bf16.msrb.mxu1 %v14981_v11 }
 0xae7   :  { %v5308_v49 = vpop.f32.mrf.mxu2 }
 0xae8   :  { %v5354_v45 = vpop.f32.mrf.mxu3  ;;  %v5261_v39 = vpop.f32.mrf.mxu1 }
 0xae9   :  { %10606 = vmatpush.lsf.bf16.msrb.mxu0 %v14979_v30  ;;  %v5210_v20 = vpop.f32.mrf.mxu0  ;;  %v16623_v45 = vld [vmem:[#allocation19_spill] sm:$0xff] }
 0xaea   :  { %10843 = vmatpush.lsf.bf16.msrb.mxu1 %v14955_v26  ;;  %v16624_v39 = vld [vmem:[#allocation15_spill] sm:$0xff] }
 0xaec   :  { %5405 = vmatmul.bf16.gmra.mxu0 %v14770_v44  ;;  %10976 = vmatmul.lmr.bf16.gmra.16.mxu2 }
 0xaed   :  { %10607 = vmatpush.lsf.bf16.msrb.mxu0 %v14953_v60  ;;  %5552 = vmatmul.bf16.gmra.mxu3 %v14770_v44 }
 0xaee   :  { %10844 = vmatpush.lsf.bf16.msrb.mxu1 %v14929_v3 }
 0xaef   :  { %v5310_v37 = vpop.f32.mrf.mxu2 }
 0xaf0   :  { %v5357_v30 = vpop.f32.mrf.mxu3  ;;  %v5264_v38 = vpop.f32.mrf.mxu1  ;;  %v16625_v37 = vld [vmem:[#allocation14_spill] sm:$0xff] }
 0xaf1   :  { %10608 = vmatpush.lsf.bf16.msrb.mxu0 %v14927_v10  ;;  %v5212_v15 = vpop.f32.mrf.mxu0  ;;  %v16626_v30 = vld [vmem:[#allocation16_spill] sm:$0xff] }
 0xaf2   :  { %10845 = vmatpush.lsf.bf16.msrb.mxu1 %v14903_v52 }
 0xaf3   :  { %5459 = vmatmul.bf16.gmra.mxu1 %v14791_v17 }
 0xaf4   :  { %10977 = vmatmul.lmr.bf16.gmra.16.mxu2 }
 0xaf5   :  { %10609 = vmatpush.lsf.bf16.msrb.mxu0 %v14901_v59 }
 0xaf6   :  { %10846 = vmatpush.lsf.bf16.msrb.mxu1 %v14877_v31 }
 0xaf7   :  { %v5313_v44 = vpop.f32.mrf.mxu2 }
 0xaf8   :  { %v5359_v10 = vpop.f32.mrf.mxu3  ;;  %v5266_v60 = vpop.f32.mrf.mxu1 }
 0xaf9   :  { %10610 = vmatpush.lsf.bf16.msrb.mxu0 %v14875_v33  ;;  %v5215_v13 = vpop.f32.mrf.mxu0  ;;  %v16627_v60 = vld [vmem:[#allocation25_spill] sm:$0xff] }
 0xafb   :  { %10611 = vllmr.16.mxu0 }
 0xafc   :  { %5410 = vmatmul.bf16.gmra.mxu0 %v14786_v41  ;;  %10978 = vmatmul.lmr.bf16.gmra.16.mxu2 }
 0xafd   :  { %10628 = vmatpush.lsf.bf16.msrb.mxu0 %v5650_v25  ;;  %5557 = vmatmul.bf16.gmra.mxu3 %v14786_v41  ;;  %v16614_v41 = vld [vmem:[#allocation38_spill] sm:$0xff] }
 0xaff   :  { %v5315_v17 = vpop.f32.mrf.mxu2 }
 0xb00   :  { %v5362_v59 = vpop.f32.mrf.mxu3  ;;  %v5269_v32 = vpop.f32.mrf.mxu1 }
 0xb01   :  { %10629 = vmatpush.lsf.bf16.msrb.mxu0 %v15049_v42  ;;  %v5217_v33 = vpop.f32.mrf.mxu0  ;;  %v16628_v59 = vld [vmem:[#allocation18_spill] sm:$0xff] }
 0xb02   :  { %10847 = vllmr.16.mxu1  ;;  %v16629_v33 = vld [vmem:[#allocation17_spill] sm:$0xff] }
 0xb03   :  { %5464 = vmatmul.bf16.gmra.mxu1 %v16613_v28  ;;  %v16630_v28 = vld [vmem:[#allocation22_spill] sm:$0xff] }
 0xb04   :  { %10979 = vmatmul.lmr.bf16.gmra.16.mxu2 }
 0xb05   :  { %10630 = vmatpush.lsf.bf16.msrb.mxu0 %v15008_v2 }
 0xb07   :  { %v5318_v51 = vpop.f32.mrf.mxu2 }
 0xb08   :  { %v5364_v27 = vpop.f32.mrf.mxu3  ;;  %v5271_v29 = vpop.f32.mrf.mxu1 }
 0xb09   :  { %10631 = vmatpush.lsf.bf16.msrb.mxu0 %v14981_v11  ;;  %v5220_v22 = vpop.f32.mrf.mxu0  ;;  %v16615_v11 = vld [vmem:[#allocation4_spill] sm:$0xff] }
 0xb0c   :  { %5415 = vmatmul.bf16.gmra.mxu0 %v16614_v41  ;;  %10980 = vmatmul.lmr.bf16.gmra.16.mxu2 }
 0xb0d   :  { %10632 = vmatpush.lsf.bf16.msrb.mxu0 %v14955_v26  ;;  %5562 = vmatmul.bf16.gmra.mxu3 %v16614_v41  ;;  %v16631_v41 = vld [vmem:[#allocation21_spill] sm:$0xff] }
 0xb0f   :  { %v5320_v53 = vpop.f32.mrf.mxu2 }
 0xb10   :  { %v5367_v2 = vpop.f32.mrf.mxu3  ;;  %v5274_v9 = vpop.f32.mrf.mxu1  ;;  %v16632_v53 = vld [vmem:[#allocation29_spill] sm:$0xff] }
 0xb11   :  { %10633 = vmatpush.lsf.bf16.msrb.mxu0 %v14929_v3  ;;  %v5222_v19 = vpop.f32.mrf.mxu0  ;;  %v15143_v21 = vpop.trf.xlu2  ;;  %v16633_v9 = vld [vmem:[#allocation20_spill] sm:$0xff] }
 0xb12   :  { %v16634_v19 = vld [vmem:[#allocation26_spill] sm:$0xff] }
 0xb13   :  { %5469 = vmatmul.bf16.gmra.mxu1 %v16615_v11  ;;  %v15132_v26 = vpop.trf.xlu1 }
 0xb14   :  { %10981 = vmatmul.lmr.bf16.gmra.16.mxu2 }
 0xb15   :  { %10634 = vmatpush.lsf.bf16.msrb.mxu0 %v14903_v52 }
 0xb17   :  { %v5323_v42 = vpop.f32.mrf.mxu2 }
 0xb18   :  { %v5369_v36 = vpop.f32.mrf.mxu3  ;;  %v5276_v50 = vpop.f32.mrf.mxu1 }
 0xb19   :  { %10635 = vmatpush.lsf.bf16.msrb.mxu0 %v14877_v31  ;;  %v5225_v54 = vpop.f32.mrf.mxu0  ;;  %v16635_v36 = vld [vmem:[#allocation3_spill] sm:$0xff] }
 0xb1b   :  { %v15136_v40 = vpop.trf.xlu1 }
 0xb1c   :  { %5420 = vmatmul.bf16.gmra.mxu0 %v16616_v43  ;;  %10982 = vmatmul.lmr.bf16.gmra.16.mxu2 }
 0xb1d   :  { %5567 = vmatmul.bf16.gmra.mxu3 %v16616_v43 }
 0xb1f   :  { %v5325_v3 = vpop.f32.mrf.mxu2 }
 0xb20   :  { %v5372_v52 = vpop.f32.mrf.mxu3  ;;  %v5279_v56 = vpop.f32.mrf.mxu1 }
 0xb21   :  { %v5227_v55 = vpop.f32.mrf.mxu0  ;;  %v15161_v15 = vpop.trf.xlu2  ;;  %v16636_v56 = vld [vmem:[#allocation24_spill] sm:$0xff] }
 0xb22   :  { %v16637_v55 = vld [vmem:[#allocation33_spill] sm:$0xff] }
 0xb23   :  { %5474 = vmatmul.bf16.gmra.mxu1 %v16617_v58  ;;  %v15139_v0 = vpop.trf.xlu1  ;;  %v16638_v58 = vld [vmem:[#allocation23_spill] sm:$0xff] }
 0xb24   :  { %10983 = vmatmul.lmr.bf16.gmra.16.mxu2 }
 0xb27   :  { %v5328_v31 = vpop.f32.mrf.mxu2 }
 0xb28   :  { %v5374_v18 = vpop.f32.mrf.mxu3  ;;  %v5281_v24 = vpop.f32.mrf.mxu1  ;;  %v16639_v31 = vld [vmem:[#allocation30_spill] sm:$0xff] }
 0xb29   :  { %v5230_v5 = vpop.f32.mrf.mxu0 }
 0xb2a   :  { %v16640_v5 = vld [vmem:[#allocation28_spill] sm:$0xff] }
 0xb2b   :  { %v15145_v57 = vpop.trf.xlu1 }
 0xb2c   :  { %5425 = vmatmul.bf16.gmra.mxu0 %v16618_v6  ;;  %10984 = vmatmul.lmr.bf16.gmra.16.mxu2 }
 0xb2d   :  { %5572 = vmatmul.bf16.gmra.mxu3 %v16618_v6 }
 0xb2f   :  { %v5330_v7 = vpop.f32.mrf.mxu2 }
 0xb30   :  { %v5377_v23 = vpop.f32.mrf.mxu3  ;;  %v5440_v25 = vpop.f32.mrf.mxu1  ;;  %v16641_v7 = vld [vmem:[#allocation27_spill] sm:$0xff] }
 0xb31   :  { %v5232_v35 = vpop.f32.mrf.mxu0  ;;  %v15185_v6 = vpop.trf.xlu2  ;;  %v16642_v23 = vld [vmem:[#allocation34_spill] sm:$0xff] }
 0xb33   :  { %5756 = vmatmul.bf16.vlgmr.msra.gmra.mxu1 %v15143_v21  ;;  %v15154_v62 = vpop.trf.xlu1 }
 0xb34   :  { %5805 = vmatmul.bf16.vlgmr.msra.gmra.mxu2 %v15132_v26  ;;  %5944 = vmatpush.bf16.msra.mxu1 %v16619_v48 }
 0xb35   :  { %5993 = vmatpush.bf16.msra.mxu2 %v16620_v47 }
 0xb37   :  { %v5489_v4 = vpop.f32.mrf.mxu2 }
 0xb38   :  { %v5379_v63 = vpop.f32.mrf.mxu3  ;;  %v5490_v1 = vadd.f32 %v5489_v4, %v5440_v25  ;;  %v5442_v16 = vpop.f32.mrf.mxu1  ;;  %5945 = vmatpush.bf16.msra.mxu1 %v16621_v34  ;;  %v16643_v25 = vld [vmem:[#allocation5_spill] sm:$0xff]  ;;  %v16645_v34 = vld [vmem:[#allocation32_spill] sm:$0xff] }
 0xb39   :  { %v5391_v46 = vpop.f32.mrf.mxu0  ;;  %5994 = vmatpush.bf16.msra.mxu2 %v16622_v12  ;;  %v16644_v4 = vld [vmem:[#allocation37_spill] sm:$0xff]  ;;  %v16647_v12 = vld [vmem:[#allocation39_spill] sm:$0xff] }
 0xb3a   :  { %v5392_v8 = vadd.f32 %v5391_v46, %v15027_v14  ;;  %v16646_v46 = vld [vmem:[#allocation31_spill] sm:$0xff] }
 0xb3b   :  { %v15169_v22 = vpop.trf.xlu1 }
 0xb3c   :  { %v7386_v49 = vrot.slane %v5392_v8, 4  ;;  %10612 = vmatmul.lmr.bf16.vlgmr.msra.gmra.16.mxu0  ;;  %5946 = vmatpush.bf16.msra.mxu1 %v16623_v45  ;;  %v16650_v45 = vld [vmem:[#allocation35_spill] sm:$0xff] }
 0xb3d   :  { %5854 = vmatmul.bf16.vlgmr.msra.gmra.mxu3 %v15136_v40  ;;  %5895 = vmatpush.bf16.msra.mxu0 %v16624_v39 }
 0xb3e   :  { %v7387_v20 = vmax.f32 %v5392_v8, %v7386_v49  ;;  %6042 = vmatpush.bf16.msra.mxu3 %v16625_v37  ;;  %5995 = vmatpush.bf16.msra.mxu2 %v16626_v30  ;;  %v16648_v8 = vld [vmem:[#allocation36_spill] sm:$0xff]  ;;  %v16649_v49 = vld [vmem:[#allocation42_spill] sm:$0xff] }
 0xb3f   :  { %v5491_v38 = vpop.f32.mrf.mxu2 }
 0xb40   :  { %v7388_v44 = vrot.slane %v7387_v20, 2  ;;  %v5538_v14 = vpop.f32.mrf.mxu3  ;;  %v5445_v10 = vpop.f32.mrf.mxu1  ;;  %5947 = vmatpush.bf16.msra.mxu1 %v16627_v60 }
 0xb41   :  { %v5539_v13 = vadd.f32 %v5538_v14, %v5490_v1  ;;  %v5393_v17 = vpop.f32.mrf.mxu0  ;;  %5896 = vmatpush.bf16.msra.mxu0 %v16628_v59  ;;  %v16652_v14 = vld [vmem:[#allocation40_spill] sm:$0xff]  ;;  %v15209_v60 = vpop.trf.xlu2 }
 0xb42   :  { %v7389_v32 = vmax.f32 %v7387_v20, %v7388_v44  ;;  %6043 = vmatpush.bf16.msra.mxu3 %v16629_v33  ;;  %5996 = vmatpush.bf16.msra.mxu2 %v16630_v28  ;;  %v16651_v44 = vld [vmem:[#allocation41_spill] sm:$0xff] }
 0xb43   :  { %v7407_v51 = vrot.slane %v5539_v13, 4  ;;  %5761 = vmatmul.bf16.gmra.mxu1 %v15161_v15  ;;  %v15193_v47 = vpop.trf.xlu1 }
 0xb44   :  { %v7390_v27 = vrot.slane %v7389_v32, 1  ;;  %10613 = vmatmul.lmr.bf16.gmra.16.mxu0  ;;  %5810 = vmatmul.bf16.gmra.mxu2 %v15139_v0 }
 0xb45   :  { %v7408_v29 = vmax.f32 %v5539_v13, %v7407_v51  ;;  %5897 = vmatpush.bf16.msra.mxu0 %v16631_v41  ;;  %5948 = vmatpush.bf16.msra.mxu1 %v16632_v53 }
 0xb46   :  { %v7391_v2 = vmax.f32 %v7389_v32, %v7390_v27  ;;  %6044 = vmatpush.bf16.msra.mxu3 %v16633_v9  ;;  %5997 = vmatpush.bf16.msra.mxu2 %v16634_v19 }
 0xb47   :  { %v7409_v11 = vrot.slane %v7408_v29, 2  ;;  %v5494_v42 = vpop.f32.mrf.mxu2 }
 0xb48   :  { %v15177_v50 = vsel %vm7586_vm5, %v16635_v36, %v7391_v2  ;;  %v5540_v54 = vpop.f32.mrf.mxu3  ;;  %v5447_v43 = vpop.f32.mrf.mxu1 }
 0xb49   :  { %v7410_v3 = vmax.f32 %v7408_v29, %v7409_v11  ;;  %v5396_v52 = vpop.f32.mrf.mxu0  ;;  %5898 = vmatpush.bf16.msra.mxu0 %v16636_v56  ;;  %5949 = vmatpush.bf16.msra.mxu1 %v16637_v55 }
 0xb4a   :  { %6045 = vmatpush.bf16.msra.mxu3 %v16638_v58  ;;  %5998 = vmatpush.bf16.msra.mxu2 %v16639_v31 }
 0xb4b   :  { %v7411_v18 = vrot.slane %v7410_v3, 1  ;;  %v15204_v38 = vpop.trf.xlu1 }
 0xb4c   :  { %10614 = vmatmul.lmr.bf16.gmra.16.mxu0 }
 0xb4d   :  { %v7412_v24 = vmax.f32 %v7410_v3, %v7411_v18  ;;  %5859 = vmatmul.bf16.gmra.mxu3 %v15145_v57  ;;  %5899 = vmatpush.bf16.msra.mxu0 %v16640_v5 }
 0xb4e   :  { %6046 = vmatpush.bf16.msra.mxu3 %v16641_v7  ;;  %5999 = vmatpush.bf16.msra.mxu2 %v16642_v23 }
 0xb4f   :  { %v15191_v35 = vsel %vm7586_vm5, %v16643_v25, %v7412_v24  ;;  %v5496_v48 = vpop.f32.mrf.mxu2  ;;  %5950 = vmatpush.bf16.msra.mxu1 %v16644_v4 }
 0xb50   :  { %v5543_v63 = vpop.f32.mrf.mxu3  ;;  %v5450_v1 = vpop.f32.mrf.mxu1 }
 0xb51   :  { %v5398_v16 = vpop.f32.mrf.mxu0  ;;  %5900 = vmatpush.bf16.msra.mxu0 %v16645_v34  ;;  %v15218_v53 = vpop.trf.xlu2 }
 0xb52   :  { %6047 = vmatpush.bf16.msra.mxu3 %v16646_v46  ;;  %6000 = vmatpush.bf16.msra.mxu2 %v16647_v12 }
 0xb53   :  { %5766 = vmatmul.bf16.gmra.mxu1 %v15185_v6  ;;  %v15212_v32 = vpop.trf.xlu1 }
 0xb54   :  { %10615 = vmatmul.lmr.bf16.gmra.16.mxu0  ;;  %5815 = vmatmul.bf16.gmra.mxu2 %v15154_v62 }
 0xb55   :  { %5901 = vmatpush.bf16.msra.mxu0 %v16648_v8  ;;  %5951 = vmatpush.bf16.msra.mxu1 %v16649_v49 }
 0xb56   :  { %6048 = vmatpush.bf16.msra.mxu3 %v16650_v45 }
 0xb57   :  { %v5499_v39 = vpop.f32.mrf.mxu2 }
 0xb58   :  { %v5545_v20 = vpop.f32.mrf.mxu3  ;;  %v5452_v37 = vpop.f32.mrf.mxu1 }
 0xb59   :  { %v5401_v30 = vpop.f32.mrf.mxu0  ;;  %5902 = vmatpush.bf16.msra.mxu0 %v16651_v44 }
 0xb5a   :  { %6049 = vmatpush.bf16.msra.mxu3 %v16652_v14 }
 0xb5b   :  { %v15216_v29 = vpop.trf.xlu1 }
 0xb5c   :  { %10616 = vmatmul.lmr.bf16.gmra.16.mxu0 }
 0xb5d   :  { %5864 = vmatmul.bf16.gmra.mxu3 %v15169_v22 }
 0xb5f   :  { %v5501_v10 = vpop.f32.mrf.mxu2 }
 0xb60   :  { %v5548_v13 = vpop.f32.mrf.mxu3  ;;  %v5455_v17 = vpop.f32.mrf.mxu1 }
 0xb61   :  { %v5403_v59 = vpop.f32.mrf.mxu0  ;;  %v15225_v52 = vpop.trf.xlu2 }
 0xb63   :  { %5771 = vmatmul.bf16.gmra.mxu1 %v15209_v60  ;;  %v15222_v42 = vpop.trf.xlu1 }
 0xb64   :  { %10617 = vmatmul.lmr.bf16.gmra.16.mxu0  ;;  %5820 = vmatmul.bf16.gmra.mxu2 %v15193_v47 }
 0xb67   :  { %v5504_v33 = vpop.f32.mrf.mxu2 }
 0xb68   :  { %v5550_v28 = vpop.f32.mrf.mxu3  ;;  %v5457_v51 = vpop.f32.mrf.mxu1 }
 0xb69   :  { %v5406_v27 = vpop.f32.mrf.mxu0 }
 0xb6a   :  { %v16653_v27 = vld [vmem:[#allocation46_spill] sm:$0xff] }
 0xb6b   :  { %v15227_v31 = vpop.trf.xlu1 }
 0xb6c   :  { %10618 = vmatmul.lmr.bf16.gmra.16.mxu0 }
 0xb6d   :  { %5869 = vmatmul.bf16.gmra.mxu3 %v15204_v38 }
 0xb6f   :  { %v5506_v41 = vpop.f32.mrf.mxu2 }
 0xb70   :  { %v5553_v2 = vpop.f32.mrf.mxu3  ;;  %v5460_v9 = vpop.f32.mrf.mxu1  ;;  %v16654_v41 = vld [vmem:[#allocation45_spill] sm:$0xff] }
 0xb71   :  { %v5408_v19 = vpop.f32.mrf.mxu0  ;;  %v15234_v48 = vpop.trf.xlu2 }
 0xb73   :  { %5776 = vmatmul.bf16.gmra.mxu1 %v15218_v53  ;;  %v15231_v23 = vpop.trf.xlu1 }
 0xb74   :  { %10619 = vmatmul.lmr.bf16.gmra.16.mxu0  ;;  %5825 = vmatmul.bf16.gmra.mxu2 %v15212_v32 }
 0xb77   :  { %v5509_v11 = vpop.f32.mrf.mxu2 }
 0xb78   :  { %v5555_v36 = vpop.f32.mrf.mxu3  ;;  %v5462_v54 = vpop.f32.mrf.mxu1 }
 0xb79   :  { %v5411_v43 = vpop.f32.mrf.mxu0  ;;  %v16655_v36 = vld [vmem:[#allocation48_spill] sm:$0xff]  ;;  %v16656_v54 = vld [vmem:[#allocation47_spill] sm:$0xff] }
 0xb7b   :  { %v15238_v16 = vpop.trf.xlu1 }
 0xb7c   :  { %10620 = vmatmul.lmr.bf16.gmra.16.mxu0 }
 0xb7d   :  { %5874 = vmatmul.bf16.gmra.mxu3 %v15216_v29 }
 0xb7f   :  { %v5511_v3 = vpop.f32.mrf.mxu2 }
 0xb80   :  { %v5558_v56 = vpop.f32.mrf.mxu3  ;;  %v5465_v55 = vpop.f32.mrf.mxu1 }
 0xb81   :  { %v5413_v58 = vpop.f32.mrf.mxu0  ;;  %v15241_v49 = vpop.trf.xlu2  ;;  %v16657_v56 = vld [vmem:[#allocation50_spill] sm:$0xff] }
 0xb82   :  { %v16658_v58 = vld [vmem:[#allocation49_spill] sm:$0xff] }
 0xb83   :  { %5781 = vmatmul.bf16.gmra.mxu1 %v15225_v52  ;;  %v15243_v39 = vpop.trf.xlu1 }
 0xb84   :  { %10621 = vmatmul.lmr.bf16.gmra.16.mxu0  ;;  %5830 = vmatmul.bf16.gmra.mxu2 %v15222_v42 }
 0xb87   :  { %v5514_v18 = vpop.f32.mrf.mxu2 }
 0xb88   :  { %v5560_v24 = vpop.f32.mrf.mxu3  ;;  %v5467_v5 = vpop.f32.mrf.mxu1  ;;  %v16659_v18 = vld [vmem:[#allocation51_spill] sm:$0xff] }
 0xb89   :  { %v5416_v7 = vpop.f32.mrf.mxu0  ;;  %v16660_v5 = vld [vmem:[#allocation57_spill] sm:$0xff] }
 0xb8b   :  { %v15247_v17 = vpop.trf.xlu1 }
 0xb8c   :  { %10622 = vmatmul.lmr.bf16.gmra.16.mxu0 }
 0xb8d   :  { %5879 = vmatmul.bf16.gmra.mxu3 %v15227_v31 }
 0xb8f   :  { %v5516_v25 = vpop.f32.mrf.mxu2 }
 0xb90   :  { %v5563_v4 = vpop.f32.mrf.mxu3  ;;  %v5470_v63 = vpop.f32.mrf.mxu1 }
 0xb91   :  { %v5418_v1 = vpop.f32.mrf.mxu0 }
 0xb92   :  { %v16661_v1 = vld [vmem:[#allocation54_spill] sm:$0xff] }
 0xb93   :  { %5786 = vmatmul.bf16.gmra.mxu1 %v15234_v48 }
 0xb94   :  { %10623 = vmatmul.lmr.bf16.gmra.16.mxu0  ;;  %5835 = vmatmul.bf16.gmra.mxu2 %v15231_v23 }
 0xb97   :  { %v5519_v34 = vpop.f32.mrf.mxu2 }
 0xb98   :  { %v5565_v46 = vpop.f32.mrf.mxu3  ;;  %v5472_v12 = vpop.f32.mrf.mxu1 }
 0xb99   :  { %v5421_v8 = vpop.f32.mrf.mxu0  ;;  %v16662_v46 = vld [vmem:[#allocation53_spill] sm:$0xff]  ;;  %v16663_v12 = vld [vmem:[#allocation58_spill] sm:$0xff] }
 0xb9c   :  { %10624 = vmatmul.lmr.bf16.gmra.16.mxu0 }
 0xb9d   :  { %5884 = vmatmul.bf16.gmra.mxu3 %v15238_v16 }
 0xb9f   :  { %v5521_v45 = vpop.f32.mrf.mxu2 }
 0xba0   :  { %v5568_v20 = vpop.f32.mrf.mxu3  ;;  %v5475_v37 = vpop.f32.mrf.mxu1  ;;  %v16664_v45 = vld [vmem:[#allocation61_spill] sm:$0xff] }
 0xba1   :  { %v5423_v30 = vpop.f32.mrf.mxu0  ;;  %v16665_v20 = vld [vmem:[#allocation56_spill] sm:$0xff] }
 0xba2   :  { %v16666_v30 = vld [vmem:[#allocation55_spill] sm:$0xff] }
 0xba3   :  { %5791 = vmatmul.bf16.gmra.mxu1 %v15241_v49 }
 0xba4   :  { %10625 = vmatmul.lmr.bf16.gmra.16.mxu0  ;;  %5840 = vmatmul.bf16.gmra.mxu2 %v15243_v39 }
 0xba7   :  { %v5524_v44 = vpop.f32.mrf.mxu2 }
 0xba8   :  { %v5570_v14 = vpop.f32.mrf.mxu3  ;;  %v5477_v10 = vpop.f32.mrf.mxu1  ;;  %v16667_v44 = vld [vmem:[#allocation62_spill] sm:$0xff] }
 0xba9   :  { %v5426_v13 = vpop.f32.mrf.mxu0 }
 0xbac   :  { %10626 = vmatmul.lmr.bf16.gmra.16.mxu0 }
 0xbad   :  { %5889 = vmatmul.bf16.gmra.mxu3 %v15247_v17 }
 0xbaf   :  { %v5526_v59 = vpop.f32.mrf.mxu2 }
 0xbb0   :  { %v5573_v33 = vpop.f32.mrf.mxu3  ;;  %v5757_v28 = vpop.f32.mrf.mxu1 }
 0xbb1   :  { %v5428_v51 = vpop.f32.mrf.mxu0  ;;  %v16668_v33 = vld [vmem:[#allocation65_spill] sm:$0xff] }
 0xbb2   :  { %v16669_v51 = vld [vmem:[#allocation60_spill] sm:$0xff] }
 0xbb3   :  { %10848 = vmatmul.lmr.bf16.vlgmr.msra.gmra.16.mxu1 }
 0xbb4   :  { %10627 = vmatmul.lmr.bf16.gmra.16.mxu0  ;;  %6001 = vmatmul.bf16.vlgmr.msra.gmra.mxu2 %v15136_v40 }
 0xbb5   :  { %6189 = vmatpush.bf16.msra.mxu2 %v16653_v27  ;;  %6140 = vmatpush.bf16.msra.mxu1 %v16654_v41  ;;  %v16670_v27 = vld [vmem:[#allocation44_spill] sm:$0xff] }
 0xbb7   :  { %v5806_v2 = vpop.f32.mrf.mxu2 }
 0xbb8   :  { %v5575_v9 = vpop.f32.mrf.mxu3  ;;  %v5759_v19 = vpop.f32.mrf.mxu1 }
 0xbb9   :  { %v5708_v11 = vpop.f32.mrf.mxu0  ;;  %6190 = vmatpush.bf16.msra.mxu2 %v16655_v36  ;;  %6141 = vmatpush.bf16.msra.mxu1 %v16656_v54  ;;  %v16672_v9 = vld [vmem:[#allocation66_spill] sm:$0xff]  ;;  %v16673_v19 = vld [vmem:[#allocation69_spill] sm:$0xff]  ;;  %v16675_v36 = vld [vmem:[#allocation63_spill] sm:$0xff] }
 0xbba   :  { %v5758_v43 = vadd.f32 %v5757_v28, %v5708_v11  ;;  %v16674_v11 = vld [vmem:[#allocation64_spill] sm:$0xff]  ;;  %v16676_v54 = vld [vmem:[#allocation70_spill] sm:$0xff] }
 0xbbb   :  { %10849 = vmatmul.lmr.bf16.gmra.16.mxu1  ;;  %10636 = vllmr.16.mxu0 }
 0xbbc   :  { %v5807_v3 = vadd.f32 %v5806_v2, %v5758_v43  ;;  %5903 = vmatmul.bf16.vlgmr.msra.gmra.mxu0 %v15143_v21  ;;  %v16671_v2 = vld [vmem:[#allocation59_spill] sm:$0xff] }
 0xbbd   :  { %6050 = vmatmul.bf16.vlgmr.msra.gmra.mxu3 %v15143_v21  ;;  %6091 = vmatpush.bf16.msra.mxu0 %v16657_v56 }
 0xbbe   :  { %v7492_v55 = vrot.slane %v5807_v3, 4  ;;  %6238 = vmatpush.bf16.msra.mxu3 %v16658_v58  ;;  %6191 = vmatpush.bf16.msra.mxu2 %v16659_v18  ;;  %v16678_v18 = vld [vmem:[#allocation68_spill] sm:$0xff] }
 0xbbf   :  { %v5808_v24 = vpop.f32.mrf.mxu2  ;;  %6142 = vmatpush.bf16.msra.mxu1 %v16660_v5  ;;  %v16680_v5 = vld [vmem:[#allocation74_spill] sm:$0xff] }
 0xbc0   :  { %v7493_v7 = vmax.f32 %v5807_v3, %v7492_v55  ;;  %v15261_v25 = vpop.f32.mrf.mxu3  ;;  %v5762_v4 = vpop.f32.mrf.mxu1  ;;  %v16677_v55 = vld [vmem:[#allocation73_spill] sm:$0xff]  ;;  %v16679_v24 = vld [vmem:[#allocation67_spill] sm:$0xff] }
 0xbc1   :  { %v5710_v63 = vpop.f32.mrf.mxu0  ;;  %6092 = vmatpush.bf16.msra.mxu0 %v16661_v1  ;;  %v16682_v4 = vld [vmem:[#allocation72_spill] sm:$0xff] }
 0xbc2   :  { %v7494_v34 = vrot.slane %v7493_v7, 2  ;;  %6239 = vmatpush.bf16.msra.mxu3 %v16662_v46  ;;  %6192 = vmatpush.bf16.msra.mxu2 %v16663_v12  ;;  %v16683_v63 = vld [vmem:[#allocation71_spill] sm:$0xff] }
 0xbc3   :  { %10850 = vmatmul.lmr.bf16.gmra.16.mxu1 }
 0xbc4   :  { %v7495_v8 = vmax.f32 %v7493_v7, %v7494_v34  ;;  %6006 = vmatmul.bf16.gmra.mxu2 %v15145_v57  ;;  %6143 = vmatpush.bf16.msra.mxu1 %v16664_v45  ;;  %v16681_v7 = vld [vmem:[#allocation76_spill] sm:$0xff]  ;;  %v16685_v45 = vld [vmem:[#allocation75_spill] sm:$0xff] }
 0xbc5   :  { %6093 = vmatpush.bf16.msra.mxu0 %v16665_v20 }
 0xbc6   :  { %v7496_v37 = vrot.slane %v7495_v8, 1  ;;  %6240 = vmatpush.bf16.msra.mxu3 %v16666_v30  ;;  %6193 = vmatpush.bf16.msra.mxu2 %v16667_v44 }
 0xbc7   :  { %v5811_v14 = vpop.f32.mrf.mxu2 }
 0xbc8   :  { %v7497_v10 = vmax.f32 %v7495_v8, %v7496_v37  ;;  %v5857_v13 = vpop.f32.mrf.mxu3  ;;  %v5764_v59 = vpop.f32.mrf.mxu1  ;;  %6144 = vmatpush.bf16.msra.mxu1 %v16668_v33  ;;  %v16684_v8 = vld [vmem:[#allocation77_spill] sm:$0xff] }
 0xbc9   :  { %v5713_v28 = vpop.f32.mrf.mxu0  ;;  %6094 = vmatpush.bf16.msra.mxu0 %v16669_v51 }
 0xbca   :  { %v15275_v41 = vsel %vm7591_vm6, %v16670_v27, %v7497_v10  ;;  %6241 = vmatpush.bf16.msra.mxu3 %v16671_v2  ;;  %6194 = vmatpush.bf16.msra.mxu2 %v16672_v9 }
 0xbcb   :  { %10851 = vmatmul.lmr.bf16.gmra.16.mxu1 }
 0xbcc   :  { %5908 = vmatmul.bf16.gmra.mxu0 %v15161_v15  ;;  %6145 = vmatpush.bf16.msra.mxu1 %v16673_v19 }
 0xbcd   :  { %6055 = vmatmul.bf16.gmra.mxu3 %v15161_v15  ;;  %6095 = vmatpush.bf16.msra.mxu0 %v16674_v11 }
 0xbce   :  { %6242 = vmatpush.bf16.msra.mxu3 %v16675_v36  ;;  %6195 = vmatpush.bf16.msra.mxu2 %v16676_v54 }
 0xbcf   :  { %v5813_v43 = vpop.f32.mrf.mxu2 }
 0xbd0   :  { %v5860_v3 = vpop.f32.mrf.mxu3  ;;  %v5767_v56 = vpop.f32.mrf.mxu1  ;;  %6146 = vmatpush.bf16.msra.mxu1 %v16677_v55 }
 0xbd1   :  { %v5715_v58 = vpop.f32.mrf.mxu0  ;;  %6096 = vmatpush.bf16.msra.mxu0 %v16678_v18 }
 0xbd2   :  { %6243 = vmatpush.bf16.msra.mxu3 %v16679_v24  ;;  %6196 = vmatpush.bf16.msra.mxu2 %v16680_v5 }
 0xbd3   :  { %10852 = vmatmul.lmr.bf16.gmra.16.mxu1 }
 0xbd4   :  { %6011 = vmatmul.bf16.gmra.mxu2 %v15169_v22  ;;  %6147 = vmatpush.bf16.msra.mxu1 %v16681_v7 }
 0xbd5   :  { %6097 = vmatpush.bf16.msra.mxu0 %v16682_v4 }
 0xbd6   :  { %6244 = vmatpush.bf16.msra.mxu3 %v16683_v63 }
 0xbd7   :  { %v5816_v1 = vpop.f32.mrf.mxu2 }
 0xbd8   :  { %v5862_v34 = vpop.f32.mrf.mxu3  ;;  %v5769_v46 = vpop.f32.mrf.mxu1 }
 0xbd9   :  { %v5718_v12 = vpop.f32.mrf.mxu0  ;;  %6098 = vmatpush.bf16.msra.mxu0 %v16684_v8 }
 0xbda   :  { %6245 = vmatpush.bf16.msra.mxu3 %v16685_v45 }
 0xbdb   :  { %10853 = vmatmul.lmr.bf16.gmra.16.mxu1 }
 0xbdc   :  { %5913 = vmatmul.bf16.gmra.mxu0 %v15185_v6 }
 0xbdd   :  { %6060 = vmatmul.bf16.gmra.mxu3 %v15185_v6 }
 0xbdf   :  { %v5818_v20 = vpop.f32.mrf.mxu2 }
 0xbe0   :  { %v5865_v37 = vpop.f32.mrf.mxu3  ;;  %v5772_v30 = vpop.f32.mrf.mxu1 }
 0xbe1   :  { %v5720_v44 = vpop.f32.mrf.mxu0 }
 0xbe3   :  { %10854 = vmatmul.lmr.bf16.gmra.16.mxu1 }
 0xbe4   :  { %6016 = vmatmul.bf16.gmra.mxu2 %v15204_v38 }
 0xbe7   :  { %v5821_v14 = vpop.f32.mrf.mxu2 }
 0xbe8   :  { %v5867_v10 = vpop.f32.mrf.mxu3  ;;  %v5774_v13 = vpop.f32.mrf.mxu1 }
 0xbe9   :  { %v5723_v59 = vpop.f32.mrf.mxu0 }
 0xbeb   :  { %10855 = vmatmul.lmr.bf16.gmra.16.mxu1 }
 0xbec   :  { %5918 = vmatmul.bf16.gmra.mxu0 %v15209_v60 }
 0xbed   :  { %6065 = vmatmul.bf16.gmra.mxu3 %v15209_v60 }
 0xbef   :  { %v5823_v33 = vpop.f32.mrf.mxu2 }
 0xbf0   :  { %v5870_v28 = vpop.f32.mrf.mxu3  ;;  %v5777_v51 = vpop.f32.mrf.mxu1 }
 0xbf1   :  { %v5725_v27 = vpop.f32.mrf.mxu0  ;;  %v9970_v28 = vld [vmem:[%s15845_s3 + $0x170] sm:$0xf]  ;;  %v10248_v51 = vld [vmem:[%s15845_s3 + $0x174] sm:$0xf0] }
 0xbf2   :  { %v9971_v27 = vor.u32 %v10248_v51, %v9970_v28  ;;  %v9898_v28 = vld [vmem:[%s15845_s3 + $0xe0] sm:$0xf]  ;;  %v10230_v51 = vld [vmem:[%s15845_s3 + $0xe4] sm:$0xf0] }
 0xbf3   :  { %10856 = vmatmul.lmr.bf16.gmra.16.mxu1 }
 0xbf4   :  { %6021 = vmatmul.bf16.gmra.mxu2 %v15216_v29 }
 0xbf7   :  { %v5826_v2 = vpop.f32.mrf.mxu2 }
 0xbf8   :  { %v5872_v9 = vpop.f32.mrf.mxu3  ;;  %v5779_v19 = vpop.f32.mrf.mxu1  ;;  %v9842_v2 = vld [vmem:[%s15845_s3 + $0x70] sm:$0xf] }
 0xbf9   :  { %v5728_v11 = vpop.f32.mrf.mxu0  ;;  %v10216_v9 = vld [vmem:[%s15845_s3 + $0x74] sm:$0xf0] }
 0xbfa   :  { %v10264_v19 = vld [vmem:[%s15845_s3 + $0x1f4] sm:$0xf0] }
 0xbfb   :  { %10857 = vmatmul.lmr.bf16.gmra.16.mxu1 }
 0xbfc   :  { %5923 = vmatmul.bf16.gmra.mxu0 %v15218_v53 }
 0xbfd   :  { %6070 = vmatmul.bf16.gmra.mxu3 %v15218_v53 }
 0xbff   :  { %v5828_v36 = vpop.f32.mrf.mxu2 }
 0xc00   :  { %v5875_v54 = vpop.f32.mrf.mxu3  ;;  %v5782_v43 = vpop.f32.mrf.mxu1 }
 0xc01   :  { %v5730_v3 = vpop.f32.mrf.mxu0  ;;  %v9906_v54 = vld [vmem:[%s15845_s3 + $0xf0] sm:$0xf]  ;;  %v10232_v43 = vld [vmem:[%s15845_s3 + $0xf4] sm:$0xf0] }
 0xc03   :  { %10858 = vmatmul.lmr.bf16.gmra.16.mxu1 }
 0xc04   :  { %6026 = vmatmul.bf16.gmra.mxu2 %v15227_v31 }
 0xc07   :  { %v5831_v56 = vpop.f32.mrf.mxu2 }
 0xc08   :  { %v5877_v55 = vpop.f32.mrf.mxu3  ;;  %v5784_v58 = vpop.f32.mrf.mxu1  ;;  %v9843_v56 = vor.u32 %v10216_v9, %v9842_v2  ;;  %v9899_v2 = vor.u32 %v10230_v51, %v9898_v28 }
 0xc09   :  { %v5733_v18 = vpop.f32.mrf.mxu0  ;;  %v9907_v55 = vor.u32 %v10232_v43, %v9906_v54  ;;  %v10260_v43 = vld [vmem:[%s15845_s3 + $0x1d4] sm:$0xf0] }
 0xc0b   :  { %10859 = vmatmul.lmr.bf16.gmra.16.mxu1 }
 0xc0c   :  { %5928 = vmatmul.bf16.gmra.mxu0 %v15225_v52 }
 0xc0d   :  { %6075 = vmatmul.bf16.gmra.mxu3 %v15225_v52 }
 0xc0f   :  { %v5833_v24 = vpop.f32.mrf.mxu2 }
 0xc10   :  { %v5880_v5 = vpop.f32.mrf.mxu3  ;;  %v5787_v7 = vpop.f32.mrf.mxu1 }
 0xc11   :  { %v5735_v4 = vpop.f32.mrf.mxu0 }
 0xc13   :  { %10860 = vmatmul.lmr.bf16.gmra.16.mxu1 }
 0xc14   :  { %6031 = vmatmul.bf16.gmra.mxu2 %v15238_v16 }
 0xc17   :  { %v5836_v63 = vpop.f32.mrf.mxu2 }
 0xc18   :  { %v5882_v1 = vpop.f32.mrf.mxu3  ;;  %v5789_v34 = vpop.f32.mrf.mxu1 }
 0xc19   :  { %v5738_v46 = vpop.f32.mrf.mxu0 }
 0xc1b   :  { %10861 = vmatmul.lmr.bf16.gmra.16.mxu1 }
 0xc1c   :  { %5933 = vmatmul.bf16.gmra.mxu0 %v15234_v48 }
 0xc1d   :  { %6080 = vmatmul.bf16.gmra.mxu3 %v15234_v48 }
 0xc1f   :  { %v5838_v12 = vpop.f32.mrf.mxu2 }
 0xc20   :  { %v5885_v8 = vpop.f32.mrf.mxu3  ;;  %v5792_v45 = vpop.f32.mrf.mxu1 }
 0xc21   :  { %v5740_v20 = vpop.f32.mrf.mxu0  ;;  %v10246_v8 = vld [vmem:[%s15845_s3 + $0x164] sm:$0xf0]  ;;  %v9834_v45 = vld [vmem:[%s15845_s3 + $0x60] sm:$0xf] }
 0xc23   :  { %10862 = vmatmul.lmr.bf16.gmra.16.mxu1 }
 0xc24   :  { %6036 = vmatmul.bf16.gmra.mxu2 %v15247_v17 }
 0xc27   :  { %v5841_v37 = vpop.f32.mrf.mxu2 }
 0xc28   :  { %v5887_v30 = vpop.f32.mrf.mxu3  ;;  %v5794_v44 = vpop.f32.mrf.mxu1  ;;  %v10262_v37 = vld [vmem:[%s15845_s3 + $0x1e4] sm:$0xf0] }
 0xc29   :  { %v5743_v14 = vpop.f32.mrf.mxu0 }
 0xc2b   :  { %10863 = vmatmul.lmr.bf16.gmra.16.mxu1 }
 0xc2c   :  { %5938 = vmatmul.bf16.gmra.mxu0 %v15241_v49 }
 0xc2d   :  { %6085 = vmatmul.bf16.gmra.mxu3 %v15241_v49 }
 0xc2f   :  { %v5843_v10 = vpop.f32.mrf.mxu2 }
 0xc30   :  { %v5890_v13 = vpop.f32.mrf.mxu3  ;;  %v5953_v59 = vpop.f32.mrf.mxu1 }
 0xc31   :  { %v5745_v33 = vpop.f32.mrf.mxu0 }
 0xc33   :  { %6148 = vmatmul.bf16.vlgmr.msra.gmra.mxu1 %v15136_v40 }
 0xc34   :  { %6197 = vmatmul.bf16.vlgmr.msra.gmra.mxu2 %v15143_v21  ;;  %v10034_v21 = vld [vmem:[%s15845_s3 + $0x1f0] sm:$0xf]  ;;  %8767 = vmatpush.bf16.msra.mxu1 %v9907_v55 }
 0xc35   :  { %8780 = vmatpush.bf16.msra.mxu2 %v9971_v27  ;;  %v10035_v18 = vor.u32 %v10264_v19, %v10034_v21 }
 0xc37   :  { %v6002_v40 = vpop.f32.mrf.mxu2 }
 0xc38   :  { %v5892_v11 = vpop.f32.mrf.mxu3  ;;  %v5955_v36 = vpop.f32.mrf.mxu1  ;;  %8768 = vmatpush.bf16.msra.mxu1 %v9899_v2  ;;  %v10240_v2 = vld [vmem:[%s15845_s3 + $0x134] sm:$0xf0] }
 0xc39   :  { %v5904_v3 = vpop.f32.mrf.mxu0  ;;  %v9954_v36 = vld [vmem:[%s15845_s3 + $0x150] sm:$0xf] }
 0xc3a   :  { %v5905_v58 = vadd.f32 %v5904_v3, %v15261_v25 }
 0xc3c   :  { %v5954_v24 = vadd.f32 %v5953_v59, %v5905_v58  ;;  %10637 = vmatmul.lmr.bf16.vlgmr.msra.gmra.16.mxu0 }
 0xc3d   :  { %6246 = vmatmul.bf16.vlgmr.msra.gmra.mxu3 %v15132_v26  ;;  %8754 = vmatpush.bf16.msra.mxu0 %v9843_v56  ;;  %v9962_v26 = vld [vmem:[%s15845_s3 + $0x160] sm:$0xf] }
 0xc3e   :  { %v7513_v5 = vrot.slane %v5954_v24, 4  ;;  %8793 = vmatpush.bf16.msra.mxu3 %v10035_v18  ;;  %v9963_v20 = vor.u32 %v10246_v8, %v9962_v26  ;;  %v10242_v26 = vld [vmem:[%s15845_s3 + $0x144] sm:$0xf0] }
 0xc3f   :  { %v6004_v7 = vpop.f32.mrf.mxu2 }
 0xc40   :  { %v7514_v4 = vmax.f32 %v5954_v24, %v7513_v5  ;;  %v6051_v63 = vpop.f32.mrf.mxu3  ;;  %v5958_v1 = vpop.f32.mrf.mxu1  ;;  %8781 = vmatpush.bf16.msra.mxu2 %v9963_v20  ;;  %v9890_v24 = vld [vmem:[%s15845_s3 + $0xd0] sm:$0xf]  ;;  %v10228_v5 = vld [vmem:[%s15845_s3 + $0xd4] sm:$0xf0] }
 0xc41   :  { %v15340_v34 = vadd.f32 %v6051_v63, %v6002_v40  ;;  %v5906_v46 = vpop.f32.mrf.mxu0 }
 0xc42   :  { %v7515_v12 = vrot.slane %v7514_v4, 2 }
 0xc43   :  { %6153 = vmatmul.bf16.gmra.mxu1 %v15145_v57  ;;  %v10214_v57 = vld [vmem:[%s15845_s3 + $0x64] sm:$0xf0] }
 0xc44   :  { %v7516_v25 = vmax.f32 %v7514_v4, %v7515_v12  ;;  %10638 = vmatmul.lmr.bf16.gmra.16.mxu0  ;;  %6202 = vmatmul.bf16.gmra.mxu2 %v15161_v15  ;;  %v10026_v15 = vld [vmem:[%s15845_s3 + $0x1e0] sm:$0xf]  ;;  %v9835_v44 = vor.u32 %v10214_v57, %v9834_v45  ;;  %v9891_v4 = vor.u32 %v10228_v5, %v9890_v24  ;;  %v10258_v45 = vld [vmem:[%s15845_s3 + $0x1c4] sm:$0xf0] }
 0xc45   :  { %v10027_v14 = vor.u32 %v10262_v37, %v10026_v15  ;;  %v10238_v24 = vld [vmem:[%s15845_s3 + $0x124] sm:$0xf0] }
 0xc46   :  { %v7517_v30 = vrot.slane %v7516_v25, 1  ;;  %8755 = vmatpush.bf16.msra.mxu0 %v9835_v44  ;;  %8769 = vmatpush.bf16.msra.mxu1 %v9891_v4  ;;  %v9882_v44 = vld [vmem:[%s15845_s3 + $0xc0] sm:$0xf] }
 0xc47   :  { %v6007_v10 = vpop.f32.mrf.mxu2  ;;  %8794 = vmatpush.bf16.msra.mxu3 %v10027_v14  ;;  %v10226_v14 = vld [vmem:[%s15845_s3 + $0xc4] sm:$0xf0] }
 0xc48   :  { %v7518_v13 = vmax.f32 %v7516_v25, %v7517_v30  ;;  %v6053_v59 = vpop.f32.mrf.mxu3  ;;  %v5960_v33 = vpop.f32.mrf.mxu1  ;;  %v9946_v25 = vld [vmem:[%s15845_s3 + $0x140] sm:$0xf] }
 0xc49   :  { %v5909_v27 = vpop.f32.mrf.mxu0  ;;  %v9947_v8 = vor.u32 %v10242_v26, %v9946_v25 }
 0xc4a   :  { %v15370_v9 = vsel %vm7591_vm6, %v15055_v61, %v7518_v13  ;;  %v10244_v61 = vld [vmem:[%s15845_s3 + $0x154] sm:$0xf0]  ;;  %v9883_v13 = vor.u32 %v10226_v14, %v9882_v44  ;;  %v9938_v27 = vld [vmem:[%s15845_s3 + $0x130] sm:$0xf] }
 0xc4b   :  { %v9955_v54 = vor.u32 %v10244_v61, %v9954_v36 }
 0xc4c   :  { %10639 = vmatmul.lmr.bf16.gmra.16.mxu0  ;;  %8770 = vmatpush.bf16.msra.mxu1 %v9883_v13 }
 0xc4d   :  { %6251 = vmatmul.bf16.gmra.mxu3 %v15139_v0  ;;  %v9826_v0 = vld [vmem:[%s15845_s3 + $0x50] sm:$0xf]  ;;  %8782 = vmatpush.bf16.msra.mxu2 %v9955_v54 }
 0xc4e   :  { %v9874_v54 = vld [vmem:[%s15845_s3 + $0xb0] sm:$0xf] }
 0xc4f   :  { %v6009_v40 = vpop.f32.mrf.mxu2 }
 0xc50   :  { %v6056_v21 = vpop.f32.mrf.mxu3  ;;  %v5963_v19 = vpop.f32.mrf.mxu1  ;;  %v9939_v40 = vor.u32 %v10240_v2, %v9938_v27  ;;  %v10202_v2 = vld [vmem:[%s15845_s3 + $0x4] sm:$0xf0] }
 0xc51   :  { %v5911_v11 = vpop.f32.mrf.mxu0  ;;  %8783 = vmatpush.bf16.msra.mxu2 %v9947_v8  ;;  %v10256_v21 = vld [vmem:[%s15845_s3 + $0x1b4] sm:$0xf0] }
 0xc53   :  { %6158 = vmatmul.bf16.gmra.mxu1 %v15169_v22  ;;  %v10212_v22 = vld [vmem:[%s15845_s3 + $0x54] sm:$0xf0] }
 0xc54   :  { %10640 = vmatmul.lmr.bf16.gmra.16.mxu0  ;;  %6207 = vmatmul.bf16.gmra.mxu2 %v15185_v6  ;;  %v10018_v6 = vld [vmem:[%s15845_s3 + $0x1d0] sm:$0xf]  ;;  %v9827_v3 = vor.u32 %v10212_v22, %v9826_v0  ;;  %v10224_v22 = vld [vmem:[%s15845_s3 + $0xb4] sm:$0xf0] }
 0xc55   :  { %v10019_v56 = vor.u32 %v10260_v43, %v10018_v6  ;;  %8784 = vmatpush.bf16.msra.mxu2 %v9939_v40  ;;  %v9875_v43 = vor.u32 %v10224_v22, %v9874_v54 }
 0xc56   :  { %8756 = vmatpush.bf16.msra.mxu0 %v9827_v3 }
 0xc57   :  { %v6012_v55 = vpop.f32.mrf.mxu2  ;;  %8795 = vmatpush.bf16.msra.mxu3 %v10019_v56  ;;  %8771 = vmatpush.bf16.msra.mxu1 %v9875_v43 }
 0xc58   :  { %v6058_v58 = vpop.f32.mrf.mxu3  ;;  %v5965_v18 = vpop.f32.mrf.mxu1 }
 0xc59   :  { %v5914_v7 = vpop.f32.mrf.mxu0  ;;  %v9930_v18 = vld [vmem:[%s15845_s3 + $0x120] sm:$0xf] }
 0xc5a   :  { %v9931_v5 = vor.u32 %v10238_v24, %v9930_v18  ;;  %v10254_v7 = vld [vmem:[%s15845_s3 + $0x1a4] sm:$0xf0] }
 0xc5c   :  { %10641 = vmatmul.lmr.bf16.gmra.16.mxu0  ;;  %8785 = vmatpush.bf16.msra.mxu2 %v9931_v5 }
 0xc5d   :  { %6256 = vmatmul.bf16.gmra.mxu3 %v15154_v62  ;;  %v9818_v62 = vld [vmem:[%s15845_s3 + $0x40] sm:$0xf] }
 0xc5f   :  { %v6014_v63 = vpop.f32.mrf.mxu2 }
 0xc60   :  { %v6061_v1 = vpop.f32.mrf.mxu3  ;;  %v5968_v46 = vpop.f32.mrf.mxu1 }
 0xc61   :  { %v5916_v12 = vpop.f32.mrf.mxu0  ;;  %v9866_v1 = vld [vmem:[%s15845_s3 + $0xa0] sm:$0xf]  ;;  %v10222_v46 = vld [vmem:[%s15845_s3 + $0xa4] sm:$0xf0] }
 0xc62   :  { %v9867_v25 = vor.u32 %v10222_v46, %v9866_v1  ;;  %v10229_v46 = vld [vmem:[%s15845_s3 + $0xe4] sm:$0xf] }
 0xc63   :  { %6163 = vmatmul.bf16.gmra.mxu1 %v15204_v38  ;;  %v10210_v38 = vld [vmem:[%s15845_s3 + $0x44] sm:$0xf0] }
 0xc64   :  { %10642 = vmatmul.lmr.bf16.gmra.16.mxu0  ;;  %6212 = vmatmul.bf16.gmra.mxu2 %v15209_v60  ;;  %v10010_v60 = vld [vmem:[%s15845_s3 + $0x1c0] sm:$0xf]  ;;  %v9819_v20 = vor.u32 %v10210_v38, %v9818_v62  ;;  %v9858_v38 = vld [vmem:[%s15845_s3 + $0x90] sm:$0xf] }
 0xc65   :  { %v10011_v57 = vor.u32 %v10258_v45, %v10010_v60  ;;  %8772 = vmatpush.bf16.msra.mxu1 %v9867_v25  ;;  %v10220_v60 = vld [vmem:[%s15845_s3 + $0x94] sm:$0xf0] }
 0xc66   :  { %8757 = vmatpush.bf16.msra.mxu0 %v9819_v20  ;;  %v9859_v45 = vor.u32 %v10220_v60, %v9858_v38  ;;  %v9850_v20 = vld [vmem:[%s15845_s3 + $0x80] sm:$0xf]  ;;  %v10215_v38 = vld [vmem:[%s15845_s3 + $0x74] sm:$0xf]  ;;  %v9844_v60 = vld [vmem:[%s15845_s3 + $0x78] sm:$0xf0] }
 0xc67   :  { %v6017_v15 = vpop.f32.mrf.mxu2  ;;  %8796 = vmatpush.bf16.msra.mxu3 %v10011_v57  ;;  %v10218_v57 = vld [vmem:[%s15845_s3 + $0x84] sm:$0xf0] }
 0xc68   :  { %v6063_v37 = vpop.f32.mrf.mxu3  ;;  %v5970_v30 = vpop.f32.mrf.mxu1 }
 0xc69   :  { %v5919_v10 = vpop.f32.mrf.mxu0  ;;  %8773 = vmatpush.bf16.msra.mxu1 %v9859_v45  ;;  %v9851_v37 = vor.u32 %v10218_v57, %v9850_v20 }
 0xc6a   :  { %v9794_v10 = vld [vmem:[%s15845_s3 + $0x10] sm:$0xf] }
 0xc6c   :  { %10643 = vmatmul.lmr.bf16.gmra.16.mxu0 }
 0xc6d   :  { %6261 = vmatmul.bf16.gmra.mxu3 %v15193_v47  ;;  %v9810_v47 = vld [vmem:[%s15845_s3 + $0x30] sm:$0xf]  ;;  %8774 = vmatpush.bf16.msra.mxu1 %v9851_v37 }
 0xc6f   :  { %v6019_v59 = vpop.f32.mrf.mxu2 }
 0xc70   :  { %v6066_v33 = vpop.f32.mrf.mxu3  ;;  %v5973_v28 = vpop.f32.mrf.mxu1  ;;  %v9922_v59 = vld [vmem:[%s15845_s3 + $0x110] sm:$0xf] }
 0xc71   :  { %v5921_v51 = vpop.f32.mrf.mxu0  ;;  %v10236_v33 = vld [vmem:[%s15845_s3 + $0x114] sm:$0xf0]  ;;  %v9986_v28 = vld [vmem:[%s15845_s3 + $0x190] sm:$0xf] }
 0xc72   :  { %v9923_v51 = vor.u32 %v10236_v33, %v9922_v59  ;;  %v10213_v59 = vld [vmem:[%s15845_s3 + $0x64] sm:$0xf]  ;;  %v9836_v33 = vld [vmem:[%s15845_s3 + $0x68] sm:$0xf0] }
 0xc73   :  { %6168 = vmatmul.bf16.gmra.mxu1 %v15216_v29  ;;  %v10208_v29 = vld [vmem:[%s15845_s3 + $0x34] sm:$0xf0] }
 0xc74   :  { %10644 = vmatmul.lmr.bf16.gmra.16.mxu0  ;;  %6217 = vmatmul.bf16.gmra.mxu2 %v15218_v53  ;;  %v10002_v53 = vld [vmem:[%s15845_s3 + $0x1b0] sm:$0xf]  ;;  %v9811_v19 = vor.u32 %v10208_v29, %v9810_v47 }
 0xc75   :  { %v10003_v11 = vor.u32 %v10256_v21, %v10002_v53  ;;  %8786 = vmatpush.bf16.msra.mxu2 %v9923_v51 }
 0xc76   :  { %8758 = vmatpush.bf16.msra.mxu0 %v9811_v19 }
 0xc77   :  { %v6022_v36 = vpop.f32.mrf.mxu2  ;;  %8797 = vmatpush.bf16.msra.mxu3 %v10003_v11 }
 0xc78   :  { %v6068_v61 = vpop.f32.mrf.mxu3  ;;  %v5975_v0 = vpop.f32.mrf.mxu1 }
 0xc79   :  { %v5924_v6 = vpop.f32.mrf.mxu0  ;;  %v15523_v61 = vld [vmem:[%s15846_s2] sm:$0xf] }
 0xc7a   :  { %v8337_v54 = vperm.slane %v15523_v61, 1 }
 0xc7c   :  { %10645 = vmatmul.lmr.bf16.gmra.16.mxu0  ;;  %v8345_v22 = vadd.f32 %v8337_v54, %v15370_v9  ;;  %v9908_v9 = vld [vmem:[%s15845_s3 + $0xf8] sm:$0xf0] }
 0xc7d   :  { %6266 = vmatmul.bf16.gmra.mxu3 %v15212_v32  ;;  %v9802_v32 = vld [vmem:[%s15845_s3 + $0x20] sm:$0xf] }
 0xc7e   :  { %vm8349_vm7 = vcmp.ge.f32.partialorder %v8345_v22, 0.0 }
 0xc7f   :  { %v6024_v3 = vpop.f32.mrf.mxu2 }
 0xc80   :  { %v6071_v56 = vpop.f32.mrf.mxu3  ;;  %v5978_v55 = vpop.f32.mrf.mxu1 }
 0xc81   :  { %v5926_v58 = vpop.f32.mrf.mxu0  ;;  %v8353_v56 = vmul.f32 0.2, %v8345_v22  ;;  %v9914_v55 = vld [vmem:[%s15845_s3 + $0x100] sm:$0xf] }
 0xc82   :  { %v10234_v58 = vld [vmem:[%s15845_s3 + $0x104] sm:$0xf0] }
 0xc83   :  { %6173 = vmatmul.bf16.gmra.mxu1 %v15227_v31  ;;  %v10206_v31 = vld [vmem:[%s15845_s3 + $0x24] sm:$0xf0]  ;;  %v9915_v18 = vor.u32 %v10234_v58, %v9914_v55  ;;  %v8357_v24 = vsel %vm8349_vm7, %v8345_v22, %v8353_v56  ;;  %v10221_v22 = vld [vmem:[%s15845_s3 + $0xa4] sm:$0xf] }
 0xc84   :  { %10646 = vmatmul.lmr.bf16.gmra.16.mxu0  ;;  %6222 = vmatmul.bf16.gmra.mxu2 %v15225_v52  ;;  %v9994_v52 = vld [vmem:[%s15845_s3 + $0x1a0] sm:$0xf]  ;;  %v9803_v4 = vor.u32 %v10206_v31, %v9802_v32  ;;  %v15550_v1 = vpack.c.bf16 %v8357_v24, %v8357_v24  ;;  %v9860_v24 = vld [vmem:[%s15845_s3 + $0x98] sm:$0xf0] }
 0xc85   :  { %v9995_v63 = vor.u32 %v10254_v7, %v9994_v52  ;;  %8787 = vmatpush.bf16.msra.mxu2 %v9915_v18 }
 0xc86   :  { %8759 = vmatpush.bf16.msra.mxu0 %v9803_v4  ;;  %v10250_v4 = vld [vmem:[%s15845_s3 + $0x184] sm:$0xf0] }
 0xc87   :  { %v6027_v12 = vpop.f32.mrf.mxu2  ;;  %8798 = vmatpush.bf16.msra.mxu3 %v9995_v63 }
 0xc88   :  { %v6073_v26 = vpop.f32.mrf.mxu3  ;;  %v5980_v62 = vpop.f32.mrf.mxu1 }
 0xc89   :  { %v5929_v8 = vpop.f32.mrf.mxu0  ;;  %v10227_v62 = vld [vmem:[%s15845_s3 + $0xd4] sm:$0xf] }
 0xc8a   :  { %v9892_v8 = vld [vmem:[%s15845_s3 + $0xd8] sm:$0xf0] }
 0xc8b   :  { %v9895_v37 = vor.u32 %v10227_v62, %v9892_v8  ;;  %v10205_v62 = vld [vmem:[%s15845_s3 + $0x24] sm:$0xf] }
 0xc8c   :  { %10647 = vmatmul.lmr.bf16.gmra.16.mxu0  ;;  %v10217_v8 = vld [vmem:[%s15845_s3 + $0x84] sm:$0xf] }
 0xc8d   :  { %6271 = vmatmul.bf16.gmra.mxu3 %v15222_v42  ;;  %v10204_v42 = vld [vmem:[%s15845_s3 + $0x14] sm:$0xf0] }
 0xc8e   :  { %v9795_v13 = vor.u32 %v10204_v42, %v9794_v10  ;;  %v9884_v10 = vld [vmem:[%s15845_s3 + $0xc8] sm:$0xf0] }
 0xc8f   :  { %v6029_v15 = vpop.f32.mrf.mxu2 }
 0xc90   :  { %v6076_v30 = vpop.f32.mrf.mxu3  ;;  %v5983_v44 = vpop.f32.mrf.mxu1  ;;  %8760 = vmatpush.bf16.msra.mxu0 %v9795_v13 }
 0xc91   :  { %v5931_v14 = vpop.f32.mrf.mxu0  ;;  %v9847_v44 = vor.u32 %v10215_v38, %v9844_v60  ;;  %v9804_v38 = vld [vmem:[%s15845_s3 + $0x28] sm:$0xf0]  ;;  %v10247_v60 = vld [vmem:[%s15845_s3 + $0x174] sm:$0xf] }
 0xc92   :  { %v10225_v14 = vld [vmem:[%s15845_s3 + $0xc4] sm:$0xf] }
 0xc93   :  { %6178 = vmatmul.bf16.gmra.mxu1 %v15238_v16  ;;  %v10252_v16 = vld [vmem:[%s15845_s3 + $0x194] sm:$0xf0]  ;;  %v9887_v51 = vor.u32 %v10225_v14, %v9884_v10  ;;  %v9807_v14 = vor.u32 %v10205_v62, %v9804_v38  ;;  %v10235_v38 = vld [vmem:[%s15845_s3 + $0x114] sm:$0xf] }
 0xc94   :  { %10648 = vmatmul.lmr.bf16.gmra.16.mxu0  ;;  %6227 = vmatmul.bf16.gmra.mxu2 %v15234_v48  ;;  %v9987_v27 = vor.u32 %v10252_v16, %v9986_v28  ;;  %v9786_v48 = vld [vmem:[%s15845_s3] sm:$0xf]  ;;  %v9839_v16 = vor.u32 %v10213_v59, %v9836_v33  ;;  %v9796_v33 = vld [vmem:[%s15845_s3 + $0x18] sm:$0xf0] }
 0xc95   :  { %v9787_v40 = vor.u32 %v10202_v2, %v9786_v48  ;;  %v10211_v2 = vld [vmem:[%s15845_s3 + $0x54] sm:$0xf] }
 0xc96   :  { %8799 = vmatpush.bf16.msra.mxu3 %v9987_v27  ;;  %v9876_v27 = vld [vmem:[%s15845_s3 + $0xb8] sm:$0xf0] }
 0xc97   :  { %v6032_v47 = vpop.f32.mrf.mxu2  ;;  %8761 = vmatpush.bf16.msra.mxu0 %v9787_v40 }
 0xc98   :  { %v6078_v29 = vpop.f32.mrf.mxu3  ;;  %v5985_v53 = vpop.f32.mrf.mxu1  ;;  %v9828_v47 = vld [vmem:[%s15845_s3 + $0x58] sm:$0xf0] }
 0xc99   :  { %v5934_v21 = vpop.f32.mrf.mxu0  ;;  %v9831_v54 = vor.u32 %v10211_v2, %v9828_v47  ;;  %v10263_v2 = vld [vmem:[%s15845_s3 + $0x1f4] sm:$0xf]  ;;  %v10036_v47 = vld [vmem:[%s15845_s3 + $0x1f8] sm:$0xf0] }
 0xc9c   :  { %10649 = vmatmul.lmr.bf16.gmra.16.mxu0 }
 0xc9d   :  { %6276 = vmatmul.bf16.gmra.mxu3 %v15231_v23 }
 0xc9f   :  { %v6034_v19 = vpop.f32.mrf.mxu2 }
 0xca0   :  { %v6081_v11 = vpop.f32.mrf.mxu3  ;;  %v5988_v36 = vpop.f32.mrf.mxu1 }
 0xca1   :  { %v5936_v0 = vpop.f32.mrf.mxu0 }
 0xca3   :  { %6183 = vmatmul.bf16.gmra.mxu1 %v15247_v17  ;;  %v8336_v17 = vperm.slane %v15523_v61, 0 }
 0xca4   :  { %10650 = vmatmul.lmr.bf16.gmra.16.mxu0  ;;  %6232 = vmatmul.bf16.gmra.mxu2 %v15241_v49  ;;  %v10231_v49 = vld [vmem:[%s15845_s3 + $0xf4] sm:$0xf] }
 0xca5   :  { %v8344_v32 = vadd.f32 %v8336_v17, %v15275_v41  ;;  %v9911_v7 = vor.u32 %v10231_v49, %v9908_v9  ;;  %v9900_v41 = vld [vmem:[%s15845_s3 + $0xe8] sm:$0xf0]  ;;  %v8338_v17 = vperm.slane %v15523_v61, 2  ;;  %v10219_v9 = vld [vmem:[%s15845_s3 + $0x94] sm:$0xf] }
 0xca6   :  { %v9903_v26 = vor.u32 %v10229_v46, %v9900_v41  ;;  %v9863_v46 = vor.u32 %v10219_v9, %v9860_v24  ;;  %v10259_v24 = vld [vmem:[%s15845_s3 + $0x1d4] sm:$0xf] }
 0xca7   :  { %v6037_v6 = vpop.f32.mrf.mxu2  ;;  %v8352_v25 = vmul.f32 0.2, %v8344_v32  ;;  %vm8348_vm8 = vcmp.ge.f32.partialorder %v8344_v32, 0.0 }
 0xca8   :  { %v6083_v23 = vpop.f32.mrf.mxu3  ;;  %v5990_v43 = vpop.f32.mrf.mxu1  ;;  %v9868_v6 = vld [vmem:[%s15845_s3 + $0xa8] sm:$0xf0] }
 0xca9   :  { %v5939_v3 = vpop.f32.mrf.mxu0  ;;  %v8356_v20 = vsel %vm8348_vm8, %v8344_v32, %v8352_v25  ;;  %v10209_v43 = vld [vmem:[%s15845_s3 + $0x44] sm:$0xf]  ;;  %v9871_v58 = vor.u32 %v10221_v22, %v9868_v6 }
 0xcaa   :  { %v15578_v13 = vpack.c.bf16 %v8356_v20, %v8356_v20  ;;  %v9820_v3 = vld [vmem:[%s15845_s3 + $0x48] sm:$0xf0] }
 0xcab   :  { %v9823_v49 = vor.u32 %v10209_v43, %v9820_v3  ;;  %v10261_v43 = vld [vmem:[%s15845_s3 + $0x1e4] sm:$0xf]  ;;  %v10028_v3 = vld [vmem:[%s15845_s3 + $0x1e8] sm:$0xf0] }
 0xcac   :  { %10651 = vmatmul.lmr.bf16.gmra.16.mxu0 }
 0xcad   :  { %6281 = vmatmul.bf16.gmra.mxu3 %v15243_v39  ;;  %v9978_v39 = vld [vmem:[%s15845_s3 + $0x180] sm:$0xf] }
 0xcae   :  { %v9979_v12 = vor.u32 %v10250_v4, %v9978_v39 }
 0xcaf   :  { %v6039_v5 = vpop.f32.mrf.mxu2 }
 0xcb0   :  { %v6086_v31 = vpop.f32.mrf.mxu3  ;;  %v6149_v52 = vpop.f32.mrf.mxu1  ;;  %8800 = vmatpush.bf16.msra.mxu3 %v9979_v12  ;;  %v10207_v5 = vld [vmem:[%s15845_s3 + $0x34] sm:$0xf] }
 0xcb1   :  { %v5941_v63 = vpop.f32.mrf.mxu0  ;;  %v9812_v31 = vld [vmem:[%s15845_s3 + $0x38] sm:$0xf0] }
 0xcb3   :  { %8775 = vmatmul.bf16.vlgmr.msra.gmra.mxu1 %v15550_v1 }
 0xcb4   :  { %10652 = vmatmul.lmr.bf16.gmra.16.mxu0  ;;  %8819 = vmatpush.bf16.msra.mxu1 %v9911_v7 }
 0xcb7   :  { %v6198_v45 = vpop.f32.mrf.mxu2 }
 0xcb8   :  { %v6088_v57 = vpop.f32.mrf.mxu3  ;;  %8820 = vmatpush.bf16.msra.mxu1 %v9903_v26  ;;  %v6151_v15 = vpop.f32.mrf.mxu1  ;;  %v6199_v40 = vadd.f32 %v6198_v45, %v6149_v52  ;;  %v9815_v26 = vor.u32 %v10207_v5, %v9812_v31  ;;  %v9972_v45 = vld [vmem:[%s15845_s3 + $0x178] sm:$0xf0]  ;;  %v10239_v5 = vld [vmem:[%s15845_s3 + $0x134] sm:$0xf] }
 0xcb9   :  { %v6100_v30 = vpop.f32.mrf.mxu0  ;;  %v8339_v15 = vperm.slane %v15523_v61, 3  ;;  %v9975_v10 = vor.u32 %v10247_v60, %v9972_v45  ;;  %v10245_v61 = vld [vmem:[%s15845_s3 + $0x164] sm:$0xf]  ;;  %v9940_v31 = vld [vmem:[%s15845_s3 + $0x138] sm:$0xf0] }
 0xcba   :  { %v6101_v42 = vadd.f32 %v6100_v30, %v15340_v34  ;;  %v10223_v34 = vld [vmem:[%s15845_s3 + $0xb4] sm:$0xf]  ;;  %v9924_v60 = vld [vmem:[%s15845_s3 + $0x118] sm:$0xf0] }
 0xcbb   :  { %v9879_v11 = vor.u32 %v10223_v34, %v9876_v27 }
 0xcbc   :  { %v7534_v28 = vrot.slane %v6101_v42, 4  ;;  %8762 = vmatmul.bf16.vlgmr.msra.gmra.mxu0 %v15578_v13  ;;  %8821 = vmatpush.bf16.msra.mxu1 %v9895_v37 }
 0xcbd   :  { %8806 = vmatpush.bf16.msra.mxu0 %v9847_v44 }
 0xcbe   :  { %v7535_v48 = vmax.f32 %v6101_v42, %v7534_v28  ;;  %v10203_v42 = vld [vmem:[%s15845_s3 + $0x14] sm:$0xf]  ;;  %v9964_v28 = vld [vmem:[%s15845_s3 + $0x168] sm:$0xf0] }
 0xcbf   :  { %v6200_v29 = vpop.f32.mrf.mxu2 }
 0xcc0   :  { %v7536_v53 = vrot.slane %v7535_v48, 2  ;;  %v6247_v21 = vpop.f32.mrf.mxu3  ;;  %8822 = vmatpush.bf16.msra.mxu1 %v9887_v51  ;;  %v6154_v19 = vpop.f32.mrf.mxu1  ;;  %v9799_v29 = vor.u32 %v10203_v42, %v9796_v33 }
 0xcc1   :  { %v6248_v36 = vadd.f32 %v6247_v21, %v6199_v40  ;;  %8807 = vmatpush.bf16.msra.mxu0 %v9839_v16  ;;  %v6102_v0 = vpop.f32.mrf.mxu0  ;;  %v9788_v21 = vld [vmem:[%s15845_s3 + $0x8] sm:$0xf0]  ;;  %v10243_v19 = vld [vmem:[%s15845_s3 + $0x154] sm:$0xf] }
 0xcc2   :  { %v7537_v23 = vmax.f32 %v7535_v48, %v7536_v53  ;;  %v10201_v53 = vld [vmem:[%s15845_s3 + $0x4] sm:$0xf] }
 0xcc3   :  { %v7555_v56 = vrot.slane %v6248_v36, 4  ;;  %v9791_v6 = vor.u32 %v10201_v53, %v9788_v21 }
 0xcc4   :  { %v7538_v55 = vrot.slane %v7537_v23, 1  ;;  %8823 = vmatpush.bf16.msra.mxu1 %v9879_v11 }
 0xcc5   :  { %v7556_v18 = vmax.f32 %v6248_v36, %v7555_v56  ;;  %8808 = vmatpush.bf16.msra.mxu0 %v9831_v54  ;;  %v9956_v36 = vld [vmem:[%s15845_s3 + $0x158] sm:$0xf0]  ;;  %v10039_v54 = vor.u32 %v10263_v2, %v10036_v47  ;;  %v9948_v56 = vld [vmem:[%s15845_s3 + $0x148] sm:$0xf0] }
 0xcc6   :  { %v7539_v32 = vmax.f32 %v7537_v23, %v7538_v55  ;;  %v9959_v23 = vor.u32 %v10243_v19, %v9956_v36 }
 0xcc7   :  { %v7557_v52 = vrot.slane %v7556_v18, 2  ;;  %v6203_v7 = vpop.f32.mrf.mxu2 }
 0xcc8   :  { %v7594_v39 = vsel %vm7591_vm6, %v15177_v50, %v7539_v32  ;;  %v6249_v4 = vpop.f32.mrf.mxu3  ;;  %8824 = vmatpush.bf16.msra.mxu1 %v9871_v58  ;;  %v6156_v63 = vpop.f32.mrf.mxu1  ;;  %v9852_v50 = vld [vmem:[%s15845_s3 + $0x88] sm:$0xf0]  ;;  %v10020_v32 = vld [vmem:[%s15845_s3 + $0x1d8] sm:$0xf0]  ;;  %v9943_v7 = vor.u32 %v10239_v5, %v9940_v31  ;;  %v10271_v31 = vld [vmem:[%s15848_s5 + $0x30] sm:$0xff] }
 0xcc9   :  { %v8346_v41 = vadd.f32 %v8338_v17, %v7594_v39  ;;  %v7558_v12 = vmax.f32 %v7556_v18, %v7557_v52  ;;  %8809 = vmatpush.bf16.msra.mxu0 %v9823_v49  ;;  %v6105_v25 = vpop.f32.mrf.mxu0  ;;  %v9855_v37 = vor.u32 %v10217_v8, %v9852_v50  ;;  %v10031_v18 = vor.u32 %v10261_v43, %v10028_v3  ;;  %v10257_v39 = vld [vmem:[%s15845_s3 + $0x1c4] sm:$0xf]  ;;  %v10012_v4 = vld [vmem:[%s15845_s3 + $0x1c8] sm:$0xf0]  ;;  %v10255_v8 = vld [vmem:[%s15845_s3 + $0x1b4] sm:$0xf] }
 0xcca   :  { %v10023_v52 = vor.u32 %v10259_v24, %v10020_v32  ;;  %v10237_v63 = vld [vmem:[%s15845_s3 + $0x124] sm:$0xf]  ;;  %v10015_v25 = vor.u32 %v10257_v39, %v10012_v4  ;;  %v10004_v50 = vld [vmem:[%s15845_s3 + $0x1b8] sm:$0xf0] }
 0xccb   :  { %v8354_v20 = vmul.f32 0.2, %v8346_v41  ;;  %v7559_v57 = vrot.slane %v7558_v12, 1  ;;  %vm8350_vm9 = vcmp.ge.f32.partialorder %v8346_v41, 0.0  ;;  %v10007_v45 = vor.u32 %v10255_v8, %v10004_v50  ;;  %v10272_v5 = vld [vmem:[%s15848_s5 + $0x38] sm:$0xff] }
 0xccc   :  { %8825 = vmatpush.bf16.msra.mxu1 %v9863_v46  ;;  %v9932_v46 = vld [vmem:[%s15845_s3 + $0x128] sm:$0xf0] }
 0xccd   :  { %v7560_v30 = vmax.f32 %v7558_v12, %v7559_v57  ;;  %8810 = vmatpush.bf16.msra.mxu0 %v9815_v26  ;;  %v8358_v44 = vsel %vm8350_vm9, %v8346_v41, %v8354_v20  ;;  %v9935_v62 = vor.u32 %v10237_v63, %v9932_v46  ;;  %v9927_v20 = vor.u32 %v10235_v38, %v9924_v60  ;;  %v10253_v57 = vld [vmem:[%s15845_s3 + $0x1a4] sm:$0xf]  ;;  %v10266_v60 = vld [vmem:[%s15848_s5 + $0x8] sm:$0xff] }
 0xcce   :  { %v15648_v59 = vpack.c.bf16 %v8358_v44, %v8358_v44  ;;  %v10269_v46 = vld [vmem:[%s15848_s5 + $0x20] sm:$0xff] }
 0xccf   :  { %v7595_v51 = vsel %vm7591_vm6, %v15191_v35, %v7560_v30  ;;  %v6205_v16 = vpop.f32.mrf.mxu2  ;;  %v9967_v35 = vor.u32 %v10245_v61, %v9964_v28  ;;  %v9916_v30 = vld [vmem:[%s15845_s3 + $0x108] sm:$0xf0]  ;;  %v10251_v28 = vld [vmem:[%s15845_s3 + $0x194] sm:$0xf] }
 0xcd0   :  { %v8347_v34 = vadd.f32 %v8339_v15, %v7595_v51  ;;  %v6252_v27 = vpop.f32.mrf.mxu3  ;;  %8788 = vmatmul.bf16.vlgmr.msra.gmra.mxu2 %v15648_v59  ;;  %8826 = vmatpush.bf16.msra.mxu1 %v9855_v37  ;;  %v6159_v48 = vpop.f32.mrf.mxu1  ;;  %v9996_v15 = vld [vmem:[%s15845_s3 + $0x1a8] sm:$0xf0]  ;;  %v10233_v37 = vld [vmem:[%s15845_s3 + $0x104] sm:$0xf]  ;;  %v9988_v51 = vld [vmem:[%s15845_s3 + $0x198] sm:$0xf0] }
 0xcd1   :  { %8811 = vmatpush.bf16.msra.mxu0 %v9807_v14  ;;  %8832 = vmatpush.bf16.msra.mxu2 %v9975_v10  ;;  %v6107_v40 = vpop.f32.mrf.mxu0  ;;  %v9999_v42 = vor.u32 %v10253_v57, %v9996_v15  ;;  %v9919_v61 = vor.u32 %v10233_v37, %v9916_v30  ;;  %v9991_v16 = vor.u32 %v10251_v28, %v9988_v51  ;;  %v9980_v27 = vld [vmem:[%s15845_s3 + $0x188] sm:$0xf0]  ;;  %v10279_v15 = vld [vmem:[%s15848_s5 + $0x70] sm:$0xff]  ;;  %v10277_v30 = vld [vmem:[%s15848_s5 + $0x60] sm:$0xff] }
 0xcd2   :  { %v8355_v11 = vmul.f32 0.2, %v8347_v34  ;;  %vm8351_vm10 = vcmp.ge.f32.partialorder %v8347_v34, 0.0  ;;  %v10278_v37 = vld [vmem:[%s15848_s5 + $0x68] sm:$0xff]  ;;  %v10275_v28 = vld [vmem:[%s15848_s5 + $0x50] sm:$0xff] }
 0xcd3   :  { %8827 = vmatmul.bf16.vlgmr.msra.gmra.mxu1 %v15550_v1  ;;  %v10241_v1 = vld [vmem:[%s15845_s3 + $0x144] sm:$0xf] }
 0xcd4   :  { %v8359_v0 = vsel %vm8351_vm10, %v8347_v34, %v8355_v11  ;;  %v9951_v9 = vor.u32 %v10241_v1, %v9948_v56  ;;  %v10249_v34 = vld [vmem:[%s15845_s3 + $0x184] sm:$0xf] }
 0xcd5   :  { %8812 = vmatpush.bf16.msra.mxu0 %v9799_v29  ;;  %8833 = vmatpush.bf16.msra.mxu2 %v9967_v35  ;;  %v15681_v22 = vpack.c.bf16 %v8359_v0, %v8359_v0  ;;  %v9983_v40 = vor.u32 %v10249_v34, %v9980_v27  ;;  %v10274_v34 = vld [vmem:[%s15848_s5 + $0x48] sm:$0xff] }
 0xcd7   :  { %8801 = vmatmul.bf16.vlgmr.msra.gmra.mxu3 %v15681_v22  ;;  %v6208_v55 = vpop.f32.mrf.mxu2 }
 0xcd8   :  { %8845 = vmatpush.bf16.msra.mxu3 %v10039_v54  ;;  %v6254_v58 = vpop.f32.mrf.mxu3  ;;  %v6161_v17 = vpop.f32.mrf.mxu1 }
 0xcd9   :  { %8813 = vmatpush.bf16.msra.mxu0 %v9791_v6  ;;  %8834 = vmatpush.bf16.msra.mxu2 %v9959_v23  ;;  %v6110_v49 = vpop.f32.mrf.mxu0 }
 0xcdc   :  { %8846 = vmatpush.bf16.msra.mxu3 %v10031_v18  ;;  %8814 = vmatmul.bf16.vlgmr.msra.gmra.mxu0 %v15578_v13 }
 0xcdd   :  { %8835 = vmatpush.bf16.msra.mxu2 %v9951_v9  ;;  %8994 = vmatpush.bf16.msra.mxu0 %v10272_v5 }
 0xcdf   :  { %v6210_v13 = vpop.f32.mrf.mxu2 }
 0xce0   :  { %8847 = vmatpush.bf16.msra.mxu3 %v10023_v52  ;;  %v6257_v41 = vpop.f32.mrf.mxu3  ;;  %v6164_v12 = vpop.f32.mrf.mxu1 }
 0xce1   :  { %8836 = vmatpush.bf16.msra.mxu2 %v9943_v7  ;;  %v6112_v26 = vpop.f32.mrf.mxu0  ;;  %8995 = vmatpush.bf16.msra.mxu0 %v10271_v31  ;;  %v10270_v7 = vld [vmem:[%s15848_s5 + $0x28] sm:$0xff]  ;;  %v11289_v31 = vld [vmem:[%s15847_s6] ss:$0 sm:$0xff] }
 0xce4   :  { %8848 = vmatpush.bf16.msra.mxu3 %v10015_v25  ;;  %v10268_v25 = vld [vmem:[%s15848_s5 + $0x18] sm:$0xff] }
 0xce5   :  { %8837 = vmatpush.bf16.msra.mxu2 %v9935_v62  ;;  %8996 = vmatpush.bf16.msra.mxu0 %v10270_v7  ;;  %v10267_v62 = vld [vmem:[%s15848_s5 + $0x10] sm:$0xff] }
 0xce7   :  { %v6213_v44 = vpop.f32.mrf.mxu2 }
 0xce8   :  { %8849 = vmatpush.bf16.msra.mxu3 %v10007_v45  ;;  %v6259_v14 = vpop.f32.mrf.mxu3  ;;  %v6166_v10 = vpop.f32.mrf.mxu1  ;;  %v10265_v45 = vld [vmem:[%s15848_s5] sm:$0xff] }
 0xce9   :  { %8838 = vmatpush.bf16.msra.mxu2 %v9927_v20  ;;  %v6115_v33 = vpop.f32.mrf.mxu0  ;;  %8997 = vmatpush.bf16.msra.mxu0 %v10269_v46  ;;  %v10280_v20 = vld [vmem:[%s15848_s5 + $0x78] sm:$0xff]  ;;  %v8428_v44 = vld [vmem:[%s15849_s4] sm:$0x3] }
 0xcea   :  { %9007 = vmatpush.bf16.msra.mxu1 %v10280_v20  ;;  %v10276_v14 = vld [vmem:[%s15848_s5 + $0x58] sm:$0xff]  ;;  %v8430_v10 = vperm.slane %v8428_v44, 0  ;;  %v11290_v46 = vld [vmem:[%s15850_s8] ss:$0 sm:$0xff] }
 0xcec   :  { %8850 = vmatpush.bf16.msra.mxu3 %v9999_v42 }
 0xced   :  { %8839 = vmatpush.bf16.msra.mxu2 %v9919_v61  ;;  %8998 = vmatpush.bf16.msra.mxu0 %v10268_v25 }
 0xcee   :  { %9008 = vmatpush.bf16.msra.mxu1 %v10279_v15 }
 0xcef   :  { %v6215_v48 = vpop.f32.mrf.mxu2 }
 0xcf0   :  { %8851 = vmatpush.bf16.msra.mxu3 %v9991_v16  ;;  %v6262_v2 = vpop.f32.mrf.mxu3  ;;  %8840 = vmatmul.bf16.vlgmr.msra.gmra.mxu2 %v15648_v59  ;;  %v6169_v47 = vpop.f32.mrf.mxu1 }
 0xcf1   :  { %v6117_v29 = vpop.f32.mrf.mxu0  ;;  %8999 = vmatpush.bf16.msra.mxu0 %v10267_v62 }
 0xcf2   :  { %9009 = vmatpush.bf16.msra.mxu1 %v10278_v37  ;;  %v10273_v29 = vld [vmem:[%s15848_s5 + $0x40] sm:$0xff] }
 0xcf4   :  { %8852 = vmatpush.bf16.msra.mxu3 %v9983_v40 }
 0xcf5   :  { %9000 = vmatpush.bf16.msra.mxu0 %v10266_v60 }
 0xcf6   :  { %9010 = vmatpush.bf16.msra.mxu1 %v10277_v30 }
 0xcf7   :  { %8853 = vmatmul.bf16.vlgmr.msra.gmra.mxu3 %v15681_v22  ;;  %v6218_v35 = vpop.f32.mrf.mxu2 }
 0xcf8   :  { %v6264_v53 = vpop.f32.mrf.mxu3  ;;  %v6171_v21 = vpop.f32.mrf.mxu1 }
 0xcf9   :  { %v6120_v19 = vpop.f32.mrf.mxu0  ;;  %9001 = vmatpush.bf16.msra.mxu0 %v10265_v45 }
 0xcfa   :  { %9011 = vmatpush.bf16.msra.mxu1 %v10276_v14 }
 0xcfe   :  { %9012 = vmatpush.bf16.msra.mxu1 %v10275_v28 }
 0xcff   :  { %v6220_v11 = vpop.f32.mrf.mxu2 }
 0xd00   :  { %v6267_v36 = vpop.f32.mrf.mxu3  ;;  %v6174_v0 = vpop.f32.mrf.mxu1  ;;  %v8431_v11 = vperm.slane %v8428_v44, 1 }
 0xd01   :  { %v6122_v54 = vpop.f32.mrf.mxu0 }
 0xd02   :  { %9013 = vmatpush.bf16.msra.mxu1 %v10274_v34 }
 0xd06   :  { %9014 = vmatpush.bf16.msra.mxu1 %v10273_v29 }
 0xd07   :  { %v6223_v6 = vpop.f32.mrf.mxu2 }
 0xd08   :  { %v6269_v23 = vpop.f32.mrf.mxu3  ;;  %v6176_v43 = vpop.f32.mrf.mxu1 }
 0xd09   :  { %v6125_v3 = vpop.f32.mrf.mxu0 }
 0xd0f   :  { %v6225_v1 = vpop.f32.mrf.mxu2 }
 0xd10   :  { %v6272_v59 = vpop.f32.mrf.mxu3  ;;  %v6179_v56 = vpop.f32.mrf.mxu1 }
 0xd11   :  { %v6127_v55 = vpop.f32.mrf.mxu0 }
 0xd12   :  { %v9028_v55 = vld [vmem:[%s15851_s7 + $0x38] sm:$0xff] }
 0xd13   :  { %9045 = vmatpush.msra.mxu2 %v9028_v55 }
 0xd17   :  { %v6228_v58 = vpop.f32.mrf.mxu2 }
 0xd18   :  { %v6274_v17 = vpop.f32.mrf.mxu3  ;;  %v6181_v18 = vpop.f32.mrf.mxu1  ;;  %v9027_v58 = vld [vmem:[%s15851_s7 + $0x30] sm:$0xff] }
 0xd19   :  { %v6130_v22 = vpop.f32.mrf.mxu0  ;;  %v9026_v17 = vld [vmem:[%s15851_s7 + $0x28] sm:$0xff]  ;;  %9046 = vmatpush.msra.mxu2 %v9027_v58  ;;  %v9025_v18 = vld [vmem:[%s15851_s7 + $0x20] sm:$0xff] }
 0xd1a   :  { %v9024_v22 = vld [vmem:[%s15851_s7 + $0x18] sm:$0xff] }
 0xd1b   :  { %9047 = vmatpush.msra.mxu2 %v9026_v17 }
 0xd1d   :  { %9048 = vmatpush.msra.mxu2 %v9025_v18 }
 0xd1f   :  { %v6230_v49 = vpop.f32.mrf.mxu2  ;;  %9049 = vmatpush.msra.mxu2 %v9024_v22 }
 0xd20   :  { %v6277_v9 = vpop.f32.mrf.mxu3  ;;  %v6184_v24 = vpop.f32.mrf.mxu1  ;;  %v9023_v49 = vld [vmem:[%s15851_s7 + $0x10] sm:$0xff] }
 0xd21   :  { %v6132_v32 = vpop.f32.mrf.mxu0  ;;  %9050 = vmatpush.msra.mxu2 %v9023_v49  ;;  %v9022_v24 = vld [vmem:[%s15851_s7 + $0x8] sm:$0xff] }
 0xd22   :  { %v9021_v32 = vld [vmem:[%s15851_s7] sm:$0xff] }
 0xd23   :  { %9051 = vmatpush.msra.mxu2 %v9022_v24 }
 0xd25   :  { %9052 = vmatpush.msra.mxu2 %v9021_v32 }
 0xd27   :  { %v6233_v52 = vpop.f32.mrf.mxu2 }
 0xd28   :  { %v6279_v39 = vpop.f32.mrf.mxu3  ;;  %v6186_v4 = vpop.f32.mrf.mxu1 }
 0xd29   :  { %v6135_v63 = vpop.f32.mrf.mxu0 }
 0xd2f   :  { %v6235_v13 = vpop.f32.mrf.mxu2 }
 0xd30   :  { %v6282_v41 = vpop.f32.mrf.mxu3  ;;  %v8776_v12 = vpop.f32.mrf.mxu1 }
 0xd31   :  { %v6137_v26 = vpop.f32.mrf.mxu0 }
 0xd38   :  { %v6284_v8 = vpop.f32.mrf.mxu3  ;;  %v8778_v50 = vpop.f32.mrf.mxu1 }
 0xd39   :  { %v8763_v38 = vpop.f32.mrf.mxu0 }
 0xd3a   :  { %v8764_v33 = vadd.f32 %v8763_v38, %v8430_v10 }
 0xd3c   :  { %v8777_v51 = vadd.f32 %v8776_v12, %v8764_v33 }
 0xd41   :  { %v8765_v57 = vpop.f32.mrf.mxu0 }
 0xd50   :  { %v8828_v42 = vpop.f32.mrf.mxu1 }
 0xd53   :  { %v8789_v61 = vpop.f32.mrf.mxu2 }
 0xd54   :  { %v8790_v27 = vadd.f32 %v8789_v61, %v8777_v51 }
 0xd58   :  { %v8830_v16 = vpop.f32.mrf.mxu1 }
 0xd59   :  { %v8815_v48 = vpop.f32.mrf.mxu0 }
 0xd5a   :  { %v8802_v2 = vpop.f32.mrf.mxu3  ;;  %v8816_v36 = vadd.f32 %v8815_v48, %v8431_v11 }
 0xd5b   :  { %v8803_v47 = vadd.f32 %v8802_v2, %v8790_v27  ;;  %v8791_v40 = vpop.f32.mrf.mxu2 }
 0xd5c   :  { %v8829_v54 = vadd.f32 %v8828_v42, %v8816_v36 }
 0xd5d   :  { %v8858_v35 = vmax.f32 %v8803_v47, 0.0 }
 0xd5f   :  { %v8860_v53 = vpack.c.bf16 %v8858_v35, %v8858_v35 }
 0xd61   :  { %v8817_v21 = vpop.f32.mrf.mxu0  ;;  %9002 = vmatmul.bf16.vlgmr.msra.gmra.mxu0 %v8860_v53 }
 0xd62   :  { %v8804_v19 = vpop.f32.mrf.mxu3 }
 0xd73   :  { %v8841_v0 = vpop.f32.mrf.mxu2 }
 0xd74   :  { %v8842_v6 = vadd.f32 %v8841_v0, %v8829_v54 }
 0xd7a   :  { %v8854_v23 = vpop.f32.mrf.mxu3 }
 0xd7b   :  { %v8855_v43 = vadd.f32 %v8854_v23, %v8842_v6  ;;  %v8843_v3 = vpop.f32.mrf.mxu2 }
 0xd7d   :  { %v8859_v1 = vmax.f32 %v8855_v43, 0.0 }
 0xd7f   :  { %v8861_v59 = vpack.c.bf16 %v8859_v1, %v8859_v1 }
 0xd81   :  { %9015 = vmatmul.bf16.vlgmr.msra.gmra.mxu1 %v8861_v59 }
 0xd82   :  { %v8856_v56 = vpop.f32.mrf.mxu3 }
 0xdde   :  { %v9003_v9 = vpop.f32.mrf.mxu0 }
 0xddf   :  { %v9004_v52 = vadd.f32 %v11289_v31, %v9003_v9 }
 0xde6   :  { %v9005_v5 = vpop.f32.mrf.mxu0 }
 0xdfe   :  { %v9016_v7 = vpop.f32.mrf.mxu1 }
 0xdff   :  { %v9017_v39 = vadd.f32 %v9016_v7, %v9004_v52 }
 0xe01   :  { %v9020_v4 = vmax.f32 %v9017_v39, 0.0 }
 0xe03   :  { %10104 = vmatmul.msk.f32.vlgmr.msra.gmra.mxu2 %vm9033_vm11, %v9020_v4 }
 0xe06   :  { %v9018_v63 = vpop.f32.mrf.mxu1 }
 0xe86   :  { %v9054_v13 = vpop.f32.mrf.mxu2 }
 0xe87   :  { %v9055_v41 = vadd.f32 %v11290_v46, %v9054_v13 }
 0xe89   :  { %11291 = vtanh.f32 %v9055_v41 }
 0xe8f   :  { %v11292_v12 = vpop.eup %11291 }
 0xe90   :  { %9059 = vst.msk [vmem:[%s15852_s9] sm:$0xff] %vm9058_vm12, %v11292_v12 }

</bundles_post_ra>
